<compile_context>
chip_gen: v5e
topology: v5e:2x2
jax: 0.10.0
libtpu: 0.0.40
codegen_flags: <defaults>
</compile_context>

<pallas_src>
import jax
import jax.numpy as jnp
from jax import lax
from jax.experimental import pallas as pl
from jax.experimental.pallas import tpu as pltpu

HIDDEN = 50   # nn.LSTM(hidden_size=50)
HP = 128      # hidden padded so each gate occupies one full 128-lane block


def _lstm_kernel(xg1_ref, whh1_ref, wih2_ref, whh2_ref, b2_ref,
                 wfc_ref, bfc_ref, out_ref):
    T, B, _ = xg1_ref.shape
    Hp = whh1_ref.shape[0]

    # Hoist loop-invariant loads / broadcasts out of the recurrence
    # (JAX does not CSE broadcast_in_dim inside the loop body).
    whh1 = whh1_ref[...]                                  # (Hp, 4Hp)
    wih2 = wih2_ref[...]                                  # (Hp, 4Hp)
    whh2 = whh2_ref[...]                                  # (Hp, 4Hp)
    b2 = jnp.broadcast_to(b2_ref[...], (B, 4 * Hp))       # (B, 4Hp)

    def gates_to_hc(gates, c_prev):
        # PyTorch gate order: i, f, g, o — each gate is one aligned lane block.
        i = jax.nn.sigmoid(gates[:, 0 * Hp:1 * Hp])
        f = jax.nn.sigmoid(gates[:, 1 * Hp:2 * Hp])
        g = jnp.tanh(gates[:, 2 * Hp:3 * Hp])
        o = jax.nn.sigmoid(gates[:, 3 * Hp:4 * Hp])
        c_new = f * c_prev + i * g
        h_new = o * jnp.tanh(c_new)
        return h_new, c_new

    def step(t, carry):
        h1, c1, h2, c2 = carry
        # Layer-2 hidden recurrence depends only on last step's h2 — keeping it
        # as a separate dot leaves it off the serial critical path so the
        # scheduler can overlap it with layer-1 work.
        rec2 = jnp.dot(h2, whh2, preferred_element_type=jnp.float32)
        # Layer 1: x_t @ W_ih + b1 was precomputed (input_size == 1), so the
        # only matmul on the serial path here is the hidden recurrence.
        gates1 = xg1_ref[t] + jnp.dot(h1, whh1,
                                      preferred_element_type=jnp.float32)
        h1n, c1n = gates_to_hc(gates1, c1)
        # Layer 2: input projection of the fresh h1, then combine.
        gates2 = (jnp.dot(h1n, wih2, preferred_element_type=jnp.float32)
                  + rec2 + b2)
        h2n, c2n = gates_to_hc(gates2, c2)
        return (h1n, c1n, h2n, c2n)

    zeros = jnp.zeros((B, Hp), jnp.float32)
    _, _, h2, _ = lax.fori_loop(0, T, step, (zeros, zeros, zeros, zeros),
                                unroll=True)

    # fc(lstm_out[:, -1, :]); padded rows of wfc are zero so padding cannot leak.
    out_ref[...] = (jnp.dot(h2, wfc_ref[...], preferred_element_type=jnp.float32)
                    + bfc_ref[...])


def _pad_gate_cols(w, H, Hp):
    """w: (K, 4H) with gate order [i|f|g|o] -> (K, 4Hp), each gate zero-padded."""
    blocks = [jnp.pad(w[:, g * H:(g + 1) * H], ((0, 0), (0, Hp - H)))
              for g in range(4)]
    return jnp.concatenate(blocks, axis=1)


def _pad_rows(w, Hp):
    return jnp.pad(w, ((0, Hp - w.shape[0]), (0, 0)))


@jax.jit
def lstm_stock_predictor(x, params):
    """x: (B, T, 1) float32 (PyTorch batch_first). Returns (B, 1)."""
    B, T, _ = x.shape
    H, Hp = HIDDEN, HP

    x_tm = jnp.transpose(x, (1, 0, 2))                     # (T, B, 1) time-major

    # ---- layout plumbing (runs once per call, off the serial critical path) ----
    # Layer-1 input projection + bias: input_size == 1, so x_t @ W_ih^T + b is a
    # broadcast multiply-add; precompute it for all timesteps at once.
    wih1 = _pad_gate_cols(params["w_ih_l0"].T, H, Hp)                      # (1, 4Hp)
    b1 = _pad_gate_cols(
        (params["b_ih_l0"] + params["b_hh_l0"]).reshape(1, -1), H, Hp)     # (1, 4Hp)
    xg1 = x_tm * wih1 + b1                                                 # (T, B, 4Hp)

    whh1 = _pad_rows(_pad_gate_cols(params["w_hh_l0"].T, H, Hp), Hp)       # (Hp, 4Hp)
    wih2 = _pad_rows(_pad_gate_cols(params["w_ih_l1"].T, H, Hp), Hp)       # (Hp, 4Hp)
    whh2 = _pad_rows(_pad_gate_cols(params["w_hh_l1"].T, H, Hp), Hp)       # (Hp, 4Hp)
    b2 = _pad_gate_cols(
        (params["b_ih_l1"] + params["b_hh_l1"]).reshape(1, -1), H, Hp)     # (1, 4Hp)

    wfc = _pad_rows(params["fc_w"].T, Hp)                                  # (Hp, 1)
    bfc = params["fc_b"].reshape(1, 1)                                     # (1, 1)

    def full_spec(shape):
        n = len(shape)
        return pl.BlockSpec(shape, lambda i, _n=n: (0,) * _n)

    out = pl.pallas_call(
        _lstm_kernel,
        out_shape=jax.ShapeDtypeStruct((B, 1), jnp.float32),
        grid_spec=pltpu.PrefetchScalarGridSpec(
            num_scalar_prefetch=0,
            grid=(1,),
            in_specs=[full_spec(xg1.shape),
                      full_spec(whh1.shape),
                      full_spec(wih2.shape),
                      full_spec(whh2.shape),
                      full_spec(b2.shape),
                      full_spec(wfc.shape),
                      full_spec(bfc.shape)],
            out_specs=pl.BlockSpec((B, 1), lambda i: (0, 0)),
        ),
        compiler_params=pltpu.CompilerParams(
            dimension_semantics=("arbitrary",)),
    )(xg1, whh1, wih2, whh2, b2, wfc, bfc)
    return out


def _reference(x, params):
    """Pure-JAX reference reproducing PyTorch nn.LSTM(2 layers) + Linear."""
    B, T, _ = x.shape
    H = HIDDEN

    def cell(inp, h, c, wih, whh, bih, bhh):
        gates = inp @ wih.T + bih + h @ whh.T + bhh
        i = jax.nn.sigmoid(gates[:, 0 * H:1 * H])
        f = jax.nn.sigmoid(gates[:, 1 * H:2 * H])
        g = jnp.tanh(gates[:, 2 * H:3 * H])
        o = jax.nn.sigmoid(gates[:, 3 * H:4 * H])
        c = f * c + i * g
        h = o * jnp.tanh(c)
        return h, c

    h1 = jnp.zeros((B, H), jnp.float32)
    c1 = jnp.zeros((B, H), jnp.float32)
    h2 = jnp.zeros((B, H), jnp.float32)
    c2 = jnp.zeros((B, H), jnp.float32)
    for t in range(T):
        xt = x[:, t, :]
        h1, c1 = cell(xt, h1, c1, params["w_ih_l0"], params["w_hh_l0"],
                      params["b_ih_l0"], params["b_hh_l0"])
        h2, c2 = cell(h1, h2, c2, params["w_ih_l1"], params["w_hh_l1"],
                      params["b_ih_l1"], params["b_hh_l1"])
    return h2 @ params["fc_w"].T + params["fc_b"]


def _init_params(key):
    """Deterministic init matching the shapes of the PyTorch module."""
    H = HIDDEN
    k = 1.0 / jnp.sqrt(jnp.float32(H))
    names_shapes = [
        ("w_ih_l0", (4 * H, 1)),
        ("w_hh_l0", (4 * H, H)),
        ("b_ih_l0", (4 * H,)),
        ("b_hh_l0", (4 * H,)),
        ("w_ih_l1", (4 * H, H)),
        ("w_hh_l1", (4 * H, H)),
        ("b_ih_l1", (4 * H,)),
        ("b_hh_l1", (4 * H,)),
        ("fc_w", (1, H)),
        ("fc_b", (1,)),
    ]
    params = {}
    keys = jax.random.split(key, len(names_shapes))
    for (name, shape), kk in zip(names_shapes, keys):
        params[name] = jax.random.uniform(kk, shape, jnp.float32, -k, k)
    return params


if __name__ == "__main__":
    key = jax.random.PRNGKey(0)
    k_x, k_p = jax.random.split(key)

    B, T = 2, 8
    x = jax.random.normal(k_x, (B, T, 1), jnp.float32)
    params = _init_params(k_p)

    out = lstm_stock_predictor(x, params)
    out = jax.block_until_ready(out)

    ref = _reference(x, params)
    assert out.shape == (B, 1), out.shape
    assert jnp.allclose(out, ref, atol=1e-5, rtol=1e-5), (out, ref)

    print("KERNEL_OK")
</pallas_src>

<mosaic_0001>
module attributes {stable_mosaic.version = 11 : i64} {
  func.func @_lstm_kernel(%arg0: i32, %arg1: memref<8x2x512xf32, #tpu.memory_space<vmem>>, %arg2: memref<128x512xf32, #tpu.memory_space<vmem>>, %arg3: memref<128x512xf32, #tpu.memory_space<vmem>>, %arg4: memref<128x512xf32, #tpu.memory_space<vmem>>, %arg5: memref<1x512xf32, #tpu.memory_space<vmem>>, %arg6: memref<128x1xf32, #tpu.memory_space<vmem>>, %arg7: memref<1x1xf32, #tpu.memory_space<vmem>>, %arg8: memref<2x1xf32, #tpu.memory_space<vmem>>) attributes {dimension_semantics = [#tpu.dimension_semantics<arbitrary>], iteration_bounds = array<i64: 1>, scalar_prefetch = 0 : i64, scratch_operands = 0 : i64, tpu.core_type = #tpu.core_type<tc>, window_params = [{pipeline_mode = #tpu.pipeline_mode<synchronous>, transform_indices = @transform_0, window_bounds = array<i64: 8, 2, 512>}, {pipeline_mode = #tpu.pipeline_mode<synchronous>, transform_indices = @transform_1, window_bounds = array<i64: 128, 512>}, {pipeline_mode = #tpu.pipeline_mode<synchronous>, transform_indices = @transform_2, window_bounds = array<i64: 128, 512>}, {pipeline_mode = #tpu.pipeline_mode<synchronous>, transform_indices = @transform_3, window_bounds = array<i64: 128, 512>}, {pipeline_mode = #tpu.pipeline_mode<synchronous>, transform_indices = @transform_4, window_bounds = array<i64: 1, 512>}, {pipeline_mode = #tpu.pipeline_mode<synchronous>, transform_indices = @transform_5, window_bounds = array<i64: 128, 1>}, {pipeline_mode = #tpu.pipeline_mode<synchronous>, transform_indices = @transform_6, window_bounds = array<i64: 1, 1>}, {pipeline_mode = #tpu.pipeline_mode<synchronous>, transform_indices = @transform_7, window_bounds = array<i64: 2, 1>}]} {
    %c0 = arith.constant 0 : index
    %c0_0 = arith.constant 0 : index
    %0 = vector.load %arg2[%c0, %c0_0] : memref<128x512xf32, #tpu.memory_space<vmem>>, vector<128x512xf32>
    %c0_1 = arith.constant 0 : index
    %c0_2 = arith.constant 0 : index
    %1 = vector.load %arg3[%c0_1, %c0_2] : memref<128x512xf32, #tpu.memory_space<vmem>>, vector<128x512xf32>
    %c0_3 = arith.constant 0 : index
    %c0_4 = arith.constant 0 : index
    %2 = vector.load %arg4[%c0_3, %c0_4] : memref<128x512xf32, #tpu.memory_space<vmem>>, vector<128x512xf32>
    %c0_5 = arith.constant 0 : index
    %c0_6 = arith.constant 0 : index
    %3 = vector.load %arg5[%c0_5, %c0_6] : memref<1x512xf32, #tpu.memory_space<vmem>>, vector<1x512xf32>
    %4 = vector.shape_cast %3 : vector<1x512xf32> to vector<1x512xf32>
    %5 = vector.broadcast %4 : vector<1x512xf32> to vector<2x512xf32>
    %cst = arith.constant 0.000000e+00 : f32
    %6 = vector.broadcast %cst : f32 to vector<2x128xf32>
    %c0_i32 = arith.constant 0 : i32
    %cst_7 = arith.constant dense<0.000000e+00> : vector<2x512xf32>
    %7 = tpu.matmul %6, %2, %cst_7 {dimension_numbers = #tpu.dot_dimension_numbers<[1], [0], [0], [1], [0, 0, 1, 1], [], []>} : vector<2x128xf32>, vector<128x512xf32>, vector<2x512xf32> -> vector<2x512xf32>
    %8 = arith.index_cast %c0_i32 : i32 to index
    %c0_8 = arith.constant 0 : index
    %c0_9 = arith.constant 0 : index
    %9 = vector.load %arg1[%8, %c0_8, %c0_9] : memref<8x2x512xf32, #tpu.memory_space<vmem>>, vector<1x2x512xf32>
    %10 = vector.shape_cast %9 : vector<1x2x512xf32> to vector<2x512xf32>
    %cst_10 = arith.constant dense<0.000000e+00> : vector<2x512xf32>
    %11 = tpu.matmul %6, %0, %cst_10 {dimension_numbers = #tpu.dot_dimension_numbers<[1], [0], [0], [1], [0, 0, 1, 1], [], []>} : vector<2x128xf32>, vector<128x512xf32>, vector<2x512xf32> -> vector<2x512xf32>
    %12 = arith.addf %10, %11 : vector<2x512xf32>
    %13 = vector.extract_strided_slice %12 {offsets = [0, 0], sizes = [2, 128], strides = [1, 1]} : vector<2x512xf32> to vector<2x128xf32>
    %14 = arith.negf %13 : vector<2x128xf32>
    %15 = math.exp %14 : vector<2x128xf32>
    %cst_11 = arith.constant 1.000000e+00 : f32
    %16 = vector.broadcast %cst_11 : f32 to vector<2x128xf32>
    %17 = arith.addf %16, %15 : vector<2x128xf32>
    %18 = arith.divf %16, %17 : vector<2x128xf32>
    %19 = vector.extract_strided_slice %12 {offsets = [0, 128], sizes = [2, 128], strides = [1, 1]} : vector<2x512xf32> to vector<2x128xf32>
    %20 = arith.negf %19 : vector<2x128xf32>
    %21 = math.exp %20 : vector<2x128xf32>
    %cst_12 = arith.constant 1.000000e+00 : f32
    %22 = vector.broadcast %cst_12 : f32 to vector<2x128xf32>
    %23 = arith.addf %22, %21 : vector<2x128xf32>
    %24 = arith.divf %22, %23 : vector<2x128xf32>
    %25 = vector.extract_strided_slice %12 {offsets = [0, 256], sizes = [2, 128], strides = [1, 1]} : vector<2x512xf32> to vector<2x128xf32>
    %26 = math.tanh %25 : vector<2x128xf32>
    %27 = vector.extract_strided_slice %12 {offsets = [0, 384], sizes = [2, 128], strides = [1, 1]} : vector<2x512xf32> to vector<2x128xf32>
    %28 = arith.negf %27 : vector<2x128xf32>
    %29 = math.exp %28 : vector<2x128xf32>
    %cst_13 = arith.constant 1.000000e+00 : f32
    %30 = vector.broadcast %cst_13 : f32 to vector<2x128xf32>
    %31 = arith.addf %30, %29 : vector<2x128xf32>
    %32 = arith.divf %30, %31 : vector<2x128xf32>
    %33 = arith.mulf %24, %6 : vector<2x128xf32>
    %34 = arith.mulf %18, %26 : vector<2x128xf32>
    %35 = arith.addf %33, %34 : vector<2x128xf32>
    %36 = math.tanh %35 : vector<2x128xf32>
    %37 = arith.mulf %32, %36 : vector<2x128xf32>
    %cst_14 = arith.constant dense<0.000000e+00> : vector<2x512xf32>
    %38 = tpu.matmul %37, %1, %cst_14 {dimension_numbers = #tpu.dot_dimension_numbers<[1], [0], [0], [1], [0, 0, 1, 1], [], []>} : vector<2x128xf32>, vector<128x512xf32>, vector<2x512xf32> -> vector<2x512xf32>
    %39 = arith.addf %38, %7 : vector<2x512xf32>
    %40 = arith.addf %39, %5 : vector<2x512xf32>
    %41 = vector.extract_strided_slice %40 {offsets = [0, 0], sizes = [2, 128], strides = [1, 1]} : vector<2x512xf32> to vector<2x128xf32>
    %42 = arith.negf %41 : vector<2x128xf32>
    %43 = math.exp %42 : vector<2x128xf32>
    %cst_15 = arith.constant 1.000000e+00 : f32
    %44 = vector.broadcast %cst_15 : f32 to vector<2x128xf32>
    %45 = arith.addf %44, %43 : vector<2x128xf32>
    %46 = arith.divf %44, %45 : vector<2x128xf32>
    %47 = vector.extract_strided_slice %40 {offsets = [0, 128], sizes = [2, 128], strides = [1, 1]} : vector<2x512xf32> to vector<2x128xf32>
    %48 = arith.negf %47 : vector<2x128xf32>
    %49 = math.exp %48 : vector<2x128xf32>
    %cst_16 = arith.constant 1.000000e+00 : f32
    %50 = vector.broadcast %cst_16 : f32 to vector<2x128xf32>
    %51 = arith.addf %50, %49 : vector<2x128xf32>
    %52 = arith.divf %50, %51 : vector<2x128xf32>
    %53 = vector.extract_strided_slice %40 {offsets = [0, 256], sizes = [2, 128], strides = [1, 1]} : vector<2x512xf32> to vector<2x128xf32>
    %54 = math.tanh %53 : vector<2x128xf32>
    %55 = vector.extract_strided_slice %40 {offsets = [0, 384], sizes = [2, 128], strides = [1, 1]} : vector<2x512xf32> to vector<2x128xf32>
    %56 = arith.negf %55 : vector<2x128xf32>
    %57 = math.exp %56 : vector<2x128xf32>
    %cst_17 = arith.constant 1.000000e+00 : f32
    %58 = vector.broadcast %cst_17 : f32 to vector<2x128xf32>
    %59 = arith.addf %58, %57 : vector<2x128xf32>
    %60 = arith.divf %58, %59 : vector<2x128xf32>
    %61 = arith.mulf %52, %6 : vector<2x128xf32>
    %62 = arith.mulf %46, %54 : vector<2x128xf32>
    %63 = arith.addf %61, %62 : vector<2x128xf32>
    %64 = math.tanh %63 : vector<2x128xf32>
    %65 = arith.mulf %60, %64 : vector<2x128xf32>
    %c1_i32 = arith.constant 1 : i32
    %cst_18 = arith.constant dense<0.000000e+00> : vector<2x512xf32>
    %66 = tpu.matmul %65, %2, %cst_18 {dimension_numbers = #tpu.dot_dimension_numbers<[1], [0], [0], [1], [0, 0, 1, 1], [], []>} : vector<2x128xf32>, vector<128x512xf32>, vector<2x512xf32> -> vector<2x512xf32>
    %67 = arith.index_cast %c1_i32 : i32 to index
    %c0_19 = arith.constant 0 : index
    %c0_20 = arith.constant 0 : index
    %68 = vector.load %arg1[%67, %c0_19, %c0_20] : memref<8x2x512xf32, #tpu.memory_space<vmem>>, vector<1x2x512xf32>
    %69 = vector.shape_cast %68 : vector<1x2x512xf32> to vector<2x512xf32>
    %cst_21 = arith.constant dense<0.000000e+00> : vector<2x512xf32>
    %70 = tpu.matmul %37, %0, %cst_21 {dimension_numbers = #tpu.dot_dimension_numbers<[1], [0], [0], [1], [0, 0, 1, 1], [], []>} : vector<2x128xf32>, vector<128x512xf32>, vector<2x512xf32> -> vector<2x512xf32>
    %71 = arith.addf %69, %70 : vector<2x512xf32>
    %72 = vector.extract_strided_slice %71 {offsets = [0, 0], sizes = [2, 128], strides = [1, 1]} : vector<2x512xf32> to vector<2x128xf32>
    %73 = arith.negf %72 : vector<2x128xf32>
    %74 = math.exp %73 : vector<2x128xf32>
    %cst_22 = arith.constant 1.000000e+00 : f32
    %75 = vector.broadcast %cst_22 : f32 to vector<2x128xf32>
    %76 = arith.addf %75, %74 : vector<2x128xf32>
    %77 = arith.divf %75, %76 : vector<2x128xf32>
    %78 = vector.extract_strided_slice %71 {offsets = [0, 128], sizes = [2, 128], strides = [1, 1]} : vector<2x512xf32> to vector<2x128xf32>
    %79 = arith.negf %78 : vector<2x128xf32>
    %80 = math.exp %79 : vector<2x128xf32>
    %cst_23 = arith.constant 1.000000e+00 : f32
    %81 = vector.broadcast %cst_23 : f32 to vector<2x128xf32>
    %82 = arith.addf %81, %80 : vector<2x128xf32>
    %83 = arith.divf %81, %82 : vector<2x128xf32>
    %84 = vector.extract_strided_slice %71 {offsets = [0, 256], sizes = [2, 128], strides = [1, 1]} : vector<2x512xf32> to vector<2x128xf32>
    %85 = math.tanh %84 : vector<2x128xf32>
    %86 = vector.extract_strided_slice %71 {offsets = [0, 384], sizes = [2, 128], strides = [1, 1]} : vector<2x512xf32> to vector<2x128xf32>
    %87 = arith.negf %86 : vector<2x128xf32>
    %88 = math.exp %87 : vector<2x128xf32>
    %cst_24 = arith.constant 1.000000e+00 : f32
    %89 = vector.broadcast %cst_24 : f32 to vector<2x128xf32>
    %90 = arith.addf %89, %88 : vector<2x128xf32>
    %91 = arith.divf %89, %90 : vector<2x128xf32>
    %92 = arith.mulf %83, %35 : vector<2x128xf32>
    %93 = arith.mulf %77, %85 : vector<2x128xf32>
    %94 = arith.addf %92, %93 : vector<2x128xf32>
    %95 = math.tanh %94 : vector<2x128xf32>
    %96 = arith.mulf %91, %95 : vector<2x128xf32>
    %cst_25 = arith.constant dense<0.000000e+00> : vector<2x512xf32>
    %97 = tpu.matmul %96, %1, %cst_25 {dimension_numbers = #tpu.dot_dimension_numbers<[1], [0], [0], [1], [0, 0, 1, 1], [], []>} : vector<2x128xf32>, vector<128x512xf32>, vector<2x512xf32> -> vector<2x512xf32>
    %98 = arith.addf %97, %66 : vector<2x512xf32>
    %99 = arith.addf %98, %5 : vector<2x512xf32>
    %100 = vector.extract_strided_slice %99 {offsets = [0, 0], sizes = [2, 128], strides = [1, 1]} : vector<2x512xf32> to vector<2x128xf32>
    %101 = arith.negf %100 : vector<2x128xf32>
    %102 = math.exp %101 : vector<2x128xf32>
    %cst_26 = arith.constant 1.000000e+00 : f32
    %103 = vector.broadcast %cst_26 : f32 to vector<2x128xf32>
    %104 = arith.addf %103, %102 : vector<2x128xf32>
    %105 = arith.divf %103, %104 : vector<2x128xf32>
    %106 = vector.extract_strided_slice %99 {offsets = [0, 128], sizes = [2, 128], strides = [1, 1]} : vector<2x512xf32> to vector<2x128xf32>
    %107 = arith.negf %106 : vector<2x128xf32>
    %108 = math.exp %107 : vector<2x128xf32>
    %cst_27 = arith.constant 1.000000e+00 : f32
    %109 = vector.broadcast %cst_27 : f32 to vector<2x128xf32>
    %110 = arith.addf %109, %108 : vector<2x128xf32>
    %111 = arith.divf %109, %110 : vector<2x128xf32>
    %112 = vector.extract_strided_slice %99 {offsets = [0, 256], sizes = [2, 128], strides = [1, 1]} : vector<2x512xf32> to vector<2x128xf32>
    %113 = math.tanh %112 : vector<2x128xf32>
    %114 = vector.extract_strided_slice %99 {offsets = [0, 384], sizes = [2, 128], strides = [1, 1]} : vector<2x512xf32> to vector<2x128xf32>
    %115 = arith.negf %114 : vector<2x128xf32>
    %116 = math.exp %115 : vector<2x128xf32>
    %cst_28 = arith.constant 1.000000e+00 : f32
    %117 = vector.broadcast %cst_28 : f32 to vector<2x128xf32>
    %118 = arith.addf %117, %116 : vector<2x128xf32>
    %119 = arith.divf %117, %118 : vector<2x128xf32>
    %120 = arith.mulf %111, %63 : vector<2x128xf32>
    %121 = arith.mulf %105, %113 : vector<2x128xf32>
    %122 = arith.addf %120, %121 : vector<2x128xf32>
    %123 = math.tanh %122 : vector<2x128xf32>
    %124 = arith.mulf %119, %123 : vector<2x128xf32>
    %c2_i32 = arith.constant 2 : i32
    %cst_29 = arith.constant dense<0.000000e+00> : vector<2x512xf32>
    %125 = tpu.matmul %124, %2, %cst_29 {dimension_numbers = #tpu.dot_dimension_numbers<[1], [0], [0], [1], [0, 0, 1, 1], [], []>} : vector<2x128xf32>, vector<128x512xf32>, vector<2x512xf32> -> vector<2x512xf32>
    %126 = arith.index_cast %c2_i32 : i32 to index
    %c0_30 = arith.constant 0 : index
    %c0_31 = arith.constant 0 : index
    %127 = vector.load %arg1[%126, %c0_30, %c0_31] : memref<8x2x512xf32, #tpu.memory_space<vmem>>, vector<1x2x512xf32>
    %128 = vector.shape_cast %127 : vector<1x2x512xf32> to vector<2x512xf32>
    %cst_32 = arith.constant dense<0.000000e+00> : vector<2x512xf32>
    %129 = tpu.matmul %96, %0, %cst_32 {dimension_numbers = #tpu.dot_dimension_numbers<[1], [0], [0], [1], [0, 0, 1, 1], [], []>} : vector<2x128xf32>, vector<128x512xf32>, vector<2x512xf32> -> vector<2x512xf32>
    %130 = arith.addf %128, %129 : vector<2x512xf32>
    %131 = vector.extract_strided_slice %130 {offsets = [0, 0], sizes = [2, 128], strides = [1, 1]} : vector<2x512xf32> to vector<2x128xf32>
    %132 = arith.negf %131 : vector<2x128xf32>
    %133 = math.exp %132 : vector<2x128xf32>
    %cst_33 = arith.constant 1.000000e+00 : f32
    %134 = vector.broadcast %cst_33 : f32 to vector<2x128xf32>
    %135 = arith.addf %134, %133 : vector<2x128xf32>
    %136 = arith.divf %134, %135 : vector<2x128xf32>
    %137 = vector.extract_strided_slice %130 {offsets = [0, 128], sizes = [2, 128], strides = [1, 1]} : vector<2x512xf32> to vector<2x128xf32>
    %138 = arith.negf %137 : vector<2x128xf32>
    %139 = math.exp %138 : vector<2x128xf32>
    %cst_34 = arith.constant 1.000000e+00 : f32
    %140 = vector.broadcast %cst_34 : f32 to vector<2x128xf32>
    %141 = arith.addf %140, %139 : vector<2x128xf32>
    %142 = arith.divf %140, %141 : vector<2x128xf32>
    %143 = vector.extract_strided_slice %130 {offsets = [0, 256], sizes = [2, 128], strides = [1, 1]} : vector<2x512xf32> to vector<2x128xf32>
    %144 = math.tanh %143 : vector<2x128xf32>
    %145 = vector.extract_strided_slice %130 {offsets = [0, 384], sizes = [2, 128], strides = [1, 1]} : vector<2x512xf32> to vector<2x128xf32>
    %146 = arith.negf %145 : vector<2x128xf32>
    %147 = math.exp %146 : vector<2x128xf32>
    %cst_35 = arith.constant 1.000000e+00 : f32
    %148 = vector.broadcast %cst_35 : f32 to vector<2x128xf32>
    %149 = arith.addf %148, %147 : vector<2x128xf32>
    %150 = arith.divf %148, %149 : vector<2x128xf32>
    %151 = arith.mulf %142, %94 : vector<2x128xf32>
    %152 = arith.mulf %136, %144 : vector<2x128xf32>
    %153 = arith.addf %151, %152 : vector<2x128xf32>
    %154 = math.tanh %153 : vector<2x128xf32>
    %155 = arith.mulf %150, %154 : vector<2x128xf32>
    %cst_36 = arith.constant dense<0.000000e+00> : vector<2x512xf32>
    %156 = tpu.matmul %155, %1, %cst_36 {dimension_numbers = #tpu.dot_dimension_numbers<[1], [0], [0], [1], [0, 0, 1, 1], [], []>} : vector<2x128xf32>, vector<128x512xf32>, vector<2x512xf32> -> vector<2x512xf32>
    %157 = arith.addf %156, %125 : vector<2x512xf32>
    %158 = arith.addf %157, %5 : vector<2x512xf32>
    %159 = vector.extract_strided_slice %158 {offsets = [0, 0], sizes = [2, 128], strides = [1, 1]} : vector<2x512xf32> to vector<2x128xf32>
    %160 = arith.negf %159 : vector<2x128xf32>
    %161 = math.exp %160 : vector<2x128xf32>
    %cst_37 = arith.constant 1.000000e+00 : f32
    %162 = vector.broadcast %cst_37 : f32 to vector<2x128xf32>
    %163 = arith.addf %162, %161 : vector<2x128xf32>
    %164 = arith.divf %162, %163 : vector<2x128xf32>
    %165 = vector.extract_strided_slice %158 {offsets = [0, 128], sizes = [2, 128], strides = [1, 1]} : vector<2x512xf32> to vector<2x128xf32>
    %166 = arith.negf %165 : vector<2x128xf32>
    %167 = math.exp %166 : vector<2x128xf32>
    %cst_38 = arith.constant 1.000000e+00 : f32
    %168 = vector.broadcast %cst_38 : f32 to vector<2x128xf32>
    %169 = arith.addf %168, %167 : vector<2x128xf32>
    %170 = arith.divf %168, %169 : vector<2x128xf32>
    %171 = vector.extract_strided_slice %158 {offsets = [0, 256], sizes = [2, 128], strides = [1, 1]} : vector<2x512xf32> to vector<2x128xf32>
    %172 = math.tanh %171 : vector<2x128xf32>
    %173 = vector.extract_strided_slice %158 {offsets = [0, 384], sizes = [2, 128], strides = [1, 1]} : vector<2x512xf32> to vector<2x128xf32>
    %174 = arith.negf %173 : vector<2x128xf32>
    %175 = math.exp %174 : vector<2x128xf32>
    %cst_39 = arith.constant 1.000000e+00 : f32
    %176 = vector.broadcast %cst_39 : f32 to vector<2x128xf32>
    %177 = arith.addf %176, %175 : vector<2x128xf32>
    %178 = arith.divf %176, %177 : vector<2x128xf32>
    %179 = arith.mulf %170, %122 : vector<2x128xf32>
    %180 = arith.mulf %164, %172 : vector<2x128xf32>
    %181 = arith.addf %179, %180 : vector<2x128xf32>
    %182 = math.tanh %181 : vector<2x128xf32>
    %183 = arith.mulf %178, %182 : vector<2x128xf32>
    %c3_i32 = arith.constant 3 : i32
    %cst_40 = arith.constant dense<0.000000e+00> : vector<2x512xf32>
    %184 = tpu.matmul %183, %2, %cst_40 {dimension_numbers = #tpu.dot_dimension_numbers<[1], [0], [0], [1], [0, 0, 1, 1], [], []>} : vector<2x128xf32>, vector<128x512xf32>, vector<2x512xf32> -> vector<2x512xf32>
    %185 = arith.index_cast %c3_i32 : i32 to index
    %c0_41 = arith.constant 0 : index
    %c0_42 = arith.constant 0 : index
    %186 = vector.load %arg1[%185, %c0_41, %c0_42] : memref<8x2x512xf32, #tpu.memory_space<vmem>>, vector<1x2x512xf32>
    %187 = vector.shape_cast %186 : vector<1x2x512xf32> to vector<2x512xf32>
    %cst_43 = arith.constant dense<0.000000e+00> : vector<2x512xf32>
    %188 = tpu.matmul %155, %0, %cst_43 {dimension_numbers = #tpu.dot_dimension_numbers<[1], [0], [0], [1], [0, 0, 1, 1], [], []>} : vector<2x128xf32>, vector<128x512xf32>, vector<2x512xf32> -> vector<2x512xf32>
    %189 = arith.addf %187, %188 : vector<2x512xf32>
    %190 = vector.extract_strided_slice %189 {offsets = [0, 0], sizes = [2, 128], strides = [1, 1]} : vector<2x512xf32> to vector<2x128xf32>
    %191 = arith.negf %190 : vector<2x128xf32>
    %192 = math.exp %191 : vector<2x128xf32>
    %cst_44 = arith.constant 1.000000e+00 : f32
    %193 = vector.broadcast %cst_44 : f32 to vector<2x128xf32>
    %194 = arith.addf %193, %192 : vector<2x128xf32>
    %195 = arith.divf %193, %194 : vector<2x128xf32>
    %196 = vector.extract_strided_slice %189 {offsets = [0, 128], sizes = [2, 128], strides = [1, 1]} : vector<2x512xf32> to vector<2x128xf32>
    %197 = arith.negf %196 : vector<2x128xf32>
    %198 = math.exp %197 : vector<2x128xf32>
    %cst_45 = arith.constant 1.000000e+00 : f32
    %199 = vector.broadcast %cst_45 : f32 to vector<2x128xf32>
    %200 = arith.addf %199, %198 : vector<2x128xf32>
    %201 = arith.divf %199, %200 : vector<2x128xf32>
    %202 = vector.extract_strided_slice %189 {offsets = [0, 256], sizes = [2, 128], strides = [1, 1]} : vector<2x512xf32> to vector<2x128xf32>
    %203 = math.tanh %202 : vector<2x128xf32>
    %204 = vector.extract_strided_slice %189 {offsets = [0, 384], sizes = [2, 128], strides = [1, 1]} : vector<2x512xf32> to vector<2x128xf32>
    %205 = arith.negf %204 : vector<2x128xf32>
    %206 = math.exp %205 : vector<2x128xf32>
    %cst_46 = arith.constant 1.000000e+00 : f32
    %207 = vector.broadcast %cst_46 : f32 to vector<2x128xf32>
    %208 = arith.addf %207, %206 : vector<2x128xf32>
    %209 = arith.divf %207, %208 : vector<2x128xf32>
    %210 = arith.mulf %201, %153 : vector<2x128xf32>
    %211 = arith.mulf %195, %203 : vector<2x128xf32>
    %212 = arith.addf %210, %211 : vector<2x128xf32>
    %213 = math.tanh %212 : vector<2x128xf32>
    %214 = arith.mulf %209, %213 : vector<2x128xf32>
    %cst_47 = arith.constant dense<0.000000e+00> : vector<2x512xf32>
    %215 = tpu.matmul %214, %1, %cst_47 {dimension_numbers = #tpu.dot_dimension_numbers<[1], [0], [0], [1], [0, 0, 1, 1], [], []>} : vector<2x128xf32>, vector<128x512xf32>, vector<2x512xf32> -> vector<2x512xf32>
    %216 = arith.addf %215, %184 : vector<2x512xf32>
    %217 = arith.addf %216, %5 : vector<2x512xf32>
    %218 = vector.extract_strided_slice %217 {offsets = [0, 0], sizes = [2, 128], strides = [1, 1]} : vector<2x512xf32> to vector<2x128xf32>
    %219 = arith.negf %218 : vector<2x128xf32>
    %220 = math.exp %219 : vector<2x128xf32>
    %cst_48 = arith.constant 1.000000e+00 : f32
    %221 = vector.broadcast %cst_48 : f32 to vector<2x128xf32>
    %222 = arith.addf %221, %220 : vector<2x128xf32>
    %223 = arith.divf %221, %222 : vector<2x128xf32>
    %224 = vector.extract_strided_slice %217 {offsets = [0, 128], sizes = [2, 128], strides = [1, 1]} : vector<2x512xf32> to vector<2x128xf32>
    %225 = arith.negf %224 : vector<2x128xf32>
    %226 = math.exp %225 : vector<2x128xf32>
    %cst_49 = arith.constant 1.000000e+00 : f32
    %227 = vector.broadcast %cst_49 : f32 to vector<2x128xf32>
    %228 = arith.addf %227, %226 : vector<2x128xf32>
    %229 = arith.divf %227, %228 : vector<2x128xf32>
    %230 = vector.extract_strided_slice %217 {offsets = [0, 256], sizes = [2, 128], strides = [1, 1]} : vector<2x512xf32> to vector<2x128xf32>
    %231 = math.tanh %230 : vector<2x128xf32>
    %232 = vector.extract_strided_slice %217 {offsets = [0, 384], sizes = [2, 128], strides = [1, 1]} : vector<2x512xf32> to vector<2x128xf32>
    %233 = arith.negf %232 : vector<2x128xf32>
    %234 = math.exp %233 : vector<2x128xf32>
    %cst_50 = arith.constant 1.000000e+00 : f32
    %235 = vector.broadcast %cst_50 : f32 to vector<2x128xf32>
    %236 = arith.addf %235, %234 : vector<2x128xf32>
    %237 = arith.divf %235, %236 : vector<2x128xf32>
    %238 = arith.mulf %229, %181 : vector<2x128xf32>
    %239 = arith.mulf %223, %231 : vector<2x128xf32>
    %240 = arith.addf %238, %239 : vector<2x128xf32>
    %241 = math.tanh %240 : vector<2x128xf32>
    %242 = arith.mulf %237, %241 : vector<2x128xf32>
    %c4_i32 = arith.constant 4 : i32
    %cst_51 = arith.constant dense<0.000000e+00> : vector<2x512xf32>
    %243 = tpu.matmul %242, %2, %cst_51 {dimension_numbers = #tpu.dot_dimension_numbers<[1], [0], [0], [1], [0, 0, 1, 1], [], []>} : vector<2x128xf32>, vector<128x512xf32>, vector<2x512xf32> -> vector<2x512xf32>
    %244 = arith.index_cast %c4_i32 : i32 to index
    %c0_52 = arith.constant 0 : index
    %c0_53 = arith.constant 0 : index
    %245 = vector.load %arg1[%244, %c0_52, %c0_53] : memref<8x2x512xf32, #tpu.memory_space<vmem>>, vector<1x2x512xf32>
    %246 = vector.shape_cast %245 : vector<1x2x512xf32> to vector<2x512xf32>
    %cst_54 = arith.constant dense<0.000000e+00> : vector<2x512xf32>
    %247 = tpu.matmul %214, %0, %cst_54 {dimension_numbers = #tpu.dot_dimension_numbers<[1], [0], [0], [1], [0, 0, 1, 1], [], []>} : vector<2x128xf32>, vector<128x512xf32>, vector<2x512xf32> -> vector<2x512xf32>
    %248 = arith.addf %246, %247 : vector<2x512xf32>
    %249 = vector.extract_strided_slice %248 {offsets = [0, 0], sizes = [2, 128], strides = [1, 1]} : vector<2x512xf32> to vector<2x128xf32>
    %250 = arith.negf %249 : vector<2x128xf32>
    %251 = math.exp %250 : vector<2x128xf32>
    %cst_55 = arith.constant 1.000000e+00 : f32
    %252 = vector.broadcast %cst_55 : f32 to vector<2x128xf32>
    %253 = arith.addf %252, %251 : vector<2x128xf32>
    %254 = arith.divf %252, %253 : vector<2x128xf32>
    %255 = vector.extract_strided_slice %248 {offsets = [0, 128], sizes = [2, 128], strides = [1, 1]} : vector<2x512xf32> to vector<2x128xf32>
    %256 = arith.negf %255 : vector<2x128xf32>
    %257 = math.exp %256 : vector<2x128xf32>
    %cst_56 = arith.constant 1.000000e+00 : f32
    %258 = vector.broadcast %cst_56 : f32 to vector<2x128xf32>
    %259 = arith.addf %258, %257 : vector<2x128xf32>
    %260 = arith.divf %258, %259 : vector<2x128xf32>
    %261 = vector.extract_strided_slice %248 {offsets = [0, 256], sizes = [2, 128], strides = [1, 1]} : vector<2x512xf32> to vector<2x128xf32>
    %262 = math.tanh %261 : vector<2x128xf32>
    %263 = vector.extract_strided_slice %248 {offsets = [0, 384], sizes = [2, 128], strides = [1, 1]} : vector<2x512xf32> to vector<2x128xf32>
    %264 = arith.negf %263 : vector<2x128xf32>
    %265 = math.exp %264 : vector<2x128xf32>
    %cst_57 = arith.constant 1.000000e+00 : f32
    %266 = vector.broadcast %cst_57 : f32 to vector<2x128xf32>
    %267 = arith.addf %266, %265 : vector<2x128xf32>
    %268 = arith.divf %266, %267 : vector<2x128xf32>
    %269 = arith.mulf %260, %212 : vector<2x128xf32>
    %270 = arith.mulf %254, %262 : vector<2x128xf32>
    %271 = arith.addf %269, %270 : vector<2x128xf32>
    %272 = math.tanh %271 : vector<2x128xf32>
    %273 = arith.mulf %268, %272 : vector<2x128xf32>
    %cst_58 = arith.constant dense<0.000000e+00> : vector<2x512xf32>
    %274 = tpu.matmul %273, %1, %cst_58 {dimension_numbers = #tpu.dot_dimension_numbers<[1], [0], [0], [1], [0, 0, 1, 1], [], []>} : vector<2x128xf32>, vector<128x512xf32>, vector<2x512xf32> -> vector<2x512xf32>
    %275 = arith.addf %274, %243 : vector<2x512xf32>
    %276 = arith.addf %275, %5 : vector<2x512xf32>
    %277 = vector.extract_strided_slice %276 {offsets = [0, 0], sizes = [2, 128], strides = [1, 1]} : vector<2x512xf32> to vector<2x128xf32>
    %278 = arith.negf %277 : vector<2x128xf32>
    %279 = math.exp %278 : vector<2x128xf32>
    %cst_59 = arith.constant 1.000000e+00 : f32
    %280 = vector.broadcast %cst_59 : f32 to vector<2x128xf32>
    %281 = arith.addf %280, %279 : vector<2x128xf32>
    %282 = arith.divf %280, %281 : vector<2x128xf32>
    %283 = vector.extract_strided_slice %276 {offsets = [0, 128], sizes = [2, 128], strides = [1, 1]} : vector<2x512xf32> to vector<2x128xf32>
    %284 = arith.negf %283 : vector<2x128xf32>
    %285 = math.exp %284 : vector<2x128xf32>
    %cst_60 = arith.constant 1.000000e+00 : f32
    %286 = vector.broadcast %cst_60 : f32 to vector<2x128xf32>
    %287 = arith.addf %286, %285 : vector<2x128xf32>
    %288 = arith.divf %286, %287 : vector<2x128xf32>
    %289 = vector.extract_strided_slice %276 {offsets = [0, 256], sizes = [2, 128], strides = [1, 1]} : vector<2x512xf32> to vector<2x128xf32>
    %290 = math.tanh %289 : vector<2x128xf32>
    %291 = vector.extract_strided_slice %276 {offsets = [0, 384], sizes = [2, 128], strides = [1, 1]} : vector<2x512xf32> to vector<2x128xf32>
    %292 = arith.negf %291 : vector<2x128xf32>
    %293 = math.exp %292 : vector<2x128xf32>
    %cst_61 = arith.constant 1.000000e+00 : f32
    %294 = vector.broadcast %cst_61 : f32 to vector<2x128xf32>
    %295 = arith.addf %294, %293 : vector<2x128xf32>
    %296 = arith.divf %294, %295 : vector<2x128xf32>
    %297 = arith.mulf %288, %240 : vector<2x128xf32>
    %298 = arith.mulf %282, %290 : vector<2x128xf32>
    %299 = arith.addf %297, %298 : vector<2x128xf32>
    %300 = math.tanh %299 : vector<2x128xf32>
    %301 = arith.mulf %296, %300 : vector<2x128xf32>
    %c5_i32 = arith.constant 5 : i32
    %cst_62 = arith.constant dense<0.000000e+00> : vector<2x512xf32>
    %302 = tpu.matmul %301, %2, %cst_62 {dimension_numbers = #tpu.dot_dimension_numbers<[1], [0], [0], [1], [0, 0, 1, 1], [], []>} : vector<2x128xf32>, vector<128x512xf32>, vector<2x512xf32> -> vector<2x512xf32>
    %303 = arith.index_cast %c5_i32 : i32 to index
    %c0_63 = arith.constant 0 : index
    %c0_64 = arith.constant 0 : index
    %304 = vector.load %arg1[%303, %c0_63, %c0_64] : memref<8x2x512xf32, #tpu.memory_space<vmem>>, vector<1x2x512xf32>
    %305 = vector.shape_cast %304 : vector<1x2x512xf32> to vector<2x512xf32>
    %cst_65 = arith.constant dense<0.000000e+00> : vector<2x512xf32>
    %306 = tpu.matmul %273, %0, %cst_65 {dimension_numbers = #tpu.dot_dimension_numbers<[1], [0], [0], [1], [0, 0, 1, 1], [], []>} : vector<2x128xf32>, vector<128x512xf32>, vector<2x512xf32> -> vector<2x512xf32>
    %307 = arith.addf %305, %306 : vector<2x512xf32>
    %308 = vector.extract_strided_slice %307 {offsets = [0, 0], sizes = [2, 128], strides = [1, 1]} : vector<2x512xf32> to vector<2x128xf32>
    %309 = arith.negf %308 : vector<2x128xf32>
    %310 = math.exp %309 : vector<2x128xf32>
    %cst_66 = arith.constant 1.000000e+00 : f32
    %311 = vector.broadcast %cst_66 : f32 to vector<2x128xf32>
    %312 = arith.addf %311, %310 : vector<2x128xf32>
    %313 = arith.divf %311, %312 : vector<2x128xf32>
    %314 = vector.extract_strided_slice %307 {offsets = [0, 128], sizes = [2, 128], strides = [1, 1]} : vector<2x512xf32> to vector<2x128xf32>
    %315 = arith.negf %314 : vector<2x128xf32>
    %316 = math.exp %315 : vector<2x128xf32>
    %cst_67 = arith.constant 1.000000e+00 : f32
    %317 = vector.broadcast %cst_67 : f32 to vector<2x128xf32>
    %318 = arith.addf %317, %316 : vector<2x128xf32>
    %319 = arith.divf %317, %318 : vector<2x128xf32>
    %320 = vector.extract_strided_slice %307 {offsets = [0, 256], sizes = [2, 128], strides = [1, 1]} : vector<2x512xf32> to vector<2x128xf32>
    %321 = math.tanh %320 : vector<2x128xf32>
    %322 = vector.extract_strided_slice %307 {offsets = [0, 384], sizes = [2, 128], strides = [1, 1]} : vector<2x512xf32> to vector<2x128xf32>
    %323 = arith.negf %322 : vector<2x128xf32>
    %324 = math.exp %323 : vector<2x128xf32>
    %cst_68 = arith.constant 1.000000e+00 : f32
    %325 = vector.broadcast %cst_68 : f32 to vector<2x128xf32>
    %326 = arith.addf %325, %324 : vector<2x128xf32>
    %327 = arith.divf %325, %326 : vector<2x128xf32>
    %328 = arith.mulf %319, %271 : vector<2x128xf32>
    %329 = arith.mulf %313, %321 : vector<2x128xf32>
    %330 = arith.addf %328, %329 : vector<2x128xf32>
    %331 = math.tanh %330 : vector<2x128xf32>
    %332 = arith.mulf %327, %331 : vector<2x128xf32>
    %cst_69 = arith.constant dense<0.000000e+00> : vector<2x512xf32>
    %333 = tpu.matmul %332, %1, %cst_69 {dimension_numbers = #tpu.dot_dimension_numbers<[1], [0], [0], [1], [0, 0, 1, 1], [], []>} : vector<2x128xf32>, vector<128x512xf32>, vector<2x512xf32> -> vector<2x512xf32>
    %334 = arith.addf %333, %302 : vector<2x512xf32>
    %335 = arith.addf %334, %5 : vector<2x512xf32>
    %336 = vector.extract_strided_slice %335 {offsets = [0, 0], sizes = [2, 128], strides = [1, 1]} : vector<2x512xf32> to vector<2x128xf32>
    %337 = arith.negf %336 : vector<2x128xf32>
    %338 = math.exp %337 : vector<2x128xf32>
    %cst_70 = arith.constant 1.000000e+00 : f32
    %339 = vector.broadcast %cst_70 : f32 to vector<2x128xf32>
    %340 = arith.addf %339, %338 : vector<2x128xf32>
    %341 = arith.divf %339, %340 : vector<2x128xf32>
    %342 = vector.extract_strided_slice %335 {offsets = [0, 128], sizes = [2, 128], strides = [1, 1]} : vector<2x512xf32> to vector<2x128xf32>
    %343 = arith.negf %342 : vector<2x128xf32>
    %344 = math.exp %343 : vector<2x128xf32>
    %cst_71 = arith.constant 1.000000e+00 : f32
    %345 = vector.broadcast %cst_71 : f32 to vector<2x128xf32>
    %346 = arith.addf %345, %344 : vector<2x128xf32>
    %347 = arith.divf %345, %346 : vector<2x128xf32>
    %348 = vector.extract_strided_slice %335 {offsets = [0, 256], sizes = [2, 128], strides = [1, 1]} : vector<2x512xf32> to vector<2x128xf32>
    %349 = math.tanh %348 : vector<2x128xf32>
    %350 = vector.extract_strided_slice %335 {offsets = [0, 384], sizes = [2, 128], strides = [1, 1]} : vector<2x512xf32> to vector<2x128xf32>
    %351 = arith.negf %350 : vector<2x128xf32>
    %352 = math.exp %351 : vector<2x128xf32>
    %cst_72 = arith.constant 1.000000e+00 : f32
    %353 = vector.broadcast %cst_72 : f32 to vector<2x128xf32>
    %354 = arith.addf %353, %352 : vector<2x128xf32>
    %355 = arith.divf %353, %354 : vector<2x128xf32>
    %356 = arith.mulf %347, %299 : vector<2x128xf32>
    %357 = arith.mulf %341, %349 : vector<2x128xf32>
    %358 = arith.addf %356, %357 : vector<2x128xf32>
    %359 = math.tanh %358 : vector<2x128xf32>
    %360 = arith.mulf %355, %359 : vector<2x128xf32>
    %c6_i32 = arith.constant 6 : i32
    %cst_73 = arith.constant dense<0.000000e+00> : vector<2x512xf32>
    %361 = tpu.matmul %360, %2, %cst_73 {dimension_numbers = #tpu.dot_dimension_numbers<[1], [0], [0], [1], [0, 0, 1, 1], [], []>} : vector<2x128xf32>, vector<128x512xf32>, vector<2x512xf32> -> vector<2x512xf32>
    %362 = arith.index_cast %c6_i32 : i32 to index
    %c0_74 = arith.constant 0 : index
    %c0_75 = arith.constant 0 : index
    %363 = vector.load %arg1[%362, %c0_74, %c0_75] : memref<8x2x512xf32, #tpu.memory_space<vmem>>, vector<1x2x512xf32>
    %364 = vector.shape_cast %363 : vector<1x2x512xf32> to vector<2x512xf32>
    %cst_76 = arith.constant dense<0.000000e+00> : vector<2x512xf32>
    %365 = tpu.matmul %332, %0, %cst_76 {dimension_numbers = #tpu.dot_dimension_numbers<[1], [0], [0], [1], [0, 0, 1, 1], [], []>} : vector<2x128xf32>, vector<128x512xf32>, vector<2x512xf32> -> vector<2x512xf32>
    %366 = arith.addf %364, %365 : vector<2x512xf32>
    %367 = vector.extract_strided_slice %366 {offsets = [0, 0], sizes = [2, 128], strides = [1, 1]} : vector<2x512xf32> to vector<2x128xf32>
    %368 = arith.negf %367 : vector<2x128xf32>
    %369 = math.exp %368 : vector<2x128xf32>
    %cst_77 = arith.constant 1.000000e+00 : f32
    %370 = vector.broadcast %cst_77 : f32 to vector<2x128xf32>
    %371 = arith.addf %370, %369 : vector<2x128xf32>
    %372 = arith.divf %370, %371 : vector<2x128xf32>
    %373 = vector.extract_strided_slice %366 {offsets = [0, 128], sizes = [2, 128], strides = [1, 1]} : vector<2x512xf32> to vector<2x128xf32>
    %374 = arith.negf %373 : vector<2x128xf32>
    %375 = math.exp %374 : vector<2x128xf32>
    %cst_78 = arith.constant 1.000000e+00 : f32
    %376 = vector.broadcast %cst_78 : f32 to vector<2x128xf32>
    %377 = arith.addf %376, %375 : vector<2x128xf32>
    %378 = arith.divf %376, %377 : vector<2x128xf32>
    %379 = vector.extract_strided_slice %366 {offsets = [0, 256], sizes = [2, 128], strides = [1, 1]} : vector<2x512xf32> to vector<2x128xf32>
    %380 = math.tanh %379 : vector<2x128xf32>
    %381 = vector.extract_strided_slice %366 {offsets = [0, 384], sizes = [2, 128], strides = [1, 1]} : vector<2x512xf32> to vector<2x128xf32>
    %382 = arith.negf %381 : vector<2x128xf32>
    %383 = math.exp %382 : vector<2x128xf32>
    %cst_79 = arith.constant 1.000000e+00 : f32
    %384 = vector.broadcast %cst_79 : f32 to vector<2x128xf32>
    %385 = arith.addf %384, %383 : vector<2x128xf32>
    %386 = arith.divf %384, %385 : vector<2x128xf32>
    %387 = arith.mulf %378, %330 : vector<2x128xf32>
    %388 = arith.mulf %372, %380 : vector<2x128xf32>
    %389 = arith.addf %387, %388 : vector<2x128xf32>
    %390 = math.tanh %389 : vector<2x128xf32>
    %391 = arith.mulf %386, %390 : vector<2x128xf32>
    %cst_80 = arith.constant dense<0.000000e+00> : vector<2x512xf32>
    %392 = tpu.matmul %391, %1, %cst_80 {dimension_numbers = #tpu.dot_dimension_numbers<[1], [0], [0], [1], [0, 0, 1, 1], [], []>} : vector<2x128xf32>, vector<128x512xf32>, vector<2x512xf32> -> vector<2x512xf32>
    %393 = arith.addf %392, %361 : vector<2x512xf32>
    %394 = arith.addf %393, %5 : vector<2x512xf32>
    %395 = vector.extract_strided_slice %394 {offsets = [0, 0], sizes = [2, 128], strides = [1, 1]} : vector<2x512xf32> to vector<2x128xf32>
    %396 = arith.negf %395 : vector<2x128xf32>
    %397 = math.exp %396 : vector<2x128xf32>
    %cst_81 = arith.constant 1.000000e+00 : f32
    %398 = vector.broadcast %cst_81 : f32 to vector<2x128xf32>
    %399 = arith.addf %398, %397 : vector<2x128xf32>
    %400 = arith.divf %398, %399 : vector<2x128xf32>
    %401 = vector.extract_strided_slice %394 {offsets = [0, 128], sizes = [2, 128], strides = [1, 1]} : vector<2x512xf32> to vector<2x128xf32>
    %402 = arith.negf %401 : vector<2x128xf32>
    %403 = math.exp %402 : vector<2x128xf32>
    %cst_82 = arith.constant 1.000000e+00 : f32
    %404 = vector.broadcast %cst_82 : f32 to vector<2x128xf32>
    %405 = arith.addf %404, %403 : vector<2x128xf32>
    %406 = arith.divf %404, %405 : vector<2x128xf32>
    %407 = vector.extract_strided_slice %394 {offsets = [0, 256], sizes = [2, 128], strides = [1, 1]} : vector<2x512xf32> to vector<2x128xf32>
    %408 = math.tanh %407 : vector<2x128xf32>
    %409 = vector.extract_strided_slice %394 {offsets = [0, 384], sizes = [2, 128], strides = [1, 1]} : vector<2x512xf32> to vector<2x128xf32>
    %410 = arith.negf %409 : vector<2x128xf32>
    %411 = math.exp %410 : vector<2x128xf32>
    %cst_83 = arith.constant 1.000000e+00 : f32
    %412 = vector.broadcast %cst_83 : f32 to vector<2x128xf32>
    %413 = arith.addf %412, %411 : vector<2x128xf32>
    %414 = arith.divf %412, %413 : vector<2x128xf32>
    %415 = arith.mulf %406, %358 : vector<2x128xf32>
    %416 = arith.mulf %400, %408 : vector<2x128xf32>
    %417 = arith.addf %415, %416 : vector<2x128xf32>
    %418 = math.tanh %417 : vector<2x128xf32>
    %419 = arith.mulf %414, %418 : vector<2x128xf32>
    %c7_i32 = arith.constant 7 : i32
    %cst_84 = arith.constant dense<0.000000e+00> : vector<2x512xf32>
    %420 = tpu.matmul %419, %2, %cst_84 {dimension_numbers = #tpu.dot_dimension_numbers<[1], [0], [0], [1], [0, 0, 1, 1], [], []>} : vector<2x128xf32>, vector<128x512xf32>, vector<2x512xf32> -> vector<2x512xf32>
    %421 = arith.index_cast %c7_i32 : i32 to index
    %c0_85 = arith.constant 0 : index
    %c0_86 = arith.constant 0 : index
    %422 = vector.load %arg1[%421, %c0_85, %c0_86] : memref<8x2x512xf32, #tpu.memory_space<vmem>>, vector<1x2x512xf32>
    %423 = vector.shape_cast %422 : vector<1x2x512xf32> to vector<2x512xf32>
    %cst_87 = arith.constant dense<0.000000e+00> : vector<2x512xf32>
    %424 = tpu.matmul %391, %0, %cst_87 {dimension_numbers = #tpu.dot_dimension_numbers<[1], [0], [0], [1], [0, 0, 1, 1], [], []>} : vector<2x128xf32>, vector<128x512xf32>, vector<2x512xf32> -> vector<2x512xf32>
    %425 = arith.addf %423, %424 : vector<2x512xf32>
    %426 = vector.extract_strided_slice %425 {offsets = [0, 0], sizes = [2, 128], strides = [1, 1]} : vector<2x512xf32> to vector<2x128xf32>
    %427 = arith.negf %426 : vector<2x128xf32>
    %428 = math.exp %427 : vector<2x128xf32>
    %cst_88 = arith.constant 1.000000e+00 : f32
    %429 = vector.broadcast %cst_88 : f32 to vector<2x128xf32>
    %430 = arith.addf %429, %428 : vector<2x128xf32>
    %431 = arith.divf %429, %430 : vector<2x128xf32>
    %432 = vector.extract_strided_slice %425 {offsets = [0, 128], sizes = [2, 128], strides = [1, 1]} : vector<2x512xf32> to vector<2x128xf32>
    %433 = arith.negf %432 : vector<2x128xf32>
    %434 = math.exp %433 : vector<2x128xf32>
    %cst_89 = arith.constant 1.000000e+00 : f32
    %435 = vector.broadcast %cst_89 : f32 to vector<2x128xf32>
    %436 = arith.addf %435, %434 : vector<2x128xf32>
    %437 = arith.divf %435, %436 : vector<2x128xf32>
    %438 = vector.extract_strided_slice %425 {offsets = [0, 256], sizes = [2, 128], strides = [1, 1]} : vector<2x512xf32> to vector<2x128xf32>
    %439 = math.tanh %438 : vector<2x128xf32>
    %440 = vector.extract_strided_slice %425 {offsets = [0, 384], sizes = [2, 128], strides = [1, 1]} : vector<2x512xf32> to vector<2x128xf32>
    %441 = arith.negf %440 : vector<2x128xf32>
    %442 = math.exp %441 : vector<2x128xf32>
    %cst_90 = arith.constant 1.000000e+00 : f32
    %443 = vector.broadcast %cst_90 : f32 to vector<2x128xf32>
    %444 = arith.addf %443, %442 : vector<2x128xf32>
    %445 = arith.divf %443, %444 : vector<2x128xf32>
    %446 = arith.mulf %437, %389 : vector<2x128xf32>
    %447 = arith.mulf %431, %439 : vector<2x128xf32>
    %448 = arith.addf %446, %447 : vector<2x128xf32>
    %449 = math.tanh %448 : vector<2x128xf32>
    %450 = arith.mulf %445, %449 : vector<2x128xf32>
    %cst_91 = arith.constant dense<0.000000e+00> : vector<2x512xf32>
    %451 = tpu.matmul %450, %1, %cst_91 {dimension_numbers = #tpu.dot_dimension_numbers<[1], [0], [0], [1], [0, 0, 1, 1], [], []>} : vector<2x128xf32>, vector<128x512xf32>, vector<2x512xf32> -> vector<2x512xf32>
    %452 = arith.addf %451, %420 : vector<2x512xf32>
    %453 = arith.addf %452, %5 : vector<2x512xf32>
    %454 = vector.extract_strided_slice %453 {offsets = [0, 0], sizes = [2, 128], strides = [1, 1]} : vector<2x512xf32> to vector<2x128xf32>
    %455 = arith.negf %454 : vector<2x128xf32>
    %456 = math.exp %455 : vector<2x128xf32>
    %cst_92 = arith.constant 1.000000e+00 : f32
    %457 = vector.broadcast %cst_92 : f32 to vector<2x128xf32>
    %458 = arith.addf %457, %456 : vector<2x128xf32>
    %459 = arith.divf %457, %458 : vector<2x128xf32>
    %460 = vector.extract_strided_slice %453 {offsets = [0, 128], sizes = [2, 128], strides = [1, 1]} : vector<2x512xf32> to vector<2x128xf32>
    %461 = arith.negf %460 : vector<2x128xf32>
    %462 = math.exp %461 : vector<2x128xf32>
    %cst_93 = arith.constant 1.000000e+00 : f32
    %463 = vector.broadcast %cst_93 : f32 to vector<2x128xf32>
    %464 = arith.addf %463, %462 : vector<2x128xf32>
    %465 = arith.divf %463, %464 : vector<2x128xf32>
    %466 = vector.extract_strided_slice %453 {offsets = [0, 256], sizes = [2, 128], strides = [1, 1]} : vector<2x512xf32> to vector<2x128xf32>
    %467 = math.tanh %466 : vector<2x128xf32>
    %468 = vector.extract_strided_slice %453 {offsets = [0, 384], sizes = [2, 128], strides = [1, 1]} : vector<2x512xf32> to vector<2x128xf32>
    %469 = arith.negf %468 : vector<2x128xf32>
    %470 = math.exp %469 : vector<2x128xf32>
    %cst_94 = arith.constant 1.000000e+00 : f32
    %471 = vector.broadcast %cst_94 : f32 to vector<2x128xf32>
    %472 = arith.addf %471, %470 : vector<2x128xf32>
    %473 = arith.divf %471, %472 : vector<2x128xf32>
    %474 = arith.mulf %465, %417 : vector<2x128xf32>
    %475 = arith.mulf %459, %467 : vector<2x128xf32>
    %476 = arith.addf %474, %475 : vector<2x128xf32>
    %477 = math.tanh %476 : vector<2x128xf32>
    %478 = arith.mulf %473, %477 : vector<2x128xf32>
    %c8_i32 = arith.constant 8 : i32
    %c0_95 = arith.constant 0 : index
    %c0_96 = arith.constant 0 : index
    %479 = vector.load %arg6[%c0_95, %c0_96] : memref<128x1xf32, #tpu.memory_space<vmem>>, vector<128x1xf32>
    %cst_97 = arith.constant dense<0.000000e+00> : vector<2x1xf32>
    %480 = tpu.matmul %478, %479, %cst_97 {dimension_numbers = #tpu.dot_dimension_numbers<[1], [0], [0], [1], [0, 0, 1, 1], [], []>} : vector<2x128xf32>, vector<128x1xf32>, vector<2x1xf32> -> vector<2x1xf32>
    %c0_98 = arith.constant 0 : index
    %c0_99 = arith.constant 0 : index
    %481 = vector.load %arg7[%c0_98, %c0_99] : memref<1x1xf32, #tpu.memory_space<vmem>>, vector<1x1xf32>
    %482 = vector.broadcast %481 : vector<1x1xf32> to vector<2x1xf32>
    %483 = arith.addf %480, %482 : vector<2x1xf32>
    %c0_100 = arith.constant 0 : index
    %c0_101 = arith.constant 0 : index
    %484 = vector.load %arg8[%c0_100, %c0_101] : memref<2x1xf32, #tpu.memory_space<vmem>>, vector<2x1xf32>
    tpu.vector_store %arg8[%c0_100, %c0_101], %483 {strides = array<i32>} : memref<2x1xf32, #tpu.memory_space<vmem>>, vector<2x1xf32>,
    return
  }
  func.func @transform_0(%arg0: i32) -> (i32, i32, i32) {
    %c0_i32 = arith.constant 0 : i32
    %c0_i32_0 = arith.constant 0 : i32
    %c0_i32_1 = arith.constant 0 : i32
    %c0_i32_2 = arith.constant 0 : i32
    return %c0_i32, %c0_i32_0, %c0_i32_1 : i32, i32, i32
  }
  func.func @transform_1(%arg0: i32) -> (i32, i32) {
    %c0_i32 = arith.constant 0 : i32
    %c0_i32_0 = arith.constant 0 : i32
    %c0_i32_1 = arith.constant 0 : i32
    return %c0_i32, %c0_i32_0 : i32, i32
  }
  func.func @transform_2(%arg0: i32) -> (i32, i32) {
    %c0_i32 = arith.constant 0 : i32
    %c0_i32_0 = arith.constant 0 : i32
    %c0_i32_1 = arith.constant 0 : i32
    return %c0_i32, %c0_i32_0 : i32, i32
  }
  func.func @transform_3(%arg0: i32) -> (i32, i32) {
    %c0_i32 = arith.constant 0 : i32
    %c0_i32_0 = arith.constant 0 : i32
    %c0_i32_1 = arith.constant 0 : i32
    return %c0_i32, %c0_i32_0 : i32, i32
  }
  func.func @transform_4(%arg0: i32) -> (i32, i32) {
    %c0_i32 = arith.constant 0 : i32
    %c0_i32_0 = arith.constant 0 : i32
    %c0_i32_1 = arith.constant 0 : i32
    return %c0_i32, %c0_i32_0 : i32, i32
  }
  func.func @transform_5(%arg0: i32) -> (i32, i32) {
    %c0_i32 = arith.constant 0 : i32
    %c0_i32_0 = arith.constant 0 : i32
    %c0_i32_1 = arith.constant 0 : i32
    return %c0_i32, %c0_i32_0 : i32, i32
  }
  func.func @transform_6(%arg0: i32) -> (i32, i32) {
    %c0_i32 = arith.constant 0 : i32
    %c0_i32_0 = arith.constant 0 : i32
    %c0_i32_1 = arith.constant 0 : i32
    return %c0_i32, %c0_i32_0 : i32, i32
  }
  func.func @transform_7(%arg0: i32) -> (i32, i32) {
    %c0_i32 = arith.constant 0 : i32
    %c0_i32_0 = arith.constant 0 : i32
    %c0_i32_1 = arith.constant 0 : i32
    return %c0_i32, %c0_i32_0 : i32, i32
  }
}

</mosaic_0001>

<bundles_post_ra>
// kernel: lstm_stock_predictor.1
= control target key start
LH: loop header
LB: loop body
LE: loop exit
PB: predicated region body
PF: predicated region fallthrough
CT: control target
= control target key end

     0   :  { %vm400_vm0 = vcmask 1045508   ;;  %vm398_vm1 = vcmask 1041408   ;;  %vm402_vm2 = vcmask 1043456   ;;  %s10121_s3 = inlined_call_operand.vmem [shape: f32[128,512], index: 3, kind: input, shape index: {}]   ;;  %s10122_s1 = inlined_call_operand.vmem [shape: f32[128,512], index: 1, kind: input, shape index: {}]   ;;  %s10123_s2 = inlined_call_operand.vmem [shape: f32[128,512], index: 2, kind: input, shape index: {}]   ;;  %s10124_s0 = inlined_call_operand.vmem [shape: f32[8,2,512], index: 0, kind: input, shape index: {}]   ;;  %s10125_s4 = inlined_call_operand.vmem [shape: f32[1,512], index: 4, kind: input, shape index: {}]   ;;  %s10126_s5 = inlined_call_operand.vmem [shape: f32[128,1], index: 5, kind: input, shape index: {}]   ;;  %s10127_s6 = inlined_call_operand.<no memory space> [shape: f32[1,1], index: 6, kind: input, shape index: {}]   ;;  %s10128_s7 = inlined_call_operand.vmem [shape: f32[2,1], index: 7, kind: output, shape index: {}]  }
   0x1   :  { %v4339_v0 = vld [vmem:[%s10121_s3 + $0x1f0] sm:$0xff]  ;;  %v4344_v1 = vld [vmem:[%s10121_s3 + $0x1f8] sm:$0xff]  ;;  %v4371_v6 = vld [vmem:[%s10121_s3 + $0x1e8] sm:$0xff] }
   0x2   :  { %v4349_v2 = vld [vmem:[%s10121_s3 + $0x1d0] sm:$0xff]  ;;  %270 = vmatpush.msra.mxu2 %v4339_v0  ;;  %290 = vmatpush.msra.mxu3 %v4344_v1  ;;  %v4356_v3 = vld [vmem:[%s10121_s3 + $0x1d8] sm:$0xff]  ;;  %v4378_v7 = vld [vmem:[%s10121_s3 + $0x1e0] sm:$0xff] }
   0x3   :  { %v4361_v4 = vld [vmem:[%s10121_s3 + $0x1b0] sm:$0xff]  ;;  %v4366_v5 = vld [vmem:[%s10121_s3 + $0x1b8] sm:$0xff]  ;;  %v4383_v8 = vld [vmem:[%s10121_s3 + $0x1c8] sm:$0xff]  ;;  %250 = vmatpush.msra.mxu1 %v4371_v6  ;;  %230 = vmatpush.msra.mxu0 %v4378_v7 }
   0x4   :  { %271 = vmatpush.msra.mxu2 %v4349_v2  ;;  %291 = vmatpush.msra.mxu3 %v4356_v3  ;;  %v4389_v9 = vld [vmem:[%s10121_s3 + $0x190] sm:$0xff]  ;;  %v4394_v10 = vld [vmem:[%s10121_s3 + $0x198] sm:$0xff]  ;;  %v4400_v11 = vld [vmem:[%s10121_s3 + $0x1c0] sm:$0xff] }
   0x5   :  { %v4407_v12 = vld [vmem:[%s10121_s3 + $0x1a8] sm:$0xff]  ;;  %v4412_v13 = vld [vmem:[%s10121_s3 + $0x1a0] sm:$0xff]  ;;  %251 = vmatpush.msra.mxu1 %v4383_v8  ;;  %v4418_v14 = vld [vmem:[%s10121_s3 + $0x170] sm:$0xff]  ;;  %231 = vmatpush.msra.mxu0 %v4400_v11 }
   0x6   :  { %272 = vmatpush.msra.mxu2 %v4361_v4  ;;  %292 = vmatpush.msra.mxu3 %v4366_v5  ;;  %v4423_v15 = vld [vmem:[%s10121_s3 + $0x178] sm:$0xff]  ;;  %v4431_v16 = vld [vmem:[%s10121_s3 + $0x188] sm:$0xff]  ;;  %v4436_v17 = vld [vmem:[%s10121_s3 + $0x180] sm:$0xff] }
   0x7   :  { %252 = vmatpush.msra.mxu1 %v4407_v12  ;;  %v4442_v18 = vld [vmem:[%s10121_s3 + $0x150] sm:$0xff]  ;;  %v4447_v19 = vld [vmem:[%s10121_s3 + $0x158] sm:$0xff]  ;;  %232 = vmatpush.msra.mxu0 %v4412_v13  ;;  %v4455_v20 = vld [vmem:[%s10121_s3 + $0x168] sm:$0xff] }
   0x8   :  { %273 = vmatpush.msra.mxu2 %v4389_v9  ;;  %293 = vmatpush.msra.mxu3 %v4394_v10  ;;  %v4460_v21 = vld [vmem:[%s10121_s3 + $0x160] sm:$0xff]  ;;  %v4466_v22 = vld [vmem:[%s10121_s3 + $0x130] sm:$0xff]  ;;  %v4471_v23 = vld [vmem:[%s10121_s3 + $0x138] sm:$0xff] }
   0x9   :  { %253 = vmatpush.msra.mxu1 %v4431_v16  ;;  %233 = vmatpush.msra.mxu0 %v4436_v17  ;;  %v4479_v24 = vld [vmem:[%s10121_s3 + $0x148] sm:$0xff]  ;;  %v4484_v25 = vld [vmem:[%s10121_s3 + $0x140] sm:$0xff]  ;;  %v4490_v26 = vld [vmem:[%s10121_s3 + $0x110] sm:$0xff] }
   0xa   :  { %274 = vmatpush.msra.mxu2 %v4418_v14  ;;  %294 = vmatpush.msra.mxu3 %v4423_v15  ;;  %v4495_v27 = vld [vmem:[%s10121_s3 + $0x118] sm:$0xff]  ;;  %v4503_v28 = vld [vmem:[%s10121_s3 + $0x128] sm:$0xff]  ;;  %v4508_v29 = vld [vmem:[%s10121_s3 + $0x120] sm:$0xff] }
   0xb   :  { %254 = vmatpush.msra.mxu1 %v4455_v20  ;;  %234 = vmatpush.msra.mxu0 %v4460_v21  ;;  %v4514_v30 = vld [vmem:[%s10121_s3 + $0xf0] sm:$0xff]  ;;  %v4519_v31 = vld [vmem:[%s10121_s3 + $0xf8] sm:$0xff]  ;;  %v4527_v32 = vld [vmem:[%s10121_s3 + $0x108] sm:$0xff] }
   0xc   :  { %275 = vmatpush.msra.mxu2 %v4442_v18  ;;  %295 = vmatpush.msra.mxu3 %v4447_v19  ;;  %v4532_v33 = vld [vmem:[%s10121_s3 + $0x100] sm:$0xff]  ;;  %v4538_v34 = vld [vmem:[%s10121_s3 + $0xd0] sm:$0xff]  ;;  %v4543_v35 = vld [vmem:[%s10121_s3 + $0xd8] sm:$0xff] }
   0xd   :  { %255 = vmatpush.msra.mxu1 %v4479_v24  ;;  %235 = vmatpush.msra.mxu0 %v4484_v25  ;;  %v4551_v36 = vld [vmem:[%s10121_s3 + $0xe8] sm:$0xff]  ;;  %v4556_v37 = vld [vmem:[%s10121_s3 + $0xe0] sm:$0xff]  ;;  %v4562_v38 = vld [vmem:[%s10121_s3 + $0xb0] sm:$0xff] }
   0xe   :  { %276 = vmatpush.msra.mxu2 %v4466_v22  ;;  %296 = vmatpush.msra.mxu3 %v4471_v23  ;;  %v4567_v39 = vld [vmem:[%s10121_s3 + $0xb8] sm:$0xff]  ;;  %v4575_v40 = vld [vmem:[%s10121_s3 + $0xc8] sm:$0xff]  ;;  %v4580_v41 = vld [vmem:[%s10121_s3 + $0xc0] sm:$0xff] }
   0xf   :  { %256 = vmatpush.msra.mxu1 %v4503_v28  ;;  %236 = vmatpush.msra.mxu0 %v4508_v29  ;;  %v4586_v42 = vld [vmem:[%s10121_s3 + $0x90] sm:$0xff]  ;;  %v4591_v43 = vld [vmem:[%s10121_s3 + $0x98] sm:$0xff]  ;;  %v4599_v44 = vld [vmem:[%s10121_s3 + $0xa8] sm:$0xff] }
  0x10   :  { %277 = vmatpush.msra.mxu2 %v4490_v26  ;;  %297 = vmatpush.msra.mxu3 %v4495_v27  ;;  %v4604_v45 = vld [vmem:[%s10121_s3 + $0xa0] sm:$0xff]  ;;  %v4610_v46 = vld [vmem:[%s10121_s3 + $0x70] sm:$0xff]  ;;  %v4615_v47 = vld [vmem:[%s10121_s3 + $0x78] sm:$0xff] }
  0x11   :  { %257 = vmatpush.msra.mxu1 %v4527_v32  ;;  %237 = vmatpush.msra.mxu0 %v4532_v33  ;;  %v4623_v48 = vld [vmem:[%s10121_s3 + $0x88] sm:$0xff]  ;;  %v4628_v49 = vld [vmem:[%s10121_s3 + $0x80] sm:$0xff]  ;;  %v4634_v50 = vld [vmem:[%s10121_s3 + $0x50] sm:$0xff] }
  0x12   :  { %278 = vmatpush.msra.mxu2 %v4514_v30  ;;  %298 = vmatpush.msra.mxu3 %v4519_v31  ;;  %10675 = vst [vmem:[#allocation3_spill] sm:$0xff] %v4634_v50  ;;  %v4639_v51 = vld [vmem:[%s10121_s3 + $0x58] sm:$0xff]  ;;  %v4647_v52 = vld [vmem:[%s10121_s3 + $0x68] sm:$0xff]  ;;  %v4652_v53 = vld [vmem:[%s10121_s3 + $0x60] sm:$0xff] }
  0x13   :  { %258 = vmatpush.msra.mxu1 %v4551_v36  ;;  %238 = vmatpush.msra.mxu0 %v4556_v37  ;;  %10676 = vst [vmem:[#allocation4_spill] sm:$0xff] %v4639_v51  ;;  %v4658_v54 = vld [vmem:[%s10121_s3 + $0x30] sm:$0xff]  ;;  %v4663_v55 = vld [vmem:[%s10121_s3 + $0x38] sm:$0xff]  ;;  %v4671_v56 = vld [vmem:[%s10121_s3 + $0x48] sm:$0xff] }
  0x14   :  { %279 = vmatpush.msra.mxu2 %v4538_v34  ;;  %299 = vmatpush.msra.mxu3 %v4543_v35  ;;  %10677 = vst [vmem:[#allocation5_spill] sm:$0xff] %v4658_v54  ;;  %v4676_v57 = vld [vmem:[%s10121_s3 + $0x40] sm:$0xff]  ;;  %v4682_v58 = vld [vmem:[%s10121_s3 + $0x10] sm:$0xff]  ;;  %v4687_v59 = vld [vmem:[%s10121_s3 + $0x18] sm:$0xff] }
  0x15   :  { %259 = vmatpush.msra.mxu1 %v4575_v40  ;;  %239 = vmatpush.msra.mxu0 %v4580_v41  ;;  %10678 = vst [vmem:[#allocation6_spill] sm:$0xff] %v4663_v55  ;;  %v4695_v60 = vld [vmem:[%s10122_s1 + $0x1f0] sm:$0xff]  ;;  %v4700_v61 = vld [vmem:[%s10122_s1 + $0x1f8] sm:$0xff]  ;;  %v4707_v62 = vld [vmem:[%s10121_s3 + $0x28] sm:$0xff] }
  0x16   :  { %280 = vmatpush.msra.mxu2 %v4562_v38  ;;  %300 = vmatpush.msra.mxu3 %v4567_v39  ;;  %10679 = vst [vmem:[#allocation7_spill] sm:$0xff] %v4671_v56  ;;  %v4712_v63 = vld [vmem:[%s10121_s3 + $0x20] sm:$0xff] }
  0x17   :  { %260 = vmatpush.msra.mxu1 %v4599_v44  ;;  %240 = vmatpush.msra.mxu0 %v4604_v45  ;;  %10680 = vst [vmem:[#allocation8_spill] sm:$0xff] %v4676_v57 }
  0x18   :  { %281 = vmatpush.msra.mxu2 %v4586_v42  ;;  %301 = vmatpush.msra.mxu3 %v4591_v43  ;;  %10681 = vst [vmem:[#allocation9_spill] sm:$0xff] %v4682_v58 }
  0x19   :  { %261 = vmatpush.msra.mxu1 %v4623_v48  ;;  %241 = vmatpush.msra.mxu0 %v4628_v49  ;;  %10682 = vst [vmem:[#allocation10_spill] sm:$0xff] %v4687_v59 }
  0x1a   :  { %282 = vmatpush.msra.mxu2 %v4610_v46  ;;  %302 = vmatpush.msra.mxu3 %v4615_v47  ;;  %10683 = vst [vmem:[#allocation11_spill] sm:$0xff] %v4695_v60 }
  0x1b   :  { %262 = vmatpush.msra.mxu1 %v4647_v52  ;;  %242 = vmatpush.msra.mxu0 %v4652_v53  ;;  %10684 = vst [vmem:[#allocation12_spill] sm:$0xff] %v4700_v61 }
  0x1c   :  { %283 = vmatpush.msra.mxu2 %v4634_v50  ;;  %303 = vmatpush.msra.mxu3 %v4639_v51  ;;  %10685 = vst [vmem:[#allocation13_spill] sm:$0xff] %v4707_v62  ;;  %v4742_v51 = vld [vmem:[%s10122_s1 + $0x1b0] sm:$0xff] }
  0x1d   :  { %263 = vmatpush.msra.mxu1 %v4671_v56  ;;  %243 = vmatpush.msra.mxu0 %v4676_v57  ;;  %10686 = vst [vmem:[#allocation14_spill] sm:$0xff] %v4712_v63  ;;  %v5279_v56 = vld [vmem:[%s10123_s2 + $0x138] sm:$0xff] }
  0x1e   :  { %284 = vmatpush.msra.mxu2 %v4658_v54  ;;  %304 = vmatpush.msra.mxu3 %v4663_v55  ;;  %v4719_v55 = vld [vmem:[%s10122_s1 + $0x1d0] sm:$0xff]  ;;  %v4724_v54 = vld [vmem:[%s10122_s1 + $0x1d8] sm:$0xff]  ;;  %10691 = vst [vmem:[#allocation19_spill] sm:$0xff] %v4742_v51 }
  0x1f   :  { %10687 = vst [vmem:[#allocation15_spill] sm:$0xff] %v4719_v55  ;;  %264 = vmatpush.msra.mxu1 %v4707_v62  ;;  %244 = vmatpush.msra.mxu0 %v4712_v63  ;;  %v4760_v62 = vld [vmem:[%s10122_s1 + $0x1e0] sm:$0xff]  ;;  %v4766_v63 = vld [vmem:[%s10122_s1 + $0x190] sm:$0xff] }
  0x20   :  { %285 = vmatpush.msra.mxu2 %v4682_v58  ;;  %305 = vmatpush.msra.mxu3 %v4687_v59  ;;  %10688 = vst [vmem:[#allocation16_spill] sm:$0xff] %v4724_v54  ;;  %v4731_v58 = vld [vmem:[%s10121_s3 + $0x8] sm:$0xff]  ;;  %v4736_v59 = vld [vmem:[%s10121_s3] sm:$0xff] }
  0x21   :  { %10689 = vst [vmem:[#allocation17_spill] sm:$0xff] %v4731_v58  ;;  %265 = vmatpush.msra.mxu1 %v4731_v58  ;;  %245 = vmatpush.msra.mxu0 %v4736_v59  ;;  %v4784_v58 = vld [vmem:[%s10122_s1 + $0x1c0] sm:$0xff] }
  0x22   :  { %351 = vmatpush.msrb.mxu2 %v4695_v60  ;;  %371 = vmatpush.msrb.mxu3 %v4700_v61  ;;  %10690 = vst [vmem:[#allocation18_spill] sm:$0xff] %v4736_v59  ;;  %v4747_v61 = vld [vmem:[%s10122_s1 + $0x1b8] sm:$0xff]  ;;  %v4755_v60 = vld [vmem:[%s10122_s1 + $0x1e8] sm:$0xff] }
  0x23   :  { %10692 = vst [vmem:[#allocation20_spill] sm:$0xff] %v4747_v61  ;;  %331 = vmatpush.msrb.mxu1 %v4755_v60  ;;  %311 = vmatpush.msrb.mxu0 %v4760_v62  ;;  %v4995_v59 = vld [vmem:[%s10122_s1 + $0xa8] sm:$0xff] }
  0x24   :  { %352 = vmatpush.msrb.mxu2 %v4719_v55  ;;  %372 = vmatpush.msrb.mxu3 %v4724_v54  ;;  %10693 = vst [vmem:[#allocation21_spill] sm:$0xff] %v4755_v60  ;;  %v4771_v54 = vld [vmem:[%s10122_s1 + $0x198] sm:$0xff]  ;;  %v4779_v55 = vld [vmem:[%s10122_s1 + $0x1c8] sm:$0xff] }
  0x25   :  { %10694 = vst [vmem:[#allocation22_spill] sm:$0xff] %v4760_v62  ;;  %v4803_v60 = vld [vmem:[%s10122_s1 + $0x1a8] sm:$0xff]  ;;  %v4808_v62 = vld [vmem:[%s10122_s1 + $0x1a0] sm:$0xff]  ;;  %332 = vmatpush.msrb.mxu1 %v4779_v55  ;;  %312 = vmatpush.msrb.mxu0 %v4784_v58 }
  0x26   :  { %10695 = vst [vmem:[#allocation23_spill] sm:$0xff] %v4766_v63  ;;  %353 = vmatpush.msrb.mxu2 %v4742_v51  ;;  %373 = vmatpush.msrb.mxu3 %v4747_v61  ;;  %v4791_v51 = vld [vmem:[%s10122_s1 + $0x170] sm:$0xff]  ;;  %v4796_v61 = vld [vmem:[%s10122_s1 + $0x178] sm:$0xff] }
  0x27   :  { %10696 = vst [vmem:[#allocation24_spill] sm:$0xff] %v4771_v54  ;;  %333 = vmatpush.msrb.mxu1 %v4803_v60  ;;  %313 = vmatpush.msrb.mxu0 %v4808_v62 }
  0x28   :  { %10697 = vst [vmem:[#allocation25_spill] sm:$0xff] %v4779_v55  ;;  %354 = vmatpush.msrb.mxu2 %v4766_v63  ;;  %374 = vmatpush.msrb.mxu3 %v4771_v54  ;;  %v4815_v63 = vld [vmem:[%s10122_s1 + $0x150] sm:$0xff]  ;;  %v4820_v54 = vld [vmem:[%s10122_s1 + $0x158] sm:$0xff]  ;;  %v4827_v55 = vld [vmem:[%s10122_s1 + $0x188] sm:$0xff] }
  0x29   :  { %10698 = vst [vmem:[#allocation26_spill] sm:$0xff] %v4784_v58  ;;  %v4832_v58 = vld [vmem:[%s10122_s1 + $0x180] sm:$0xff]  ;;  %334 = vmatpush.msrb.mxu1 %v4827_v55 }
  0x2a   :  { %10699 = vst [vmem:[#allocation27_spill] sm:$0xff] %v4791_v51  ;;  %355 = vmatpush.msrb.mxu2 %v4791_v51  ;;  %375 = vmatpush.msrb.mxu3 %v4796_v61  ;;  %v4839_v51 = vld [vmem:[%s10122_s1 + $0x130] sm:$0xff] }
  0x2b   :  { %10700 = vst [vmem:[#allocation28_spill] sm:$0xff] %v4796_v61  ;;  %v4844_v61 = vld [vmem:[%s10122_s1 + $0x138] sm:$0xff]  ;;  %314 = vmatpush.msrb.mxu0 %v4832_v58 }
  0x2c   :  { %10701 = vst [vmem:[#allocation29_spill] sm:$0xff] %v4803_v60  ;;  %356 = vmatpush.msrb.mxu2 %v4815_v63  ;;  %376 = vmatpush.msrb.mxu3 %v4820_v54  ;;  %v4851_v60 = vld [vmem:[%s10122_s1 + $0x168] sm:$0xff] }
  0x2d   :  { %10702 = vst [vmem:[#allocation30_spill] sm:$0xff] %v4808_v62  ;;  %v4856_v62 = vld [vmem:[%s10122_s1 + $0x160] sm:$0xff]  ;;  %335 = vmatpush.msrb.mxu1 %v4851_v60 }
  0x2e   :  { %10703 = vst [vmem:[#allocation31_spill] sm:$0xff] %v4815_v63  ;;  %v4863_v63 = vld [vmem:[%s10122_s1 + $0x110] sm:$0xff]  ;;  %357 = vmatpush.msrb.mxu2 %v4839_v51  ;;  %377 = vmatpush.msrb.mxu3 %v4844_v61 }
  0x2f   :  { %10704 = vst [vmem:[#allocation32_spill] sm:$0xff] %v4820_v54  ;;  %v4868_v54 = vld [vmem:[%s10122_s1 + $0x118] sm:$0xff]  ;;  %315 = vmatpush.msrb.mxu0 %v4856_v62 }
  0x30   :  { %10705 = vst [vmem:[#allocation33_spill] sm:$0xff] %v4827_v55  ;;  %v4875_v55 = vld [vmem:[%s10122_s1 + $0x148] sm:$0xff]  ;;  %358 = vmatpush.msrb.mxu2 %v4863_v63  ;;  %378 = vmatpush.msrb.mxu3 %v4868_v54 }
  0x31   :  { %10706 = vst [vmem:[#allocation34_spill] sm:$0xff] %v4832_v58  ;;  %v4880_v58 = vld [vmem:[%s10122_s1 + $0x140] sm:$0xff]  ;;  %336 = vmatpush.msrb.mxu1 %v4875_v55 }
  0x32   :  { %10707 = vst [vmem:[#allocation35_spill] sm:$0xff] %v4839_v51  ;;  %v4887_v51 = vld [vmem:[%s10122_s1 + $0xf0] sm:$0xff]  ;;  %316 = vmatpush.msrb.mxu0 %v4880_v58 }
  0x33   :  { %10708 = vst [vmem:[#allocation36_spill] sm:$0xff] %v4844_v61  ;;  %v4892_v61 = vld [vmem:[%s10122_s1 + $0xf8] sm:$0xff]  ;;  %359 = vmatpush.msrb.mxu2 %v4887_v51 }
  0x34   :  { %10709 = vst [vmem:[#allocation37_spill] sm:$0xff] %v4851_v60  ;;  %v4899_v60 = vld [vmem:[%s10122_s1 + $0x128] sm:$0xff]  ;;  %379 = vmatpush.msrb.mxu3 %v4892_v61 }
  0x35   :  { %10710 = vst [vmem:[#allocation38_spill] sm:$0xff] %v4856_v62  ;;  %v4904_v62 = vld [vmem:[%s10122_s1 + $0x120] sm:$0xff]  ;;  %337 = vmatpush.msrb.mxu1 %v4899_v60 }
  0x36   :  { %10711 = vst [vmem:[#allocation39_spill] sm:$0xff] %v4863_v63  ;;  %v4911_v63 = vld [vmem:[%s10122_s1 + $0xd0] sm:$0xff]  ;;  %317 = vmatpush.msrb.mxu0 %v4904_v62 }
  0x37   :  { %10712 = vst [vmem:[#allocation40_spill] sm:$0xff] %v4868_v54  ;;  %v4916_v54 = vld [vmem:[%s10122_s1 + $0xd8] sm:$0xff]  ;;  %360 = vmatpush.msrb.mxu2 %v4911_v63 }
  0x38   :  { %10713 = vst [vmem:[#allocation41_spill] sm:$0xff] %v4875_v55  ;;  %v4923_v55 = vld [vmem:[%s10122_s1 + $0x108] sm:$0xff]  ;;  %380 = vmatpush.msrb.mxu3 %v4916_v54 }
  0x39   :  { %10714 = vst [vmem:[#allocation42_spill] sm:$0xff] %v4880_v58  ;;  %v4928_v58 = vld [vmem:[%s10122_s1 + $0x100] sm:$0xff]  ;;  %338 = vmatpush.msrb.mxu1 %v4923_v55 }
  0x3a   :  { %10715 = vst [vmem:[#allocation43_spill] sm:$0xff] %v4887_v51  ;;  %v4935_v51 = vld [vmem:[%s10122_s1 + $0xb0] sm:$0xff]  ;;  %318 = vmatpush.msrb.mxu0 %v4928_v58 }
  0x3b   :  { %10716 = vst [vmem:[#allocation44_spill] sm:$0xff] %v4892_v61  ;;  %v4940_v61 = vld [vmem:[%s10122_s1 + $0xb8] sm:$0xff]  ;;  %361 = vmatpush.msrb.mxu2 %v4935_v51 }
  0x3c   :  { %10717 = vst [vmem:[#allocation45_spill] sm:$0xff] %v4899_v60  ;;  %v4947_v60 = vld [vmem:[%s10122_s1 + $0xe8] sm:$0xff]  ;;  %381 = vmatpush.msrb.mxu3 %v4940_v61 }
  0x3d   :  { %10718 = vst [vmem:[#allocation46_spill] sm:$0xff] %v4904_v62  ;;  %v4954_v62 = vld [vmem:[%s10122_s1 + $0x90] sm:$0xff]  ;;  %339 = vmatpush.msrb.mxu1 %v4947_v60 }
  0x3e   :  { %10719 = vst [vmem:[#allocation47_spill] sm:$0xff] %v4911_v63  ;;  %v4959_v63 = vld [vmem:[%s10122_s1 + $0x98] sm:$0xff]  ;;  %362 = vmatpush.msrb.mxu2 %v4954_v62 }
  0x3f   :  { %10720 = vst [vmem:[#allocation48_spill] sm:$0xff] %v4916_v54  ;;  %v4966_v54 = vld [vmem:[%s10122_s1 + $0xe0] sm:$0xff]  ;;  %382 = vmatpush.msrb.mxu3 %v4959_v63 }
  0x40   :  { %10721 = vst [vmem:[#allocation49_spill] sm:$0xff] %v4923_v55  ;;  %v4295_v55 = vmov 0.0   ;;  %319 = vmatpush.msrb.mxu0 %v4966_v54 }
  0x41   :  { %10722 = vst [vmem:[#allocation50_spill] sm:$0xff] %v4928_v58  ;;  %286 = vmatmul.f32.vlgmr.msra.gmra.mxu2 %v4295_v55  ;;  %v4972_v58 = vld [vmem:[%s10122_s1 + $0xc8] sm:$0xff]  ;;  %306 = vmatmul.f32.vlgmr.msra.gmra.mxu3 %v4295_v55 }
  0x42   :  { %10723 = vst [vmem:[#allocation51_spill] sm:$0xff] %v4935_v51  ;;  %v4977_v51 = vld [vmem:[%s10122_s1 + $0x70] sm:$0xff]  ;;  %340 = vmatpush.msrb.mxu1 %v4972_v58  ;;  %246 = vmatmul.f32.vlgmr.msra.gmra.mxu0 %v4295_v55 }
  0x43   :  { %10724 = vst [vmem:[#allocation52_spill] sm:$0xff] %v4940_v61  ;;  %v4984_v61 = vld [vmem:[%s10122_s1 + $0x78] sm:$0xff]  ;;  %363 = vmatpush.msrb.mxu2 %v4977_v51  ;;  %266 = vmatmul.f32.vlgmr.msra.gmra.mxu1 %v4295_v55 }
  0x44   :  { %10725 = vst [vmem:[#allocation53_spill] sm:$0xff] %v4947_v60  ;;  %v4989_v60 = vld [vmem:[%s10122_s1 + $0xc0] sm:$0xff]  ;;  %383 = vmatpush.msrb.mxu3 %v4984_v61  ;;  %341 = vmatpush.msrb.mxu1 %v4995_v59 }
  0x45   :  { %10726 = vst [vmem:[#allocation54_spill] sm:$0xff] %v4954_v62  ;;  %v5007_v62 = vld [vmem:[%s10122_s1 + $0x58] sm:$0xff]  ;;  %320 = vmatpush.msrb.mxu0 %v4989_v60 }
  0x46   :  { %10727 = vst [vmem:[#allocation55_spill] sm:$0xff] %v4959_v63  ;;  %v5000_v63 = vld [vmem:[%s10122_s1 + $0x50] sm:$0xff]  ;;  %384 = vmatpush.msrb.mxu3 %v5007_v62 }
  0x47   :  { %10728 = vst [vmem:[#allocation56_spill] sm:$0xff] %v4966_v54  ;;  %v5012_v54 = vld [vmem:[%s10122_s1 + $0xa0] sm:$0xff]  ;;  %364 = vmatpush.msrb.mxu2 %v5000_v63 }
  0x48   :  { %10729 = vst [vmem:[#allocation57_spill] sm:$0xff] %v4972_v58  ;;  %v5019_v58 = vld [vmem:[%s10122_s1 + $0x88] sm:$0xff]  ;;  %321 = vmatpush.msrb.mxu0 %v5012_v54 }
  0x49   :  { %10730 = vst [vmem:[#allocation58_spill] sm:$0xff] %v4977_v51  ;;  %v5024_v51 = vld [vmem:[%s10122_s1 + $0x30] sm:$0xff]  ;;  %342 = vmatpush.msrb.mxu1 %v5019_v58 }
  0x4a   :  { %10731 = vst [vmem:[#allocation59_spill] sm:$0xff] %v4984_v61  ;;  %v5031_v61 = vld [vmem:[%s10122_s1 + $0x38] sm:$0xff]  ;;  %365 = vmatpush.msrb.mxu2 %v5024_v51 }
  0x4b   :  { %10732 = vst [vmem:[#allocation60_spill] sm:$0xff] %v4989_v60  ;;  %v5038_v60 = vld [vmem:[%s10122_s1 + $0x80] sm:$0xff]  ;;  %385 = vmatpush.msrb.mxu3 %v5031_v61 }
  0x4c   :  { %10733 = vst [vmem:[#allocation61_spill] sm:$0xff] %v4995_v59  ;;  %v5043_v59 = vld [vmem:[%s10122_s1 + $0x68] sm:$0xff]  ;;  %322 = vmatpush.msrb.mxu0 %v5038_v60 }
  0x4d   :  { %10734 = vst [vmem:[#allocation62_spill] sm:$0xff] %v5000_v63  ;;  %v5055_v63 = vld [vmem:[%s10122_s1 + $0x18] sm:$0xff]  ;;  %343 = vmatpush.msrb.mxu1 %v5043_v59 }
  0x4e   :  { %10735 = vst [vmem:[#allocation63_spill] sm:$0xff] %v5007_v62  ;;  %v5050_v62 = vld [vmem:[%s10122_s1 + $0x10] sm:$0xff]  ;;  %386 = vmatpush.msrb.mxu3 %v5055_v63 }
  0x4f   :  { %10736 = vst [vmem:[#allocation64_spill] sm:$0xff] %v5012_v54  ;;  %366 = vmatpush.msrb.mxu2 %v5050_v62  ;;  %387 = vmatmul.f32.vlgmr.msrb.gmra.mxu3 %v4295_v55 }
  0x50   :  { %10737 = vst [vmem:[#allocation65_spill] sm:$0xff] %v5019_v58  ;;  %v5070_v58 = vld [vmem:[%s10122_s1 + $0x48] sm:$0xff]  ;;  %367 = vmatmul.f32.vlgmr.msrb.gmra.mxu2 %v4295_v55 }
  0x51   :  { %10738 = vst [vmem:[#allocation66_spill] sm:$0xff] %v5024_v51  ;;  %v5063_v51 = vld [vmem:[%s10122_s1 + $0x60] sm:$0xff]  ;;  %344 = vmatpush.msrb.mxu1 %v5070_v58 }
  0x52   :  { %10739 = vst [vmem:[#allocation67_spill] sm:$0xff] %v5031_v61  ;;  %v5075_v61 = vld [vmem:[%s10122_s1 + $0x40] sm:$0xff]  ;;  %323 = vmatpush.msrb.mxu0 %v5063_v51 }
  0x53   :  { %10740 = vst [vmem:[#allocation68_spill] sm:$0xff] %v5038_v60 }
  0x54   :  { %10741 = vst [vmem:[#allocation69_spill] sm:$0xff] %v5043_v59  ;;  %324 = vmatpush.msrb.mxu0 %v5075_v61  ;;  %v5093_v59 = vld [vmem:[%s10122_s1 + $0x8] sm:$0xff] }
  0x55   :  { %10742 = vst [vmem:[#allocation70_spill] sm:$0xff] %v5050_v62  ;;  %v5081_v62 = vld [vmem:[%s10122_s1 + $0x28] sm:$0xff] }
  0x56   :  { %10743 = vst [vmem:[#allocation71_spill] sm:$0xff] %v5055_v63  ;;  %v5087_v63 = vld [vmem:[%s10122_s1 + $0x20] sm:$0xff]  ;;  %345 = vmatpush.msrb.mxu1 %v5081_v62 }
  0x57   :  { %10744 = vst [vmem:[#allocation72_spill] sm:$0xff] %v5063_v51  ;;  %v5099_v51 = vld [vmem:[%s10122_s1] sm:$0xff]  ;;  %325 = vmatpush.msrb.mxu0 %v5087_v63 }
  0x58   :  { %10745 = vst [vmem:[#allocation73_spill] sm:$0xff] %v5070_v58  ;;  %346 = vmatpush.msrb.mxu1 %v5093_v59  ;;  %v5107_v58 = vld [vmem:[%s10123_s2 + $0x1e0] sm:$0xff] }
  0x59   :  { %10746 = vst [vmem:[#allocation74_spill] sm:$0xff] %v5075_v61  ;;  %347 = vmatmul.f32.vlgmr.msrb.gmra.mxu1 %v4295_v55  ;;  %326 = vmatpush.msrb.mxu0 %v5099_v51 }
  0x5a   :  { %10747 = vst [vmem:[#allocation75_spill] sm:$0xff] %v5081_v62  ;;  %327 = vmatmul.f32.vlgmr.msrb.gmra.mxu0 %v4295_v55  ;;  %v5112_v62 = vld [vmem:[%s10123_s2 + $0x1e8] sm:$0xff]  ;;  %v5126_v55 = vld [vmem:[%s10123_s2 + $0x1f8] sm:$0xff] }
  0x5b   :  { %10748 = vst [vmem:[#allocation76_spill] sm:$0xff] %v5087_v63  ;;  %v5117_v63 = vld [vmem:[%s10123_s2 + $0x1f0] sm:$0xff]  ;;  %476 = vmatpush.msra.mxu0 %v5107_v58  ;;  %496 = vmatpush.msra.mxu1 %v5112_v62 }
  0x5c   :  { %10749 = vst [vmem:[#allocation77_spill] sm:$0xff] %v5093_v59  ;;  %516 = vmatpush.msra.mxu2 %v5117_v63  ;;  %536 = vmatpush.msra.mxu3 %v5126_v55 }
  0x5d   :  { %10750 = vst [vmem:[#allocation78_spill] sm:$0xff] %v5099_v51 }
  0x5e   :  { %10751 = vst [vmem:[#allocation79_spill] sm:$0xff] %v5107_v58  ;;  %v5147_v58 = vld [vmem:[%s10123_s2 + $0x1d0] sm:$0xff] }
  0x5f   :  { %10752 = vst [vmem:[#allocation80_spill] sm:$0xff] %v5112_v62  ;;  %v5142_v62 = vld [vmem:[%s10123_s2 + $0x1c8] sm:$0xff]  ;;  %517 = vmatpush.msra.mxu2 %v5147_v58 }
  0x60   :  { %10753 = vst [vmem:[#allocation81_spill] sm:$0xff] %v5117_v63  ;;  %497 = vmatpush.msra.mxu1 %v5142_v62  ;;  %v5161_v63 = vld [vmem:[%s10123_s2 + $0x1a0] sm:$0xff] }
  0x61   :  { %10755 = vst [vmem:[#allocation83_spill] sm:$0xff] %v5126_v55  ;;  %v5154_v55 = vld [vmem:[%s10123_s2 + $0x1d8] sm:$0xff] }
  0x62   :  { %10759 = vst [vmem:[#allocation87_spill] sm:$0xff] %v5142_v62  ;;  %537 = vmatpush.msra.mxu3 %v5154_v55  ;;  %v5171_v62 = vld [vmem:[%s10123_s2 + $0x1b0] sm:$0xff] }
  0x63   :  { %10760 = vst [vmem:[#allocation88_spill] sm:$0xff] %v5147_v58  ;;  %518 = vmatpush.msra.mxu2 %v5171_v62  ;;  %v5187_v58 = vld [vmem:[%s10123_s2 + $0x180] sm:$0xff] }
  0x64   :  { %10761 = vst [vmem:[#allocation89_spill] sm:$0xff] %v5154_v55  ;;  %v5180_v55 = vld [vmem:[%s10123_s2 + $0x1b8] sm:$0xff] }
  0x65   :  { %10762 = vst [vmem:[#allocation90_spill] sm:$0xff] %v5161_v63  ;;  %538 = vmatpush.msra.mxu3 %v5180_v55 }
  0x66   :  { %10764 = vst [vmem:[#allocation92_spill] sm:$0xff] %v5171_v62  ;;  %v5211_v62 = vld [vmem:[%s10123_s2 + $0x160] sm:$0xff] }
  0x67   :  { %10766 = vst [vmem:[#allocation94_spill] sm:$0xff] %v5180_v55  ;;  %v5204_v55 = vld [vmem:[%s10123_s2 + $0x198] sm:$0xff] }
  0x68   :  { %10767 = vst [vmem:[#allocation95_spill] sm:$0xff] %v5187_v58  ;;  %539 = vmatpush.msra.mxu3 %v5204_v55 }
  0x69   :  { %10770 = vst [vmem:[#allocation98_spill] sm:$0xff] %v5204_v55  ;;  %v5228_v55 = vld [vmem:[%s10123_s2 + $0x178] sm:$0xff] }
  0x6a   :  { %10771 = vst [vmem:[#allocation99_spill] sm:$0xff] %v5211_v62  ;;  %540 = vmatpush.msra.mxu3 %v5228_v55 }
  0x6b   :  { %10774 = vst [vmem:[#allocation102_spill] sm:$0xff] %v5228_v55  ;;  %v5252_v55 = vld [vmem:[%s10123_s2 + $0x158] sm:$0xff] }
  0x6c   :  { %10778 = vst [vmem:[#allocation106_spill] sm:$0xff] %v5252_v55  ;;  %541 = vmatpush.msra.mxu3 %v5252_v55  ;;  %v310_v55 = vld [vmem:[%s10124_s0] sm:$0xff] }
  0x6d   :  { %10782 = vst [vmem:[#allocation110_spill] sm:$0xff] %v5279_v56 }
  0x6e   :  { %542 = vmatpush.msra.mxu3 %v5279_v56  ;;  %v5305_v56 = vld [vmem:[%s10123_s2 + $0x118] sm:$0xff] }
  0x6f   :  { %10786 = vst [vmem:[#allocation114_spill] sm:$0xff] %v5305_v56 }
  0x70   :  { %543 = vmatpush.msra.mxu3 %v5305_v56  ;;  %v5366_v56 = vld [vmem:[%s10123_s2 + $0xa0] sm:$0xff] }
  0x71   :  { %10795 = vst [vmem:[#allocation123_spill] sm:$0xff] %v5366_v56 }
  0xc0   :  { %v5128_v51 = vpop.f32.mrf.mxu1 }
  0xc1   :  { %10756 = vst [vmem:[#allocation84_spill] sm:$0xff] %v5128_v51 }
  0xc4   :  { %v5119_v59 = vpop.f32.mrf.mxu2  ;;  %v5130_v61 = vpop.f32.mrf.mxu3 }
  0xc5   :  { %10754 = vst [vmem:[#allocation82_spill] sm:$0xff] %v5119_v59  ;;  %v5137_v59 = vld [vmem:[%s10123_s2 + $0x1c0] sm:$0xff] }
  0xc6   :  { %10757 = vst [vmem:[#allocation85_spill] sm:$0xff] %v5130_v61  ;;  %477 = vmatpush.msra.mxu0 %v5137_v59  ;;  %v5173_v61 = vpop.f32.mrf.mxu0 }
  0xc7   :  { %10758 = vst [vmem:[#allocation86_spill] sm:$0xff] %v5137_v59  ;;  %v5166_v59 = vld [vmem:[%s10123_s2 + $0x1a8] sm:$0xff] }
  0xc8   :  { %10763 = vst [vmem:[#allocation91_spill] sm:$0xff] %v5166_v59  ;;  %478 = vmatpush.msra.mxu0 %v5161_v63  ;;  %498 = vmatpush.msra.mxu1 %v5166_v59  ;;  %v5192_v63 = vld [vmem:[%s10123_s2 + $0x188] sm:$0xff]  ;;  %v5197_v59 = vld [vmem:[%s10123_s2 + $0x190] sm:$0xff] }
  0xc9   :  { %10765 = vst [vmem:[#allocation93_spill] sm:$0xff] %v5173_v61  ;;  %519 = vmatpush.msra.mxu2 %v5197_v59 }
  0xca   :  { %10768 = vst [vmem:[#allocation96_spill] sm:$0xff] %v5192_v63  ;;  %479 = vmatpush.msra.mxu0 %v5187_v58  ;;  %499 = vmatpush.msra.mxu1 %v5192_v63  ;;  %v5216_v58 = vld [vmem:[%s10123_s2 + $0x168] sm:$0xff]  ;;  %v5221_v63 = vld [vmem:[%s10123_s2 + $0x170] sm:$0xff] }
  0xcb   :  { %10769 = vst [vmem:[#allocation97_spill] sm:$0xff] %v5197_v59  ;;  %520 = vmatpush.msra.mxu2 %v5221_v63  ;;  %v5235_v59 = vld [vmem:[%s10123_s2 + $0x140] sm:$0xff] }
  0xcc   :  { %10772 = vst [vmem:[#allocation100_spill] sm:$0xff] %v5216_v58  ;;  %480 = vmatpush.msra.mxu0 %v5211_v62  ;;  %500 = vmatpush.msra.mxu1 %v5216_v58  ;;  %v5240_v62 = vld [vmem:[%s10123_s2 + $0x148] sm:$0xff]  ;;  %v5245_v58 = vld [vmem:[%s10123_s2 + $0x150] sm:$0xff] }
  0xcd   :  { %10773 = vst [vmem:[#allocation101_spill] sm:$0xff] %v5221_v63  ;;  %521 = vmatpush.msra.mxu2 %v5245_v58 }
  0xce   :  { %10775 = vst [vmem:[#allocation103_spill] sm:$0xff] %v5235_v59  ;;  %481 = vmatpush.msra.mxu0 %v5235_v59  ;;  %501 = vmatpush.msra.mxu1 %v5240_v62  ;;  %v5259_v59 = vld [vmem:[%s10123_s2 + $0x120] sm:$0xff] }
  0xcf   :  { %10776 = vst [vmem:[#allocation104_spill] sm:$0xff] %v5240_v62  ;;  %v5264_v62 = vld [vmem:[%s10123_s2 + $0x128] sm:$0xff] }
  0xd0   :  { %10777 = vst [vmem:[#allocation105_spill] sm:$0xff] %v5245_v58  ;;  %482 = vmatpush.msra.mxu0 %v5259_v59  ;;  %502 = vmatpush.msra.mxu1 %v5264_v62 }
  0xd1   :  { %10779 = vst [vmem:[#allocation107_spill] sm:$0xff] %v5259_v59 }
  0xd2   :  { %v388_v60 = vpop.f32.mrf.mxu3  ;;  %10780 = vst [vmem:[#allocation108_spill] sm:$0xff] %v5264_v62  ;;  %v5296_v62 = vld [vmem:[%s10123_s2 + $0x110] sm:$0xff] }
  0xd3   :  { %v368_v51 = vpop.f32.mrf.mxu2  ;;  %v397_v50 = vrot.slane %v388_v60, 2  ;;  %v5286_v60 = vld [vmem:[%s10123_s2 + $0x100] sm:$0xff]  ;;  %10785 = vst [vmem:[#allocation113_spill] sm:$0xff] %v5296_v62 }
  0xd4   :  { %v396_v61 = vrot.slane %v368_v51, 4  ;;  %v5269_v51 = vld [vmem:[%s10123_s2 + $0x130] sm:$0xff]  ;;  %10783 = vst [vmem:[#allocation111_spill] sm:$0xff] %v5286_v60  ;;  %483 = vmatpush.msra.mxu0 %v5286_v60 }
  0xd5   :  { %10781 = vst [vmem:[#allocation109_spill] sm:$0xff] %v5269_v51  ;;  %522 = vmatpush.msra.mxu2 %v5269_v51 }
  0xd6   :  { %v348_v63 = vpop.f32.mrf.mxu1  ;;  %v401_v59 = vsel %vm400_vm0, %v396_v61, %v397_v50  ;;  %v5313_v50 = vld [vmem:[%s10123_s2 + $0xe0] sm:$0xff]  ;;  %v5332_v61 = vld [vmem:[%s10123_s2 + $0xf8] sm:$0xff] }
  0xd7   :  { %v395_v54 = vrot.slane %v348_v63, 6  ;;  %v328_v58 = vpop.f32.mrf.mxu0  ;;  %v5291_v63 = vld [vmem:[%s10123_s2 + $0x108] sm:$0xff]  ;;  %523 = vmatpush.msra.mxu2 %v5296_v62  ;;  %10787 = vst [vmem:[#allocation115_spill] sm:$0xff] %v5313_v50  ;;  %484 = vmatpush.msra.mxu0 %v5313_v50  ;;  %v5359_v50 = vld [vmem:[%s10123_s2 + $0xd8] sm:$0xff] }
  0xd8   :  { %10784 = vst [vmem:[#allocation112_spill] sm:$0xff] %v5291_v63  ;;  %503 = vmatpush.msra.mxu1 %v5291_v63  ;;  %544 = vmatpush.msra.mxu3 %v5332_v61  ;;  %v5390_v63 = vld [vmem:[%s10123_s2 + $0x80] sm:$0xff] }
  0xd9   :  { %v399_v51 = vsel %vm398_vm1, %v328_v58, %v395_v54  ;;  %v5318_v54 = vld [vmem:[%s10123_s2 + $0xe8] sm:$0xff]  ;;  %v5323_v58 = vld [vmem:[%s10123_s2 + $0xf0] sm:$0xff]  ;;  %10790 = vst [vmem:[#allocation118_spill] sm:$0xff] %v5332_v61 }
  0xda   :  { %v403_v57 = vsel %vm402_vm2, %v399_v51, %v401_v59  ;;  %10788 = vst [vmem:[#allocation116_spill] sm:$0xff] %v5318_v54  ;;  %504 = vmatpush.msra.mxu1 %v5318_v54  ;;  %524 = vmatpush.msra.mxu2 %v5323_v58  ;;  %v5339_v51 = vld [vmem:[%s10123_s2 + $0xc0] sm:$0xff] }
  0xdb   :  { %10789 = vst [vmem:[#allocation117_spill] sm:$0xff] %v5323_v58  ;;  %v5325_v59 = vadd.f32 %v403_v57, %v310_v55  ;;  %v5344_v57 = vld [vmem:[%s10123_s2 + $0xc8] sm:$0xff]  ;;  %v5349_v55 = vld [vmem:[%s10123_s2 + $0xd0] sm:$0xff]  ;;  %485 = vmatpush.msra.mxu0 %v5339_v51  ;;  %545 = vmatpush.msra.mxu3 %v5359_v50 }
  0xdc   :  { %10791 = vst [vmem:[#allocation119_spill] sm:$0xff] %v5339_v51  ;;  %505 = vmatpush.msra.mxu1 %v5344_v57  ;;  %525 = vmatpush.msra.mxu2 %v5349_v55  ;;  %v5371_v51 = vld [vmem:[%s10123_s2 + $0xa8] sm:$0xff] }
  0xdd   :  { %10792 = vst [vmem:[#allocation120_spill] sm:$0xff] %v5344_v57  ;;  %v3406_v54 = vmul.f32 -1.442695, %v5325_v59  ;;  %v426_v58 = vrot.slane %v5325_v59, 2  ;;  %v450_v61 = vrot.slane %v5325_v59, 6  ;;  %v5376_v57 = vld [vmem:[%s10123_s2 + $0xb0] sm:$0xff]  ;;  %486 = vmatpush.msra.mxu0 %v5366_v56 }
  0xde   :  { %10793 = vst [vmem:[#allocation121_spill] sm:$0xff] %v5349_v55  ;;  %506 = vmatpush.msra.mxu1 %v5371_v51  ;;  %526 = vmatpush.msra.mxu2 %v5376_v57 }
  0xdf   :  { %10794 = vst [vmem:[#allocation122_spill] sm:$0xff] %v5359_v50  ;;  %3463 = vpow2.f32 %v3406_v54  ;;  %v3407_v62 = vmul.f32 -1.442695, %v426_v58  ;;  %v3408_v55 = vmul.f32 -1.442695, %v450_v61  ;;  %v5383_v50 = vld [vmem:[%s10123_s2 + $0xb8] sm:$0xff]  ;;  %487 = vmatpush.msra.mxu0 %v5390_v63 }
  0xe0   :  { %10796 = vst [vmem:[#allocation124_spill] sm:$0xff] %v5371_v51  ;;  %546 = vmatpush.msra.mxu3 %v5383_v50  ;;  %v5395_v54 = vld [vmem:[%s10123_s2 + $0x88] sm:$0xff]  ;;  %v5400_v58 = vld [vmem:[%s10123_s2 + $0x90] sm:$0xff]  ;;  %v5407_v61 = vld [vmem:[%s10123_s2 + $0x98] sm:$0xff] }
  0xe1   :  { %10797 = vst [vmem:[#allocation125_spill] sm:$0xff] %v5376_v57  ;;  %3465 = vpow2.f32 %v3407_v62  ;;  %507 = vmatpush.msra.mxu1 %v5395_v54  ;;  %v5417_v57 = vld [vmem:[%s10123_s2 + $0x68] sm:$0xff]  ;;  %527 = vmatpush.msra.mxu2 %v5400_v58  ;;  %v5424_v62 = vld [vmem:[%s10123_s2 + $0x70] sm:$0xff] }
  0xe2   :  { %10798 = vst [vmem:[#allocation126_spill] sm:$0xff] %v5383_v50  ;;  %v5412_v50 = vld [vmem:[%s10123_s2 + $0x60] sm:$0xff]  ;;  %3467 = vpow2.f32 %v3408_v55  ;;  %547 = vmatpush.msra.mxu3 %v5407_v61  ;;  %v5441_v55 = vld [vmem:[%s10123_s2 + $0x48] sm:$0xff] }
  0xe3   :  { %10799 = vst [vmem:[#allocation127_spill] sm:$0xff] %v5390_v63  ;;  %v5434_v63 = vld [vmem:[%s10123_s2 + $0x40] sm:$0xff]  ;;  %488 = vmatpush.msra.mxu0 %v5412_v50  ;;  %508 = vmatpush.msra.mxu1 %v5417_v57 }
  0xe4   :  { %10800 = vst [vmem:[#allocation128_spill] sm:$0xff] %v5395_v54  ;;  %v5429_v54 = vld [vmem:[%s10123_s2 + $0x78] sm:$0xff]  ;;  %528 = vmatpush.msra.mxu2 %v5424_v62 }
  0xe5   :  { %10801 = vst [vmem:[#allocation129_spill] sm:$0xff] %v5400_v58  ;;  %v5451_v58 = vld [vmem:[%s10123_s2 + $0x58] sm:$0xff]  ;;  %548 = vmatpush.msra.mxu3 %v5429_v54  ;;  %v3464_v51 = vpop.eup %3463  ;;  %489 = vmatpush.msra.mxu0 %v5434_v63 }
  0xe6   :  { %10802 = vst [vmem:[#allocation130_spill] sm:$0xff] %v5407_v61  ;;  %v5446_v61 = vld [vmem:[%s10123_s2 + $0x50] sm:$0xff]  ;;  %509 = vmatpush.msra.mxu1 %v5441_v55  ;;  %v5477_v56 = vadd.f32 1.0, %v3464_v51 }
  0xe7   :  { %10803 = vst [vmem:[#allocation131_spill] sm:$0xff] %v5412_v50  ;;  %v5463_v50 = vld [vmem:[%s10123_s2 + $0x28] sm:$0xff]  ;;  %529 = vmatpush.msra.mxu2 %v5446_v61  ;;  %549 = vmatpush.msra.mxu3 %v5451_v58  ;;  %v3466_v60 = vpop.eup %3465  ;;  %v5496_v51 = vld [vmem:[%s10123_s2 + $0x10] sm:$0xff] }
  0xe8   :  { %10804 = vst [vmem:[#allocation132_spill] sm:$0xff] %v5417_v57  ;;  %v5458_v57 = vld [vmem:[%s10123_s2 + $0x20] sm:$0xff]  ;;  %510 = vmatpush.msra.mxu1 %v5463_v50  ;;  %3469 = vrcp.f32 %v5477_v56  ;;  %vm415_vm4 = vweird.f32 %v5477_v56 }
  0xe9   :  { %10805 = vst [vmem:[#allocation133_spill] sm:$0xff] %v5424_v62  ;;  %v5470_v62 = vld [vmem:[%s10123_s2 + $0x30] sm:$0xff]  ;;  %490 = vmatpush.msra.mxu0 %v5458_v57 }
  0xea   :  { %10806 = vst [vmem:[#allocation134_spill] sm:$0xff] %v5429_v54  ;;  %v5475_v54 = vld [vmem:[%s10123_s2 + $0x38] sm:$0xff]  ;;  %530 = vmatpush.msra.mxu2 %v5470_v62 }
  0xeb   :  { %10807 = vst [vmem:[#allocation135_spill] sm:$0xff] %v5434_v63  ;;  %v5489_v63 = vld [vmem:[%s10123_s2 + $0x8] sm:$0xff]  ;;  %550 = vmatpush.msra.mxu3 %v5475_v54 }
  0xec   :  { %10808 = vst [vmem:[#allocation136_spill] sm:$0xff] %v5441_v55  ;;  %v5484_v55 = vld [vmem:[%s10123_s2] sm:$0xff]  ;;  %511 = vmatpush.msra.mxu1 %v5489_v63  ;;  %531 = vmatpush.msra.mxu2 %v5496_v51 }
  0xed   :  { %10809 = vst [vmem:[#allocation137_spill] sm:$0xff] %v5446_v61  ;;  %v3468_v61 = vpop.eup %3467  ;;  %491 = vmatpush.msra.mxu0 %v5484_v55 }
  0xee   :  { %10810 = vst [vmem:[#allocation138_spill] sm:$0xff] %v5451_v58  ;;  %v5501_v58 = vld [vmem:[%s10123_s2 + $0x18] sm:$0xff]  ;;  %643 = vmatpush.msrb.mxu1 %v4371_v6  ;;  %663 = vmatpush.msrb.mxu2 %v4339_v0  ;;  %v447_v6 = vrot.slane %v5325_v59, 4  ;;  %v10833_v59 = vld [vmem:[#allocation15_spill] sm:$0xff] }
  0xef   :  { %10811 = vst [vmem:[#allocation139_spill] sm:$0xff] %v5458_v57  ;;  %v5506_v57 = vadd.f32 1.0, %v3466_v60  ;;  %551 = vmatpush.msra.mxu3 %v5501_v58  ;;  %623 = vmatpush.msrb.mxu0 %v4378_v7  ;;  %v3470_v60 = vpop.eup %3469 }
  0xf0   :  { %10812 = vst [vmem:[#allocation140_spill] sm:$0xff] %v5463_v50  ;;  %v5508_v50 = vadd.f32 1.0, %v3468_v61  ;;  %644 = vmatpush.msrb.mxu1 %v4383_v8  ;;  %664 = vmatpush.msrb.mxu2 %v4349_v2  ;;  %v411_v61 = vmul.f32 %v3470_v60, %v5477_v56  ;;  %vm416_vm3 = vweird.f32 %v3470_v60  ;;  %v419_v8 = vand.u32 2147483647, %v5477_v56 }
  0xf1   :  { %3471 = vrcp.f32 %v5506_v57  ;;  %683 = vmatpush.msrb.mxu3 %v4344_v1  ;;  %624 = vmatpush.msrb.mxu0 %v4400_v11  ;;  %vm5550_vm5 = vmor %vm415_vm4, %vm416_vm3  ;;  %vm437_vm8 = vweird.f32 %v5506_v57 }
  0xf2   :  { %3473 = vrcp.f32 %v5508_v50  ;;  %645 = vmatpush.msrb.mxu1 %v4407_v12  ;;  %665 = vmatpush.msrb.mxu2 %v4361_v4  ;;  %v412_v1 = vsub.f32 1.0, %v411_v61  ;;  %v421_v4 = vand.u32 2147483648, %v5477_v56  ;;  %vm420_vm7 = vcmp.eq.f32.partialorder %v419_v8, 8.507059e+37  ;;  %v10831_v56 = vld [vmem:[#allocation26_spill] sm:$0xff]  ;;  %v10836_v61 = vld [vmem:[#allocation29_spill] sm:$0xff]  ;;  %v10845_v8 = vld [vmem:[#allocation27_spill] sm:$0xff] }
  0xf3   :  { %684 = vmatpush.msrb.mxu3 %v4356_v3  ;;  %625 = vmatpush.msrb.mxu0 %v4412_v13  ;;  %3475 = vtanh.f32 %v447_v6  ;;  %vm461_vm12 = vweird.f32 %v5508_v50  ;;  %v10839_v6 = vld [vmem:[#allocation34_spill] sm:$0xff]  ;;  %v10849_v12 = vld [vmem:[#allocation31_spill] sm:$0xff] }
  0xf4   :  { %646 = vmatpush.msrb.mxu1 %v4431_v16  ;;  %666 = vmatpush.msrb.mxu2 %v4389_v9  ;;  %v413_v7 = vmul.f32 %v3470_v60, %v412_v1  ;;  %v422_v16 = vor.u32 1.1754944e-38, %v421_v4  ;;  %v10838_v1 = vld [vmem:[#allocation20_spill] sm:$0xff]  ;;  %v10843_v4 = vld [vmem:[#allocation38_spill] sm:$0xff] }
  0xf5   :  { %685 = vmatpush.msrb.mxu3 %v4366_v5  ;;  %626 = vmatpush.msrb.mxu0 %v4436_v17 }
  0xf6   :  { %647 = vmatpush.msrb.mxu1 %v4455_v20  ;;  %667 = vmatpush.msrb.mxu2 %v4418_v14  ;;  %v414_v9 = vadd.f32 %v3470_v60, %v413_v7  ;;  %v441_v14 = vand.u32 2147483647, %v5506_v57  ;;  %v10842_v7 = vld [vmem:[#allocation24_spill] sm:$0xff] }
  0xf7   :  { %v3472_v0 = vpop.eup %3471  ;;  %686 = vmatpush.msrb.mxu3 %v4394_v10  ;;  %627 = vmatpush.msrb.mxu0 %v4460_v21  ;;  %v443_v10 = vand.u32 2147483648, %v5506_v57 }
  0xf8   :  { %v5532_v2 = vpop.eup %3473  ;;  %v433_v3 = vmul.f32 %v3472_v0, %v5506_v57  ;;  %648 = vmatpush.msrb.mxu1 %v4479_v24  ;;  %vm438_vm6 = vweird.f32 %v3472_v0  ;;  %668 = vmatpush.msrb.mxu2 %v4442_v18  ;;  %vm442_vm10 = vcmp.eq.f32.partialorder %v441_v14, 8.507059e+37  ;;  %v10834_v57 = vld [vmem:[#allocation16_spill] sm:$0xff]  ;;  %v10851_v14 = vld [vmem:[#allocation46_spill] sm:$0xff] }
  0xf9   :  { %v457_v5 = vmul.f32 %v5532_v2, %v5508_v50  ;;  %687 = vmatpush.msrb.mxu3 %v4423_v15  ;;  %628 = vmatpush.msrb.mxu0 %v4484_v25  ;;  %v418_v15 = vsel %vm5550_vm5, %v3470_v60, %v414_v9  ;;  %vm439_vm9 = vmor %vm437_vm8, %vm438_vm6  ;;  %v3476_v24 = vpop.eup %3475  ;;  %vm462_vm11 = vweird.f32 %v5532_v2  ;;  %v10835_v60 = vld [vmem:[#allocation30_spill] sm:$0xff] }
  0xfa   :  { %v434_v11 = vsub.f32 1.0, %v433_v3  ;;  %649 = vmatpush.msrb.mxu1 %v4503_v28  ;;  %669 = vmatpush.msrb.mxu2 %v4466_v22  ;;  %v423_v18 = vsel %vm420_vm7, %v422_v16, %v418_v15  ;;  %vm463_vm13 = vmor %vm461_vm12, %vm462_vm11  ;;  %v10841_v3 = vld [vmem:[#allocation23_spill] sm:$0xff]  ;;  %v10847_v9 = vld [vmem:[#allocation42_spill] sm:$0xff] }
  0xfb   :  { %688 = vmatpush.msrb.mxu3 %v4447_v19  ;;  %v458_v17 = vsub.f32 1.0, %v457_v5  ;;  %629 = vmatpush.msrb.mxu0 %v4508_v29  ;;  %v444_v19 = vor.u32 1.1754944e-38, %v443_v10  ;;  %v472_v28 = vmul.f32 %v3476_v24, %v423_v18  ;;  %v467_v29 = vand.u32 2147483648, %v5508_v50  ;;  %v10844_v5 = vld [vmem:[#allocation37_spill] sm:$0xff]  ;;  %v10853_v16 = vld [vmem:[#allocation35_spill] sm:$0xff]  ;;  %v10859_v24 = vld [vmem:[#allocation56_spill] sm:$0xff] }
  0xfc   :  { %v435_v13 = vmul.f32 %v3472_v0, %v434_v11  ;;  %650 = vmatpush.msrb.mxu1 %v4527_v32  ;;  %670 = vmatpush.msrb.mxu2 %v4490_v26  ;;  %v10846_v11 = vld [vmem:[#allocation28_spill] sm:$0xff]  ;;  %v10848_v10 = vld [vmem:[#allocation41_spill] sm:$0xff] }
  0xfd   :  { %689 = vmatpush.msrb.mxu3 %v4471_v23  ;;  %630 = vmatpush.msrb.mxu0 %v4532_v33  ;;  %v459_v22 = vmul.f32 %v5532_v2, %v458_v17  ;;  %v468_v32 = vor.u32 1.1754944e-38, %v467_v29  ;;  %v10815_v33 = vld [vmem:[#allocation8_spill] sm:$0xff]  ;;  %v10852_v15 = vld [vmem:[#allocation45_spill] sm:$0xff]  ;;  %v10865_v29 = vld [vmem:[#allocation47_spill] sm:$0xff] }
  0xfe   :  { %v436_v20 = vadd.f32 %v3472_v0, %v435_v13  ;;  %651 = vmatpush.msrb.mxu1 %v4551_v36  ;;  %671 = vmatpush.msrb.mxu2 %v4514_v30  ;;  %v465_v30 = vand.u32 2147483647, %v5508_v50  ;;  %v10832_v50 = vld [vmem:[#allocation25_spill] sm:$0xff]  ;;  %v10850_v13 = vld [vmem:[#allocation32_spill] sm:$0xff] }
  0xff   :  { %690 = vmatpush.msrb.mxu3 %v4495_v27  ;;  %631 = vmatpush.msrb.mxu0 %v4556_v37  ;;  %v460_v27 = vadd.f32 %v5532_v2, %v459_v22  ;;  %v10817_v37 = vld [vmem:[#allocation3_spill] sm:$0xff]  ;;  %v10854_v17 = vld [vmem:[#allocation36_spill] sm:$0xff]  ;;  %v10856_v18 = vld [vmem:[#allocation49_spill] sm:$0xff] }
 0x100   :  { %v440_v21 = vsel %vm439_vm9, %v3472_v0, %v436_v20  ;;  %652 = vmatpush.msrb.mxu1 %v4575_v40  ;;  %672 = vmatpush.msrb.mxu2 %v4538_v34  ;;  %vm466_vm14 = vcmp.eq.f32.partialorder %v465_v30, 8.507059e+37  ;;  %v10816_v34 = vld [vmem:[#allocation7_spill] sm:$0xff]  ;;  %v10819_v40 = vld [vmem:[#allocation14_spill] sm:$0xff]  ;;  %v10866_v30 = vld [vmem:[#allocation48_spill] sm:$0xff] }
 0x101   :  { %v445_v25 = vsel %vm442_vm10, %v444_v19, %v440_v21  ;;  %691 = vmatpush.msrb.mxu3 %v4519_v31  ;;  %632 = vmatpush.msrb.mxu0 %v4580_v41  ;;  %v464_v31 = vsel %vm463_vm13, %v5532_v2, %v460_v27  ;;  %v10820_v41 = vld [vmem:[#allocation13_spill] sm:$0xff]  ;;  %v10837_v0 = vld [vmem:[#allocation19_spill] sm:$0xff]  ;;  %v10855_v20 = vld [vmem:[#allocation50_spill] sm:$0xff] }
 0x102   :  { %v471_v23 = vmul.f32 0.0, %v445_v25  ;;  %653 = vmatpush.msrb.mxu1 %v4599_v44  ;;  %673 = vmatpush.msrb.mxu2 %v4562_v38  ;;  %v469_v36 = vsel %vm466_vm14, %v468_v32, %v464_v31  ;;  %v10818_v38 = vld [vmem:[#allocation4_spill] sm:$0xff]  ;;  %v10823_v44 = vld [vmem:[#allocation18_spill] sm:$0xff]  ;;  %v10840_v2 = vld [vmem:[#allocation33_spill] sm:$0xff] }
 0x103   :  { %692 = vmatpush.msrb.mxu3 %v4543_v35  ;;  %633 = vmatpush.msrb.mxu0 %v4604_v45  ;;  %v10824_v45 = vld [vmem:[#allocation17_spill] sm:$0xff]  ;;  %v10857_v19 = vld [vmem:[#allocation39_spill] sm:$0xff]  ;;  %v10858_v21 = vld [vmem:[#allocation40_spill] sm:$0xff] }
 0x104   :  { %v5576_v26 = vadd.f32 %v472_v28, %v471_v23  ;;  %654 = vmatpush.msrb.mxu1 %v4623_v48  ;;  %674 = vmatpush.msrb.mxu2 %v4586_v42  ;;  %v10821_v42 = vld [vmem:[#allocation5_spill] sm:$0xff]  ;;  %v10827_v48 = vld [vmem:[#allocation22_spill] sm:$0xff]  ;;  %v10861_v22 = vld [vmem:[#allocation43_spill] sm:$0xff] }
 0x105   :  { %693 = vmatpush.msrb.mxu3 %v4567_v39  ;;  %634 = vmatpush.msrb.mxu0 %v4628_v49  ;;  %v10828_v49 = vld [vmem:[#allocation21_spill] sm:$0xff]  ;;  %v10862_v23 = vld [vmem:[#allocation44_spill] sm:$0xff] }
 0x106   :  { %3477 = vtanh.f32 %v5576_v26  ;;  %655 = vmatpush.msrb.mxu1 %v4647_v52  ;;  %675 = vmatpush.msrb.mxu2 %v4610_v46  ;;  %v10825_v46 = vld [vmem:[#allocation9_spill] sm:$0xff]  ;;  %v10829_v52 = vld [vmem:[#allocation11_spill] sm:$0xff]  ;;  %v10863_v28 = vld [vmem:[#allocation60_spill] sm:$0xff] }
 0x107   :  { %694 = vmatpush.msrb.mxu3 %v4591_v43  ;;  %635 = vmatpush.msrb.mxu0 %v4652_v53  ;;  %v10822_v43 = vld [vmem:[#allocation6_spill] sm:$0xff]  ;;  %v10830_v53 = vld [vmem:[#allocation12_spill] sm:$0xff]  ;;  %v10860_v25 = vld [vmem:[#allocation53_spill] sm:$0xff] }
 0x108   :  { %656 = vmatpush.msrb.mxu1 %v10816_v34  ;;  %676 = vmatpush.msrb.mxu2 %v10817_v37  ;;  %v10864_v27 = vld [vmem:[#allocation57_spill] sm:$0xff]  ;;  %v10867_v31 = vld [vmem:[#allocation64_spill] sm:$0xff]  ;;  %v10873_v37 = vld [vmem:[#allocation54_spill] sm:$0xff] }
 0x109   :  { %695 = vmatpush.msrb.mxu3 %v4615_v47  ;;  %636 = vmatpush.msrb.mxu0 %v10815_v33  ;;  %v10826_v47 = vld [vmem:[#allocation10_spill] sm:$0xff]  ;;  %v10868_v32 = vld [vmem:[#allocation61_spill] sm:$0xff]  ;;  %v10869_v33 = vld [vmem:[#allocation51_spill] sm:$0xff] }
 0x10a   :  { %657 = vmatpush.msrb.mxu1 %v10820_v41  ;;  %677 = vmatpush.msrb.mxu2 %v10821_v42  ;;  %v10870_v34 = vld [vmem:[#allocation52_spill] sm:$0xff]  ;;  %v10876_v41 = vld [vmem:[#allocation69_spill] sm:$0xff]  ;;  %v10877_v42 = vld [vmem:[#allocation58_spill] sm:$0xff] }
 0x10b   :  { %696 = vmatpush.msrb.mxu3 %v10818_v38  ;;  %637 = vmatpush.msrb.mxu0 %v10819_v40  ;;  %v10874_v38 = vld [vmem:[#allocation55_spill] sm:$0xff]  ;;  %v10875_v40 = vld [vmem:[#allocation72_spill] sm:$0xff] }
 0x10c   :  { %v3478_v35 = vpop.eup %3477  ;;  %658 = vmatpush.msrb.mxu1 %v10824_v45  ;;  %678 = vmatpush.msrb.mxu2 %v10825_v46  ;;  %v10880_v45 = vld [vmem:[#allocation73_spill] sm:$0xff]  ;;  %v10881_v46 = vld [vmem:[#allocation62_spill] sm:$0xff] }
 0x10d   :  { %v5603_v39 = vmul.f32 %v3478_v35, %v469_v36  ;;  %697 = vmatpush.msrb.mxu3 %v10822_v43  ;;  %638 = vmatpush.msrb.mxu0 %v10823_v44  ;;  %v10871_v35 = vld [vmem:[#allocation68_spill] sm:$0xff]  ;;  %v10872_v36 = vld [vmem:[#allocation65_spill] sm:$0xff]  ;;  %v10878_v43 = vld [vmem:[#allocation59_spill] sm:$0xff] }
 0x10e   :  { %v10879_v44 = vld [vmem:[#allocation74_spill] sm:$0xff] }
 0x10f   :  { %492 = vmatmul.f32.vlgmr.msra.gmra.mxu0 %v5603_v39  ;;  %512 = vmatmul.f32.vlgmr.msra.gmra.mxu1 %v5603_v39 }
 0x110   :  { %532 = vmatmul.f32.vlgmr.msra.gmra.mxu2 %v5603_v39  ;;  %552 = vmatmul.f32.vlgmr.msra.gmra.mxu3 %v5603_v39 }
 0x111   :  { %698 = vmatpush.msrb.mxu3 %v10826_v47  ;;  %705 = vmatpush.msra.mxu0 %v10827_v48  ;;  %v10882_v47 = vld [vmem:[#allocation63_spill] sm:$0xff]  ;;  %v10883_v48 = vld [vmem:[#allocation76_spill] sm:$0xff] }
 0x112   :  { %725 = vmatpush.msra.mxu1 %v10828_v49  ;;  %745 = vmatpush.msra.mxu2 %v10829_v52  ;;  %v10884_v49 = vld [vmem:[#allocation75_spill] sm:$0xff]  ;;  %v10885_v52 = vld [vmem:[#allocation66_spill] sm:$0xff] }
 0x113   :  { %765 = vmatpush.msra.mxu3 %v10830_v53  ;;  %706 = vmatpush.msra.mxu0 %v10831_v56  ;;  %v10886_v53 = vld [vmem:[#allocation67_spill] sm:$0xff]  ;;  %v10887_v56 = vld [vmem:[#allocation78_spill] sm:$0xff] }
 0x114   :  { %726 = vmatpush.msra.mxu1 %v10832_v50  ;;  %746 = vmatpush.msra.mxu2 %v10833_v59  ;;  %v10888_v50 = vld [vmem:[#allocation77_spill] sm:$0xff]  ;;  %v10889_v59 = vld [vmem:[#allocation70_spill] sm:$0xff] }
 0x115   :  { %766 = vmatpush.msra.mxu3 %v10834_v57  ;;  %707 = vmatpush.msra.mxu0 %v10835_v60  ;;  %v10890_v57 = vld [vmem:[#allocation71_spill] sm:$0xff] }
 0x116   :  { %727 = vmatpush.msra.mxu1 %v10836_v61  ;;  %747 = vmatpush.msra.mxu2 %v10837_v0  ;;  %v220_v60 = vld [vmem:[%s10125_s4] sm:$0xf] }
 0x117   :  { %767 = vmatpush.msra.mxu3 %v10838_v1  ;;  %708 = vmatpush.msra.mxu0 %v10839_v6  ;;  %v5684_v61 = vperm.slane %v220_v60, 0  ;;  %v5686_v0 = vperm.slane %v220_v60, 1 }
 0x118   :  { %728 = vmatpush.msra.mxu1 %v10840_v2  ;;  %748 = vmatpush.msra.mxu2 %v10841_v3  ;;  %v10893_v2 = vld [vmem:[#allocation93_spill] sm:$0xff] }
 0x119   :  { %768 = vmatpush.msra.mxu3 %v10842_v7  ;;  %709 = vmatpush.msra.mxu0 %v10843_v4  ;;  %10891 = vst [vmem:[#allocation8_spill] sm:$0xff] %v5684_v61  ;;  %v10894_v7 = vld [vmem:[#allocation84_spill] sm:$0xff] }
 0x11a   :  { %729 = vmatpush.msra.mxu1 %v10844_v5  ;;  %749 = vmatpush.msra.mxu2 %v10845_v8  ;;  %10892 = vst [vmem:[#allocation7_spill] sm:$0xff] %v5686_v0 }
 0x11b   :  { %769 = vmatpush.msra.mxu3 %v10846_v11  ;;  %710 = vmatpush.msra.mxu0 %v10847_v9 }
 0x11c   :  { %730 = vmatpush.msra.mxu1 %v10848_v10  ;;  %750 = vmatpush.msra.mxu2 %v10849_v12  ;;  %v5692_v10 = vperm.slane %v220_v60, 3 }
 0x11d   :  { %770 = vmatpush.msra.mxu3 %v10850_v13  ;;  %711 = vmatpush.msra.mxu0 %v10851_v14  ;;  %v10896_v13 = vld [vmem:[#allocation85_spill] sm:$0xff] }
 0x11e   :  { %731 = vmatpush.msra.mxu1 %v10852_v15  ;;  %751 = vmatpush.msra.mxu2 %v10853_v16  ;;  %10895 = vst [vmem:[#allocation3_spill] sm:$0xff] %v5692_v10 }
 0x11f   :  { %771 = vmatpush.msra.mxu3 %v10854_v17  ;;  %712 = vmatpush.msra.mxu0 %v10855_v20 }
 0x120   :  { %732 = vmatpush.msra.mxu1 %v10856_v18  ;;  %752 = vmatpush.msra.mxu2 %v10857_v19 }
 0x121   :  { %772 = vmatpush.msra.mxu3 %v10858_v21  ;;  %713 = vmatpush.msra.mxu0 %v10859_v24  ;;  %v5696_v24 = vperm.slane %v220_v60, 2 }
 0x122   :  { %733 = vmatpush.msra.mxu1 %v10860_v25  ;;  %753 = vmatpush.msra.mxu2 %v10861_v22  ;;  %v10898_v25 = vld [vmem:[#allocation82_spill] sm:$0xff] }
 0x123   :  { %773 = vmatpush.msra.mxu3 %v10862_v23  ;;  %714 = vmatpush.msra.mxu0 %v10863_v28  ;;  %10897 = vst [vmem:[#allocation4_spill] sm:$0xff] %v5696_v24 }
 0x124   :  { %734 = vmatpush.msra.mxu1 %v10864_v27  ;;  %754 = vmatpush.msra.mxu2 %v10865_v29 }
 0x125   :  { %774 = vmatpush.msra.mxu3 %v10866_v30  ;;  %715 = vmatpush.msra.mxu0 %v10867_v31 }
 0x126   :  { %735 = vmatpush.msra.mxu1 %v10868_v32  ;;  %755 = vmatpush.msra.mxu2 %v10869_v33 }
 0x127   :  { %775 = vmatpush.msra.mxu3 %v10870_v34  ;;  %716 = vmatpush.msra.mxu0 %v10871_v35 }
 0x128   :  { %736 = vmatpush.msra.mxu1 %v10872_v36  ;;  %756 = vmatpush.msra.mxu2 %v10873_v37 }
 0x129   :  { %776 = vmatpush.msra.mxu3 %v10874_v38  ;;  %717 = vmatpush.msra.mxu0 %v10875_v40 }
 0x12a   :  { %737 = vmatpush.msra.mxu1 %v10876_v41  ;;  %757 = vmatpush.msra.mxu2 %v10877_v42 }
 0x12b   :  { %777 = vmatpush.msra.mxu3 %v10878_v43  ;;  %718 = vmatpush.msra.mxu0 %v10879_v44 }
 0x12c   :  { %738 = vmatpush.msra.mxu1 %v10880_v45  ;;  %758 = vmatpush.msra.mxu2 %v10881_v46 }
 0x12d   :  { %778 = vmatpush.msra.mxu3 %v10882_v47  ;;  %719 = vmatpush.msra.mxu0 %v10883_v48 }
 0x12e   :  { %739 = vmatpush.msra.mxu1 %v10884_v49  ;;  %759 = vmatpush.msra.mxu2 %v10885_v52 }
 0x12f   :  { %779 = vmatpush.msra.mxu3 %v10886_v53  ;;  %720 = vmatpush.msra.mxu0 %v10887_v56 }
 0x130   :  { %740 = vmatpush.msra.mxu1 %v10888_v50  ;;  %760 = vmatpush.msra.mxu2 %v10889_v59 }
 0x131   :  { %780 = vmatpush.msra.mxu3 %v10890_v57 }
 0x18c   :  { %v493_v1 = vpop.f32.mrf.mxu0  ;;  %v513_v6 = vpop.f32.mrf.mxu1 }
 0x18d   :  { %v494_v3 = vadd.f32 %v493_v1, %v10893_v2  ;;  %v514_v4 = vadd.f32 %v513_v6, %v10894_v7 }
 0x18f   :  { %v556_v5 = vadd.f32 %v494_v3, %v5684_v61  ;;  %v557_v8 = vadd.f32 %v514_v4, %v5686_v0 }
 0x191   :  { %v3409_v11 = vmul.f32 -1.442695, %v556_v5  ;;  %v3410_v9 = vmul.f32 -1.442695, %v557_v8 }
 0x193   :  { %3479 = vpow2.f32 %v3409_v11  ;;  %v553_v12 = vpop.f32.mrf.mxu3  ;;  %v533_v21 = vpop.f32.mrf.mxu2 }
 0x194   :  { %3481 = vpow2.f32 %v3410_v9  ;;  %v554_v14 = vadd.f32 %v553_v12, %v10896_v13  ;;  %v534_v22 = vadd.f32 %v533_v21, %v10898_v25  ;;  %v10899_v9 = vld [vmem:[#allocation79_spill] sm:$0xff]  ;;  %v10900_v12 = vld [vmem:[#allocation80_spill] sm:$0xff]  ;;  %v10901_v13 = vld [vmem:[#allocation81_spill] sm:$0xff] }
 0x195   :  { %v10909_v21 = vld [vmem:[#allocation92_spill] sm:$0xff]  ;;  %v10910_v25 = vld [vmem:[#allocation94_spill] sm:$0xff] }
 0x196   :  { %v559_v15 = vadd.f32 %v554_v14, %v5692_v10  ;;  %v558_v29 = vadd.f32 %v534_v22, %v5696_v24  ;;  %v10902_v14 = vld [vmem:[#allocation83_spill] sm:$0xff] }
 0x197   :  { %v10911_v22 = vld [vmem:[#allocation95_spill] sm:$0xff] }
 0x198   :  { %v3411_v16 = vmul.f32 -1.442695, %v559_v15  ;;  %v10903_v15 = vld [vmem:[#allocation86_spill] sm:$0xff] }
 0x199   :  { %v3480_v17 = vpop.eup %3479 }
 0x19a   :  { %v3482_v20 = vpop.eup %3481  ;;  %v563_v18 = vadd.f32 1.0, %v3480_v17  ;;  %3483 = vpow2.f32 %v3411_v16  ;;  %v10904_v16 = vld [vmem:[#allocation87_spill] sm:$0xff]  ;;  %v10905_v17 = vld [vmem:[#allocation88_spill] sm:$0xff] }
 0x19b   :  { %v582_v19 = vadd.f32 1.0, %v3482_v20  ;;  %v10906_v20 = vld [vmem:[#allocation89_spill] sm:$0xff] }
 0x19c   :  { %3485 = vrcp.f32 %v563_v18  ;;  %v575_v35 = vand.u32 2147483648, %v563_v18  ;;  %v573_v38 = vand.u32 2147483647, %v563_v18  ;;  %vm569_vm4 = vweird.f32 %v563_v18 }
 0x19d   :  { %3487 = vrcp.f32 %v582_v19  ;;  %v594_v36 = vand.u32 2147483648, %v582_v19  ;;  %v592_v41 = vand.u32 2147483647, %v582_v19  ;;  %vm588_vm5 = vweird.f32 %v582_v19 }
 0x19e   :  { %v576_v44 = vor.u32 1.1754944e-38, %v575_v35  ;;  %vm574_vm7 = vcmp.eq.f32.partialorder %v573_v38, 8.507059e+37  ;;  %v10922_v35 = vld [vmem:[#allocation106_spill] sm:$0xff]  ;;  %v10925_v38 = vld [vmem:[#allocation109_spill] sm:$0xff] }
 0x19f   :  { %v595_v47 = vor.u32 1.1754944e-38, %v594_v36  ;;  %vm593_vm9 = vcmp.eq.f32.partialorder %v592_v41, 8.507059e+37  ;;  %v10923_v36 = vld [vmem:[#allocation107_spill] sm:$0xff] }
 0x1a0   :  { %v3484_v23 = vpop.eup %3483  ;;  %v10927_v41 = vld [vmem:[#allocation111_spill] sm:$0xff] }
 0x1a1   :  { %v602_v28 = vadd.f32 1.0, %v3484_v23  ;;  %v10912_v23 = vld [vmem:[#allocation96_spill] sm:$0xff] }
 0x1a2   :  { %v3486_v27 = vpop.eup %3485 }
 0x1a3   :  { %v3488_v30 = vpop.eup %3487  ;;  %v565_v31 = vmul.f32 %v3486_v27, %v563_v18  ;;  %3489 = vrcp.f32 %v602_v28  ;;  %vm570_vm15 = vweird.f32 %v3486_v27  ;;  %v614_v2 = vand.u32 2147483648, %v602_v28  ;;  %v10907_v18 = vld [vmem:[#allocation90_spill] sm:$0xff] }
 0x1a4   :  { %v584_v32 = vmul.f32 %v3488_v30, %v582_v19  ;;  %3491 = vtanh.f32 %v558_v29  ;;  %vm589_vm3 = vweird.f32 %v3488_v30  ;;  %vm571_vm6 = vmor %vm569_vm4, %vm570_vm15  ;;  %vm608_vm11 = vweird.f32 %v602_v28  ;;  %v10908_v19 = vld [vmem:[#allocation91_spill] sm:$0xff] }
 0x1a5   :  { %v566_v33 = vsub.f32 1.0, %v565_v31  ;;  %vm590_vm8 = vmor %vm588_vm5, %vm589_vm3  ;;  %v612_v3 = vand.u32 2147483647, %v602_v28  ;;  %v615_v4 = vor.u32 1.1754944e-38, %v614_v2  ;;  %v10915_v29 = vld [vmem:[#allocation99_spill] sm:$0xff]  ;;  %v10917_v31 = vld [vmem:[#allocation101_spill] sm:$0xff] }
 0x1a6   :  { %v585_v34 = vsub.f32 1.0, %v584_v32  ;;  %v10918_v32 = vld [vmem:[#allocation102_spill] sm:$0xff]  ;;  %v10944_v2 = vld [vmem:[#allocation128_spill] sm:$0xff] }
 0x1a7   :  { %v567_v37 = vmul.f32 %v3486_v27, %v566_v33  ;;  %vm613_vm13 = vcmp.eq.f32.partialorder %v612_v3, 8.507059e+37  ;;  %v10919_v33 = vld [vmem:[#allocation103_spill] sm:$0xff]  ;;  %v10945_v3 = vld [vmem:[#allocation129_spill] sm:$0xff] }
 0x1a8   :  { %v586_v40 = vmul.f32 %v3488_v30, %v585_v34  ;;  %v10920_v34 = vld [vmem:[#allocation104_spill] sm:$0xff] }
 0x1a9   :  { %v3490_v42 = vpop.eup %3489  ;;  %v568_v43 = vadd.f32 %v3486_v27, %v567_v37  ;;  %v10924_v37 = vld [vmem:[#allocation108_spill] sm:$0xff] }
 0x1aa   :  { %v587_v45 = vadd.f32 %v3488_v30, %v586_v40  ;;  %v604_v46 = vmul.f32 %v3490_v42, %v602_v28  ;;  %v3492_v49 = vpop.eup %3491  ;;  %vm609_vm10 = vweird.f32 %v3490_v42  ;;  %v10913_v28 = vld [vmem:[#allocation97_spill] sm:$0xff]  ;;  %v10926_v40 = vld [vmem:[#allocation110_spill] sm:$0xff] }
 0x1ab   :  { %v572_v48 = vsel %vm571_vm6, %v3486_v27, %v568_v43  ;;  %vm610_vm12 = vmor %vm608_vm11, %vm609_vm10  ;;  %v10914_v27 = vld [vmem:[#allocation98_spill] sm:$0xff]  ;;  %v10929_v43 = vld [vmem:[#allocation113_spill] sm:$0xff] }
 0x1ac   :  { %v577_v52 = vsel %vm574_vm7, %v576_v44, %v572_v48  ;;  %v591_v53 = vsel %vm590_vm8, %v3488_v30, %v587_v45  ;;  %v605_v56 = vsub.f32 1.0, %v604_v46  ;;  %v10916_v30 = vld [vmem:[#allocation100_spill] sm:$0xff]  ;;  %v10930_v44 = vld [vmem:[#allocation114_spill] sm:$0xff]  ;;  %v10931_v45 = vld [vmem:[#allocation115_spill] sm:$0xff] }
 0x1ad   :  { %v596_v50 = vsel %vm593_vm9, %v595_v47, %v591_v53  ;;  %v619_v59 = vmul.f32 %v3492_v49, %v577_v52  ;;  %v10932_v46 = vld [vmem:[#allocation116_spill] sm:$0xff]  ;;  %v10933_v47 = vld [vmem:[#allocation117_spill] sm:$0xff]  ;;  %v10934_v48 = vld [vmem:[#allocation118_spill] sm:$0xff] }
 0x1ae   :  { %v618_v57 = vmul.f32 0.0, %v596_v50  ;;  %v606_v60 = vmul.f32 %v3490_v42, %v605_v56  ;;  %v10935_v49 = vld [vmem:[#allocation119_spill] sm:$0xff]  ;;  %v10936_v52 = vld [vmem:[#allocation120_spill] sm:$0xff]  ;;  %v10937_v53 = vld [vmem:[#allocation121_spill] sm:$0xff] }
 0x1af   :  { %v10938_v56 = vld [vmem:[#allocation122_spill] sm:$0xff]  ;;  %v10939_v50 = vld [vmem:[#allocation123_spill] sm:$0xff] }
 0x1b0   :  { %v5700_v1 = vadd.f32 %v619_v59, %v618_v57  ;;  %v607_v6 = vadd.f32 %v3490_v42, %v606_v60  ;;  %v10940_v59 = vld [vmem:[#allocation124_spill] sm:$0xff]  ;;  %v10941_v57 = vld [vmem:[#allocation125_spill] sm:$0xff]  ;;  %v10942_v60 = vld [vmem:[#allocation126_spill] sm:$0xff] }
 0x1b2   :  { %3493 = vtanh.f32 %v5700_v1  ;;  %v611_v7 = vsel %vm610_vm12, %v3490_v42, %v607_v6  ;;  %v10928_v42 = vld [vmem:[#allocation112_spill] sm:$0xff]  ;;  %v10943_v6 = vld [vmem:[#allocation127_spill] sm:$0xff] }
 0x1b3   :  { %v616_v8 = vsel %vm613_vm13, %v615_v4, %v611_v7  ;;  %v10946_v7 = vld [vmem:[#allocation130_spill] sm:$0xff]  ;;  %v10947_v4 = vld [vmem:[#allocation131_spill] sm:$0xff] }
 0x1b8   :  { %v3494_v5 = vpop.eup %3493 }
 0x1b9   :  { %v622_v11 = vmul.f32 %v3494_v5, %v616_v8  ;;  %v10948_v5 = vld [vmem:[#allocation132_spill] sm:$0xff]  ;;  %v10949_v8 = vld [vmem:[#allocation133_spill] sm:$0xff] }
 0x1bb   :  { %639 = vmatmul.f32.vlgmr.msrb.gmra.mxu0 %v622_v11  ;;  %659 = vmatmul.f32.vlgmr.msrb.gmra.mxu1 %v622_v11 }
 0x1bc   :  { %679 = vmatmul.f32.vlgmr.msrb.gmra.mxu2 %v622_v11  ;;  %699 = vmatmul.f32.vlgmr.msrb.gmra.mxu3 %v622_v11  ;;  %v10950_v11 = vld [vmem:[#allocation134_spill] sm:$0xff] }
 0x1bd   :  { %867 = vmatpush.msrb.mxu0 %v10899_v9  ;;  %887 = vmatpush.msrb.mxu1 %v10900_v12  ;;  %v10951_v9 = vld [vmem:[#allocation135_spill] sm:$0xff]  ;;  %v10952_v12 = vld [vmem:[#allocation136_spill] sm:$0xff] }
 0x1be   :  { %907 = vmatpush.msrb.mxu2 %v10901_v13  ;;  %927 = vmatpush.msrb.mxu3 %v10902_v14  ;;  %v10953_v13 = vld [vmem:[#allocation137_spill] sm:$0xff]  ;;  %v10954_v14 = vld [vmem:[#allocation138_spill] sm:$0xff] }
 0x1bf   :  { %868 = vmatpush.msrb.mxu0 %v10903_v15  ;;  %888 = vmatpush.msrb.mxu1 %v10904_v16  ;;  %v10955_v15 = vld [vmem:[#allocation139_spill] sm:$0xff]  ;;  %v10956_v16 = vld [vmem:[#allocation140_spill] sm:$0xff] }
 0x1c0   :  { %908 = vmatpush.msrb.mxu2 %v10905_v17  ;;  %928 = vmatpush.msrb.mxu3 %v10906_v20  ;;  %v5774_v17 = vld [vmem:[%s10121_s3 + $0x1e0] sm:$0xff]  ;;  %v5816_v20 = vld [vmem:[%s10121_s3 + $0x1d8] sm:$0xff] }
 0x1c1   :  { %869 = vmatpush.msrb.mxu0 %v10907_v18  ;;  %889 = vmatpush.msrb.mxu1 %v10908_v19  ;;  %v5822_v18 = vld [vmem:[%s10121_s3 + $0x1a0] sm:$0xff]  ;;  %v5828_v19 = vld [vmem:[%s10121_s3 + $0x1a8] sm:$0xff] }
 0x1c2   :  { %909 = vmatpush.msrb.mxu2 %v10909_v21  ;;  %929 = vmatpush.msrb.mxu3 %v10910_v25  ;;  %v5834_v21 = vld [vmem:[%s10121_s3 + $0x1b0] sm:$0xff]  ;;  %v5840_v25 = vld [vmem:[%s10121_s3 + $0x1b8] sm:$0xff] }
 0x1c3   :  { %721 = vmatmul.f32.vlgmr.msra.gmra.mxu0 %v5603_v39  ;;  %741 = vmatmul.f32.vlgmr.msra.gmra.mxu1 %v5603_v39 }
 0x1c4   :  { %761 = vmatmul.f32.vlgmr.msra.gmra.mxu2 %v5603_v39  ;;  %781 = vmatmul.f32.vlgmr.msra.gmra.mxu3 %v5603_v39  ;;  %v10921_v39 = vld [vmem:[#allocation105_spill] sm:$0xff] }
 0x1c5   :  { %870 = vmatpush.msrb.mxu0 %v10911_v22  ;;  %890 = vmatpush.msrb.mxu1 %v10912_v23  ;;  %v5846_v22 = vld [vmem:[%s10121_s3 + $0x180] sm:$0xff]  ;;  %v5852_v23 = vld [vmem:[%s10121_s3 + $0x188] sm:$0xff] }
 0x1c6   :  { %910 = vmatpush.msrb.mxu2 %v10913_v28  ;;  %930 = vmatpush.msrb.mxu3 %v10914_v27  ;;  %v5858_v28 = vld [vmem:[%s10121_s3 + $0x190] sm:$0xff]  ;;  %v5864_v27 = vld [vmem:[%s10121_s3 + $0x198] sm:$0xff] }
 0x1c7   :  { %871 = vmatpush.msrb.mxu0 %v10915_v29  ;;  %891 = vmatpush.msrb.mxu1 %v10916_v30  ;;  %v5870_v29 = vld [vmem:[%s10121_s3 + $0x160] sm:$0xff]  ;;  %v5876_v30 = vld [vmem:[%s10121_s3 + $0x168] sm:$0xff] }
 0x1c8   :  { %911 = vmatpush.msrb.mxu2 %v10917_v31  ;;  %931 = vmatpush.msrb.mxu3 %v10918_v32  ;;  %v5882_v31 = vld [vmem:[%s10121_s3 + $0x170] sm:$0xff]  ;;  %v5888_v32 = vld [vmem:[%s10121_s3 + $0x178] sm:$0xff] }
 0x1c9   :  { %872 = vmatpush.msrb.mxu0 %v10919_v33  ;;  %892 = vmatpush.msrb.mxu1 %v10920_v34  ;;  %v5894_v33 = vld [vmem:[%s10121_s3 + $0x140] sm:$0xff]  ;;  %v5900_v34 = vld [vmem:[%s10121_s3 + $0x148] sm:$0xff] }
 0x1ca   :  { %912 = vmatpush.msrb.mxu2 %v10921_v39  ;;  %932 = vmatpush.msrb.mxu3 %v10922_v35  ;;  %v5906_v39 = vld [vmem:[%s10121_s3 + $0x150] sm:$0xff]  ;;  %v5912_v35 = vld [vmem:[%s10121_s3 + $0x158] sm:$0xff] }
 0x1cb   :  { %873 = vmatpush.msrb.mxu0 %v10923_v36  ;;  %893 = vmatpush.msrb.mxu1 %v10924_v37  ;;  %v5918_v36 = vld [vmem:[%s10121_s3 + $0x120] sm:$0xff]  ;;  %v5924_v37 = vld [vmem:[%s10121_s3 + $0x128] sm:$0xff] }
 0x1cc   :  { %913 = vmatpush.msrb.mxu2 %v10925_v38  ;;  %933 = vmatpush.msrb.mxu3 %v10926_v40  ;;  %v5930_v38 = vld [vmem:[%s10121_s3 + $0x130] sm:$0xff]  ;;  %v5936_v40 = vld [vmem:[%s10121_s3 + $0x138] sm:$0xff] }
 0x1cd   :  { %874 = vmatpush.msrb.mxu0 %v10927_v41  ;;  %894 = vmatpush.msrb.mxu1 %v10928_v42  ;;  %v5942_v41 = vld [vmem:[%s10121_s3 + $0x100] sm:$0xff]  ;;  %v5948_v42 = vld [vmem:[%s10121_s3 + $0x108] sm:$0xff] }
 0x1ce   :  { %914 = vmatpush.msrb.mxu2 %v10929_v43  ;;  %934 = vmatpush.msrb.mxu3 %v10930_v44  ;;  %10957 = vst [vmem:[#allocation14_spill] sm:$0xff] %v5942_v41  ;;  %v5954_v43 = vld [vmem:[%s10121_s3 + $0x110] sm:$0xff]  ;;  %v5960_v44 = vld [vmem:[%s10121_s3 + $0x118] sm:$0xff] }
 0x1cf   :  { %875 = vmatpush.msrb.mxu0 %v10931_v45  ;;  %895 = vmatpush.msrb.mxu1 %v10932_v46  ;;  %10958 = vst [vmem:[#allocation13_spill] sm:$0xff] %v5948_v42  ;;  %v5966_v45 = vld [vmem:[%s10121_s3 + $0xe0] sm:$0xff]  ;;  %v5972_v46 = vld [vmem:[%s10121_s3 + $0xe8] sm:$0xff] }
 0x1d0   :  { %915 = vmatpush.msrb.mxu2 %v10933_v47  ;;  %935 = vmatpush.msrb.mxu3 %v10934_v48  ;;  %10959 = vst [vmem:[#allocation5_spill] sm:$0xff] %v5954_v43  ;;  %v5978_v47 = vld [vmem:[%s10121_s3 + $0xf0] sm:$0xff]  ;;  %v5984_v48 = vld [vmem:[%s10121_s3 + $0xf8] sm:$0xff] }
 0x1d1   :  { %876 = vmatpush.msrb.mxu0 %v10935_v49  ;;  %896 = vmatpush.msrb.mxu1 %v10936_v52  ;;  %10960 = vst [vmem:[#allocation6_spill] sm:$0xff] %v5960_v44  ;;  %v5990_v49 = vld [vmem:[%s10121_s3 + $0xc0] sm:$0xff]  ;;  %v5996_v52 = vld [vmem:[%s10121_s3 + $0xc8] sm:$0xff] }
 0x1d2   :  { %916 = vmatpush.msrb.mxu2 %v10937_v53  ;;  %936 = vmatpush.msrb.mxu3 %v10938_v56  ;;  %10961 = vst [vmem:[#allocation18_spill] sm:$0xff] %v5966_v45  ;;  %v6002_v53 = vld [vmem:[%s10121_s3 + $0xd0] sm:$0xff]  ;;  %v6008_v56 = vld [vmem:[%s10121_s3 + $0xd8] sm:$0xff] }
 0x1d3   :  { %877 = vmatpush.msrb.mxu0 %v10939_v50  ;;  %897 = vmatpush.msrb.mxu1 %v10940_v59  ;;  %10962 = vst [vmem:[#allocation17_spill] sm:$0xff] %v5972_v46  ;;  %v6014_v50 = vld [vmem:[%s10121_s3 + $0xa0] sm:$0xff]  ;;  %v6020_v59 = vld [vmem:[%s10121_s3 + $0xa8] sm:$0xff] }
 0x1d4   :  { %917 = vmatpush.msrb.mxu2 %v10941_v57  ;;  %937 = vmatpush.msrb.mxu3 %v10942_v60  ;;  %10963 = vst [vmem:[#allocation9_spill] sm:$0xff] %v5978_v47  ;;  %v6026_v57 = vld [vmem:[%s10121_s3 + $0xb0] sm:$0xff]  ;;  %v6032_v60 = vld [vmem:[%s10121_s3 + $0xb8] sm:$0xff] }
 0x1d5   :  { %878 = vmatpush.msrb.mxu0 %v10943_v6  ;;  %898 = vmatpush.msrb.mxu1 %v10944_v2  ;;  %10964 = vst [vmem:[#allocation10_spill] sm:$0xff] %v5984_v48  ;;  %v6038_v6 = vld [vmem:[%s10121_s3 + $0x80] sm:$0xff]  ;;  %v6044_v2 = vld [vmem:[%s10121_s3 + $0x88] sm:$0xff] }
 0x1d6   :  { %918 = vmatpush.msrb.mxu2 %v10945_v3  ;;  %938 = vmatpush.msrb.mxu3 %v10946_v7  ;;  %10965 = vst [vmem:[#allocation22_spill] sm:$0xff] %v5990_v49  ;;  %v6050_v3 = vld [vmem:[%s10121_s3 + $0x90] sm:$0xff]  ;;  %v6056_v7 = vld [vmem:[%s10121_s3 + $0x98] sm:$0xff] }
 0x1d7   :  { %879 = vmatpush.msrb.mxu0 %v10947_v4  ;;  %899 = vmatpush.msrb.mxu1 %v10948_v5  ;;  %10966 = vst [vmem:[#allocation21_spill] sm:$0xff] %v5996_v52  ;;  %v6062_v4 = vld [vmem:[%s10121_s3 + $0x60] sm:$0xff]  ;;  %v6068_v5 = vld [vmem:[%s10121_s3 + $0x68] sm:$0xff] }
 0x1d8   :  { %919 = vmatpush.msrb.mxu2 %v10949_v8  ;;  %939 = vmatpush.msrb.mxu3 %v10950_v11  ;;  %10967 = vst [vmem:[#allocation11_spill] sm:$0xff] %v6002_v53  ;;  %v6074_v8 = vld [vmem:[%s10121_s3 + $0x70] sm:$0xff]  ;;  %v6080_v11 = vld [vmem:[%s10121_s3 + $0x78] sm:$0xff] }
 0x1d9   :  { %880 = vmatpush.msrb.mxu0 %v10951_v9  ;;  %900 = vmatpush.msrb.mxu1 %v10952_v12  ;;  %10968 = vst [vmem:[#allocation12_spill] sm:$0xff] %v6008_v56  ;;  %v6086_v9 = vld [vmem:[%s10121_s3 + $0x40] sm:$0xff]  ;;  %v6092_v12 = vld [vmem:[%s10121_s3 + $0x48] sm:$0xff] }
 0x1da   :  { %920 = vmatpush.msrb.mxu2 %v10953_v13  ;;  %940 = vmatpush.msrb.mxu3 %v10954_v14  ;;  %10969 = vst [vmem:[#allocation26_spill] sm:$0xff] %v6014_v50  ;;  %v6098_v13 = vld [vmem:[%s10121_s3 + $0x50] sm:$0xff]  ;;  %v6104_v14 = vld [vmem:[%s10121_s3 + $0x58] sm:$0xff] }
 0x1db   :  { %881 = vmatpush.msrb.mxu0 %v10955_v15  ;;  %901 = vmatpush.msrb.mxu1 %v10956_v16  ;;  %10970 = vst [vmem:[#allocation25_spill] sm:$0xff] %v6020_v59  ;;  %v6110_v15 = vld [vmem:[%s10121_s3 + $0x20] sm:$0xff]  ;;  %v6116_v16 = vld [vmem:[%s10121_s3 + $0x28] sm:$0xff] }
 0x1dc   :  { %921 = vmatpush.msrb.mxu2 %v5470_v62  ;;  %941 = vmatpush.msrb.mxu3 %v5475_v54  ;;  %v5780_v62 = vld [vmem:[%s10121_s3 + $0x1e8] sm:$0xff]  ;;  %v5792_v54 = vld [vmem:[%s10121_s3 + $0x1f8] sm:$0xff]  ;;  %10971 = vst [vmem:[#allocation15_spill] sm:$0xff] %v6026_v57 }
 0x1dd   :  { %882 = vmatpush.msrb.mxu0 %v5484_v55  ;;  %902 = vmatpush.msrb.mxu1 %v5489_v63  ;;  %v5786_v63 = vld [vmem:[%s10121_s3 + $0x1f0] sm:$0xff]  ;;  %v5804_v55 = vld [vmem:[%s10121_s3 + $0x1c8] sm:$0xff]  ;;  %10972 = vst [vmem:[#allocation16_spill] sm:$0xff] %v6032_v60 }
 0x1de   :  { %922 = vmatpush.msrb.mxu2 %v5496_v51  ;;  %942 = vmatpush.msrb.mxu3 %v5501_v58  ;;  %v5798_v58 = vld [vmem:[%s10121_s3 + $0x1c0] sm:$0xff]  ;;  %v5810_v51 = vld [vmem:[%s10121_s3 + $0x1d0] sm:$0xff]  ;;  %10973 = vst [vmem:[#allocation30_spill] sm:$0xff] %v6038_v6 }
 0x1df   :  { %1014 = vmatpush.msra.mxu0 %v5774_v17  ;;  %1034 = vmatpush.msra.mxu1 %v5780_v62  ;;  %10974 = vst [vmem:[#allocation29_spill] sm:$0xff] %v6044_v2 }
 0x1e0   :  { %1054 = vmatpush.msra.mxu2 %v5786_v63  ;;  %1074 = vmatpush.msra.mxu3 %v5792_v54  ;;  %10975 = vst [vmem:[#allocation19_spill] sm:$0xff] %v6050_v3 }
 0x1e1   :  { %1015 = vmatpush.msra.mxu0 %v5798_v58  ;;  %1035 = vmatpush.msra.mxu1 %v5804_v55  ;;  %10976 = vst [vmem:[#allocation20_spill] sm:$0xff] %v6056_v7 }
 0x1e2   :  { %1055 = vmatpush.msra.mxu2 %v5810_v51  ;;  %1075 = vmatpush.msra.mxu3 %v5816_v20  ;;  %10977 = vst [vmem:[#allocation34_spill] sm:$0xff] %v6062_v4 }
 0x1e3   :  { %1016 = vmatpush.msra.mxu0 %v5822_v18  ;;  %1036 = vmatpush.msra.mxu1 %v5828_v19  ;;  %10978 = vst [vmem:[#allocation33_spill] sm:$0xff] %v6068_v5 }
 0x1e4   :  { %1056 = vmatpush.msra.mxu2 %v5834_v21  ;;  %1076 = vmatpush.msra.mxu3 %v5840_v25  ;;  %10979 = vst [vmem:[#allocation23_spill] sm:$0xff] %v6074_v8 }
 0x1e5   :  { %1017 = vmatpush.msra.mxu0 %v5846_v22  ;;  %1037 = vmatpush.msra.mxu1 %v5852_v23  ;;  %10980 = vst [vmem:[#allocation24_spill] sm:$0xff] %v6080_v11 }
 0x1e6   :  { %1057 = vmatpush.msra.mxu2 %v5858_v28  ;;  %1077 = vmatpush.msra.mxu3 %v5864_v27  ;;  %10981 = vst [vmem:[#allocation38_spill] sm:$0xff] %v6086_v9 }
 0x1e7   :  { %1018 = vmatpush.msra.mxu0 %v5870_v29  ;;  %1038 = vmatpush.msra.mxu1 %v5876_v30  ;;  %10982 = vst [vmem:[#allocation37_spill] sm:$0xff] %v6092_v12 }
 0x1e8   :  { %1058 = vmatpush.msra.mxu2 %v5882_v31  ;;  %1078 = vmatpush.msra.mxu3 %v5888_v32  ;;  %10983 = vst [vmem:[#allocation27_spill] sm:$0xff] %v6098_v13 }
 0x1e9   :  { %1019 = vmatpush.msra.mxu0 %v5894_v33  ;;  %1039 = vmatpush.msra.mxu1 %v5900_v34  ;;  %10984 = vst [vmem:[#allocation28_spill] sm:$0xff] %v6104_v14 }
 0x1ea   :  { %1059 = vmatpush.msra.mxu2 %v5906_v39  ;;  %1079 = vmatpush.msra.mxu3 %v5912_v35  ;;  %10985 = vst [vmem:[#allocation42_spill] sm:$0xff] %v6110_v15 }
 0x1eb   :  { %1020 = vmatpush.msra.mxu0 %v5918_v36  ;;  %1040 = vmatpush.msra.mxu1 %v5924_v37  ;;  %10986 = vst [vmem:[#allocation41_spill] sm:$0xff] %v6116_v16 }
 0x1ec   :  { %1060 = vmatpush.msra.mxu2 %v5930_v38  ;;  %1080 = vmatpush.msra.mxu3 %v5936_v40 }
 0x1ed   :  { %1021 = vmatpush.msra.mxu0 %v5942_v41  ;;  %1041 = vmatpush.msra.mxu1 %v5948_v42 }
 0x1ee   :  { %1061 = vmatpush.msra.mxu2 %v5954_v43  ;;  %1081 = vmatpush.msra.mxu3 %v5960_v44 }
 0x1ef   :  { %1022 = vmatpush.msra.mxu0 %v5966_v45  ;;  %1042 = vmatpush.msra.mxu1 %v5972_v46 }
 0x1f0   :  { %1062 = vmatpush.msra.mxu2 %v5978_v47  ;;  %1082 = vmatpush.msra.mxu3 %v5984_v48 }
 0x1f1   :  { %1023 = vmatpush.msra.mxu0 %v5990_v49  ;;  %1043 = vmatpush.msra.mxu1 %v5996_v52 }
 0x1f2   :  { %1063 = vmatpush.msra.mxu2 %v6002_v53  ;;  %1083 = vmatpush.msra.mxu3 %v6008_v56 }
 0x1f3   :  { %1024 = vmatpush.msra.mxu0 %v6014_v50  ;;  %1044 = vmatpush.msra.mxu1 %v6020_v59 }
 0x1f4   :  { %1064 = vmatpush.msra.mxu2 %v6026_v57  ;;  %1084 = vmatpush.msra.mxu3 %v6032_v60 }
 0x1f5   :  { %1025 = vmatpush.msra.mxu0 %v6038_v6  ;;  %1045 = vmatpush.msra.mxu1 %v6044_v2  ;;  %v3412_v2 = vld [vmem:[%s10124_s0 + $0x8] sm:$0xff] }
 0x1f6   :  { %1065 = vmatpush.msra.mxu2 %v6050_v3  ;;  %1085 = vmatpush.msra.mxu3 %v6056_v7 }
 0x1f7   :  { %1026 = vmatpush.msra.mxu0 %v6062_v4  ;;  %1046 = vmatpush.msra.mxu1 %v6068_v5 }
 0x1f8   :  { %1066 = vmatpush.msra.mxu2 %v6074_v8  ;;  %1086 = vmatpush.msra.mxu3 %v6080_v11 }
 0x1f9   :  { %1027 = vmatpush.msra.mxu0 %v6086_v9  ;;  %1047 = vmatpush.msra.mxu1 %v6092_v12 }
 0x1fa   :  { %1067 = vmatpush.msra.mxu2 %v6098_v13  ;;  %1087 = vmatpush.msra.mxu3 %v6104_v14  ;;  %v6122_v13 = vld [vmem:[%s10121_s3 + $0x30] sm:$0xff]  ;;  %v6128_v14 = vld [vmem:[%s10121_s3 + $0x38] sm:$0xff] }
 0x1fb   :  { %1028 = vmatpush.msra.mxu0 %v6110_v15  ;;  %1048 = vmatpush.msra.mxu1 %v6116_v16  ;;  %10987 = vst [vmem:[#allocation31_spill] sm:$0xff] %v6122_v13  ;;  %v6134_v15 = vld [vmem:[%s10121_s3] sm:$0xff]  ;;  %v6140_v16 = vld [vmem:[%s10121_s3 + $0x8] sm:$0xff] }
 0x1fc   :  { %1068 = vmatpush.msra.mxu2 %v6122_v13  ;;  %10988 = vst [vmem:[#allocation32_spill] sm:$0xff] %v6128_v14  ;;  %1088 = vmatpush.msra.mxu3 %v6128_v14  ;;  %v6146_v13 = vld [vmem:[%s10121_s3 + $0x10] sm:$0xff]  ;;  %v6152_v14 = vld [vmem:[%s10121_s3 + $0x18] sm:$0xff] }
 0x1fd   :  { %10989 = vst [vmem:[#allocation46_spill] sm:$0xff] %v6134_v15  ;;  %1029 = vmatpush.msra.mxu0 %v6134_v15  ;;  %1049 = vmatpush.msra.mxu1 %v6140_v16 }
 0x1fe   :  { %10990 = vst [vmem:[#allocation45_spill] sm:$0xff] %v6140_v16  ;;  %1069 = vmatpush.msra.mxu2 %v6146_v13  ;;  %1089 = vmatpush.msra.mxu3 %v6152_v14 }
 0x1ff   :  { %10991 = vst [vmem:[#allocation35_spill] sm:$0xff] %v6146_v13 }
 0x200   :  { %10992 = vst [vmem:[#allocation36_spill] sm:$0xff] %v6152_v14 }
 0x238   :  { %v6155_v15 = vpop.f32.mrf.mxu1  ;;  %v6157_v12 = vpop.f32.mrf.mxu0 }
 0x23f   :  { %v6159_v9 = vpop.f32.mrf.mxu2  ;;  %v6161_v16 = vpop.f32.mrf.mxu3 }
 0x240   :  { %v742_v11 = vpop.f32.mrf.mxu1  ;;  %v722_v3 = vpop.f32.mrf.mxu0 }
 0x241   :  { %v789_v8 = vrot.slane %v742_v11, 6 }
 0x243   :  { %v792_v14 = vsel %vm398_vm1, %v722_v3, %v789_v8 }
 0x247   :  { %v762_v5 = vpop.f32.mrf.mxu2  ;;  %v782_v4 = vpop.f32.mrf.mxu3 }
 0x248   :  { %v790_v13 = vrot.slane %v762_v5, 4  ;;  %v791_v7 = vrot.slane %v782_v4, 2 }
 0x24a   :  { %v793_v6 = vsel %vm400_vm0, %v790_v13, %v791_v7 }
 0x24b   :  { %v794_v60 = vsel %vm402_vm2, %v792_v14, %v793_v6 }
 0x24c   :  { %v796_v57 = vadd.f32 %v3412_v2, %v794_v60 }
 0x24e   :  { %v3413_v59 = vmul.f32 -1.442695, %v796_v57  ;;  %v817_v50 = vrot.slane %v796_v57, 2  ;;  %v841_v56 = vrot.slane %v796_v57, 6  ;;  %v838_v8 = vrot.slane %v796_v57, 4 }
 0x250   :  { %3495 = vpow2.f32 %v3413_v59  ;;  %v3414_v11 = vmul.f32 -1.442695, %v817_v50  ;;  %v3415_v53 = vmul.f32 -1.442695, %v841_v56 }
 0x252   :  { %3497 = vpow2.f32 %v3414_v11 }
 0x253   :  { %3499 = vpow2.f32 %v3415_v53 }
 0x256   :  { %v3496_v4 = vpop.eup %3495 }
 0x257   :  { %v800_v5 = vadd.f32 1.0, %v3496_v4 }
 0x258   :  { %v3498_v52 = vpop.eup %3497 }
 0x259   :  { %v3500_v49 = vpop.eup %3499  ;;  %3501 = vrcp.f32 %v800_v5  ;;  %v822_v48 = vadd.f32 1.0, %v3498_v52  ;;  %v812_v56 = vand.u32 2147483648, %v800_v5  ;;  %v810_v14 = vand.u32 2147483647, %v800_v5 }
 0x25a   :  { %v846_v3 = vadd.f32 1.0, %v3500_v49  ;;  %vm806_vm15 = vweird.f32 %v800_v5 }
 0x25b   :  { %3503 = vrcp.f32 %v822_v48  ;;  %v834_v47 = vand.u32 2147483648, %v822_v48  ;;  %v832_v52 = vand.u32 2147483647, %v822_v48  ;;  %v813_v45 = vor.u32 1.1754944e-38, %v812_v56  ;;  %v6218_v56 = vld [vmem:[%s10122_s1 + $0x1d0] sm:$0xff] }
 0x25c   :  { %3505 = vrcp.f32 %v846_v3  ;;  %vm811_vm5 = vcmp.eq.f32.partialorder %v810_v14, 8.507059e+37  ;;  %vm828_vm6 = vweird.f32 %v822_v48  ;;  %vm852_vm10 = vweird.f32 %v846_v3  ;;  %v6230_v14 = vld [vmem:[%s10122_s1 + $0x1a0] sm:$0xff] }
 0x25d   :  { %3507 = vtanh.f32 %v838_v8  ;;  %v835_v44 = vor.u32 1.1754944e-38, %v834_v47  ;;  %vm833_vm8 = vcmp.eq.f32.partialorder %v832_v52, 8.507059e+37  ;;  %10993 = vst [vmem:[#allocation50_spill] sm:$0xff] %v6230_v14  ;;  %v6248_v52 = vld [vmem:[%s10122_s1 + $0x1b8] sm:$0xff] }
 0x25e   :  { %10996 = vst [vmem:[#allocation40_spill] sm:$0xff] %v6248_v52 }
 0x25f   :  { %v3502_v7 = vpop.eup %3501 }
 0x260   :  { %v802_v6 = vmul.f32 %v3502_v7, %v800_v5  ;;  %vm807_vm14 = vweird.f32 %v3502_v7 }
 0x261   :  { %v3504_v60 = vpop.eup %3503  ;;  %vm808_vm3 = vmor %vm806_vm15, %vm807_vm14 }
 0x262   :  { %v803_v2 = vsub.f32 1.0, %v802_v6  ;;  %v3506_v13 = vpop.eup %3505  ;;  %v824_v59 = vmul.f32 %v3504_v60, %v822_v48  ;;  %vm829_vm4 = vweird.f32 %v3504_v60  ;;  %v856_v48 = vand.u32 2147483647, %v846_v3 }
 0x263   :  { %v848_v53 = vmul.f32 %v3506_v13, %v846_v3  ;;  %vm830_vm7 = vmor %vm828_vm6, %vm829_vm4  ;;  %vm853_vm9 = vweird.f32 %v3506_v13 }
 0x264   :  { %v804_v50 = vmul.f32 %v3502_v7, %v803_v2  ;;  %v825_v11 = vsub.f32 1.0, %v824_v59  ;;  %v3508_v59 = vpop.eup %3507  ;;  %vm854_vm11 = vmor %vm852_vm10, %vm853_vm9  ;;  %vm857_vm12 = vcmp.eq.f32.partialorder %v856_v48, 8.507059e+37  ;;  %v6302_v48 = vld [vmem:[%s10122_s1 + $0x140] sm:$0xff] }
 0x265   :  { %v849_v6 = vsub.f32 1.0, %v848_v53  ;;  %v6224_v53 = vld [vmem:[%s10122_s1 + $0x1d8] sm:$0xff]  ;;  %11005 = vst [vmem:[#allocation64_spill] sm:$0xff] %v6302_v48 }
 0x266   :  { %v805_v4 = vadd.f32 %v3502_v7, %v804_v50  ;;  %v826_v49 = vmul.f32 %v3504_v60, %v825_v11 }
 0x267   :  { %v850_v5 = vmul.f32 %v3506_v13, %v849_v6  ;;  %v6254_v6 = vld [vmem:[%s10122_s1 + $0x180] sm:$0xff] }
 0x268   :  { %v809_v46 = vsel %vm808_vm3, %v3502_v7, %v805_v4  ;;  %v827_v57 = vadd.f32 %v3504_v60, %v826_v49  ;;  %v858_v7 = vand.u32 2147483648, %v846_v3  ;;  %v6206_v3 = vld [vmem:[%s10122_s1 + $0x1c0] sm:$0xff]  ;;  %v6236_v4 = vld [vmem:[%s10122_s1 + $0x1a8] sm:$0xff]  ;;  %v6242_v49 = vld [vmem:[%s10122_s1 + $0x1b0] sm:$0xff]  ;;  %10997 = vst [vmem:[#allocation56_spill] sm:$0xff] %v6254_v6 }
 0x269   :  { %v814_v2 = vsel %vm811_vm5, %v813_v45, %v809_v46  ;;  %v851_v41 = vadd.f32 %v3506_v13, %v850_v5  ;;  %10994 = vst [vmem:[#allocation49_spill] sm:$0xff] %v6236_v4  ;;  %v6284_v5 = vld [vmem:[%s10122_s1 + $0x168] sm:$0xff] }
 0x26a   :  { %v831_v43 = vsel %vm830_vm7, %v3504_v60, %v827_v57  ;;  %v863_v42 = vmul.f32 %v3508_v59, %v814_v2  ;;  %v859_v46 = vor.u32 1.1754944e-38, %v858_v7  ;;  %10995 = vst [vmem:[#allocation39_spill] sm:$0xff] %v6242_v49  ;;  %v6260_v57 = vld [vmem:[%s10122_s1 + $0x188] sm:$0xff]  ;;  %v6266_v2 = vld [vmem:[%s10122_s1 + $0x190] sm:$0xff]  ;;  %v6272_v59 = vld [vmem:[%s10122_s1 + $0x198] sm:$0xff] }
 0x26b   :  { %v836_v50 = vsel %vm833_vm8, %v835_v44, %v831_v43  ;;  %v855_v45 = vsel %vm854_vm11, %v3506_v13, %v851_v41  ;;  %v6188_v41 = vld [vmem:[%s10122_s1 + $0x1e8] sm:$0xff]  ;;  %v6200_v44 = vld [vmem:[%s10122_s1 + $0x1f8] sm:$0xff]  ;;  %10998 = vst [vmem:[#allocation53_spill] sm:$0xff] %v6260_v57 }
 0x26c   :  { %v862_v8 = vmul.f32 %v836_v50, %v5576_v26  ;;  %v860_v60 = vsel %vm857_vm12, %v859_v46, %v855_v45  ;;  %v6182_v26 = vld [vmem:[%s10122_s1 + $0x1e0] sm:$0xff]  ;;  %v6212_v13 = vld [vmem:[%s10122_s1 + $0x1c8] sm:$0xff]  ;;  %10999 = vst [vmem:[#allocation43_spill] sm:$0xff] %v6266_v2  ;;  %v6296_v7 = vld [vmem:[%s10122_s1 + $0x178] sm:$0xff] }
 0x26d   :  { %11000 = vst [vmem:[#allocation44_spill] sm:$0xff] %v6272_v59  ;;  %v6278_v50 = vld [vmem:[%s10122_s1 + $0x160] sm:$0xff]  ;;  %v6308_v45 = vld [vmem:[%s10122_s1 + $0x148] sm:$0xff]  ;;  %v6314_v46 = vld [vmem:[%s10122_s1 + $0x150] sm:$0xff] }
 0x26e   :  { %v6170_v11 = vadd.f32 %v863_v42, %v862_v8  ;;  %v6194_v42 = vld [vmem:[%s10122_s1 + $0x1f0] sm:$0xff]  ;;  %11001 = vst [vmem:[#allocation60_spill] sm:$0xff] %v6278_v50 }
 0x26f   :  { %11002 = vst [vmem:[#allocation57_spill] sm:$0xff] %v6284_v5  ;;  %v6290_v8 = vld [vmem:[%s10122_s1 + $0x170] sm:$0xff] }
 0x270   :  { %3509 = vtanh.f32 %v6170_v11  ;;  %11003 = vst [vmem:[#allocation47_spill] sm:$0xff] %v6290_v8 }
 0x271   :  { %11004 = vst [vmem:[#allocation48_spill] sm:$0xff] %v6296_v7 }
 0x272   :  { %11006 = vst [vmem:[#allocation61_spill] sm:$0xff] %v6308_v45 }
 0x273   :  { %11007 = vst [vmem:[#allocation51_spill] sm:$0xff] %v6314_v46 }
 0x276   :  { %v3510_v47 = vpop.eup %3509 }
 0x277   :  { %v6173_v43 = vmul.f32 %v3510_v47, %v860_v60  ;;  %v6320_v47 = vld [vmem:[%s10122_s1 + $0x158] sm:$0xff]  ;;  %v6326_v60 = vld [vmem:[%s10122_s1 + $0x120] sm:$0xff] }
 0x278   :  { %11008 = vst [vmem:[#allocation52_spill] sm:$0xff] %v6320_v47 }
 0x279   :  { %883 = vmatmul.f32.vlgmr.msrb.gmra.mxu0 %v6173_v43  ;;  %903 = vmatmul.f32.vlgmr.msrb.gmra.mxu1 %v6173_v43  ;;  %11009 = vst [vmem:[#allocation68_spill] sm:$0xff] %v6326_v60 }
 0x27a   :  { %923 = vmatmul.f32.vlgmr.msrb.gmra.mxu2 %v6173_v43  ;;  %943 = vmatmul.f32.vlgmr.msrb.gmra.mxu3 %v6173_v43 }
 0x27b   :  { %1096 = vmatpush.msrb.mxu0 %v6182_v26  ;;  %1116 = vmatpush.msrb.mxu1 %v6188_v41 }
 0x27c   :  { %1136 = vmatpush.msrb.mxu2 %v6194_v42  ;;  %1156 = vmatpush.msrb.mxu3 %v6200_v44 }
 0x27d   :  { %1097 = vmatpush.msrb.mxu0 %v6206_v3  ;;  %1117 = vmatpush.msrb.mxu1 %v6212_v13 }
 0x27e   :  { %1137 = vmatpush.msrb.mxu2 %v6218_v56  ;;  %1157 = vmatpush.msrb.mxu3 %v6224_v53 }
 0x27f   :  { %1098 = vmatpush.msrb.mxu0 %v6230_v14  ;;  %1118 = vmatpush.msrb.mxu1 %v6236_v4 }
 0x280   :  { %1138 = vmatpush.msrb.mxu2 %v6242_v49  ;;  %1158 = vmatpush.msrb.mxu3 %v6248_v52 }
 0x281   :  { %1099 = vmatpush.msrb.mxu0 %v6254_v6  ;;  %1119 = vmatpush.msrb.mxu1 %v6260_v57 }
 0x282   :  { %1139 = vmatpush.msrb.mxu2 %v6266_v2  ;;  %1159 = vmatpush.msrb.mxu3 %v6272_v59 }
 0x283   :  { %1100 = vmatpush.msrb.mxu0 %v6278_v50  ;;  %1120 = vmatpush.msrb.mxu1 %v6284_v5 }
 0x284   :  { %1140 = vmatpush.msrb.mxu2 %v6290_v8  ;;  %1160 = vmatpush.msrb.mxu3 %v6296_v7 }
 0x285   :  { %1101 = vmatpush.msrb.mxu0 %v6302_v48  ;;  %1121 = vmatpush.msrb.mxu1 %v6308_v45  ;;  %v6332_v45 = vld [vmem:[%s10122_s1 + $0x128] sm:$0xff] }
 0x286   :  { %1141 = vmatpush.msrb.mxu2 %v6314_v46  ;;  %1161 = vmatpush.msrb.mxu3 %v6320_v47  ;;  %11010 = vst [vmem:[#allocation65_spill] sm:$0xff] %v6332_v45  ;;  %v6338_v46 = vld [vmem:[%s10122_s1 + $0x130] sm:$0xff]  ;;  %v6344_v47 = vld [vmem:[%s10122_s1 + $0x138] sm:$0xff] }
 0x287   :  { %1102 = vmatpush.msrb.mxu0 %v6326_v60  ;;  %1122 = vmatpush.msrb.mxu1 %v6332_v45  ;;  %11011 = vst [vmem:[#allocation54_spill] sm:$0xff] %v6338_v46  ;;  %v6350_v60 = vld [vmem:[%s10122_s1 + $0x100] sm:$0xff]  ;;  %v6356_v45 = vld [vmem:[%s10122_s1 + $0x108] sm:$0xff] }
 0x288   :  { %1142 = vmatpush.msrb.mxu2 %v6338_v46  ;;  %11012 = vst [vmem:[#allocation55_spill] sm:$0xff] %v6344_v47  ;;  %1162 = vmatpush.msrb.mxu3 %v6344_v47  ;;  %v6362_v46 = vld [vmem:[%s10122_s1 + $0x110] sm:$0xff]  ;;  %v6368_v47 = vld [vmem:[%s10122_s1 + $0x118] sm:$0xff] }
 0x289   :  { %11013 = vst [vmem:[#allocation72_spill] sm:$0xff] %v6350_v60  ;;  %1103 = vmatpush.msrb.mxu0 %v6350_v60  ;;  %1123 = vmatpush.msrb.mxu1 %v6356_v45  ;;  %v6374_v60 = vld [vmem:[%s10122_s1 + $0xe0] sm:$0xff] }
 0x28a   :  { %11014 = vst [vmem:[#allocation69_spill] sm:$0xff] %v6356_v45  ;;  %1143 = vmatpush.msrb.mxu2 %v6362_v46  ;;  %1163 = vmatpush.msrb.mxu3 %v6368_v47  ;;  %v6380_v45 = vld [vmem:[%s10122_s1 + $0xe8] sm:$0xff] }
 0x28b   :  { %11015 = vst [vmem:[#allocation58_spill] sm:$0xff] %v6362_v46  ;;  %1104 = vmatpush.msrb.mxu0 %v6374_v60  ;;  %1124 = vmatpush.msrb.mxu1 %v6380_v45  ;;  %v6386_v46 = vld [vmem:[%s10122_s1 + $0xf0] sm:$0xff] }
 0x28c   :  { %11016 = vst [vmem:[#allocation59_spill] sm:$0xff] %v6368_v47  ;;  %1144 = vmatpush.msrb.mxu2 %v6386_v46  ;;  %v6392_v47 = vld [vmem:[%s10122_s1 + $0xf8] sm:$0xff] }
 0x28d   :  { %11017 = vst [vmem:[#allocation74_spill] sm:$0xff] %v6374_v60  ;;  %1164 = vmatpush.msrb.mxu3 %v6392_v47  ;;  %v6398_v60 = vld [vmem:[%s10122_s1 + $0xc0] sm:$0xff] }
 0x28e   :  { %11018 = vst [vmem:[#allocation73_spill] sm:$0xff] %v6380_v45  ;;  %1105 = vmatpush.msrb.mxu0 %v6398_v60  ;;  %v6404_v45 = vld [vmem:[%s10122_s1 + $0xc8] sm:$0xff] }
 0x28f   :  { %11019 = vst [vmem:[#allocation62_spill] sm:$0xff] %v6386_v46  ;;  %1125 = vmatpush.msrb.mxu1 %v6404_v45  ;;  %v6410_v46 = vld [vmem:[%s10122_s1 + $0xd0] sm:$0xff] }
 0x290   :  { %11020 = vst [vmem:[#allocation63_spill] sm:$0xff] %v6392_v47  ;;  %1145 = vmatpush.msrb.mxu2 %v6410_v46  ;;  %v6416_v47 = vld [vmem:[%s10122_s1 + $0xd8] sm:$0xff] }
 0x291   :  { %11021 = vst [vmem:[#allocation76_spill] sm:$0xff] %v6398_v60  ;;  %1165 = vmatpush.msrb.mxu3 %v6416_v47  ;;  %v6422_v60 = vld [vmem:[%s10122_s1 + $0xa0] sm:$0xff] }
 0x292   :  { %11022 = vst [vmem:[#allocation75_spill] sm:$0xff] %v6404_v45  ;;  %1106 = vmatpush.msrb.mxu0 %v6422_v60  ;;  %v6428_v45 = vld [vmem:[%s10122_s1 + $0xa8] sm:$0xff] }
 0x293   :  { %11023 = vst [vmem:[#allocation66_spill] sm:$0xff] %v6410_v46  ;;  %1126 = vmatpush.msrb.mxu1 %v6428_v45  ;;  %v6434_v46 = vld [vmem:[%s10122_s1 + $0xb0] sm:$0xff] }
 0x294   :  { %11024 = vst [vmem:[#allocation67_spill] sm:$0xff] %v6416_v47  ;;  %1146 = vmatpush.msrb.mxu2 %v6434_v46  ;;  %v6440_v47 = vld [vmem:[%s10122_s1 + $0xb8] sm:$0xff] }
 0x295   :  { %11025 = vst [vmem:[#allocation78_spill] sm:$0xff] %v6422_v60  ;;  %1166 = vmatpush.msrb.mxu3 %v6440_v47  ;;  %v6446_v60 = vld [vmem:[%s10122_s1 + $0x80] sm:$0xff] }
 0x296   :  { %11026 = vst [vmem:[#allocation77_spill] sm:$0xff] %v6428_v45  ;;  %1107 = vmatpush.msrb.mxu0 %v6446_v60  ;;  %v6452_v45 = vld [vmem:[%s10122_s1 + $0x88] sm:$0xff] }
 0x297   :  { %11027 = vst [vmem:[#allocation70_spill] sm:$0xff] %v6434_v46  ;;  %1127 = vmatpush.msrb.mxu1 %v6452_v45  ;;  %v6458_v46 = vld [vmem:[%s10122_s1 + $0x90] sm:$0xff] }
 0x298   :  { %11028 = vst [vmem:[#allocation71_spill] sm:$0xff] %v6440_v47  ;;  %1147 = vmatpush.msrb.mxu2 %v6458_v46  ;;  %v6464_v47 = vld [vmem:[%s10122_s1 + $0x98] sm:$0xff] }
 0x299   :  { %11029 = vst [vmem:[#allocation93_spill] sm:$0xff] %v6446_v60  ;;  %1167 = vmatpush.msrb.mxu3 %v6464_v47  ;;  %v6470_v60 = vld [vmem:[%s10122_s1 + $0x60] sm:$0xff] }
 0x29a   :  { %11030 = vst [vmem:[#allocation84_spill] sm:$0xff] %v6452_v45  ;;  %1108 = vmatpush.msrb.mxu0 %v6470_v60  ;;  %v6476_v45 = vld [vmem:[%s10122_s1 + $0x68] sm:$0xff] }
 0x29b   :  { %11031 = vst [vmem:[#allocation85_spill] sm:$0xff] %v6458_v46  ;;  %1128 = vmatpush.msrb.mxu1 %v6476_v45  ;;  %v6482_v46 = vld [vmem:[%s10122_s1 + $0x70] sm:$0xff] }
 0x29c   :  { %11032 = vst [vmem:[#allocation82_spill] sm:$0xff] %v6464_v47  ;;  %1148 = vmatpush.msrb.mxu2 %v6482_v46  ;;  %v6488_v47 = vld [vmem:[%s10122_s1 + $0x78] sm:$0xff] }
 0x29d   :  { %11033 = vst [vmem:[#allocation79_spill] sm:$0xff] %v6470_v60  ;;  %1168 = vmatpush.msrb.mxu3 %v6488_v47  ;;  %v6494_v60 = vld [vmem:[%s10122_s1 + $0x40] sm:$0xff] }
 0x29e   :  { %11034 = vst [vmem:[#allocation80_spill] sm:$0xff] %v6476_v45  ;;  %1109 = vmatpush.msrb.mxu0 %v6494_v60  ;;  %v6500_v45 = vld [vmem:[%s10122_s1 + $0x48] sm:$0xff] }
 0x29f   :  { %11035 = vst [vmem:[#allocation81_spill] sm:$0xff] %v6482_v46  ;;  %1129 = vmatpush.msrb.mxu1 %v6500_v45  ;;  %v6506_v46 = vld [vmem:[%s10122_s1 + $0x50] sm:$0xff] }
 0x2a0   :  { %11036 = vst [vmem:[#allocation83_spill] sm:$0xff] %v6488_v47  ;;  %1149 = vmatpush.msrb.mxu2 %v6506_v46  ;;  %v6512_v47 = vld [vmem:[%s10122_s1 + $0x58] sm:$0xff] }
 0x2a1   :  { %11037 = vst [vmem:[#allocation86_spill] sm:$0xff] %v6494_v60  ;;  %1169 = vmatpush.msrb.mxu3 %v6512_v47  ;;  %v6518_v60 = vld [vmem:[%s10122_s1 + $0x20] sm:$0xff] }
 0x2a2   :  { %11038 = vst [vmem:[#allocation87_spill] sm:$0xff] %v6500_v45  ;;  %1110 = vmatpush.msrb.mxu0 %v6518_v60  ;;  %v6524_v45 = vld [vmem:[%s10122_s1 + $0x28] sm:$0xff] }
 0x2a3   :  { %11039 = vst [vmem:[#allocation88_spill] sm:$0xff] %v6506_v46  ;;  %1130 = vmatpush.msrb.mxu1 %v6524_v45  ;;  %v6530_v46 = vld [vmem:[%s10122_s1 + $0x30] sm:$0xff] }
 0x2a4   :  { %11040 = vst [vmem:[#allocation89_spill] sm:$0xff] %v6512_v47  ;;  %1150 = vmatpush.msrb.mxu2 %v6530_v46  ;;  %v6536_v47 = vld [vmem:[%s10122_s1 + $0x38] sm:$0xff] }
 0x2a5   :  { %11041 = vst [vmem:[#allocation90_spill] sm:$0xff] %v6518_v60  ;;  %1170 = vmatpush.msrb.mxu3 %v6536_v47  ;;  %v6542_v60 = vld [vmem:[%s10122_s1] sm:$0xff] }
 0x2a6   :  { %11042 = vst [vmem:[#allocation91_spill] sm:$0xff] %v6524_v45  ;;  %1111 = vmatpush.msrb.mxu0 %v6542_v60  ;;  %v6548_v45 = vld [vmem:[%s10122_s1 + $0x8] sm:$0xff] }
 0x2a7   :  { %11043 = vst [vmem:[#allocation92_spill] sm:$0xff] %v6530_v46  ;;  %1131 = vmatpush.msrb.mxu1 %v6548_v45  ;;  %v6554_v46 = vld [vmem:[%s10122_s1 + $0x10] sm:$0xff] }
 0x2a8   :  { %11044 = vst [vmem:[#allocation94_spill] sm:$0xff] %v6536_v47  ;;  %1151 = vmatpush.msrb.mxu2 %v6554_v46  ;;  %v6560_v47 = vld [vmem:[%s10122_s1 + $0x18] sm:$0xff] }
 0x2a9   :  { %11045 = vst [vmem:[#allocation95_spill] sm:$0xff] %v6542_v60  ;;  %1171 = vmatpush.msrb.mxu3 %v6560_v47 }
 0x2aa   :  { %11046 = vst [vmem:[#allocation96_spill] sm:$0xff] %v6548_v45 }
 0x2ab   :  { %11047 = vst [vmem:[#allocation97_spill] sm:$0xff] %v6554_v46 }
 0x2ac   :  { %11048 = vst [vmem:[#allocation98_spill] sm:$0xff] %v6560_v47 }
 0x2f6   :  { %v884_v60 = vpop.f32.mrf.mxu0  ;;  %v904_v48 = vpop.f32.mrf.mxu1 }
 0x2f7   :  { %v885_v7 = vadd.f32 %v884_v60, %v6157_v12  ;;  %v905_v45 = vadd.f32 %v904_v48, %v6155_v15 }
 0x2f9   :  { %v947_v8 = vadd.f32 %v885_v7, %v5684_v61  ;;  %v948_v5 = vadd.f32 %v905_v45, %v5686_v0 }
 0x2fb   :  { %v3416_v50 = vmul.f32 -1.442695, %v947_v8  ;;  %v3417_v59 = vmul.f32 -1.442695, %v948_v5 }
 0x2fd   :  { %3511 = vpow2.f32 %v3416_v50  ;;  %v944_v46 = vpop.f32.mrf.mxu3  ;;  %v924_v15 = vpop.f32.mrf.mxu2 }
 0x2fe   :  { %3513 = vpow2.f32 %v3417_v59  ;;  %v945_v2 = vadd.f32 %v944_v46, %v6161_v16  ;;  %v925_v7 = vadd.f32 %v924_v15, %v6159_v9 }
 0x300   :  { %v950_v57 = vadd.f32 %v945_v2, %v5692_v10  ;;  %v949_v59 = vadd.f32 %v925_v7, %v5696_v24 }
 0x302   :  { %v3418_v47 = vmul.f32 -1.442695, %v950_v57 }
 0x303   :  { %v3512_v6 = vpop.eup %3511 }
 0x304   :  { %v3514_v52 = vpop.eup %3513  ;;  %v954_v49 = vadd.f32 1.0, %v3512_v6  ;;  %3515 = vpow2.f32 %v3418_v47 }
 0x305   :  { %v973_v12 = vadd.f32 1.0, %v3514_v52 }
 0x306   :  { %3517 = vrcp.f32 %v954_v49  ;;  %v966_v46 = vand.u32 2147483648, %v954_v49  ;;  %v964_v47 = vand.u32 2147483647, %v954_v49  ;;  %vm960_vm15 = vweird.f32 %v954_v49 }
 0x307   :  { %3519 = vrcp.f32 %v973_v12  ;;  %v985_v6 = vand.u32 2147483648, %v973_v12  ;;  %v983_v9 = vand.u32 2147483647, %v973_v12  ;;  %vm979_vm3 = vweird.f32 %v973_v12 }
 0x308   :  { %v967_v7 = vor.u32 1.1754944e-38, %v966_v46  ;;  %vm965_vm6 = vcmp.eq.f32.partialorder %v964_v47, 8.507059e+37 }
 0x309   :  { %vm984_vm7 = vcmp.eq.f32.partialorder %v983_v9, 8.507059e+37  ;;  %v6620_v9 = vld [vmem:[%s10123_s2 + $0x1d8] sm:$0xff] }
 0x30a   :  { %v3516_v8 = vpop.eup %3515 }
 0x30b   :  { %v993_v5 = vadd.f32 1.0, %v3516_v8 }
 0x30c   :  { %v3518_v50 = vpop.eup %3517 }
 0x30d   :  { %v3520_v48 = vpop.eup %3519  ;;  %v956_v16 = vmul.f32 %v3518_v50, %v954_v49  ;;  %3521 = vrcp.f32 %v993_v5  ;;  %vm961_vm13 = vweird.f32 %v3518_v50  ;;  %v1005_v46 = vand.u32 2147483648, %v993_v5 }
 0x30e   :  { %v975_v2 = vmul.f32 %v3520_v48, %v973_v12  ;;  %3523 = vtanh.f32 %v949_v59  ;;  %vm980_vm14 = vweird.f32 %v3520_v48  ;;  %vm962_vm4 = vmor %vm960_vm15, %vm961_vm13  ;;  %vm999_vm9 = vweird.f32 %v993_v5 }
 0x30f   :  { %v957_v57 = vsub.f32 1.0, %v956_v16  ;;  %vm981_vm5 = vmor %vm979_vm3, %vm980_vm14  ;;  %v986_v16 = vor.u32 1.1754944e-38, %v985_v6  ;;  %v1006_v47 = vor.u32 1.1754944e-38, %v1005_v46  ;;  %v6696_v46 = vld [vmem:[%s10123_s2 + $0x178] sm:$0xff] }
 0x310   :  { %v976_v45 = vsub.f32 1.0, %v975_v2 }
 0x311   :  { %v958_v52 = vmul.f32 %v3518_v50, %v957_v57 }
 0x312   :  { %v977_v60 = vmul.f32 %v3520_v48, %v976_v45 }
 0x313   :  { %v3522_v15 = vpop.eup %3521  ;;  %v959_v8 = vadd.f32 %v3518_v50, %v958_v52 }
 0x314   :  { %v978_v24 = vadd.f32 %v3520_v48, %v977_v60  ;;  %v995_v10 = vmul.f32 %v3522_v15, %v993_v5  ;;  %v3524_v59 = vpop.eup %3523  ;;  %vm1000_vm8 = vweird.f32 %v3522_v15  ;;  %v6614_v60 = vld [vmem:[%s10123_s2 + $0x1d0] sm:$0xff] }
 0x315   :  { %v963_v2 = vsel %vm962_vm4, %v3518_v50, %v959_v8  ;;  %v1003_v50 = vand.u32 2147483647, %v993_v5  ;;  %vm1001_vm10 = vmor %vm999_vm9, %vm1000_vm8  ;;  %v6608_v5 = vld [vmem:[%s10123_s2 + $0x1c8] sm:$0xff] }
 0x316   :  { %v968_v0 = vsel %vm965_vm6, %v967_v7, %v963_v2  ;;  %v982_v57 = vsel %vm981_vm5, %v3520_v48, %v978_v24  ;;  %v996_v61 = vsub.f32 1.0, %v995_v10  ;;  %v6632_v8 = vld [vmem:[%s10123_s2 + $0x1a8] sm:$0xff]  ;;  %v6638_v7 = vld [vmem:[%s10123_s2 + $0x1b0] sm:$0xff]  ;;  %v6654_v2 = vld [vmem:[%s10123_s2 + $0x180] sm:$0xff] }
 0x317   :  { %v987_v45 = vsel %vm984_vm7, %v986_v16, %v982_v57  ;;  %v1010_v4 = vmul.f32 %v3524_v59, %v968_v0  ;;  %vm1004_vm11 = vcmp.eq.f32.partialorder %v1003_v50, 8.507059e+37  ;;  %v6584_v0 = vld [vmem:[%s10123_s2 + $0x1e8] sm:$0xff]  ;;  %v6644_v16 = vld [vmem:[%s10123_s2 + $0x1b8] sm:$0xff]  ;;  %v6666_v57 = vld [vmem:[%s10123_s2 + $0x190] sm:$0xff] }
 0x318   :  { %v1009_v14 = vmul.f32 %v987_v45, %v5700_v1  ;;  %v997_v52 = vmul.f32 %v3522_v15, %v996_v61  ;;  %v6578_v61 = vld [vmem:[%s10123_s2 + $0x1e0] sm:$0xff]  ;;  %v6590_v1 = vld [vmem:[%s10123_s2 + $0x1f0] sm:$0xff]  ;;  %v6660_v59 = vld [vmem:[%s10123_s2 + $0x188] sm:$0xff] }
 0x319   :  { %v6678_v45 = vld [vmem:[%s10123_s2 + $0x160] sm:$0xff] }
 0x31a   :  { %v6572_v49 = vadd.f32 %v1010_v4, %v1009_v14  ;;  %v998_v12 = vadd.f32 %v3522_v15, %v997_v52  ;;  %v6596_v14 = vld [vmem:[%s10123_s2 + $0x1f8] sm:$0xff]  ;;  %v6602_v4 = vld [vmem:[%s10123_s2 + $0x1c0] sm:$0xff]  ;;  %v6684_v52 = vld [vmem:[%s10123_s2 + $0x168] sm:$0xff] }
 0x31b   :  { %v6702_v50 = vld [vmem:[%s10123_s2 + $0x140] sm:$0xff] }
 0x31c   :  { %3525 = vtanh.f32 %v6572_v49  ;;  %v1002_v6 = vsel %vm1001_vm10, %v3522_v15, %v998_v12  ;;  %v6626_v15 = vld [vmem:[%s10123_s2 + $0x1a0] sm:$0xff]  ;;  %v6690_v12 = vld [vmem:[%s10123_s2 + $0x170] sm:$0xff] }
 0x31d   :  { %v1007_v10 = vsel %vm1004_vm11, %v1006_v47, %v1002_v6  ;;  %v6708_v6 = vld [vmem:[%s10123_s2 + $0x148] sm:$0xff]  ;;  %v6714_v47 = vld [vmem:[%s10123_s2 + $0x150] sm:$0xff] }
 0x31e   :  { %11049 = vst [vmem:[#allocation99_spill] sm:$0xff] %v6714_v47 }
 0x322   :  { %v3526_v24 = vpop.eup %3525 }
 0x323   :  { %v1013_v48 = vmul.f32 %v3526_v24, %v1007_v10  ;;  %v6720_v24 = vld [vmem:[%s10123_s2 + $0x158] sm:$0xff]  ;;  %v6726_v10 = vld [vmem:[%s10123_s2 + $0x120] sm:$0xff] }
 0x324   :  { %11050 = vst [vmem:[#allocation100_spill] sm:$0xff] %v6720_v24 }
 0x325   :  { %1030 = vmatmul.f32.vlgmr.msra.gmra.mxu0 %v1013_v48  ;;  %1050 = vmatmul.f32.vlgmr.msra.gmra.mxu1 %v1013_v48  ;;  %11051 = vst [vmem:[#allocation101_spill] sm:$0xff] %v6726_v10 }
 0x326   :  { %1070 = vmatmul.f32.vlgmr.msra.gmra.mxu2 %v1013_v48  ;;  %1090 = vmatmul.f32.vlgmr.msra.gmra.mxu3 %v1013_v48  ;;  %v6732_v48 = vld [vmem:[%s10123_s2 + $0x128] sm:$0xff] }
 0x327   :  { %1258 = vmatpush.msra.mxu0 %v6578_v61  ;;  %1278 = vmatpush.msra.mxu1 %v6584_v0  ;;  %11052 = vst [vmem:[#allocation102_spill] sm:$0xff] %v6732_v48 }
 0x328   :  { %1298 = vmatpush.msra.mxu2 %v6590_v1  ;;  %1318 = vmatpush.msra.mxu3 %v6596_v14 }
 0x329   :  { %1259 = vmatpush.msra.mxu0 %v6602_v4  ;;  %1279 = vmatpush.msra.mxu1 %v6608_v5 }
 0x32a   :  { %1299 = vmatpush.msra.mxu2 %v6614_v60  ;;  %1319 = vmatpush.msra.mxu3 %v6620_v9 }
 0x32b   :  { %1260 = vmatpush.msra.mxu0 %v6626_v15  ;;  %1280 = vmatpush.msra.mxu1 %v6632_v8 }
 0x32c   :  { %1300 = vmatpush.msra.mxu2 %v6638_v7  ;;  %1320 = vmatpush.msra.mxu3 %v6644_v16 }
 0x32d   :  { %1112 = vmatmul.f32.vlgmr.msrb.gmra.mxu0 %v6173_v43  ;;  %1132 = vmatmul.f32.vlgmr.msrb.gmra.mxu1 %v6173_v43 }
 0x32e   :  { %1152 = vmatmul.f32.vlgmr.msrb.gmra.mxu2 %v6173_v43  ;;  %1172 = vmatmul.f32.vlgmr.msrb.gmra.mxu3 %v6173_v43  ;;  %v6672_v43 = vld [vmem:[%s10123_s2 + $0x198] sm:$0xff] }
 0x32f   :  { %1261 = vmatpush.msra.mxu0 %v6654_v2  ;;  %1281 = vmatpush.msra.mxu1 %v6660_v59 }
 0x330   :  { %1301 = vmatpush.msra.mxu2 %v6666_v57  ;;  %1321 = vmatpush.msra.mxu3 %v6672_v43 }
 0x331   :  { %1262 = vmatpush.msra.mxu0 %v6678_v45  ;;  %1282 = vmatpush.msra.mxu1 %v6684_v52 }
 0x332   :  { %1302 = vmatpush.msra.mxu2 %v6690_v12  ;;  %1322 = vmatpush.msra.mxu3 %v6696_v46 }
 0x333   :  { %1263 = vmatpush.msra.mxu0 %v6702_v50  ;;  %1283 = vmatpush.msra.mxu1 %v6708_v6 }
 0x334   :  { %1303 = vmatpush.msra.mxu2 %v6714_v47  ;;  %1323 = vmatpush.msra.mxu3 %v6720_v24  ;;  %v6738_v47 = vld [vmem:[%s10123_s2 + $0x130] sm:$0xff]  ;;  %v6744_v24 = vld [vmem:[%s10123_s2 + $0x138] sm:$0xff] }
 0x335   :  { %1264 = vmatpush.msra.mxu0 %v6726_v10  ;;  %1284 = vmatpush.msra.mxu1 %v6732_v48  ;;  %11053 = vst [vmem:[#allocation103_spill] sm:$0xff] %v6738_v47  ;;  %v6750_v10 = vld [vmem:[%s10123_s2 + $0x100] sm:$0xff]  ;;  %v6756_v48 = vld [vmem:[%s10123_s2 + $0x108] sm:$0xff] }
 0x336   :  { %1304 = vmatpush.msra.mxu2 %v6738_v47  ;;  %11054 = vst [vmem:[#allocation104_spill] sm:$0xff] %v6744_v24  ;;  %1324 = vmatpush.msra.mxu3 %v6744_v24  ;;  %v6762_v47 = vld [vmem:[%s10123_s2 + $0x110] sm:$0xff]  ;;  %v6768_v24 = vld [vmem:[%s10123_s2 + $0x118] sm:$0xff] }
 0x337   :  { %11055 = vst [vmem:[#allocation105_spill] sm:$0xff] %v6750_v10  ;;  %1265 = vmatpush.msra.mxu0 %v6750_v10  ;;  %1285 = vmatpush.msra.mxu1 %v6756_v48  ;;  %v6774_v10 = vld [vmem:[%s10123_s2 + $0xe0] sm:$0xff] }
 0x338   :  { %11056 = vst [vmem:[#allocation106_spill] sm:$0xff] %v6756_v48  ;;  %1305 = vmatpush.msra.mxu2 %v6762_v47  ;;  %1325 = vmatpush.msra.mxu3 %v6768_v24  ;;  %v6780_v48 = vld [vmem:[%s10123_s2 + $0xe8] sm:$0xff] }
 0x339   :  { %11057 = vst [vmem:[#allocation107_spill] sm:$0xff] %v6762_v47  ;;  %1266 = vmatpush.msra.mxu0 %v6774_v10  ;;  %1286 = vmatpush.msra.mxu1 %v6780_v48  ;;  %v6786_v47 = vld [vmem:[%s10123_s2 + $0xf0] sm:$0xff] }
 0x33a   :  { %11058 = vst [vmem:[#allocation108_spill] sm:$0xff] %v6768_v24  ;;  %1306 = vmatpush.msra.mxu2 %v6786_v47  ;;  %v6792_v24 = vld [vmem:[%s10123_s2 + $0xf8] sm:$0xff] }
 0x33b   :  { %11059 = vst [vmem:[#allocation109_spill] sm:$0xff] %v6774_v10  ;;  %1326 = vmatpush.msra.mxu3 %v6792_v24  ;;  %v6798_v10 = vld [vmem:[%s10123_s2 + $0xc0] sm:$0xff] }
 0x33c   :  { %11060 = vst [vmem:[#allocation110_spill] sm:$0xff] %v6780_v48  ;;  %1267 = vmatpush.msra.mxu0 %v6798_v10  ;;  %v6804_v48 = vld [vmem:[%s10123_s2 + $0xc8] sm:$0xff] }
 0x33d   :  { %11061 = vst [vmem:[#allocation111_spill] sm:$0xff] %v6786_v47  ;;  %1287 = vmatpush.msra.mxu1 %v6804_v48  ;;  %v6810_v47 = vld [vmem:[%s10123_s2 + $0xd0] sm:$0xff] }
 0x33e   :  { %11062 = vst [vmem:[#allocation112_spill] sm:$0xff] %v6792_v24  ;;  %1307 = vmatpush.msra.mxu2 %v6810_v47  ;;  %v6816_v24 = vld [vmem:[%s10123_s2 + $0xd8] sm:$0xff] }
 0x33f   :  { %11063 = vst [vmem:[#allocation113_spill] sm:$0xff] %v6798_v10  ;;  %1327 = vmatpush.msra.mxu3 %v6816_v24  ;;  %v6822_v10 = vld [vmem:[%s10123_s2 + $0xa0] sm:$0xff] }
 0x340   :  { %11064 = vst [vmem:[#allocation114_spill] sm:$0xff] %v6804_v48  ;;  %1268 = vmatpush.msra.mxu0 %v6822_v10  ;;  %v6828_v48 = vld [vmem:[%s10123_s2 + $0xa8] sm:$0xff] }
 0x341   :  { %11065 = vst [vmem:[#allocation115_spill] sm:$0xff] %v6810_v47  ;;  %1288 = vmatpush.msra.mxu1 %v6828_v48  ;;  %v6834_v47 = vld [vmem:[%s10123_s2 + $0xb0] sm:$0xff] }
 0x342   :  { %11066 = vst [vmem:[#allocation116_spill] sm:$0xff] %v6816_v24  ;;  %1308 = vmatpush.msra.mxu2 %v6834_v47  ;;  %v6840_v24 = vld [vmem:[%s10123_s2 + $0xb8] sm:$0xff] }
 0x343   :  { %11067 = vst [vmem:[#allocation117_spill] sm:$0xff] %v6822_v10  ;;  %1328 = vmatpush.msra.mxu3 %v6840_v24  ;;  %v6846_v10 = vld [vmem:[%s10123_s2 + $0x80] sm:$0xff] }
 0x344   :  { %11068 = vst [vmem:[#allocation118_spill] sm:$0xff] %v6828_v48  ;;  %1269 = vmatpush.msra.mxu0 %v6846_v10  ;;  %v6852_v48 = vld [vmem:[%s10123_s2 + $0x88] sm:$0xff] }
 0x345   :  { %11069 = vst [vmem:[#allocation119_spill] sm:$0xff] %v6834_v47  ;;  %1289 = vmatpush.msra.mxu1 %v6852_v48  ;;  %v6858_v47 = vld [vmem:[%s10123_s2 + $0x90] sm:$0xff] }
 0x346   :  { %11070 = vst [vmem:[#allocation120_spill] sm:$0xff] %v6840_v24  ;;  %1309 = vmatpush.msra.mxu2 %v6858_v47  ;;  %v6864_v24 = vld [vmem:[%s10123_s2 + $0x98] sm:$0xff] }
 0x347   :  { %11071 = vst [vmem:[#allocation121_spill] sm:$0xff] %v6846_v10  ;;  %1329 = vmatpush.msra.mxu3 %v6864_v24  ;;  %v6870_v10 = vld [vmem:[%s10123_s2 + $0x60] sm:$0xff] }
 0x348   :  { %11072 = vst [vmem:[#allocation122_spill] sm:$0xff] %v6852_v48  ;;  %1270 = vmatpush.msra.mxu0 %v6870_v10  ;;  %v6876_v48 = vld [vmem:[%s10123_s2 + $0x68] sm:$0xff] }
 0x349   :  { %11073 = vst [vmem:[#allocation123_spill] sm:$0xff] %v6858_v47  ;;  %1290 = vmatpush.msra.mxu1 %v6876_v48  ;;  %v6882_v47 = vld [vmem:[%s10123_s2 + $0x70] sm:$0xff] }
 0x34a   :  { %11074 = vst [vmem:[#allocation124_spill] sm:$0xff] %v6864_v24  ;;  %1310 = vmatpush.msra.mxu2 %v6882_v47  ;;  %v6888_v24 = vld [vmem:[%s10123_s2 + $0x78] sm:$0xff] }
 0x34b   :  { %11075 = vst [vmem:[#allocation125_spill] sm:$0xff] %v6870_v10  ;;  %1330 = vmatpush.msra.mxu3 %v6888_v24  ;;  %v6894_v10 = vld [vmem:[%s10123_s2 + $0x40] sm:$0xff] }
 0x34c   :  { %11076 = vst [vmem:[#allocation126_spill] sm:$0xff] %v6876_v48  ;;  %1271 = vmatpush.msra.mxu0 %v6894_v10  ;;  %v6900_v48 = vld [vmem:[%s10123_s2 + $0x48] sm:$0xff] }
 0x34d   :  { %11077 = vst [vmem:[#allocation127_spill] sm:$0xff] %v6882_v47  ;;  %1291 = vmatpush.msra.mxu1 %v6900_v48  ;;  %v6906_v47 = vld [vmem:[%s10123_s2 + $0x50] sm:$0xff] }
 0x34e   :  { %11078 = vst [vmem:[#allocation128_spill] sm:$0xff] %v6888_v24  ;;  %1311 = vmatpush.msra.mxu2 %v6906_v47  ;;  %v6912_v24 = vld [vmem:[%s10123_s2 + $0x58] sm:$0xff] }
 0x34f   :  { %11079 = vst [vmem:[#allocation129_spill] sm:$0xff] %v6894_v10  ;;  %1331 = vmatpush.msra.mxu3 %v6912_v24  ;;  %v6918_v10 = vld [vmem:[%s10123_s2 + $0x20] sm:$0xff] }
 0x350   :  { %11080 = vst [vmem:[#allocation130_spill] sm:$0xff] %v6900_v48  ;;  %1272 = vmatpush.msra.mxu0 %v6918_v10  ;;  %v6924_v48 = vld [vmem:[%s10123_s2 + $0x28] sm:$0xff] }
 0x351   :  { %11081 = vst [vmem:[#allocation131_spill] sm:$0xff] %v6906_v47  ;;  %1292 = vmatpush.msra.mxu1 %v6924_v48  ;;  %v6930_v47 = vld [vmem:[%s10123_s2 + $0x30] sm:$0xff] }
 0x352   :  { %11082 = vst [vmem:[#allocation132_spill] sm:$0xff] %v6912_v24  ;;  %1312 = vmatpush.msra.mxu2 %v6930_v47  ;;  %v6936_v24 = vld [vmem:[%s10123_s2 + $0x38] sm:$0xff] }
 0x353   :  { %11083 = vst [vmem:[#allocation133_spill] sm:$0xff] %v6918_v10  ;;  %1332 = vmatpush.msra.mxu3 %v6936_v24  ;;  %v6942_v10 = vld [vmem:[%s10123_s2] sm:$0xff] }
 0x354   :  { %11084 = vst [vmem:[#allocation134_spill] sm:$0xff] %v6924_v48  ;;  %1273 = vmatpush.msra.mxu0 %v6942_v10  ;;  %v6948_v48 = vld [vmem:[%s10123_s2 + $0x8] sm:$0xff] }
 0x355   :  { %11085 = vst [vmem:[#allocation135_spill] sm:$0xff] %v6930_v47  ;;  %1293 = vmatpush.msra.mxu1 %v6948_v48  ;;  %v6954_v47 = vld [vmem:[%s10123_s2 + $0x10] sm:$0xff] }
 0x356   :  { %11086 = vst [vmem:[#allocation136_spill] sm:$0xff] %v6936_v24  ;;  %1313 = vmatpush.msra.mxu2 %v6954_v47  ;;  %v6960_v24 = vld [vmem:[%s10123_s2 + $0x18] sm:$0xff]  ;;  %1405 = vmatpush.msrb.mxu0 %v5774_v17 }
 0x357   :  { %11087 = vst [vmem:[#allocation137_spill] sm:$0xff] %v6954_v47  ;;  %1333 = vmatpush.msra.mxu3 %v6960_v24  ;;  %1425 = vmatpush.msrb.mxu1 %v5780_v62  ;;  %v11089_v17 = vld [vmem:[#allocation14_spill] sm:$0xff]  ;;  %v11090_v62 = vld [vmem:[#allocation13_spill] sm:$0xff] }
 0x358   :  { %11088 = vst [vmem:[#allocation138_spill] sm:$0xff] %v6960_v24  ;;  %1445 = vmatpush.msrb.mxu2 %v5786_v63  ;;  %1406 = vmatpush.msrb.mxu0 %v5798_v58  ;;  %v11091_v63 = vld [vmem:[#allocation5_spill] sm:$0xff]  ;;  %v11093_v58 = vld [vmem:[#allocation18_spill] sm:$0xff] }
 0x359   :  { %1465 = vmatpush.msrb.mxu3 %v5792_v54  ;;  %1426 = vmatpush.msrb.mxu1 %v5804_v55  ;;  %v11092_v54 = vld [vmem:[#allocation6_spill] sm:$0xff]  ;;  %v11094_v55 = vld [vmem:[#allocation17_spill] sm:$0xff] }
 0x35a   :  { %1446 = vmatpush.msrb.mxu2 %v5810_v51  ;;  %1407 = vmatpush.msrb.mxu0 %v5822_v18  ;;  %v11095_v51 = vld [vmem:[#allocation9_spill] sm:$0xff]  ;;  %v11097_v18 = vld [vmem:[#allocation22_spill] sm:$0xff] }
 0x35b   :  { %1466 = vmatpush.msrb.mxu3 %v5816_v20  ;;  %1427 = vmatpush.msrb.mxu1 %v5828_v19  ;;  %v11096_v20 = vld [vmem:[#allocation10_spill] sm:$0xff]  ;;  %v11098_v19 = vld [vmem:[#allocation21_spill] sm:$0xff] }
 0x35c   :  { %1447 = vmatpush.msrb.mxu2 %v5834_v21  ;;  %1408 = vmatpush.msrb.mxu0 %v5846_v22  ;;  %v11099_v21 = vld [vmem:[#allocation11_spill] sm:$0xff]  ;;  %v11101_v22 = vld [vmem:[#allocation26_spill] sm:$0xff] }
 0x35d   :  { %1467 = vmatpush.msrb.mxu3 %v5840_v25  ;;  %1428 = vmatpush.msrb.mxu1 %v5852_v23  ;;  %v11100_v25 = vld [vmem:[#allocation12_spill] sm:$0xff]  ;;  %v11102_v23 = vld [vmem:[#allocation25_spill] sm:$0xff] }
 0x35e   :  { %1448 = vmatpush.msrb.mxu2 %v5858_v28  ;;  %1409 = vmatpush.msrb.mxu0 %v5870_v29  ;;  %v11103_v28 = vld [vmem:[#allocation15_spill] sm:$0xff]  ;;  %v11105_v29 = vld [vmem:[#allocation30_spill] sm:$0xff] }
 0x35f   :  { %1468 = vmatpush.msrb.mxu3 %v5864_v27  ;;  %1429 = vmatpush.msrb.mxu1 %v5876_v30  ;;  %v11104_v27 = vld [vmem:[#allocation16_spill] sm:$0xff]  ;;  %v11106_v30 = vld [vmem:[#allocation29_spill] sm:$0xff] }
 0x360   :  { %1449 = vmatpush.msrb.mxu2 %v5882_v31  ;;  %1410 = vmatpush.msrb.mxu0 %v5894_v33  ;;  %v11107_v31 = vld [vmem:[#allocation19_spill] sm:$0xff]  ;;  %v11109_v33 = vld [vmem:[#allocation34_spill] sm:$0xff] }
 0x361   :  { %1469 = vmatpush.msrb.mxu3 %v5888_v32  ;;  %1430 = vmatpush.msrb.mxu1 %v5900_v34  ;;  %v11108_v32 = vld [vmem:[#allocation20_spill] sm:$0xff]  ;;  %v11110_v34 = vld [vmem:[#allocation33_spill] sm:$0xff] }
 0x362   :  { %1450 = vmatpush.msrb.mxu2 %v5906_v39  ;;  %1411 = vmatpush.msrb.mxu0 %v5918_v36  ;;  %v11111_v39 = vld [vmem:[#allocation23_spill] sm:$0xff]  ;;  %v11113_v36 = vld [vmem:[#allocation38_spill] sm:$0xff] }
 0x363   :  { %1470 = vmatpush.msrb.mxu3 %v5912_v35  ;;  %1431 = vmatpush.msrb.mxu1 %v5924_v37  ;;  %v11112_v35 = vld [vmem:[#allocation24_spill] sm:$0xff]  ;;  %v11114_v37 = vld [vmem:[#allocation37_spill] sm:$0xff] }
 0x364   :  { %1451 = vmatpush.msrb.mxu2 %v5930_v38  ;;  %1412 = vmatpush.msrb.mxu0 %v11089_v17  ;;  %v11115_v38 = vld [vmem:[#allocation27_spill] sm:$0xff]  ;;  %v11117_v17 = vld [vmem:[#allocation42_spill] sm:$0xff] }
 0x365   :  { %1471 = vmatpush.msrb.mxu3 %v5936_v40  ;;  %1432 = vmatpush.msrb.mxu1 %v11090_v62  ;;  %v11116_v40 = vld [vmem:[#allocation28_spill] sm:$0xff]  ;;  %v11118_v62 = vld [vmem:[#allocation41_spill] sm:$0xff] }
 0x366   :  { %1452 = vmatpush.msrb.mxu2 %v11091_v63  ;;  %1413 = vmatpush.msrb.mxu0 %v11093_v58  ;;  %v11119_v63 = vld [vmem:[#allocation31_spill] sm:$0xff]  ;;  %v11121_v58 = vld [vmem:[#allocation46_spill] sm:$0xff] }
 0x367   :  { %1472 = vmatpush.msrb.mxu3 %v11092_v54  ;;  %1433 = vmatpush.msrb.mxu1 %v11094_v55  ;;  %v11120_v54 = vld [vmem:[#allocation32_spill] sm:$0xff]  ;;  %v11122_v55 = vld [vmem:[#allocation45_spill] sm:$0xff] }
 0x368   :  { %1453 = vmatpush.msrb.mxu2 %v11095_v51  ;;  %1414 = vmatpush.msrb.mxu0 %v11097_v18  ;;  %v11123_v51 = vld [vmem:[#allocation35_spill] sm:$0xff] }
 0x369   :  { %1473 = vmatpush.msrb.mxu3 %v11096_v20  ;;  %1434 = vmatpush.msrb.mxu1 %v11098_v19  ;;  %v11124_v20 = vld [vmem:[#allocation36_spill] sm:$0xff] }
 0x36a   :  { %1454 = vmatpush.msrb.mxu2 %v11099_v21  ;;  %1415 = vmatpush.msrb.mxu0 %v11101_v22 }
 0x36b   :  { %1474 = vmatpush.msrb.mxu3 %v11100_v25  ;;  %1435 = vmatpush.msrb.mxu1 %v11102_v23 }
 0x36c   :  { %1455 = vmatpush.msrb.mxu2 %v11103_v28  ;;  %1416 = vmatpush.msrb.mxu0 %v11105_v29 }
 0x36d   :  { %1475 = vmatpush.msrb.mxu3 %v11104_v27  ;;  %1436 = vmatpush.msrb.mxu1 %v11106_v30 }
 0x36e   :  { %1456 = vmatpush.msrb.mxu2 %v11107_v31  ;;  %1417 = vmatpush.msrb.mxu0 %v11109_v33 }
 0x36f   :  { %1476 = vmatpush.msrb.mxu3 %v11108_v32  ;;  %1437 = vmatpush.msrb.mxu1 %v11110_v34  ;;  %v3419_v32 = vld [vmem:[%s10124_s0 + $0x10] sm:$0xff] }
 0x370   :  { %1457 = vmatpush.msrb.mxu2 %v11111_v39  ;;  %1418 = vmatpush.msrb.mxu0 %v11113_v36 }
 0x371   :  { %1477 = vmatpush.msrb.mxu3 %v11112_v35  ;;  %1438 = vmatpush.msrb.mxu1 %v11114_v37 }
 0x372   :  { %1458 = vmatpush.msrb.mxu2 %v11115_v38  ;;  %1419 = vmatpush.msrb.mxu0 %v11117_v17 }
 0x373   :  { %1478 = vmatpush.msrb.mxu3 %v11116_v40  ;;  %1439 = vmatpush.msrb.mxu1 %v11118_v62 }
 0x374   :  { %1459 = vmatpush.msrb.mxu2 %v11119_v63  ;;  %1420 = vmatpush.msrb.mxu0 %v11121_v58 }
 0x375   :  { %1479 = vmatpush.msrb.mxu3 %v11120_v54  ;;  %1440 = vmatpush.msrb.mxu1 %v11122_v55 }
 0x376   :  { %1460 = vmatpush.msrb.mxu2 %v11123_v51 }
 0x377   :  { %1480 = vmatpush.msrb.mxu3 %v11124_v20 }
 0x3a2   :  { %v7027_v18 = vpop.f32.mrf.mxu1  ;;  %v7029_v19 = vpop.f32.mrf.mxu0 }
 0x3a9   :  { %v7031_v21 = vpop.f32.mrf.mxu2  ;;  %v7033_v25 = vpop.f32.mrf.mxu3 }
 0x3aa   :  { %v1133_v22 = vpop.f32.mrf.mxu1  ;;  %v1113_v31 = vpop.f32.mrf.mxu0 }
 0x3ab   :  { %v1180_v23 = vrot.slane %v1133_v22, 6 }
 0x3ad   :  { %v1183_v33 = vsel %vm398_vm1, %v1113_v31, %v1180_v23 }
 0x3b1   :  { %v1153_v28 = vpop.f32.mrf.mxu2  ;;  %v1173_v27 = vpop.f32.mrf.mxu3 }
 0x3b2   :  { %v1181_v29 = vrot.slane %v1153_v28, 4  ;;  %v1182_v30 = vrot.slane %v1173_v27, 2 }
 0x3b4   :  { %v1184_v34 = vsel %vm400_vm0, %v1181_v29, %v1182_v30 }
 0x3b5   :  { %v1185_v39 = vsel %vm402_vm2, %v1183_v33, %v1184_v34 }
 0x3b6   :  { %v1187_v35 = vadd.f32 %v3419_v32, %v1185_v39 }
 0x3b8   :  { %v3420_v36 = vmul.f32 -1.442695, %v1187_v35  ;;  %v1208_v37 = vrot.slane %v1187_v35, 2  ;;  %v1232_v38 = vrot.slane %v1187_v35, 6  ;;  %v1229_v27 = vrot.slane %v1187_v35, 4 }
 0x3ba   :  { %3527 = vpow2.f32 %v3420_v36  ;;  %v3421_v40 = vmul.f32 -1.442695, %v1208_v37  ;;  %v3422_v17 = vmul.f32 -1.442695, %v1232_v38 }
 0x3bc   :  { %3529 = vpow2.f32 %v3421_v40 }
 0x3bd   :  { %3531 = vpow2.f32 %v3422_v17 }
 0x3c0   :  { %v3528_v62 = vpop.eup %3527 }
 0x3c1   :  { %v1191_v63 = vadd.f32 1.0, %v3528_v62 }
 0x3c2   :  { %v3530_v54 = vpop.eup %3529 }
 0x3c3   :  { %v3532_v58 = vpop.eup %3531  ;;  %3533 = vrcp.f32 %v1191_v63  ;;  %v1213_v55 = vadd.f32 1.0, %v3530_v54  ;;  %v1203_v32 = vand.u32 2147483648, %v1191_v63  ;;  %v1201_v34 = vand.u32 2147483647, %v1191_v63 }
 0x3c4   :  { %v1237_v51 = vadd.f32 1.0, %v3532_v58  ;;  %vm1197_vm13 = vweird.f32 %v1191_v63 }
 0x3c5   :  { %3535 = vrcp.f32 %v1213_v55  ;;  %v1225_v37 = vand.u32 2147483648, %v1213_v55  ;;  %v1223_v40 = vand.u32 2147483647, %v1213_v55  ;;  %v1204_v62 = vor.u32 1.1754944e-38, %v1203_v32 }
 0x3c6   :  { %3537 = vrcp.f32 %v1237_v51  ;;  %vm1202_vm3 = vcmp.eq.f32.partialorder %v1201_v34, 8.507059e+37  ;;  %vm1219_vm4 = vweird.f32 %v1213_v55  ;;  %vm1243_vm8 = vweird.f32 %v1237_v51 }
 0x3c7   :  { %3539 = vtanh.f32 %v1229_v27  ;;  %vm1224_vm6 = vcmp.eq.f32.partialorder %v1223_v40, 8.507059e+37  ;;  %v11140_v40 = vld [vmem:[#allocation52_spill] sm:$0xff] }
 0x3c9   :  { %v3534_v20 = vpop.eup %3533 }
 0x3ca   :  { %v1193_v22 = vmul.f32 %v3534_v20, %v1191_v63  ;;  %vm1198_vm12 = vweird.f32 %v3534_v20 }
 0x3cb   :  { %v3536_v23 = vpop.eup %3535  ;;  %vm1199_vm14 = vmor %vm1197_vm13, %vm1198_vm12 }
 0x3cc   :  { %v1194_v28 = vsub.f32 1.0, %v1193_v22  ;;  %v3538_v29 = vpop.eup %3537  ;;  %v1215_v30 = vmul.f32 %v3536_v23, %v1213_v55  ;;  %vm1220_vm15 = vweird.f32 %v3536_v23  ;;  %v1226_v22 = vor.u32 1.1754944e-38, %v1225_v37  ;;  %v11138_v37 = vld [vmem:[#allocation61_spill] sm:$0xff] }
 0x3cd   :  { %v1239_v33 = vmul.f32 %v3538_v29, %v1237_v51  ;;  %vm1221_vm5 = vmor %vm1219_vm4, %vm1220_vm15  ;;  %vm1244_vm7 = vweird.f32 %v3538_v29  ;;  %v1247_v55 = vand.u32 2147483647, %v1237_v51 }
 0x3ce   :  { %v1195_v31 = vmul.f32 %v3534_v20, %v1194_v28  ;;  %v1216_v39 = vsub.f32 1.0, %v1215_v30  ;;  %v3540_v30 = vpop.eup %3539  ;;  %vm1245_vm9 = vmor %vm1243_vm8, %vm1244_vm7 }
 0x3cf   :  { %v1240_v54 = vsub.f32 1.0, %v1239_v33  ;;  %vm1248_vm10 = vcmp.eq.f32.partialorder %v1247_v55, 8.507059e+37  ;;  %v11153_v55 = vld [vmem:[#allocation76_spill] sm:$0xff] }
 0x3d0   :  { %v1196_v36 = vadd.f32 %v3534_v20, %v1195_v31  ;;  %v1217_v38 = vmul.f32 %v3536_v23, %v1216_v39 }
 0x3d1   :  { %v1241_v63 = vmul.f32 %v3538_v29, %v1240_v54  ;;  %v11143_v54 = vld [vmem:[#allocation54_spill] sm:$0xff] }
 0x3d2   :  { %v1200_v17 = vsel %vm1199_vm14, %v3534_v20, %v1196_v36  ;;  %v1218_v35 = vadd.f32 %v3536_v23, %v1217_v38  ;;  %v1249_v20 = vand.u32 2147483648, %v1237_v51  ;;  %v11136_v51 = vld [vmem:[#allocation48_spill] sm:$0xff]  ;;  %v11139_v38 = vld [vmem:[#allocation51_spill] sm:$0xff] }
 0x3d3   :  { %v1205_v58 = vsel %vm1202_vm3, %v1204_v62, %v1200_v17  ;;  %v1242_v47 = vadd.f32 %v3538_v29, %v1241_v63  ;;  %v11141_v17 = vld [vmem:[#allocation68_spill] sm:$0xff]  ;;  %v11142_v62 = vld [vmem:[#allocation65_spill] sm:$0xff] }
 0x3d4   :  { %v1222_v28 = vsel %vm1221_vm5, %v3536_v23, %v1218_v35  ;;  %v1254_v24 = vmul.f32 %v3540_v30, %v1205_v58  ;;  %v1250_v33 = vor.u32 1.1754944e-38, %v1249_v20  ;;  %v11144_v35 = vld [vmem:[#allocation55_spill] sm:$0xff]  ;;  %v11145_v58 = vld [vmem:[#allocation72_spill] sm:$0xff]  ;;  %v11150_v63 = vld [vmem:[#allocation73_spill] sm:$0xff] }
 0x3d5   :  { %v1227_v31 = vsel %vm1224_vm6, %v1226_v22, %v1222_v28  ;;  %v1246_v32 = vsel %vm1245_vm9, %v3538_v29, %v1242_v47  ;;  %v11126_v47 = vld [vmem:[#allocation49_spill] sm:$0xff]  ;;  %v11137_v29 = vld [vmem:[#allocation64_spill] sm:$0xff]  ;;  %v11147_v28 = vld [vmem:[#allocation58_spill] sm:$0xff] }
 0x3d6   :  { %v1253_v27 = vmul.f32 %v1227_v31, %v6170_v11  ;;  %v1251_v34 = vsel %vm1248_vm10, %v1250_v33, %v1246_v32  ;;  %v11125_v11 = vld [vmem:[#allocation50_spill] sm:$0xff]  ;;  %v11146_v22 = vld [vmem:[#allocation69_spill] sm:$0xff]  ;;  %v11148_v30 = vld [vmem:[#allocation59_spill] sm:$0xff] }
 0x3d7   :  { %v11149_v31 = vld [vmem:[#allocation74_spill] sm:$0xff]  ;;  %v11152_v20 = vld [vmem:[#allocation63_spill] sm:$0xff] }
 0x3d8   :  { %v7042_v39 = vadd.f32 %v1254_v24, %v1253_v27  ;;  %v11127_v24 = vld [vmem:[#allocation39_spill] sm:$0xff]  ;;  %v11151_v27 = vld [vmem:[#allocation62_spill] sm:$0xff] }
 0x3d9   :  { %v11154_v32 = vld [vmem:[#allocation75_spill] sm:$0xff]  ;;  %v11155_v33 = vld [vmem:[#allocation66_spill] sm:$0xff] }
 0x3da   :  { %3541 = vtanh.f32 %v7042_v39 }
 0x3e0   :  { %v3542_v23 = vpop.eup %3541 }
 0x3e1   :  { %v7045_v36 = vmul.f32 %v3542_v23, %v1251_v34  ;;  %v11156_v23 = vld [vmem:[#allocation67_spill] sm:$0xff]  ;;  %v11157_v34 = vld [vmem:[#allocation78_spill] sm:$0xff] }
 0x3e3   :  { %1274 = vmatmul.f32.vlgmr.msra.gmra.mxu0 %v7045_v36  ;;  %1294 = vmatmul.f32.vlgmr.msra.gmra.mxu1 %v7045_v36 }
 0x3e4   :  { %1314 = vmatmul.f32.vlgmr.msra.gmra.mxu2 %v7045_v36  ;;  %1334 = vmatmul.f32.vlgmr.msra.gmra.mxu3 %v7045_v36 }
 0x3e5   :  { %1487 = vmatpush.msra.mxu0 %v6182_v26  ;;  %1507 = vmatpush.msra.mxu1 %v6188_v41  ;;  %v11128_v26 = vld [vmem:[#allocation40_spill] sm:$0xff] }
 0x3e6   :  { %1527 = vmatpush.msra.mxu2 %v6194_v42  ;;  %1547 = vmatpush.msra.mxu3 %v6200_v44  ;;  %v11129_v41 = vld [vmem:[#allocation56_spill] sm:$0xff]  ;;  %v11130_v42 = vld [vmem:[#allocation53_spill] sm:$0xff]  ;;  %v11131_v44 = vld [vmem:[#allocation43_spill] sm:$0xff] }
 0x3e7   :  { %1488 = vmatpush.msra.mxu0 %v6206_v3  ;;  %1508 = vmatpush.msra.mxu1 %v6212_v13  ;;  %v11132_v3 = vld [vmem:[#allocation44_spill] sm:$0xff] }
 0x3e8   :  { %1528 = vmatpush.msra.mxu2 %v6218_v56  ;;  %1548 = vmatpush.msra.mxu3 %v6224_v53  ;;  %v11133_v13 = vld [vmem:[#allocation60_spill] sm:$0xff]  ;;  %v11134_v56 = vld [vmem:[#allocation57_spill] sm:$0xff]  ;;  %v11135_v53 = vld [vmem:[#allocation47_spill] sm:$0xff] }
 0x3e9   :  { %1489 = vmatpush.msra.mxu0 %v11125_v11  ;;  %1509 = vmatpush.msra.mxu1 %v11126_v47  ;;  %v11158_v11 = vld [vmem:[#allocation77_spill] sm:$0xff]  ;;  %v11159_v47 = vld [vmem:[#allocation70_spill] sm:$0xff] }
 0x3ea   :  { %1529 = vmatpush.msra.mxu2 %v11127_v24  ;;  %1549 = vmatpush.msra.mxu3 %v11128_v26  ;;  %v11160_v24 = vld [vmem:[#allocation71_spill] sm:$0xff]  ;;  %v11161_v26 = vld [vmem:[#allocation93_spill] sm:$0xff] }
 0x3eb   :  { %1490 = vmatpush.msra.mxu0 %v11129_v41  ;;  %1510 = vmatpush.msra.mxu1 %v11130_v42  ;;  %v11162_v41 = vld [vmem:[#allocation84_spill] sm:$0xff]  ;;  %v11163_v42 = vld [vmem:[#allocation85_spill] sm:$0xff] }
 0x3ec   :  { %1530 = vmatpush.msra.mxu2 %v11131_v44  ;;  %1550 = vmatpush.msra.mxu3 %v11132_v3  ;;  %v11164_v44 = vld [vmem:[#allocation82_spill] sm:$0xff]  ;;  %v11165_v3 = vld [vmem:[#allocation79_spill] sm:$0xff] }
 0x3ed   :  { %1491 = vmatpush.msra.mxu0 %v11133_v13  ;;  %1511 = vmatpush.msra.mxu1 %v11134_v56  ;;  %v11166_v13 = vld [vmem:[#allocation80_spill] sm:$0xff]  ;;  %v11167_v56 = vld [vmem:[#allocation81_spill] sm:$0xff] }
 0x3ee   :  { %1531 = vmatpush.msra.mxu2 %v11135_v53  ;;  %1551 = vmatpush.msra.mxu3 %v11136_v51  ;;  %v11168_v53 = vld [vmem:[#allocation83_spill] sm:$0xff]  ;;  %v11169_v51 = vld [vmem:[#allocation86_spill] sm:$0xff] }
 0x3ef   :  { %1492 = vmatpush.msra.mxu0 %v11137_v29  ;;  %1512 = vmatpush.msra.mxu1 %v11138_v37  ;;  %v11170_v29 = vld [vmem:[#allocation87_spill] sm:$0xff]  ;;  %v11171_v37 = vld [vmem:[#allocation88_spill] sm:$0xff] }
 0x3f0   :  { %1532 = vmatpush.msra.mxu2 %v11139_v38  ;;  %1552 = vmatpush.msra.mxu3 %v11140_v40  ;;  %v11172_v38 = vld [vmem:[#allocation89_spill] sm:$0xff]  ;;  %v11173_v40 = vld [vmem:[#allocation90_spill] sm:$0xff] }
 0x3f1   :  { %1493 = vmatpush.msra.mxu0 %v11141_v17  ;;  %1513 = vmatpush.msra.mxu1 %v11142_v62  ;;  %v11174_v17 = vld [vmem:[#allocation91_spill] sm:$0xff]  ;;  %v11175_v62 = vld [vmem:[#allocation92_spill] sm:$0xff] }
 0x3f2   :  { %1533 = vmatpush.msra.mxu2 %v11143_v54  ;;  %1553 = vmatpush.msra.mxu3 %v11144_v35  ;;  %v11176_v54 = vld [vmem:[#allocation94_spill] sm:$0xff]  ;;  %v11177_v35 = vld [vmem:[#allocation95_spill] sm:$0xff] }
 0x3f3   :  { %1494 = vmatpush.msra.mxu0 %v11145_v58  ;;  %1514 = vmatpush.msra.mxu1 %v11146_v22  ;;  %v11178_v58 = vld [vmem:[#allocation96_spill] sm:$0xff]  ;;  %v11179_v22 = vld [vmem:[#allocation97_spill] sm:$0xff] }
 0x3f4   :  { %1534 = vmatpush.msra.mxu2 %v11147_v28  ;;  %1554 = vmatpush.msra.mxu3 %v11148_v30  ;;  %v11180_v28 = vld [vmem:[#allocation98_spill] sm:$0xff] }
 0x3f5   :  { %1495 = vmatpush.msra.mxu0 %v11149_v31  ;;  %1515 = vmatpush.msra.mxu1 %v11150_v63 }
 0x3f6   :  { %1535 = vmatpush.msra.mxu2 %v11151_v27  ;;  %1555 = vmatpush.msra.mxu3 %v11152_v20  ;;  %v11181_v20 = vld [vmem:[#allocation8_spill] sm:$0xff] }
 0x3f7   :  { %1496 = vmatpush.msra.mxu0 %v11153_v55  ;;  %1516 = vmatpush.msra.mxu1 %v11154_v32  ;;  %v11182_v32 = vld [vmem:[#allocation7_spill] sm:$0xff] }
 0x3f8   :  { %1536 = vmatpush.msra.mxu2 %v11155_v33  ;;  %1556 = vmatpush.msra.mxu3 %v11156_v23 }
 0x3f9   :  { %1497 = vmatpush.msra.mxu0 %v11157_v34  ;;  %1517 = vmatpush.msra.mxu1 %v11158_v11 }
 0x3fa   :  { %1537 = vmatpush.msra.mxu2 %v11159_v47  ;;  %1557 = vmatpush.msra.mxu3 %v11160_v24  ;;  %v11183_v24 = vld [vmem:[#allocation3_spill] sm:$0xff] }
 0x3fb   :  { %1498 = vmatpush.msra.mxu0 %v11161_v26  ;;  %1518 = vmatpush.msra.mxu1 %v11162_v41 }
 0x3fc   :  { %1538 = vmatpush.msra.mxu2 %v11163_v42  ;;  %1558 = vmatpush.msra.mxu3 %v11164_v44 }
 0x3fd   :  { %1499 = vmatpush.msra.mxu0 %v11165_v3  ;;  %1519 = vmatpush.msra.mxu1 %v11166_v13 }
 0x3fe   :  { %1539 = vmatpush.msra.mxu2 %v11167_v56  ;;  %1559 = vmatpush.msra.mxu3 %v11168_v53 }
 0x3ff   :  { %1500 = vmatpush.msra.mxu0 %v11169_v51  ;;  %1520 = vmatpush.msra.mxu1 %v11170_v29  ;;  %v11184_v29 = vld [vmem:[#allocation4_spill] sm:$0xff] }
 0x400   :  { %1540 = vmatpush.msra.mxu2 %v11171_v37  ;;  %1560 = vmatpush.msra.mxu3 %v11172_v38 }
 0x401   :  { %1501 = vmatpush.msra.mxu0 %v11173_v40  ;;  %1521 = vmatpush.msra.mxu1 %v11174_v17 }
 0x402   :  { %1541 = vmatpush.msra.mxu2 %v11175_v62  ;;  %1561 = vmatpush.msra.mxu3 %v11176_v54 }
 0x403   :  { %1502 = vmatpush.msra.mxu0 %v11177_v35  ;;  %1522 = vmatpush.msra.mxu1 %v11178_v58 }
 0x404   :  { %1542 = vmatpush.msra.mxu2 %v11179_v22  ;;  %1562 = vmatpush.msra.mxu3 %v11180_v28 }
 0x460   :  { %v1275_v30 = vpop.f32.mrf.mxu0  ;;  %v1295_v31 = vpop.f32.mrf.mxu1 }
 0x461   :  { %v1276_v63 = vadd.f32 %v1275_v30, %v7029_v19  ;;  %v1296_v27 = vadd.f32 %v1295_v31, %v7027_v18 }
 0x463   :  { %v1338_v55 = vadd.f32 %v1276_v63, %v11181_v20  ;;  %v1339_v33 = vadd.f32 %v1296_v27, %v11182_v32 }
 0x465   :  { %v3423_v23 = vmul.f32 -1.442695, %v1338_v55  ;;  %v3424_v34 = vmul.f32 -1.442695, %v1339_v33 }
 0x467   :  { %3543 = vpow2.f32 %v3423_v23  ;;  %v1335_v11 = vpop.f32.mrf.mxu3  ;;  %v1315_v18 = vpop.f32.mrf.mxu2 }
 0x468   :  { %3545 = vpow2.f32 %v3424_v34  ;;  %v1336_v47 = vadd.f32 %v1335_v11, %v7033_v25  ;;  %v1316_v13 = vadd.f32 %v1315_v18, %v7031_v21 }
 0x46a   :  { %v1341_v26 = vadd.f32 %v1336_v47, %v11183_v24  ;;  %v1340_v37 = vadd.f32 %v1316_v13, %v11184_v29 }
 0x46c   :  { %v3425_v41 = vmul.f32 -1.442695, %v1341_v26 }
 0x46d   :  { %v3544_v42 = vpop.eup %3543 }
 0x46e   :  { %v3546_v44 = vpop.eup %3545  ;;  %v1345_v3 = vadd.f32 1.0, %v3544_v42  ;;  %3547 = vpow2.f32 %v3425_v41 }
 0x46f   :  { %v1364_v19 = vadd.f32 1.0, %v3546_v44 }
 0x470   :  { %3549 = vrcp.f32 %v1345_v3  ;;  %v1357_v54 = vand.u32 2147483648, %v1345_v3  ;;  %v1355_v22 = vand.u32 2147483647, %v1345_v3  ;;  %vm1351_vm13 = vweird.f32 %v1345_v3 }
 0x471   :  { %3551 = vrcp.f32 %v1364_v19  ;;  %v1376_v35 = vand.u32 2147483648, %v1364_v19  ;;  %v1374_v21 = vand.u32 2147483647, %v1364_v19  ;;  %vm1370_vm14 = vweird.f32 %v1364_v19 }
 0x472   :  { %v1358_v63 = vor.u32 1.1754944e-38, %v1357_v54  ;;  %vm1356_vm4 = vcmp.eq.f32.partialorder %v1355_v22, 8.507059e+37  ;;  %v11212_v54 = vld [vmem:[#allocation126_spill] sm:$0xff]  ;;  %v11215_v22 = vld [vmem:[#allocation129_spill] sm:$0xff] }
 0x473   :  { %v1377_v33 = vor.u32 1.1754944e-38, %v1376_v35  ;;  %vm1375_vm5 = vcmp.eq.f32.partialorder %v1374_v21, 8.507059e+37  ;;  %v11213_v35 = vld [vmem:[#allocation127_spill] sm:$0xff] }
 0x474   :  { %v3548_v56 = vpop.eup %3547  ;;  %v11217_v21 = vld [vmem:[#allocation131_spill] sm:$0xff] }
 0x475   :  { %v1384_v53 = vadd.f32 1.0, %v3548_v56 }
 0x476   :  { %v3550_v51 = vpop.eup %3549 }
 0x477   :  { %v3552_v38 = vpop.eup %3551  ;;  %v1347_v25 = vmul.f32 %v3550_v51, %v1345_v3  ;;  %3553 = vrcp.f32 %v1384_v53  ;;  %vm1352_vm11 = vweird.f32 %v3550_v51  ;;  %v1396_v13 = vand.u32 2147483648, %v1384_v53 }
 0x478   :  { %v1366_v40 = vmul.f32 %v3552_v38, %v1364_v19  ;;  %3555 = vtanh.f32 %v1340_v37  ;;  %vm1371_vm12 = vweird.f32 %v3552_v38  ;;  %vm1353_vm15 = vmor %vm1351_vm13, %vm1352_vm11  ;;  %vm1390_vm7 = vweird.f32 %v1384_v53 }
 0x479   :  { %v1348_v17 = vsub.f32 1.0, %v1347_v25  ;;  %vm1372_vm3 = vmor %vm1370_vm14, %vm1371_vm12  ;;  %v1394_v56 = vand.u32 2147483647, %v1384_v53  ;;  %v1397_v37 = vor.u32 1.1754944e-38, %v1396_v13  ;;  %v7264_v13 = vld [vmem:[%s10121_s3 + $0x1b8] sm:$0xff] }
 0x47a   :  { %v1367_v62 = vsub.f32 1.0, %v1366_v40 }
 0x47b   :  { %v1349_v58 = vmul.f32 %v3550_v51, %v1348_v17  ;;  %vm1395_vm9 = vcmp.eq.f32.partialorder %v1394_v56, 8.507059e+37  ;;  %v11210_v17 = vld [vmem:[#allocation124_spill] sm:$0xff]  ;;  %v7270_v56 = vld [vmem:[%s10121_s3 + $0x180] sm:$0xff] }
 0x47c   :  { %v1368_v28 = vmul.f32 %v3552_v38, %v1367_v62  ;;  %v11211_v62 = vld [vmem:[#allocation125_spill] sm:$0xff] }
 0x47d   :  { %v3554_v30 = vpop.eup %3553  ;;  %v1350_v31 = vadd.f32 %v3550_v51, %v1349_v58  ;;  %v11214_v58 = vld [vmem:[#allocation128_spill] sm:$0xff] }
 0x47e   :  { %v1369_v27 = vadd.f32 %v3552_v38, %v1368_v28  ;;  %v1386_v55 = vmul.f32 %v3554_v30, %v1384_v53  ;;  %v3556_v34 = vpop.eup %3555  ;;  %vm1391_vm6 = vweird.f32 %v3554_v30  ;;  %v11209_v53 = vld [vmem:[#allocation123_spill] sm:$0xff]  ;;  %v11216_v28 = vld [vmem:[#allocation130_spill] sm:$0xff] }
 0x47f   :  { %v1354_v23 = vsel %vm1353_vm15, %v3550_v51, %v1350_v31  ;;  %vm1392_vm8 = vmor %vm1390_vm7, %vm1391_vm6  ;;  %v11219_v31 = vld [vmem:[#allocation133_spill] sm:$0xff] }
 0x480   :  { %v1359_v11 = vsel %vm1356_vm4, %v1358_v63, %v1354_v23  ;;  %v1373_v47 = vsel %vm1372_vm3, %v3552_v38, %v1369_v27  ;;  %v1387_v26 = vsub.f32 1.0, %v1386_v55  ;;  %v11220_v63 = vld [vmem:[#allocation134_spill] sm:$0xff]  ;;  %v11221_v27 = vld [vmem:[#allocation135_spill] sm:$0xff]  ;;  %v11222_v55 = vld [vmem:[#allocation136_spill] sm:$0xff] }
 0x481   :  { %v1378_v41 = vsel %vm1375_vm5, %v1377_v33, %v1373_v47  ;;  %v1401_v42 = vmul.f32 %v3556_v34, %v1359_v11  ;;  %v11223_v33 = vld [vmem:[#allocation137_spill] sm:$0xff]  ;;  %v11224_v23 = vld [vmem:[#allocation138_spill] sm:$0xff]  ;;  %v7204_v11 = vld [vmem:[%s10121_s3 + $0x1e8] sm:$0xff] }
 0x482   :  { %v1400_v44 = vmul.f32 %v1378_v41, %v6572_v49  ;;  %v1388_v18 = vmul.f32 %v3554_v30, %v1387_v26  ;;  %v11185_v49 = vld [vmem:[#allocation99_spill] sm:$0xff]  ;;  %v7234_v41 = vld [vmem:[%s10121_s3 + $0x1d0] sm:$0xff] }
 0x483   :  { %v7198_v34 = vld [vmem:[%s10121_s3 + $0x1e0] sm:$0xff]  ;;  %v7228_v26 = vld [vmem:[%s10121_s3 + $0x1c8] sm:$0xff] }
 0x484   :  { %v7124_v3 = vadd.f32 %v1401_v42, %v1400_v44  ;;  %v1389_v19 = vadd.f32 %v3554_v30, %v1388_v18  ;;  %v7222_v47 = vld [vmem:[%s10121_s3 + $0x1c0] sm:$0xff]  ;;  %v7240_v42 = vld [vmem:[%s10121_s3 + $0x1d8] sm:$0xff]  ;;  %v7252_v18 = vld [vmem:[%s10121_s3 + $0x1a8] sm:$0xff] }
 0x485   :  { %v7246_v44 = vld [vmem:[%s10121_s3 + $0x1a0] sm:$0xff] }
 0x486   :  { %3557 = vtanh.f32 %v7124_v3  ;;  %v1393_v51 = vsel %vm1392_vm8, %v3554_v30, %v1389_v19  ;;  %v11218_v30 = vld [vmem:[#allocation132_spill] sm:$0xff] }
 0x487   :  { %v1398_v25 = vsel %vm1395_vm9, %v1397_v37, %v1393_v51  ;;  %v7258_v19 = vld [vmem:[%s10121_s3 + $0x1b0] sm:$0xff]  ;;  %v7276_v51 = vld [vmem:[%s10121_s3 + $0x188] sm:$0xff] }
 0x488   :  { %v7282_v37 = vld [vmem:[%s10121_s3 + $0x190] sm:$0xff] }
 0x48c   :  { %v3558_v38 = vpop.eup %3557 }
 0x48d   :  { %v1404_v40 = vmul.f32 %v3558_v38, %v1398_v25  ;;  %v7288_v38 = vld [vmem:[%s10121_s3 + $0x198] sm:$0xff]  ;;  %v7294_v25 = vld [vmem:[%s10121_s3 + $0x160] sm:$0xff] }
 0x48f   :  { %1421 = vmatmul.f32.vlgmr.msrb.gmra.mxu0 %v1404_v40  ;;  %1441 = vmatmul.f32.vlgmr.msrb.gmra.mxu1 %v1404_v40 }
 0x490   :  { %1461 = vmatmul.f32.vlgmr.msrb.gmra.mxu2 %v1404_v40  ;;  %1481 = vmatmul.f32.vlgmr.msrb.gmra.mxu3 %v1404_v40  ;;  %v7300_v40 = vld [vmem:[%s10121_s3 + $0x168] sm:$0xff] }
 0x491   :  { %1649 = vmatpush.msrb.mxu0 %v6578_v61  ;;  %1669 = vmatpush.msrb.mxu1 %v6584_v0  ;;  %v11186_v61 = vld [vmem:[#allocation100_spill] sm:$0xff]  ;;  %v11187_v0 = vld [vmem:[#allocation101_spill] sm:$0xff] }
 0x492   :  { %1689 = vmatpush.msrb.mxu2 %v6590_v1  ;;  %1709 = vmatpush.msrb.mxu3 %v6596_v14  ;;  %v11188_v1 = vld [vmem:[#allocation102_spill] sm:$0xff]  ;;  %v11189_v14 = vld [vmem:[#allocation103_spill] sm:$0xff] }
 0x493   :  { %1650 = vmatpush.msrb.mxu0 %v6602_v4  ;;  %1670 = vmatpush.msrb.mxu1 %v6608_v5  ;;  %v11190_v4 = vld [vmem:[#allocation104_spill] sm:$0xff]  ;;  %v11191_v5 = vld [vmem:[#allocation105_spill] sm:$0xff] }
 0x494   :  { %1690 = vmatpush.msrb.mxu2 %v6614_v60  ;;  %1710 = vmatpush.msrb.mxu3 %v6620_v9  ;;  %v11192_v60 = vld [vmem:[#allocation106_spill] sm:$0xff]  ;;  %v11193_v9 = vld [vmem:[#allocation107_spill] sm:$0xff] }
 0x495   :  { %1651 = vmatpush.msrb.mxu0 %v6626_v15  ;;  %1671 = vmatpush.msrb.mxu1 %v6632_v8  ;;  %v11194_v15 = vld [vmem:[#allocation108_spill] sm:$0xff]  ;;  %v11195_v8 = vld [vmem:[#allocation109_spill] sm:$0xff] }
 0x496   :  { %1691 = vmatpush.msrb.mxu2 %v6638_v7  ;;  %1711 = vmatpush.msrb.mxu3 %v6644_v16  ;;  %v11196_v7 = vld [vmem:[#allocation110_spill] sm:$0xff]  ;;  %v11197_v16 = vld [vmem:[#allocation111_spill] sm:$0xff] }
 0x497   :  { %1503 = vmatmul.f32.vlgmr.msra.gmra.mxu0 %v7045_v36  ;;  %1523 = vmatmul.f32.vlgmr.msra.gmra.mxu1 %v7045_v36 }
 0x498   :  { %1543 = vmatmul.f32.vlgmr.msra.gmra.mxu2 %v7045_v36  ;;  %1563 = vmatmul.f32.vlgmr.msra.gmra.mxu3 %v7045_v36  ;;  %v11208_v36 = vld [vmem:[#allocation122_spill] sm:$0xff] }
 0x499   :  { %1652 = vmatpush.msrb.mxu0 %v6654_v2  ;;  %1672 = vmatpush.msrb.mxu1 %v6660_v59  ;;  %v11198_v2 = vld [vmem:[#allocation112_spill] sm:$0xff]  ;;  %v11199_v59 = vld [vmem:[#allocation113_spill] sm:$0xff] }
 0x49a   :  { %1692 = vmatpush.msrb.mxu2 %v6666_v57  ;;  %1712 = vmatpush.msrb.mxu3 %v6672_v43  ;;  %v11200_v57 = vld [vmem:[#allocation114_spill] sm:$0xff]  ;;  %v11201_v43 = vld [vmem:[#allocation115_spill] sm:$0xff] }
 0x49b   :  { %1653 = vmatpush.msrb.mxu0 %v6678_v45  ;;  %1673 = vmatpush.msrb.mxu1 %v6684_v52  ;;  %v11202_v45 = vld [vmem:[#allocation116_spill] sm:$0xff]  ;;  %v11203_v52 = vld [vmem:[#allocation117_spill] sm:$0xff] }
 0x49c   :  { %1693 = vmatpush.msrb.mxu2 %v6690_v12  ;;  %1713 = vmatpush.msrb.mxu3 %v6696_v46  ;;  %v11204_v12 = vld [vmem:[#allocation118_spill] sm:$0xff]  ;;  %v11205_v46 = vld [vmem:[#allocation119_spill] sm:$0xff] }
 0x49d   :  { %1654 = vmatpush.msrb.mxu0 %v6702_v50  ;;  %1674 = vmatpush.msrb.mxu1 %v6708_v6  ;;  %v11206_v50 = vld [vmem:[#allocation120_spill] sm:$0xff]  ;;  %v11207_v6 = vld [vmem:[#allocation121_spill] sm:$0xff] }
 0x49e   :  { %1694 = vmatpush.msrb.mxu2 %v11185_v49  ;;  %1714 = vmatpush.msrb.mxu3 %v11186_v61  ;;  %v7306_v49 = vld [vmem:[%s10121_s3 + $0x170] sm:$0xff]  ;;  %v7312_v61 = vld [vmem:[%s10121_s3 + $0x178] sm:$0xff] }
 0x49f   :  { %1655 = vmatpush.msrb.mxu0 %v11187_v0  ;;  %1675 = vmatpush.msrb.mxu1 %v11188_v1  ;;  %v7318_v0 = vld [vmem:[%s10121_s3 + $0x140] sm:$0xff]  ;;  %v7324_v1 = vld [vmem:[%s10121_s3 + $0x148] sm:$0xff] }
 0x4a0   :  { %1695 = vmatpush.msrb.mxu2 %v11189_v14  ;;  %1715 = vmatpush.msrb.mxu3 %v11190_v4  ;;  %v7330_v14 = vld [vmem:[%s10121_s3 + $0x150] sm:$0xff]  ;;  %v7336_v4 = vld [vmem:[%s10121_s3 + $0x158] sm:$0xff] }
 0x4a1   :  { %1656 = vmatpush.msrb.mxu0 %v11191_v5  ;;  %1676 = vmatpush.msrb.mxu1 %v11192_v60  ;;  %v7342_v5 = vld [vmem:[%s10121_s3 + $0x120] sm:$0xff]  ;;  %v7348_v60 = vld [vmem:[%s10121_s3 + $0x128] sm:$0xff] }
 0x4a2   :  { %1696 = vmatpush.msrb.mxu2 %v11193_v9  ;;  %1716 = vmatpush.msrb.mxu3 %v11194_v15  ;;  %v7354_v9 = vld [vmem:[%s10121_s3 + $0x130] sm:$0xff]  ;;  %v7360_v15 = vld [vmem:[%s10121_s3 + $0x138] sm:$0xff] }
 0x4a3   :  { %1657 = vmatpush.msrb.mxu0 %v11195_v8  ;;  %1677 = vmatpush.msrb.mxu1 %v11196_v7  ;;  %v7366_v8 = vld [vmem:[%s10121_s3 + $0x100] sm:$0xff]  ;;  %v7372_v7 = vld [vmem:[%s10121_s3 + $0x108] sm:$0xff] }
 0x4a4   :  { %1697 = vmatpush.msrb.mxu2 %v11197_v16  ;;  %1717 = vmatpush.msrb.mxu3 %v11198_v2  ;;  %11225 = vst [vmem:[#allocation139_spill] sm:$0xff] %v7366_v8  ;;  %v7378_v16 = vld [vmem:[%s10121_s3 + $0x110] sm:$0xff]  ;;  %v7384_v2 = vld [vmem:[%s10121_s3 + $0x118] sm:$0xff] }
 0x4a5   :  { %1658 = vmatpush.msrb.mxu0 %v11199_v59  ;;  %1678 = vmatpush.msrb.mxu1 %v11200_v57  ;;  %11226 = vst [vmem:[#allocation140_spill] sm:$0xff] %v7372_v7  ;;  %v7390_v59 = vld [vmem:[%s10121_s3 + $0xe0] sm:$0xff]  ;;  %v7396_v57 = vld [vmem:[%s10121_s3 + $0xe8] sm:$0xff] }
 0x4a6   :  { %1698 = vmatpush.msrb.mxu2 %v11201_v43  ;;  %1718 = vmatpush.msrb.mxu3 %v11202_v45  ;;  %11227 = vst [vmem:[#allocation14_spill] sm:$0xff] %v7378_v16  ;;  %v7402_v43 = vld [vmem:[%s10121_s3 + $0xf0] sm:$0xff]  ;;  %v7408_v45 = vld [vmem:[%s10121_s3 + $0xf8] sm:$0xff] }
 0x4a7   :  { %1659 = vmatpush.msrb.mxu0 %v11203_v52  ;;  %1679 = vmatpush.msrb.mxu1 %v11204_v12  ;;  %11228 = vst [vmem:[#allocation13_spill] sm:$0xff] %v7384_v2  ;;  %v7414_v52 = vld [vmem:[%s10121_s3 + $0xc0] sm:$0xff]  ;;  %v7420_v12 = vld [vmem:[%s10121_s3 + $0xc8] sm:$0xff] }
 0x4a8   :  { %1699 = vmatpush.msrb.mxu2 %v11205_v46  ;;  %1719 = vmatpush.msrb.mxu3 %v11206_v50  ;;  %11229 = vst [vmem:[#allocation5_spill] sm:$0xff] %v7390_v59  ;;  %v7426_v46 = vld [vmem:[%s10121_s3 + $0xd0] sm:$0xff]  ;;  %v7432_v50 = vld [vmem:[%s10121_s3 + $0xd8] sm:$0xff] }
 0x4a9   :  { %1660 = vmatpush.msrb.mxu0 %v11207_v6  ;;  %1680 = vmatpush.msrb.mxu1 %v11208_v36  ;;  %11230 = vst [vmem:[#allocation6_spill] sm:$0xff] %v7396_v57  ;;  %v7438_v6 = vld [vmem:[%s10121_s3 + $0xa0] sm:$0xff]  ;;  %v7444_v36 = vld [vmem:[%s10121_s3 + $0xa8] sm:$0xff] }
 0x4aa   :  { %1700 = vmatpush.msrb.mxu2 %v11209_v53  ;;  %1720 = vmatpush.msrb.mxu3 %v11210_v17  ;;  %11231 = vst [vmem:[#allocation18_spill] sm:$0xff] %v7402_v43  ;;  %v7450_v53 = vld [vmem:[%s10121_s3 + $0xb0] sm:$0xff]  ;;  %v7456_v17 = vld [vmem:[%s10121_s3 + $0xb8] sm:$0xff] }
 0x4ab   :  { %1661 = vmatpush.msrb.mxu0 %v11211_v62  ;;  %1681 = vmatpush.msrb.mxu1 %v11212_v54  ;;  %11232 = vst [vmem:[#allocation17_spill] sm:$0xff] %v7408_v45  ;;  %v7462_v62 = vld [vmem:[%s10121_s3 + $0x80] sm:$0xff]  ;;  %v7468_v54 = vld [vmem:[%s10121_s3 + $0x88] sm:$0xff] }
 0x4ac   :  { %1701 = vmatpush.msrb.mxu2 %v11213_v35  ;;  %1721 = vmatpush.msrb.mxu3 %v11214_v58  ;;  %11233 = vst [vmem:[#allocation9_spill] sm:$0xff] %v7414_v52  ;;  %v7474_v35 = vld [vmem:[%s10121_s3 + $0x90] sm:$0xff]  ;;  %v7480_v58 = vld [vmem:[%s10121_s3 + $0x98] sm:$0xff] }
 0x4ad   :  { %1662 = vmatpush.msrb.mxu0 %v11215_v22  ;;  %1682 = vmatpush.msrb.mxu1 %v11216_v28  ;;  %11234 = vst [vmem:[#allocation10_spill] sm:$0xff] %v7420_v12  ;;  %v7486_v22 = vld [vmem:[%s10121_s3 + $0x60] sm:$0xff]  ;;  %v7492_v28 = vld [vmem:[%s10121_s3 + $0x68] sm:$0xff] }
 0x4ae   :  { %1702 = vmatpush.msrb.mxu2 %v11217_v21  ;;  %1722 = vmatpush.msrb.mxu3 %v11218_v30  ;;  %11235 = vst [vmem:[#allocation22_spill] sm:$0xff] %v7426_v46  ;;  %v7498_v21 = vld [vmem:[%s10121_s3 + $0x70] sm:$0xff]  ;;  %v7504_v30 = vld [vmem:[%s10121_s3 + $0x78] sm:$0xff] }
 0x4af   :  { %1663 = vmatpush.msrb.mxu0 %v11219_v31  ;;  %1683 = vmatpush.msrb.mxu1 %v11220_v63  ;;  %11236 = vst [vmem:[#allocation21_spill] sm:$0xff] %v7432_v50  ;;  %v7510_v31 = vld [vmem:[%s10121_s3 + $0x40] sm:$0xff]  ;;  %v7516_v63 = vld [vmem:[%s10121_s3 + $0x48] sm:$0xff] }
 0x4b0   :  { %1703 = vmatpush.msrb.mxu2 %v11221_v27  ;;  %1723 = vmatpush.msrb.mxu3 %v11222_v55  ;;  %11237 = vst [vmem:[#allocation11_spill] sm:$0xff] %v7438_v6  ;;  %v7522_v27 = vld [vmem:[%s10121_s3 + $0x50] sm:$0xff]  ;;  %v7528_v55 = vld [vmem:[%s10121_s3 + $0x58] sm:$0xff] }
 0x4b1   :  { %1664 = vmatpush.msrb.mxu0 %v6942_v10  ;;  %1684 = vmatpush.msrb.mxu1 %v6948_v48  ;;  %v7210_v10 = vld [vmem:[%s10121_s3 + $0x1f0] sm:$0xff]  ;;  %v7216_v48 = vld [vmem:[%s10121_s3 + $0x1f8] sm:$0xff]  ;;  %11238 = vst [vmem:[#allocation12_spill] sm:$0xff] %v7444_v36 }
 0x4b2   :  { %1704 = vmatpush.msrb.mxu2 %v11223_v33  ;;  %1724 = vmatpush.msrb.mxu3 %v11224_v23  ;;  %11239 = vst [vmem:[#allocation26_spill] sm:$0xff] %v7450_v53  ;;  %v7534_v33 = vld [vmem:[%s10121_s3 + $0x20] sm:$0xff]  ;;  %v7540_v23 = vld [vmem:[%s10121_s3 + $0x28] sm:$0xff] }
 0x4b3   :  { %1796 = vmatpush.msra.mxu0 %v7198_v34  ;;  %1816 = vmatpush.msra.mxu1 %v7204_v11  ;;  %11240 = vst [vmem:[#allocation25_spill] sm:$0xff] %v7456_v17 }
 0x4b4   :  { %1836 = vmatpush.msra.mxu2 %v7210_v10  ;;  %1856 = vmatpush.msra.mxu3 %v7216_v48  ;;  %11241 = vst [vmem:[#allocation15_spill] sm:$0xff] %v7462_v62 }
 0x4b5   :  { %1797 = vmatpush.msra.mxu0 %v7222_v47  ;;  %1817 = vmatpush.msra.mxu1 %v7228_v26  ;;  %11242 = vst [vmem:[#allocation16_spill] sm:$0xff] %v7468_v54 }
 0x4b6   :  { %1837 = vmatpush.msra.mxu2 %v7234_v41  ;;  %1857 = vmatpush.msra.mxu3 %v7240_v42  ;;  %11243 = vst [vmem:[#allocation30_spill] sm:$0xff] %v7474_v35 }
 0x4b7   :  { %1798 = vmatpush.msra.mxu0 %v7246_v44  ;;  %1818 = vmatpush.msra.mxu1 %v7252_v18  ;;  %11244 = vst [vmem:[#allocation29_spill] sm:$0xff] %v7480_v58 }
 0x4b8   :  { %1838 = vmatpush.msra.mxu2 %v7258_v19  ;;  %1858 = vmatpush.msra.mxu3 %v7264_v13  ;;  %11245 = vst [vmem:[#allocation19_spill] sm:$0xff] %v7486_v22 }
 0x4b9   :  { %1799 = vmatpush.msra.mxu0 %v7270_v56  ;;  %1819 = vmatpush.msra.mxu1 %v7276_v51  ;;  %11246 = vst [vmem:[#allocation20_spill] sm:$0xff] %v7492_v28 }
 0x4ba   :  { %1839 = vmatpush.msra.mxu2 %v7282_v37  ;;  %1859 = vmatpush.msra.mxu3 %v7288_v38  ;;  %11247 = vst [vmem:[#allocation34_spill] sm:$0xff] %v7498_v21 }
 0x4bb   :  { %1800 = vmatpush.msra.mxu0 %v7294_v25  ;;  %1820 = vmatpush.msra.mxu1 %v7300_v40  ;;  %11248 = vst [vmem:[#allocation33_spill] sm:$0xff] %v7504_v30 }
 0x4bc   :  { %1840 = vmatpush.msra.mxu2 %v7306_v49  ;;  %1860 = vmatpush.msra.mxu3 %v7312_v61  ;;  %11249 = vst [vmem:[#allocation23_spill] sm:$0xff] %v7510_v31 }
 0x4bd   :  { %1801 = vmatpush.msra.mxu0 %v7318_v0  ;;  %1821 = vmatpush.msra.mxu1 %v7324_v1  ;;  %11250 = vst [vmem:[#allocation24_spill] sm:$0xff] %v7516_v63 }
 0x4be   :  { %1841 = vmatpush.msra.mxu2 %v7330_v14  ;;  %1861 = vmatpush.msra.mxu3 %v7336_v4  ;;  %11251 = vst [vmem:[#allocation38_spill] sm:$0xff] %v7522_v27 }
 0x4bf   :  { %1802 = vmatpush.msra.mxu0 %v7342_v5  ;;  %1822 = vmatpush.msra.mxu1 %v7348_v60  ;;  %11252 = vst [vmem:[#allocation37_spill] sm:$0xff] %v7528_v55 }
 0x4c0   :  { %1842 = vmatpush.msra.mxu2 %v7354_v9  ;;  %1862 = vmatpush.msra.mxu3 %v7360_v15  ;;  %11253 = vst [vmem:[#allocation27_spill] sm:$0xff] %v7534_v33 }
 0x4c1   :  { %1803 = vmatpush.msra.mxu0 %v7366_v8  ;;  %1823 = vmatpush.msra.mxu1 %v7372_v7  ;;  %11254 = vst [vmem:[#allocation28_spill] sm:$0xff] %v7540_v23 }
 0x4c2   :  { %1843 = vmatpush.msra.mxu2 %v7378_v16  ;;  %1863 = vmatpush.msra.mxu3 %v7384_v2 }
 0x4c3   :  { %1804 = vmatpush.msra.mxu0 %v7390_v59  ;;  %1824 = vmatpush.msra.mxu1 %v7396_v57 }
 0x4c4   :  { %1844 = vmatpush.msra.mxu2 %v7402_v43  ;;  %1864 = vmatpush.msra.mxu3 %v7408_v45 }
 0x4c5   :  { %1805 = vmatpush.msra.mxu0 %v7414_v52  ;;  %1825 = vmatpush.msra.mxu1 %v7420_v12 }
 0x4c6   :  { %1845 = vmatpush.msra.mxu2 %v7426_v46  ;;  %1865 = vmatpush.msra.mxu3 %v7432_v50 }
 0x4c7   :  { %1806 = vmatpush.msra.mxu0 %v7438_v6  ;;  %1826 = vmatpush.msra.mxu1 %v7444_v36 }
 0x4c8   :  { %1846 = vmatpush.msra.mxu2 %v7450_v53  ;;  %1866 = vmatpush.msra.mxu3 %v7456_v17 }
 0x4c9   :  { %1807 = vmatpush.msra.mxu0 %v7462_v62  ;;  %1827 = vmatpush.msra.mxu1 %v7468_v54  ;;  %v3426_v54 = vld [vmem:[%s10124_s0 + $0x18] sm:$0xff] }
 0x4ca   :  { %1847 = vmatpush.msra.mxu2 %v7474_v35  ;;  %1867 = vmatpush.msra.mxu3 %v7480_v58 }
 0x4cb   :  { %1808 = vmatpush.msra.mxu0 %v7486_v22  ;;  %1828 = vmatpush.msra.mxu1 %v7492_v28 }
 0x4cc   :  { %1848 = vmatpush.msra.mxu2 %v7498_v21  ;;  %1868 = vmatpush.msra.mxu3 %v7504_v30 }
 0x4cd   :  { %1809 = vmatpush.msra.mxu0 %v7510_v31  ;;  %1829 = vmatpush.msra.mxu1 %v7516_v63 }
 0x4ce   :  { %1849 = vmatpush.msra.mxu2 %v7522_v27  ;;  %1869 = vmatpush.msra.mxu3 %v7528_v55  ;;  %v7546_v27 = vld [vmem:[%s10121_s3 + $0x30] sm:$0xff]  ;;  %v7552_v55 = vld [vmem:[%s10121_s3 + $0x38] sm:$0xff] }
 0x4cf   :  { %1810 = vmatpush.msra.mxu0 %v7534_v33  ;;  %1830 = vmatpush.msra.mxu1 %v7540_v23  ;;  %11255 = vst [vmem:[#allocation42_spill] sm:$0xff] %v7546_v27  ;;  %v7558_v33 = vld [vmem:[%s10121_s3] sm:$0xff]  ;;  %v7564_v23 = vld [vmem:[%s10121_s3 + $0x8] sm:$0xff] }
 0x4d0   :  { %1850 = vmatpush.msra.mxu2 %v7546_v27  ;;  %11256 = vst [vmem:[#allocation41_spill] sm:$0xff] %v7552_v55  ;;  %1870 = vmatpush.msra.mxu3 %v7552_v55  ;;  %v7570_v27 = vld [vmem:[%s10121_s3 + $0x10] sm:$0xff]  ;;  %v7576_v55 = vld [vmem:[%s10121_s3 + $0x18] sm:$0xff] }
 0x4d1   :  { %11257 = vst [vmem:[#allocation31_spill] sm:$0xff] %v7558_v33  ;;  %1811 = vmatpush.msra.mxu0 %v7558_v33  ;;  %1831 = vmatpush.msra.mxu1 %v7564_v23 }
 0x4d2   :  { %11258 = vst [vmem:[#allocation32_spill] sm:$0xff] %v7564_v23  ;;  %1851 = vmatpush.msra.mxu2 %v7570_v27  ;;  %1871 = vmatpush.msra.mxu3 %v7576_v55 }
 0x4d3   :  { %11259 = vst [vmem:[#allocation46_spill] sm:$0xff] %v7570_v27 }
 0x4d4   :  { %11260 = vst [vmem:[#allocation45_spill] sm:$0xff] %v7576_v55 }
 0x50c   :  { %v7579_v33 = vpop.f32.mrf.mxu1  ;;  %v7581_v63 = vpop.f32.mrf.mxu0 }
 0x513   :  { %v7583_v31 = vpop.f32.mrf.mxu2  ;;  %v7585_v23 = vpop.f32.mrf.mxu3 }
 0x514   :  { %v1524_v30 = vpop.f32.mrf.mxu1  ;;  %v1504_v35 = vpop.f32.mrf.mxu0 }
 0x515   :  { %v1571_v21 = vrot.slane %v1524_v30, 6 }
 0x517   :  { %v1574_v55 = vsel %vm398_vm1, %v1504_v35, %v1571_v21 }
 0x51b   :  { %v1544_v28 = vpop.f32.mrf.mxu2  ;;  %v1564_v22 = vpop.f32.mrf.mxu3 }
 0x51c   :  { %v1572_v27 = vrot.slane %v1544_v28, 4  ;;  %v1573_v58 = vrot.slane %v1564_v22, 2 }
 0x51e   :  { %v1575_v62 = vsel %vm400_vm0, %v1572_v27, %v1573_v58 }
 0x51f   :  { %v1576_v17 = vsel %vm402_vm2, %v1574_v55, %v1575_v62 }
 0x520   :  { %v1578_v53 = vadd.f32 %v3426_v54, %v1576_v17 }
 0x522   :  { %v3427_v36 = vmul.f32 -1.442695, %v1578_v53  ;;  %v1599_v6 = vrot.slane %v1578_v53, 2  ;;  %v1623_v50 = vrot.slane %v1578_v53, 6  ;;  %v1620_v21 = vrot.slane %v1578_v53, 4 }
 0x524   :  { %3559 = vpow2.f32 %v3427_v36  ;;  %v3428_v30 = vmul.f32 -1.442695, %v1599_v6  ;;  %v3429_v46 = vmul.f32 -1.442695, %v1623_v50 }
 0x526   :  { %3561 = vpow2.f32 %v3428_v30 }
 0x527   :  { %3563 = vpow2.f32 %v3429_v46 }
 0x52a   :  { %v3560_v22 = vpop.eup %3559 }
 0x52b   :  { %v1582_v28 = vadd.f32 1.0, %v3560_v22 }
 0x52c   :  { %v3562_v12 = vpop.eup %3561 }
 0x52d   :  { %v3564_v52 = vpop.eup %3563  ;;  %3565 = vrcp.f32 %v1582_v28  ;;  %v1604_v45 = vadd.f32 1.0, %v3562_v12  ;;  %v1594_v50 = vand.u32 2147483648, %v1582_v28  ;;  %v1592_v55 = vand.u32 2147483647, %v1582_v28 }
 0x52e   :  { %v1628_v35 = vadd.f32 1.0, %v3564_v52  ;;  %vm1588_vm11 = vweird.f32 %v1582_v28 }
 0x52f   :  { %3567 = vrcp.f32 %v1604_v45  ;;  %v1616_v43 = vand.u32 2147483648, %v1604_v45  ;;  %v1614_v12 = vand.u32 2147483647, %v1604_v45  ;;  %v1595_v59 = vor.u32 1.1754944e-38, %v1594_v50  ;;  %v7642_v50 = vld [vmem:[%s10122_s1 + $0x1d0] sm:$0xff] }
 0x530   :  { %3569 = vrcp.f32 %v1628_v35  ;;  %vm1593_vm14 = vcmp.eq.f32.partialorder %v1592_v55, 8.507059e+37  ;;  %vm1610_vm15 = vweird.f32 %v1604_v45  ;;  %vm1634_vm6 = vweird.f32 %v1628_v35  ;;  %v7654_v55 = vld [vmem:[%s10122_s1 + $0x1a0] sm:$0xff] }
 0x531   :  { %3571 = vtanh.f32 %v1620_v21  ;;  %v1617_v2 = vor.u32 1.1754944e-38, %v1616_v43  ;;  %vm1615_vm4 = vcmp.eq.f32.partialorder %v1614_v12, 8.507059e+37  ;;  %11261 = vst [vmem:[#allocation35_spill] sm:$0xff] %v7654_v55  ;;  %v7672_v12 = vld [vmem:[%s10122_s1 + $0x1b8] sm:$0xff] }
 0x532   :  { %11264 = vst [vmem:[#allocation49_spill] sm:$0xff] %v7672_v12 }
 0x533   :  { %v3566_v58 = vpop.eup %3565 }
 0x534   :  { %v1584_v62 = vmul.f32 %v3566_v58, %v1582_v28  ;;  %vm1589_vm10 = vweird.f32 %v3566_v58 }
 0x535   :  { %v3568_v17 = vpop.eup %3567  ;;  %vm1590_vm12 = vmor %vm1588_vm11, %vm1589_vm10 }
 0x536   :  { %v1585_v54 = vsub.f32 1.0, %v1584_v62  ;;  %v3570_v27 = vpop.eup %3569  ;;  %v1606_v36 = vmul.f32 %v3568_v17, %v1604_v45  ;;  %vm1611_vm13 = vweird.f32 %v3568_v17  ;;  %v1638_v45 = vand.u32 2147483647, %v1628_v35 }
 0x537   :  { %v1630_v46 = vmul.f32 %v3570_v27, %v1628_v35  ;;  %vm1612_vm3 = vmor %vm1610_vm15, %vm1611_vm13  ;;  %vm1635_vm5 = vweird.f32 %v3570_v27 }
 0x538   :  { %v1586_v6 = vmul.f32 %v3566_v58, %v1585_v54  ;;  %v1607_v30 = vsub.f32 1.0, %v1606_v36  ;;  %v3572_v36 = vpop.eup %3571  ;;  %vm1636_vm7 = vmor %vm1634_vm6, %vm1635_vm5  ;;  %vm1639_vm8 = vcmp.eq.f32.partialorder %v1638_v45, 8.507059e+37  ;;  %v7726_v45 = vld [vmem:[%s10122_s1 + $0x140] sm:$0xff] }
 0x539   :  { %v1631_v62 = vsub.f32 1.0, %v1630_v46  ;;  %v7648_v46 = vld [vmem:[%s10122_s1 + $0x1d8] sm:$0xff]  ;;  %11273 = vst [vmem:[#allocation47_spill] sm:$0xff] %v7726_v45 }
 0x53a   :  { %v1587_v22 = vadd.f32 %v3566_v58, %v1586_v6  ;;  %v1608_v52 = vmul.f32 %v3568_v17, %v1607_v30 }
 0x53b   :  { %v1632_v28 = vmul.f32 %v3570_v27, %v1631_v62  ;;  %v7678_v62 = vld [vmem:[%s10122_s1 + $0x180] sm:$0xff] }
 0x53c   :  { %v1591_v57 = vsel %vm1590_vm12, %v3566_v58, %v1587_v22  ;;  %v1609_v53 = vadd.f32 %v3568_v17, %v1608_v52  ;;  %v1640_v58 = vand.u32 2147483648, %v1628_v35  ;;  %v7630_v35 = vld [vmem:[%s10122_s1 + $0x1c0] sm:$0xff]  ;;  %v7660_v22 = vld [vmem:[%s10122_s1 + $0x1a8] sm:$0xff]  ;;  %v7666_v52 = vld [vmem:[%s10122_s1 + $0x1b0] sm:$0xff]  ;;  %11265 = vst [vmem:[#allocation39_spill] sm:$0xff] %v7678_v62 }
 0x53d   :  { %v1596_v54 = vsel %vm1593_vm14, %v1595_v59, %v1591_v57  ;;  %v1633_v8 = vadd.f32 %v3570_v27, %v1632_v28  ;;  %11262 = vst [vmem:[#allocation36_spill] sm:$0xff] %v7660_v22  ;;  %v7708_v28 = vld [vmem:[%s10122_s1 + $0x168] sm:$0xff] }
 0x53e   :  { %v1613_v16 = vsel %vm1612_vm3, %v3568_v17, %v1609_v53  ;;  %v1645_v7 = vmul.f32 %v3572_v36, %v1596_v54  ;;  %v1641_v57 = vor.u32 1.1754944e-38, %v1640_v58  ;;  %11263 = vst [vmem:[#allocation50_spill] sm:$0xff] %v7666_v52  ;;  %v7684_v53 = vld [vmem:[%s10122_s1 + $0x188] sm:$0xff]  ;;  %v7690_v54 = vld [vmem:[%s10122_s1 + $0x190] sm:$0xff]  ;;  %v7696_v36 = vld [vmem:[%s10122_s1 + $0x198] sm:$0xff] }
 0x53f   :  { %v1618_v6 = vsel %vm1615_vm4, %v1617_v2, %v1613_v16  ;;  %v1637_v59 = vsel %vm1636_vm7, %v3570_v27, %v1633_v8  ;;  %v7612_v8 = vld [vmem:[%s10122_s1 + $0x1e8] sm:$0xff]  ;;  %v7624_v2 = vld [vmem:[%s10122_s1 + $0x1f8] sm:$0xff]  ;;  %11266 = vst [vmem:[#allocation40_spill] sm:$0xff] %v7684_v53 }
 0x540   :  { %v1644_v21 = vmul.f32 %v1618_v6, %v7042_v39  ;;  %v1642_v17 = vsel %vm1639_vm8, %v1641_v57, %v1637_v59  ;;  %v7606_v39 = vld [vmem:[%s10122_s1 + $0x1e0] sm:$0xff]  ;;  %v7636_v27 = vld [vmem:[%s10122_s1 + $0x1c8] sm:$0xff]  ;;  %11267 = vst [vmem:[#allocation56_spill] sm:$0xff] %v7690_v54  ;;  %v7720_v58 = vld [vmem:[%s10122_s1 + $0x178] sm:$0xff] }
 0x541   :  { %11268 = vst [vmem:[#allocation53_spill] sm:$0xff] %v7696_v36  ;;  %v7702_v6 = vld [vmem:[%s10122_s1 + $0x160] sm:$0xff]  ;;  %v7732_v59 = vld [vmem:[%s10122_s1 + $0x148] sm:$0xff]  ;;  %v7738_v57 = vld [vmem:[%s10122_s1 + $0x150] sm:$0xff] }
 0x542   :  { %v7594_v30 = vadd.f32 %v1645_v7, %v1644_v21  ;;  %v7618_v7 = vld [vmem:[%s10122_s1 + $0x1f0] sm:$0xff]  ;;  %11269 = vst [vmem:[#allocation43_spill] sm:$0xff] %v7702_v6 }
 0x543   :  { %11270 = vst [vmem:[#allocation44_spill] sm:$0xff] %v7708_v28  ;;  %v7714_v21 = vld [vmem:[%s10122_s1 + $0x170] sm:$0xff] }
 0x544   :  { %3573 = vtanh.f32 %v7594_v30  ;;  %11271 = vst [vmem:[#allocation60_spill] sm:$0xff] %v7714_v21 }
 0x545   :  { %11272 = vst [vmem:[#allocation57_spill] sm:$0xff] %v7720_v58 }
 0x546   :  { %11274 = vst [vmem:[#allocation48_spill] sm:$0xff] %v7732_v59 }
 0x547   :  { %11275 = vst [vmem:[#allocation64_spill] sm:$0xff] %v7738_v57 }
 0x54a   :  { %v3574_v43 = vpop.eup %3573 }
 0x54b   :  { %v7597_v16 = vmul.f32 %v3574_v43, %v1642_v17  ;;  %v7744_v43 = vld [vmem:[%s10122_s1 + $0x158] sm:$0xff]  ;;  %v7750_v17 = vld [vmem:[%s10122_s1 + $0x120] sm:$0xff] }
 0x54c   :  { %11276 = vst [vmem:[#allocation61_spill] sm:$0xff] %v7744_v43 }
 0x54d   :  { %1665 = vmatmul.f32.vlgmr.msrb.gmra.mxu0 %v7597_v16  ;;  %1685 = vmatmul.f32.vlgmr.msrb.gmra.mxu1 %v7597_v16  ;;  %11277 = vst [vmem:[#allocation51_spill] sm:$0xff] %v7750_v17 }
 0x54e   :  { %1705 = vmatmul.f32.vlgmr.msrb.gmra.mxu2 %v7597_v16  ;;  %1725 = vmatmul.f32.vlgmr.msrb.gmra.mxu3 %v7597_v16 }
 0x54f   :  { %1878 = vmatpush.msrb.mxu0 %v7606_v39  ;;  %1898 = vmatpush.msrb.mxu1 %v7612_v8 }
 0x550   :  { %1918 = vmatpush.msrb.mxu2 %v7618_v7  ;;  %1938 = vmatpush.msrb.mxu3 %v7624_v2 }
 0x551   :  { %1879 = vmatpush.msrb.mxu0 %v7630_v35  ;;  %1899 = vmatpush.msrb.mxu1 %v7636_v27 }
 0x552   :  { %1919 = vmatpush.msrb.mxu2 %v7642_v50  ;;  %1939 = vmatpush.msrb.mxu3 %v7648_v46 }
 0x553   :  { %1880 = vmatpush.msrb.mxu0 %v7654_v55  ;;  %1900 = vmatpush.msrb.mxu1 %v7660_v22 }
 0x554   :  { %1920 = vmatpush.msrb.mxu2 %v7666_v52  ;;  %1940 = vmatpush.msrb.mxu3 %v7672_v12 }
 0x555   :  { %1881 = vmatpush.msrb.mxu0 %v7678_v62  ;;  %1901 = vmatpush.msrb.mxu1 %v7684_v53 }
 0x556   :  { %1921 = vmatpush.msrb.mxu2 %v7690_v54  ;;  %1941 = vmatpush.msrb.mxu3 %v7696_v36 }
 0x557   :  { %1882 = vmatpush.msrb.mxu0 %v7702_v6  ;;  %1902 = vmatpush.msrb.mxu1 %v7708_v28 }
 0x558   :  { %1922 = vmatpush.msrb.mxu2 %v7714_v21  ;;  %1942 = vmatpush.msrb.mxu3 %v7720_v58 }
 0x559   :  { %1883 = vmatpush.msrb.mxu0 %v7726_v45  ;;  %1903 = vmatpush.msrb.mxu1 %v7732_v59  ;;  %v7756_v59 = vld [vmem:[%s10122_s1 + $0x128] sm:$0xff] }
 0x55a   :  { %1923 = vmatpush.msrb.mxu2 %v7738_v57  ;;  %1943 = vmatpush.msrb.mxu3 %v7744_v43  ;;  %11278 = vst [vmem:[#allocation52_spill] sm:$0xff] %v7756_v59  ;;  %v7762_v57 = vld [vmem:[%s10122_s1 + $0x130] sm:$0xff]  ;;  %v7768_v43 = vld [vmem:[%s10122_s1 + $0x138] sm:$0xff] }
 0x55b   :  { %1884 = vmatpush.msrb.mxu0 %v7750_v17  ;;  %1904 = vmatpush.msrb.mxu1 %v7756_v59  ;;  %11279 = vst [vmem:[#allocation68_spill] sm:$0xff] %v7762_v57  ;;  %v7774_v17 = vld [vmem:[%s10122_s1 + $0x100] sm:$0xff]  ;;  %v7780_v59 = vld [vmem:[%s10122_s1 + $0x108] sm:$0xff] }
 0x55c   :  { %1924 = vmatpush.msrb.mxu2 %v7762_v57  ;;  %11280 = vst [vmem:[#allocation65_spill] sm:$0xff] %v7768_v43  ;;  %1944 = vmatpush.msrb.mxu3 %v7768_v43  ;;  %v7786_v57 = vld [vmem:[%s10122_s1 + $0x110] sm:$0xff]  ;;  %v7792_v43 = vld [vmem:[%s10122_s1 + $0x118] sm:$0xff] }
 0x55d   :  { %11281 = vst [vmem:[#allocation54_spill] sm:$0xff] %v7774_v17  ;;  %1885 = vmatpush.msrb.mxu0 %v7774_v17  ;;  %1905 = vmatpush.msrb.mxu1 %v7780_v59  ;;  %v7798_v17 = vld [vmem:[%s10122_s1 + $0xe0] sm:$0xff] }
 0x55e   :  { %11282 = vst [vmem:[#allocation55_spill] sm:$0xff] %v7780_v59  ;;  %1925 = vmatpush.msrb.mxu2 %v7786_v57  ;;  %1945 = vmatpush.msrb.mxu3 %v7792_v43  ;;  %v7804_v59 = vld [vmem:[%s10122_s1 + $0xe8] sm:$0xff] }
 0x55f   :  { %11283 = vst [vmem:[#allocation72_spill] sm:$0xff] %v7786_v57  ;;  %1886 = vmatpush.msrb.mxu0 %v7798_v17  ;;  %1906 = vmatpush.msrb.mxu1 %v7804_v59  ;;  %v7810_v57 = vld [vmem:[%s10122_s1 + $0xf0] sm:$0xff] }
 0x560   :  { %11284 = vst [vmem:[#allocation69_spill] sm:$0xff] %v7792_v43  ;;  %1926 = vmatpush.msrb.mxu2 %v7810_v57  ;;  %v7816_v43 = vld [vmem:[%s10122_s1 + $0xf8] sm:$0xff] }
 0x561   :  { %11285 = vst [vmem:[#allocation58_spill] sm:$0xff] %v7798_v17  ;;  %1946 = vmatpush.msrb.mxu3 %v7816_v43  ;;  %v7822_v17 = vld [vmem:[%s10122_s1 + $0xc0] sm:$0xff] }
 0x562   :  { %11286 = vst [vmem:[#allocation59_spill] sm:$0xff] %v7804_v59  ;;  %1887 = vmatpush.msrb.mxu0 %v7822_v17  ;;  %v7828_v59 = vld [vmem:[%s10122_s1 + $0xc8] sm:$0xff] }
 0x563   :  { %11287 = vst [vmem:[#allocation74_spill] sm:$0xff] %v7810_v57  ;;  %1907 = vmatpush.msrb.mxu1 %v7828_v59  ;;  %v7834_v57 = vld [vmem:[%s10122_s1 + $0xd0] sm:$0xff] }
 0x564   :  { %11288 = vst [vmem:[#allocation73_spill] sm:$0xff] %v7816_v43  ;;  %1927 = vmatpush.msrb.mxu2 %v7834_v57  ;;  %v7840_v43 = vld [vmem:[%s10122_s1 + $0xd8] sm:$0xff] }
 0x565   :  { %11289 = vst [vmem:[#allocation62_spill] sm:$0xff] %v7822_v17  ;;  %1947 = vmatpush.msrb.mxu3 %v7840_v43  ;;  %v7846_v17 = vld [vmem:[%s10122_s1 + $0xa0] sm:$0xff] }
 0x566   :  { %11290 = vst [vmem:[#allocation63_spill] sm:$0xff] %v7828_v59  ;;  %1888 = vmatpush.msrb.mxu0 %v7846_v17  ;;  %v7852_v59 = vld [vmem:[%s10122_s1 + $0xa8] sm:$0xff] }
 0x567   :  { %11291 = vst [vmem:[#allocation76_spill] sm:$0xff] %v7834_v57  ;;  %1908 = vmatpush.msrb.mxu1 %v7852_v59  ;;  %v7858_v57 = vld [vmem:[%s10122_s1 + $0xb0] sm:$0xff] }
 0x568   :  { %11292 = vst [vmem:[#allocation75_spill] sm:$0xff] %v7840_v43  ;;  %1928 = vmatpush.msrb.mxu2 %v7858_v57  ;;  %v7864_v43 = vld [vmem:[%s10122_s1 + $0xb8] sm:$0xff] }
 0x569   :  { %11293 = vst [vmem:[#allocation66_spill] sm:$0xff] %v7846_v17  ;;  %1948 = vmatpush.msrb.mxu3 %v7864_v43  ;;  %v7870_v17 = vld [vmem:[%s10122_s1 + $0x80] sm:$0xff] }
 0x56a   :  { %11294 = vst [vmem:[#allocation67_spill] sm:$0xff] %v7852_v59  ;;  %1889 = vmatpush.msrb.mxu0 %v7870_v17  ;;  %v7876_v59 = vld [vmem:[%s10122_s1 + $0x88] sm:$0xff] }
 0x56b   :  { %11295 = vst [vmem:[#allocation78_spill] sm:$0xff] %v7858_v57  ;;  %1909 = vmatpush.msrb.mxu1 %v7876_v59  ;;  %v7882_v57 = vld [vmem:[%s10122_s1 + $0x90] sm:$0xff] }
 0x56c   :  { %11296 = vst [vmem:[#allocation77_spill] sm:$0xff] %v7864_v43  ;;  %1929 = vmatpush.msrb.mxu2 %v7882_v57  ;;  %v7888_v43 = vld [vmem:[%s10122_s1 + $0x98] sm:$0xff] }
 0x56d   :  { %11297 = vst [vmem:[#allocation70_spill] sm:$0xff] %v7870_v17  ;;  %1949 = vmatpush.msrb.mxu3 %v7888_v43  ;;  %v7894_v17 = vld [vmem:[%s10122_s1 + $0x60] sm:$0xff] }
 0x56e   :  { %11298 = vst [vmem:[#allocation71_spill] sm:$0xff] %v7876_v59  ;;  %1890 = vmatpush.msrb.mxu0 %v7894_v17  ;;  %v7900_v59 = vld [vmem:[%s10122_s1 + $0x68] sm:$0xff] }
 0x56f   :  { %11299 = vst [vmem:[#allocation93_spill] sm:$0xff] %v7882_v57  ;;  %1910 = vmatpush.msrb.mxu1 %v7900_v59  ;;  %v7906_v57 = vld [vmem:[%s10122_s1 + $0x70] sm:$0xff] }
 0x570   :  { %11300 = vst [vmem:[#allocation84_spill] sm:$0xff] %v7888_v43  ;;  %1930 = vmatpush.msrb.mxu2 %v7906_v57  ;;  %v7912_v43 = vld [vmem:[%s10122_s1 + $0x78] sm:$0xff] }
 0x571   :  { %11301 = vst [vmem:[#allocation85_spill] sm:$0xff] %v7894_v17  ;;  %1950 = vmatpush.msrb.mxu3 %v7912_v43  ;;  %v7918_v17 = vld [vmem:[%s10122_s1 + $0x40] sm:$0xff] }
 0x572   :  { %11302 = vst [vmem:[#allocation82_spill] sm:$0xff] %v7900_v59  ;;  %1891 = vmatpush.msrb.mxu0 %v7918_v17  ;;  %v7924_v59 = vld [vmem:[%s10122_s1 + $0x48] sm:$0xff] }
 0x573   :  { %11303 = vst [vmem:[#allocation79_spill] sm:$0xff] %v7906_v57  ;;  %1911 = vmatpush.msrb.mxu1 %v7924_v59  ;;  %v7930_v57 = vld [vmem:[%s10122_s1 + $0x50] sm:$0xff] }
 0x574   :  { %11304 = vst [vmem:[#allocation80_spill] sm:$0xff] %v7912_v43  ;;  %1931 = vmatpush.msrb.mxu2 %v7930_v57  ;;  %v7936_v43 = vld [vmem:[%s10122_s1 + $0x58] sm:$0xff] }
 0x575   :  { %11305 = vst [vmem:[#allocation81_spill] sm:$0xff] %v7918_v17  ;;  %1951 = vmatpush.msrb.mxu3 %v7936_v43  ;;  %v7942_v17 = vld [vmem:[%s10122_s1 + $0x20] sm:$0xff] }
 0x576   :  { %11306 = vst [vmem:[#allocation83_spill] sm:$0xff] %v7924_v59  ;;  %1892 = vmatpush.msrb.mxu0 %v7942_v17  ;;  %v7948_v59 = vld [vmem:[%s10122_s1 + $0x28] sm:$0xff] }
 0x577   :  { %11307 = vst [vmem:[#allocation86_spill] sm:$0xff] %v7930_v57  ;;  %1912 = vmatpush.msrb.mxu1 %v7948_v59  ;;  %v7954_v57 = vld [vmem:[%s10122_s1 + $0x30] sm:$0xff] }
 0x578   :  { %11308 = vst [vmem:[#allocation87_spill] sm:$0xff] %v7936_v43  ;;  %1932 = vmatpush.msrb.mxu2 %v7954_v57  ;;  %v7960_v43 = vld [vmem:[%s10122_s1 + $0x38] sm:$0xff] }
 0x579   :  { %11309 = vst [vmem:[#allocation88_spill] sm:$0xff] %v7942_v17  ;;  %1952 = vmatpush.msrb.mxu3 %v7960_v43  ;;  %v7966_v17 = vld [vmem:[%s10122_s1] sm:$0xff] }
 0x57a   :  { %11310 = vst [vmem:[#allocation89_spill] sm:$0xff] %v7948_v59  ;;  %1893 = vmatpush.msrb.mxu0 %v7966_v17  ;;  %v7972_v59 = vld [vmem:[%s10122_s1 + $0x8] sm:$0xff] }
 0x57b   :  { %11311 = vst [vmem:[#allocation90_spill] sm:$0xff] %v7954_v57  ;;  %1913 = vmatpush.msrb.mxu1 %v7972_v59  ;;  %v7978_v57 = vld [vmem:[%s10122_s1 + $0x10] sm:$0xff] }
 0x57c   :  { %11312 = vst [vmem:[#allocation91_spill] sm:$0xff] %v7960_v43  ;;  %1933 = vmatpush.msrb.mxu2 %v7978_v57  ;;  %v7984_v43 = vld [vmem:[%s10122_s1 + $0x18] sm:$0xff] }
 0x57d   :  { %11313 = vst [vmem:[#allocation92_spill] sm:$0xff] %v7966_v17  ;;  %1953 = vmatpush.msrb.mxu3 %v7984_v43 }
 0x57e   :  { %11314 = vst [vmem:[#allocation94_spill] sm:$0xff] %v7972_v59 }
 0x57f   :  { %11315 = vst [vmem:[#allocation95_spill] sm:$0xff] %v7978_v57 }
 0x580   :  { %11316 = vst [vmem:[#allocation96_spill] sm:$0xff] %v7984_v43 }
 0x5ca   :  { %v1666_v17 = vpop.f32.mrf.mxu0  ;;  %v1686_v45 = vpop.f32.mrf.mxu1 }
 0x5cb   :  { %v1667_v58 = vadd.f32 %v1666_v17, %v7581_v63  ;;  %v1687_v59 = vadd.f32 %v1686_v45, %v7579_v33 }
 0x5cd   :  { %v1729_v21 = vadd.f32 %v1667_v58, %v11181_v20  ;;  %v1730_v28 = vadd.f32 %v1687_v59, %v11182_v32 }
 0x5cf   :  { %v3430_v6 = vmul.f32 -1.442695, %v1729_v21  ;;  %v3431_v36 = vmul.f32 -1.442695, %v1730_v28 }
 0x5d1   :  { %3575 = vpow2.f32 %v3430_v6  ;;  %v1726_v57 = vpop.f32.mrf.mxu3  ;;  %v1706_v33 = vpop.f32.mrf.mxu2 }
 0x5d2   :  { %3577 = vpow2.f32 %v3431_v36  ;;  %v1727_v54 = vadd.f32 %v1726_v57, %v7585_v23  ;;  %v1707_v58 = vadd.f32 %v1706_v33, %v7583_v31 }
 0x5d4   :  { %v1732_v53 = vadd.f32 %v1727_v54, %v11183_v24  ;;  %v1731_v36 = vadd.f32 %v1707_v58, %v11184_v29 }
 0x5d6   :  { %v3432_v43 = vmul.f32 -1.442695, %v1732_v53 }
 0x5d7   :  { %v3576_v62 = vpop.eup %3575 }
 0x5d8   :  { %v3578_v12 = vpop.eup %3577  ;;  %v1736_v52 = vadd.f32 1.0, %v3576_v62  ;;  %3579 = vpow2.f32 %v3432_v43 }
 0x5d9   :  { %v1755_v63 = vadd.f32 1.0, %v3578_v12 }
 0x5da   :  { %3581 = vrcp.f32 %v1736_v52  ;;  %v1748_v57 = vand.u32 2147483648, %v1736_v52  ;;  %v1746_v43 = vand.u32 2147483647, %v1736_v52  ;;  %vm1742_vm11 = vweird.f32 %v1736_v52 }
 0x5db   :  { %3583 = vrcp.f32 %v1755_v63  ;;  %v1767_v62 = vand.u32 2147483648, %v1755_v63  ;;  %v1765_v31 = vand.u32 2147483647, %v1755_v63  ;;  %vm1761_vm12 = vweird.f32 %v1755_v63 }
 0x5dc   :  { %v1749_v58 = vor.u32 1.1754944e-38, %v1748_v57  ;;  %vm1747_vm15 = vcmp.eq.f32.partialorder %v1746_v43, 8.507059e+37 }
 0x5dd   :  { %vm1766_vm3 = vcmp.eq.f32.partialorder %v1765_v31, 8.507059e+37  ;;  %v8044_v31 = vld [vmem:[%s10123_s2 + $0x1d8] sm:$0xff] }
 0x5de   :  { %v3580_v21 = vpop.eup %3579 }
 0x5df   :  { %v1775_v28 = vadd.f32 1.0, %v3580_v21 }
 0x5e0   :  { %v3582_v6 = vpop.eup %3581 }
 0x5e1   :  { %v3584_v45 = vpop.eup %3583  ;;  %v1738_v23 = vmul.f32 %v3582_v6, %v1736_v52  ;;  %3585 = vrcp.f32 %v1775_v28  ;;  %vm1743_vm9 = vweird.f32 %v3582_v6  ;;  %v1787_v57 = vand.u32 2147483648, %v1775_v28 }
 0x5e2   :  { %v1757_v54 = vmul.f32 %v3584_v45, %v1755_v63  ;;  %3587 = vtanh.f32 %v1731_v36  ;;  %vm1762_vm10 = vweird.f32 %v3584_v45  ;;  %vm1744_vm13 = vmor %vm1742_vm11, %vm1743_vm9  ;;  %vm1781_vm5 = vweird.f32 %v1775_v28 }
 0x5e3   :  { %v1739_v53 = vsub.f32 1.0, %v1738_v23  ;;  %vm1763_vm14 = vmor %vm1761_vm12, %vm1762_vm10  ;;  %v1768_v23 = vor.u32 1.1754944e-38, %v1767_v62  ;;  %v1788_v43 = vor.u32 1.1754944e-38, %v1787_v57  ;;  %v8120_v57 = vld [vmem:[%s10123_s2 + $0x178] sm:$0xff] }
 0x5e4   :  { %v1758_v59 = vsub.f32 1.0, %v1757_v54 }
 0x5e5   :  { %v1740_v12 = vmul.f32 %v3582_v6, %v1739_v53 }
 0x5e6   :  { %v1759_v17 = vmul.f32 %v3584_v45, %v1758_v59 }
 0x5e7   :  { %v3586_v33 = vpop.eup %3585  ;;  %v1741_v21 = vadd.f32 %v3582_v6, %v1740_v12 }
 0x5e8   :  { %v1760_v29 = vadd.f32 %v3584_v45, %v1759_v17  ;;  %v1777_v24 = vmul.f32 %v3586_v33, %v1775_v28  ;;  %v3588_v36 = vpop.eup %3587  ;;  %vm1782_vm4 = vweird.f32 %v3586_v33  ;;  %v8038_v17 = vld [vmem:[%s10123_s2 + $0x1d0] sm:$0xff] }
 0x5e9   :  { %v1745_v54 = vsel %vm1744_vm13, %v3582_v6, %v1741_v21  ;;  %v1785_v6 = vand.u32 2147483647, %v1775_v28  ;;  %vm1783_vm6 = vmor %vm1781_vm5, %vm1782_vm4  ;;  %v8032_v28 = vld [vmem:[%s10123_s2 + $0x1c8] sm:$0xff] }
 0x5ea   :  { %v1750_v32 = vsel %vm1747_vm15, %v1749_v58, %v1745_v54  ;;  %v1764_v53 = vsel %vm1763_vm14, %v3584_v45, %v1760_v29  ;;  %v1778_v20 = vsub.f32 1.0, %v1777_v24  ;;  %v8056_v21 = vld [vmem:[%s10123_s2 + $0x1a8] sm:$0xff]  ;;  %v8062_v58 = vld [vmem:[%s10123_s2 + $0x1b0] sm:$0xff]  ;;  %v8078_v54 = vld [vmem:[%s10123_s2 + $0x180] sm:$0xff] }
 0x5eb   :  { %v1769_v59 = vsel %vm1766_vm3, %v1768_v23, %v1764_v53  ;;  %v1792_v22 = vmul.f32 %v3588_v36, %v1750_v32  ;;  %vm1786_vm7 = vcmp.eq.f32.partialorder %v1785_v6, 8.507059e+37  ;;  %v8008_v32 = vld [vmem:[%s10123_s2 + $0x1e8] sm:$0xff]  ;;  %v8068_v23 = vld [vmem:[%s10123_s2 + $0x1b8] sm:$0xff]  ;;  %v8090_v53 = vld [vmem:[%s10123_s2 + $0x190] sm:$0xff] }
 0x5ec   :  { %v1791_v55 = vmul.f32 %v1769_v59, %v7124_v3  ;;  %v1779_v12 = vmul.f32 %v3586_v33, %v1778_v20  ;;  %v8002_v20 = vld [vmem:[%s10123_s2 + $0x1e0] sm:$0xff]  ;;  %v8014_v3 = vld [vmem:[%s10123_s2 + $0x1f0] sm:$0xff]  ;;  %v8084_v36 = vld [vmem:[%s10123_s2 + $0x188] sm:$0xff] }
 0x5ed   :  { %v8102_v59 = vld [vmem:[%s10123_s2 + $0x160] sm:$0xff] }
 0x5ee   :  { %v7996_v52 = vadd.f32 %v1792_v22, %v1791_v55  ;;  %v1780_v63 = vadd.f32 %v3586_v33, %v1779_v12  ;;  %v8020_v55 = vld [vmem:[%s10123_s2 + $0x1f8] sm:$0xff]  ;;  %v8026_v22 = vld [vmem:[%s10123_s2 + $0x1c0] sm:$0xff]  ;;  %v8108_v12 = vld [vmem:[%s10123_s2 + $0x168] sm:$0xff] }
 0x5ef   :  { %v8126_v6 = vld [vmem:[%s10123_s2 + $0x140] sm:$0xff] }
 0x5f0   :  { %3589 = vtanh.f32 %v7996_v52  ;;  %v1784_v62 = vsel %vm1783_vm6, %v3586_v33, %v1780_v63  ;;  %v8050_v33 = vld [vmem:[%s10123_s2 + $0x1a0] sm:$0xff]  ;;  %v8114_v63 = vld [vmem:[%s10123_s2 + $0x170] sm:$0xff] }
 0x5f1   :  { %v1789_v24 = vsel %vm1786_vm7, %v1788_v43, %v1784_v62  ;;  %v8132_v62 = vld [vmem:[%s10123_s2 + $0x148] sm:$0xff]  ;;  %v8138_v43 = vld [vmem:[%s10123_s2 + $0x150] sm:$0xff] }
 0x5f2   :  { %11317 = vst [vmem:[#allocation97_spill] sm:$0xff] %v8138_v43 }
 0x5f6   :  { %v3590_v29 = vpop.eup %3589 }
 0x5f7   :  { %v1795_v45 = vmul.f32 %v3590_v29, %v1789_v24  ;;  %v8144_v29 = vld [vmem:[%s10123_s2 + $0x158] sm:$0xff]  ;;  %v8150_v24 = vld [vmem:[%s10123_s2 + $0x120] sm:$0xff] }
 0x5f8   :  { %11318 = vst [vmem:[#allocation98_spill] sm:$0xff] %v8144_v29 }
 0x5f9   :  { %1812 = vmatmul.f32.vlgmr.msra.gmra.mxu0 %v1795_v45  ;;  %1832 = vmatmul.f32.vlgmr.msra.gmra.mxu1 %v1795_v45  ;;  %11319 = vst [vmem:[#allocation99_spill] sm:$0xff] %v8150_v24 }
 0x5fa   :  { %1852 = vmatmul.f32.vlgmr.msra.gmra.mxu2 %v1795_v45  ;;  %1872 = vmatmul.f32.vlgmr.msra.gmra.mxu3 %v1795_v45  ;;  %v8156_v45 = vld [vmem:[%s10123_s2 + $0x128] sm:$0xff] }
 0x5fb   :  { %2040 = vmatpush.msra.mxu0 %v8002_v20  ;;  %2060 = vmatpush.msra.mxu1 %v8008_v32  ;;  %11320 = vst [vmem:[#allocation100_spill] sm:$0xff] %v8156_v45 }
 0x5fc   :  { %2080 = vmatpush.msra.mxu2 %v8014_v3  ;;  %2100 = vmatpush.msra.mxu3 %v8020_v55 }
 0x5fd   :  { %2041 = vmatpush.msra.mxu0 %v8026_v22  ;;  %2061 = vmatpush.msra.mxu1 %v8032_v28 }
 0x5fe   :  { %2081 = vmatpush.msra.mxu2 %v8038_v17  ;;  %2101 = vmatpush.msra.mxu3 %v8044_v31 }
 0x5ff   :  { %2042 = vmatpush.msra.mxu0 %v8050_v33  ;;  %2062 = vmatpush.msra.mxu1 %v8056_v21 }
 0x600   :  { %2082 = vmatpush.msra.mxu2 %v8062_v58  ;;  %2102 = vmatpush.msra.mxu3 %v8068_v23 }
 0x601   :  { %1894 = vmatmul.f32.vlgmr.msrb.gmra.mxu0 %v7597_v16  ;;  %1914 = vmatmul.f32.vlgmr.msrb.gmra.mxu1 %v7597_v16 }
 0x602   :  { %1934 = vmatmul.f32.vlgmr.msrb.gmra.mxu2 %v7597_v16  ;;  %1954 = vmatmul.f32.vlgmr.msrb.gmra.mxu3 %v7597_v16  ;;  %v8096_v16 = vld [vmem:[%s10123_s2 + $0x198] sm:$0xff] }
 0x603   :  { %2043 = vmatpush.msra.mxu0 %v8078_v54  ;;  %2063 = vmatpush.msra.mxu1 %v8084_v36 }
 0x604   :  { %2083 = vmatpush.msra.mxu2 %v8090_v53  ;;  %2103 = vmatpush.msra.mxu3 %v8096_v16 }
 0x605   :  { %2044 = vmatpush.msra.mxu0 %v8102_v59  ;;  %2064 = vmatpush.msra.mxu1 %v8108_v12 }
 0x606   :  { %2084 = vmatpush.msra.mxu2 %v8114_v63  ;;  %2104 = vmatpush.msra.mxu3 %v8120_v57 }
 0x607   :  { %2045 = vmatpush.msra.mxu0 %v8126_v6  ;;  %2065 = vmatpush.msra.mxu1 %v8132_v62 }
 0x608   :  { %2085 = vmatpush.msra.mxu2 %v8138_v43  ;;  %2105 = vmatpush.msra.mxu3 %v8144_v29  ;;  %v8162_v43 = vld [vmem:[%s10123_s2 + $0x130] sm:$0xff]  ;;  %v8168_v29 = vld [vmem:[%s10123_s2 + $0x138] sm:$0xff] }
 0x609   :  { %2046 = vmatpush.msra.mxu0 %v8150_v24  ;;  %2066 = vmatpush.msra.mxu1 %v8156_v45  ;;  %11321 = vst [vmem:[#allocation101_spill] sm:$0xff] %v8162_v43  ;;  %v8174_v24 = vld [vmem:[%s10123_s2 + $0x100] sm:$0xff]  ;;  %v8180_v45 = vld [vmem:[%s10123_s2 + $0x108] sm:$0xff] }
 0x60a   :  { %2086 = vmatpush.msra.mxu2 %v8162_v43  ;;  %11322 = vst [vmem:[#allocation102_spill] sm:$0xff] %v8168_v29  ;;  %2106 = vmatpush.msra.mxu3 %v8168_v29  ;;  %v8186_v43 = vld [vmem:[%s10123_s2 + $0x110] sm:$0xff]  ;;  %v8192_v29 = vld [vmem:[%s10123_s2 + $0x118] sm:$0xff] }
 0x60b   :  { %11323 = vst [vmem:[#allocation103_spill] sm:$0xff] %v8174_v24  ;;  %2047 = vmatpush.msra.mxu0 %v8174_v24  ;;  %2067 = vmatpush.msra.mxu1 %v8180_v45  ;;  %v8198_v24 = vld [vmem:[%s10123_s2 + $0xe0] sm:$0xff] }
 0x60c   :  { %11324 = vst [vmem:[#allocation104_spill] sm:$0xff] %v8180_v45  ;;  %2087 = vmatpush.msra.mxu2 %v8186_v43  ;;  %2107 = vmatpush.msra.mxu3 %v8192_v29  ;;  %v8204_v45 = vld [vmem:[%s10123_s2 + $0xe8] sm:$0xff] }
 0x60d   :  { %11325 = vst [vmem:[#allocation105_spill] sm:$0xff] %v8186_v43  ;;  %2048 = vmatpush.msra.mxu0 %v8198_v24  ;;  %2068 = vmatpush.msra.mxu1 %v8204_v45  ;;  %v8210_v43 = vld [vmem:[%s10123_s2 + $0xf0] sm:$0xff] }
 0x60e   :  { %11326 = vst [vmem:[#allocation106_spill] sm:$0xff] %v8192_v29  ;;  %2088 = vmatpush.msra.mxu2 %v8210_v43  ;;  %v8216_v29 = vld [vmem:[%s10123_s2 + $0xf8] sm:$0xff] }
 0x60f   :  { %11327 = vst [vmem:[#allocation107_spill] sm:$0xff] %v8198_v24  ;;  %2108 = vmatpush.msra.mxu3 %v8216_v29  ;;  %v8222_v24 = vld [vmem:[%s10123_s2 + $0xc0] sm:$0xff] }
 0x610   :  { %11328 = vst [vmem:[#allocation108_spill] sm:$0xff] %v8204_v45  ;;  %2049 = vmatpush.msra.mxu0 %v8222_v24  ;;  %v8228_v45 = vld [vmem:[%s10123_s2 + $0xc8] sm:$0xff] }
 0x611   :  { %11329 = vst [vmem:[#allocation109_spill] sm:$0xff] %v8210_v43  ;;  %2069 = vmatpush.msra.mxu1 %v8228_v45  ;;  %v8234_v43 = vld [vmem:[%s10123_s2 + $0xd0] sm:$0xff] }
 0x612   :  { %11330 = vst [vmem:[#allocation110_spill] sm:$0xff] %v8216_v29  ;;  %2089 = vmatpush.msra.mxu2 %v8234_v43  ;;  %v8240_v29 = vld [vmem:[%s10123_s2 + $0xd8] sm:$0xff] }
 0x613   :  { %11331 = vst [vmem:[#allocation111_spill] sm:$0xff] %v8222_v24  ;;  %2109 = vmatpush.msra.mxu3 %v8240_v29  ;;  %v8246_v24 = vld [vmem:[%s10123_s2 + $0xa0] sm:$0xff] }
 0x614   :  { %11332 = vst [vmem:[#allocation112_spill] sm:$0xff] %v8228_v45  ;;  %2050 = vmatpush.msra.mxu0 %v8246_v24  ;;  %v8252_v45 = vld [vmem:[%s10123_s2 + $0xa8] sm:$0xff] }
 0x615   :  { %11333 = vst [vmem:[#allocation113_spill] sm:$0xff] %v8234_v43  ;;  %2070 = vmatpush.msra.mxu1 %v8252_v45  ;;  %v8258_v43 = vld [vmem:[%s10123_s2 + $0xb0] sm:$0xff] }
 0x616   :  { %11334 = vst [vmem:[#allocation114_spill] sm:$0xff] %v8240_v29  ;;  %2090 = vmatpush.msra.mxu2 %v8258_v43  ;;  %v8264_v29 = vld [vmem:[%s10123_s2 + $0xb8] sm:$0xff] }
 0x617   :  { %11335 = vst [vmem:[#allocation115_spill] sm:$0xff] %v8246_v24  ;;  %2110 = vmatpush.msra.mxu3 %v8264_v29  ;;  %v8270_v24 = vld [vmem:[%s10123_s2 + $0x80] sm:$0xff] }
 0x618   :  { %11336 = vst [vmem:[#allocation116_spill] sm:$0xff] %v8252_v45  ;;  %2051 = vmatpush.msra.mxu0 %v8270_v24  ;;  %v8276_v45 = vld [vmem:[%s10123_s2 + $0x88] sm:$0xff] }
 0x619   :  { %11337 = vst [vmem:[#allocation117_spill] sm:$0xff] %v8258_v43  ;;  %2071 = vmatpush.msra.mxu1 %v8276_v45  ;;  %v8282_v43 = vld [vmem:[%s10123_s2 + $0x90] sm:$0xff] }
 0x61a   :  { %11338 = vst [vmem:[#allocation118_spill] sm:$0xff] %v8264_v29  ;;  %2091 = vmatpush.msra.mxu2 %v8282_v43  ;;  %v8288_v29 = vld [vmem:[%s10123_s2 + $0x98] sm:$0xff] }
 0x61b   :  { %11339 = vst [vmem:[#allocation119_spill] sm:$0xff] %v8270_v24  ;;  %2111 = vmatpush.msra.mxu3 %v8288_v29  ;;  %v8294_v24 = vld [vmem:[%s10123_s2 + $0x60] sm:$0xff] }
 0x61c   :  { %11340 = vst [vmem:[#allocation120_spill] sm:$0xff] %v8276_v45  ;;  %2052 = vmatpush.msra.mxu0 %v8294_v24  ;;  %v8300_v45 = vld [vmem:[%s10123_s2 + $0x68] sm:$0xff] }
 0x61d   :  { %11341 = vst [vmem:[#allocation121_spill] sm:$0xff] %v8282_v43  ;;  %2072 = vmatpush.msra.mxu1 %v8300_v45  ;;  %v8306_v43 = vld [vmem:[%s10123_s2 + $0x70] sm:$0xff] }
 0x61e   :  { %11342 = vst [vmem:[#allocation122_spill] sm:$0xff] %v8288_v29  ;;  %2092 = vmatpush.msra.mxu2 %v8306_v43  ;;  %v8312_v29 = vld [vmem:[%s10123_s2 + $0x78] sm:$0xff] }
 0x61f   :  { %11343 = vst [vmem:[#allocation123_spill] sm:$0xff] %v8294_v24  ;;  %2112 = vmatpush.msra.mxu3 %v8312_v29  ;;  %v8318_v24 = vld [vmem:[%s10123_s2 + $0x40] sm:$0xff] }
 0x620   :  { %11344 = vst [vmem:[#allocation124_spill] sm:$0xff] %v8300_v45  ;;  %2053 = vmatpush.msra.mxu0 %v8318_v24  ;;  %v8324_v45 = vld [vmem:[%s10123_s2 + $0x48] sm:$0xff] }
 0x621   :  { %11345 = vst [vmem:[#allocation125_spill] sm:$0xff] %v8306_v43  ;;  %2073 = vmatpush.msra.mxu1 %v8324_v45  ;;  %v8330_v43 = vld [vmem:[%s10123_s2 + $0x50] sm:$0xff] }
 0x622   :  { %11346 = vst [vmem:[#allocation126_spill] sm:$0xff] %v8312_v29  ;;  %2093 = vmatpush.msra.mxu2 %v8330_v43  ;;  %v8336_v29 = vld [vmem:[%s10123_s2 + $0x58] sm:$0xff] }
 0x623   :  { %11347 = vst [vmem:[#allocation127_spill] sm:$0xff] %v8318_v24  ;;  %2113 = vmatpush.msra.mxu3 %v8336_v29  ;;  %v8342_v24 = vld [vmem:[%s10123_s2 + $0x20] sm:$0xff] }
 0x624   :  { %11348 = vst [vmem:[#allocation128_spill] sm:$0xff] %v8324_v45  ;;  %2054 = vmatpush.msra.mxu0 %v8342_v24  ;;  %v8348_v45 = vld [vmem:[%s10123_s2 + $0x28] sm:$0xff] }
 0x625   :  { %11349 = vst [vmem:[#allocation129_spill] sm:$0xff] %v8330_v43  ;;  %2074 = vmatpush.msra.mxu1 %v8348_v45  ;;  %v8354_v43 = vld [vmem:[%s10123_s2 + $0x30] sm:$0xff] }
 0x626   :  { %11350 = vst [vmem:[#allocation130_spill] sm:$0xff] %v8336_v29  ;;  %2094 = vmatpush.msra.mxu2 %v8354_v43  ;;  %v8360_v29 = vld [vmem:[%s10123_s2 + $0x38] sm:$0xff] }
 0x627   :  { %11351 = vst [vmem:[#allocation131_spill] sm:$0xff] %v8342_v24  ;;  %2114 = vmatpush.msra.mxu3 %v8360_v29  ;;  %v8366_v24 = vld [vmem:[%s10123_s2] sm:$0xff] }
 0x628   :  { %11352 = vst [vmem:[#allocation132_spill] sm:$0xff] %v8348_v45  ;;  %2055 = vmatpush.msra.mxu0 %v8366_v24  ;;  %v8372_v45 = vld [vmem:[%s10123_s2 + $0x8] sm:$0xff] }
 0x629   :  { %11353 = vst [vmem:[#allocation133_spill] sm:$0xff] %v8354_v43  ;;  %2075 = vmatpush.msra.mxu1 %v8372_v45  ;;  %v8378_v43 = vld [vmem:[%s10123_s2 + $0x10] sm:$0xff] }
 0x62a   :  { %11354 = vst [vmem:[#allocation134_spill] sm:$0xff] %v8360_v29  ;;  %2095 = vmatpush.msra.mxu2 %v8378_v43  ;;  %v8384_v29 = vld [vmem:[%s10123_s2 + $0x18] sm:$0xff]  ;;  %2187 = vmatpush.msrb.mxu0 %v7198_v34  ;;  %v11357_v34 = vld [vmem:[#allocation139_spill] sm:$0xff] }
 0x62b   :  { %11355 = vst [vmem:[#allocation135_spill] sm:$0xff] %v8378_v43  ;;  %2115 = vmatpush.msra.mxu3 %v8384_v29  ;;  %2207 = vmatpush.msrb.mxu1 %v7204_v11  ;;  %v11358_v11 = vld [vmem:[#allocation140_spill] sm:$0xff] }
 0x62c   :  { %11356 = vst [vmem:[#allocation136_spill] sm:$0xff] %v8384_v29  ;;  %2227 = vmatpush.msrb.mxu2 %v7210_v10  ;;  %2188 = vmatpush.msrb.mxu0 %v7222_v47  ;;  %v11359_v10 = vld [vmem:[#allocation14_spill] sm:$0xff]  ;;  %v11361_v47 = vld [vmem:[#allocation5_spill] sm:$0xff] }
 0x62d   :  { %2247 = vmatpush.msrb.mxu3 %v7216_v48  ;;  %2208 = vmatpush.msrb.mxu1 %v7228_v26  ;;  %v11360_v48 = vld [vmem:[#allocation13_spill] sm:$0xff]  ;;  %v11362_v26 = vld [vmem:[#allocation6_spill] sm:$0xff] }
 0x62e   :  { %2228 = vmatpush.msrb.mxu2 %v7234_v41  ;;  %2189 = vmatpush.msrb.mxu0 %v7246_v44  ;;  %v11363_v41 = vld [vmem:[#allocation18_spill] sm:$0xff]  ;;  %v11365_v44 = vld [vmem:[#allocation9_spill] sm:$0xff] }
 0x62f   :  { %2248 = vmatpush.msrb.mxu3 %v7240_v42  ;;  %2209 = vmatpush.msrb.mxu1 %v7252_v18  ;;  %v11364_v42 = vld [vmem:[#allocation17_spill] sm:$0xff]  ;;  %v11366_v18 = vld [vmem:[#allocation10_spill] sm:$0xff] }
 0x630   :  { %2229 = vmatpush.msrb.mxu2 %v7258_v19  ;;  %2190 = vmatpush.msrb.mxu0 %v7270_v56  ;;  %v11367_v19 = vld [vmem:[#allocation22_spill] sm:$0xff]  ;;  %v11369_v56 = vld [vmem:[#allocation11_spill] sm:$0xff] }
 0x631   :  { %2249 = vmatpush.msrb.mxu3 %v7264_v13  ;;  %2210 = vmatpush.msrb.mxu1 %v7276_v51  ;;  %v11368_v13 = vld [vmem:[#allocation21_spill] sm:$0xff]  ;;  %v11370_v51 = vld [vmem:[#allocation12_spill] sm:$0xff] }
 0x632   :  { %2230 = vmatpush.msrb.mxu2 %v7282_v37  ;;  %2191 = vmatpush.msrb.mxu0 %v7294_v25  ;;  %v11371_v37 = vld [vmem:[#allocation26_spill] sm:$0xff]  ;;  %v11373_v25 = vld [vmem:[#allocation15_spill] sm:$0xff] }
 0x633   :  { %2250 = vmatpush.msrb.mxu3 %v7288_v38  ;;  %2211 = vmatpush.msrb.mxu1 %v7300_v40  ;;  %v11372_v38 = vld [vmem:[#allocation25_spill] sm:$0xff]  ;;  %v11374_v40 = vld [vmem:[#allocation16_spill] sm:$0xff] }
 0x634   :  { %2231 = vmatpush.msrb.mxu2 %v7306_v49  ;;  %2192 = vmatpush.msrb.mxu0 %v7318_v0  ;;  %v11375_v49 = vld [vmem:[#allocation30_spill] sm:$0xff]  ;;  %v11377_v0 = vld [vmem:[#allocation19_spill] sm:$0xff] }
 0x635   :  { %2251 = vmatpush.msrb.mxu3 %v7312_v61  ;;  %2212 = vmatpush.msrb.mxu1 %v7324_v1  ;;  %v11376_v61 = vld [vmem:[#allocation29_spill] sm:$0xff]  ;;  %v11378_v1 = vld [vmem:[#allocation20_spill] sm:$0xff] }
 0x636   :  { %2232 = vmatpush.msrb.mxu2 %v7330_v14  ;;  %2193 = vmatpush.msrb.mxu0 %v7342_v5  ;;  %v11379_v14 = vld [vmem:[#allocation34_spill] sm:$0xff]  ;;  %v11381_v5 = vld [vmem:[#allocation23_spill] sm:$0xff] }
 0x637   :  { %2252 = vmatpush.msrb.mxu3 %v7336_v4  ;;  %2213 = vmatpush.msrb.mxu1 %v7348_v60  ;;  %v11380_v4 = vld [vmem:[#allocation33_spill] sm:$0xff]  ;;  %v11382_v60 = vld [vmem:[#allocation24_spill] sm:$0xff] }
 0x638   :  { %2233 = vmatpush.msrb.mxu2 %v7354_v9  ;;  %2194 = vmatpush.msrb.mxu0 %v11357_v34  ;;  %v11383_v9 = vld [vmem:[#allocation38_spill] sm:$0xff]  ;;  %v11385_v34 = vld [vmem:[#allocation27_spill] sm:$0xff] }
 0x639   :  { %2253 = vmatpush.msrb.mxu3 %v7360_v15  ;;  %2214 = vmatpush.msrb.mxu1 %v11358_v11  ;;  %v11384_v15 = vld [vmem:[#allocation37_spill] sm:$0xff]  ;;  %v11386_v11 = vld [vmem:[#allocation28_spill] sm:$0xff] }
 0x63a   :  { %2234 = vmatpush.msrb.mxu2 %v11359_v10  ;;  %2195 = vmatpush.msrb.mxu0 %v11361_v47  ;;  %v11387_v10 = vld [vmem:[#allocation42_spill] sm:$0xff]  ;;  %v11389_v47 = vld [vmem:[#allocation31_spill] sm:$0xff] }
 0x63b   :  { %2254 = vmatpush.msrb.mxu3 %v11360_v48  ;;  %2215 = vmatpush.msrb.mxu1 %v11362_v26  ;;  %v11388_v48 = vld [vmem:[#allocation41_spill] sm:$0xff]  ;;  %v11390_v26 = vld [vmem:[#allocation32_spill] sm:$0xff] }
 0x63c   :  { %2235 = vmatpush.msrb.mxu2 %v11363_v41  ;;  %2196 = vmatpush.msrb.mxu0 %v11365_v44  ;;  %v11391_v41 = vld [vmem:[#allocation46_spill] sm:$0xff] }
 0x63d   :  { %2255 = vmatpush.msrb.mxu3 %v11364_v42  ;;  %2216 = vmatpush.msrb.mxu1 %v11366_v18  ;;  %v11392_v42 = vld [vmem:[#allocation45_spill] sm:$0xff] }
 0x63e   :  { %2236 = vmatpush.msrb.mxu2 %v11367_v19  ;;  %2197 = vmatpush.msrb.mxu0 %v11369_v56 }
 0x63f   :  { %2256 = vmatpush.msrb.mxu3 %v11368_v13  ;;  %2217 = vmatpush.msrb.mxu1 %v11370_v51 }
 0x640   :  { %2237 = vmatpush.msrb.mxu2 %v11371_v37  ;;  %2198 = vmatpush.msrb.mxu0 %v11373_v25 }
 0x641   :  { %2257 = vmatpush.msrb.mxu3 %v11372_v38  ;;  %2218 = vmatpush.msrb.mxu1 %v11374_v40 }
 0x642   :  { %2238 = vmatpush.msrb.mxu2 %v11375_v49  ;;  %2199 = vmatpush.msrb.mxu0 %v11377_v0 }
 0x643   :  { %2258 = vmatpush.msrb.mxu3 %v11376_v61  ;;  %2219 = vmatpush.msrb.mxu1 %v11378_v1  ;;  %v3433_v61 = vld [vmem:[%s10124_s0 + $0x20] sm:$0xff] }
 0x644   :  { %2239 = vmatpush.msrb.mxu2 %v11379_v14  ;;  %2200 = vmatpush.msrb.mxu0 %v11381_v5 }
 0x645   :  { %2259 = vmatpush.msrb.mxu3 %v11380_v4  ;;  %2220 = vmatpush.msrb.mxu1 %v11382_v60 }
 0x646   :  { %2240 = vmatpush.msrb.mxu2 %v11383_v9  ;;  %2201 = vmatpush.msrb.mxu0 %v11385_v34 }
 0x647   :  { %2260 = vmatpush.msrb.mxu3 %v11384_v15  ;;  %2221 = vmatpush.msrb.mxu1 %v11386_v11 }
 0x648   :  { %2241 = vmatpush.msrb.mxu2 %v11387_v10  ;;  %2202 = vmatpush.msrb.mxu0 %v11389_v47 }
 0x649   :  { %2261 = vmatpush.msrb.mxu3 %v11388_v48  ;;  %2222 = vmatpush.msrb.mxu1 %v11390_v26 }
 0x64a   :  { %2242 = vmatpush.msrb.mxu2 %v11391_v41 }
 0x64b   :  { %2262 = vmatpush.msrb.mxu3 %v11392_v42 }
 0x676   :  { %v8451_v44 = vpop.f32.mrf.mxu1  ;;  %v8453_v18 = vpop.f32.mrf.mxu0 }
 0x67d   :  { %v8455_v19 = vpop.f32.mrf.mxu2  ;;  %v8457_v13 = vpop.f32.mrf.mxu3 }
 0x67e   :  { %v1915_v56 = vpop.f32.mrf.mxu1  ;;  %v1895_v49 = vpop.f32.mrf.mxu0 }
 0x67f   :  { %v1962_v51 = vrot.slane %v1915_v56, 6 }
 0x681   :  { %v1965_v0 = vsel %vm398_vm1, %v1895_v49, %v1962_v51 }
 0x685   :  { %v1935_v37 = vpop.f32.mrf.mxu2  ;;  %v1955_v38 = vpop.f32.mrf.mxu3 }
 0x686   :  { %v1963_v25 = vrot.slane %v1935_v37, 4  ;;  %v1964_v40 = vrot.slane %v1955_v38, 2 }
 0x688   :  { %v1966_v1 = vsel %vm400_vm0, %v1963_v25, %v1964_v40 }
 0x689   :  { %v1967_v14 = vsel %vm402_vm2, %v1965_v0, %v1966_v1 }
 0x68a   :  { %v1969_v4 = vadd.f32 %v3433_v61, %v1967_v14 }
 0x68c   :  { %v3434_v5 = vmul.f32 -1.442695, %v1969_v4  ;;  %v1990_v60 = vrot.slane %v1969_v4, 2  ;;  %v2014_v9 = vrot.slane %v1969_v4, 6  ;;  %v2011_v38 = vrot.slane %v1969_v4, 4 }
 0x68e   :  { %3591 = vpow2.f32 %v3434_v5  ;;  %v3435_v15 = vmul.f32 -1.442695, %v1990_v60  ;;  %v3436_v34 = vmul.f32 -1.442695, %v2014_v9 }
 0x690   :  { %3593 = vpow2.f32 %v3435_v15 }
 0x691   :  { %3595 = vpow2.f32 %v3436_v34 }
 0x694   :  { %v3592_v11 = vpop.eup %3591 }
 0x695   :  { %v1973_v10 = vadd.f32 1.0, %v3592_v11 }
 0x696   :  { %v3594_v48 = vpop.eup %3593 }
 0x697   :  { %v3596_v47 = vpop.eup %3595  ;;  %3597 = vrcp.f32 %v1973_v10  ;;  %v1995_v26 = vadd.f32 1.0, %v3594_v48  ;;  %v1985_v61 = vand.u32 2147483648, %v1973_v10  ;;  %v1983_v1 = vand.u32 2147483647, %v1973_v10 }
 0x698   :  { %v2019_v41 = vadd.f32 1.0, %v3596_v47  ;;  %vm1979_vm9 = vweird.f32 %v1973_v10 }
 0x699   :  { %3599 = vrcp.f32 %v1995_v26  ;;  %v2007_v60 = vand.u32 2147483648, %v1995_v26  ;;  %v2005_v15 = vand.u32 2147483647, %v1995_v26  ;;  %v1986_v11 = vor.u32 1.1754944e-38, %v1985_v61 }
 0x69a   :  { %3601 = vrcp.f32 %v2019_v41  ;;  %vm1984_vm12 = vcmp.eq.f32.partialorder %v1983_v1, 8.507059e+37  ;;  %vm2001_vm13 = vweird.f32 %v1995_v26  ;;  %vm2025_vm4 = vweird.f32 %v2019_v41 }
 0x69b   :  { %3603 = vtanh.f32 %v2011_v38  ;;  %vm2006_vm15 = vcmp.eq.f32.partialorder %v2005_v15, 8.507059e+37  ;;  %v11408_v15 = vld [vmem:[#allocation61_spill] sm:$0xff] }
 0x69d   :  { %v3598_v42 = vpop.eup %3597 }
 0x69e   :  { %v1975_v56 = vmul.f32 %v3598_v42, %v1973_v10  ;;  %vm1980_vm8 = vweird.f32 %v3598_v42 }
 0x69f   :  { %v3600_v51 = vpop.eup %3599  ;;  %vm1981_vm10 = vmor %vm1979_vm9, %vm1980_vm8 }
 0x6a0   :  { %v1976_v37 = vsub.f32 1.0, %v1975_v56  ;;  %v3602_v25 = vpop.eup %3601  ;;  %v1997_v40 = vmul.f32 %v3600_v51, %v1995_v26  ;;  %vm2002_vm11 = vweird.f32 %v3600_v51  ;;  %v2008_v56 = vor.u32 1.1754944e-38, %v2007_v60  ;;  %v11406_v60 = vld [vmem:[#allocation48_spill] sm:$0xff] }
 0x6a1   :  { %v2021_v0 = vmul.f32 %v3602_v25, %v2019_v41  ;;  %vm2003_vm14 = vmor %vm2001_vm13, %vm2002_vm11  ;;  %vm2026_vm3 = vweird.f32 %v3602_v25  ;;  %v2029_v26 = vand.u32 2147483647, %v2019_v41 }
 0x6a2   :  { %v1977_v49 = vmul.f32 %v3598_v42, %v1976_v37  ;;  %v1998_v14 = vsub.f32 1.0, %v1997_v40  ;;  %v3604_v40 = vpop.eup %3603  ;;  %vm2027_vm5 = vmor %vm2025_vm4, %vm2026_vm3 }
 0x6a3   :  { %v2022_v48 = vsub.f32 1.0, %v2021_v0  ;;  %vm2030_vm6 = vcmp.eq.f32.partialorder %v2029_v26, 8.507059e+37  ;;  %v11421_v26 = vld [vmem:[#allocation62_spill] sm:$0xff] }
 0x6a4   :  { %v1978_v5 = vadd.f32 %v3598_v42, %v1977_v49  ;;  %v1999_v9 = vmul.f32 %v3600_v51, %v1998_v14 }
 0x6a5   :  { %v2023_v10 = vmul.f32 %v3602_v25, %v2022_v48  ;;  %v11411_v48 = vld [vmem:[#allocation68_spill] sm:$0xff] }
 0x6a6   :  { %v1982_v34 = vsel %vm1981_vm10, %v3598_v42, %v1978_v5  ;;  %v2000_v4 = vadd.f32 %v3600_v51, %v1999_v9  ;;  %v2031_v42 = vand.u32 2147483648, %v2019_v41  ;;  %v11404_v41 = vld [vmem:[#allocation57_spill] sm:$0xff]  ;;  %v11407_v9 = vld [vmem:[#allocation64_spill] sm:$0xff] }
 0x6a7   :  { %v1987_v47 = vsel %vm1984_vm12, %v1986_v11, %v1982_v34  ;;  %v2024_v43 = vadd.f32 %v3602_v25, %v2023_v10  ;;  %v11409_v34 = vld [vmem:[#allocation51_spill] sm:$0xff]  ;;  %v11410_v11 = vld [vmem:[#allocation52_spill] sm:$0xff] }
 0x6a8   :  { %v2004_v37 = vsel %vm2003_vm14, %v3600_v51, %v2000_v4  ;;  %v2036_v29 = vmul.f32 %v3604_v40, %v1987_v47  ;;  %v2032_v0 = vor.u32 1.1754944e-38, %v2031_v42  ;;  %v11412_v4 = vld [vmem:[#allocation65_spill] sm:$0xff]  ;;  %v11413_v47 = vld [vmem:[#allocation54_spill] sm:$0xff]  ;;  %v11418_v10 = vld [vmem:[#allocation59_spill] sm:$0xff] }
 0x6a9   :  { %v2009_v49 = vsel %vm2006_vm15, %v2008_v56, %v2004_v37  ;;  %v2028_v61 = vsel %vm2027_vm5, %v3602_v25, %v2024_v43  ;;  %v11394_v43 = vld [vmem:[#allocation36_spill] sm:$0xff]  ;;  %v11405_v25 = vld [vmem:[#allocation47_spill] sm:$0xff]  ;;  %v11416_v40 = vld [vmem:[#allocation69_spill] sm:$0xff] }
 0x6aa   :  { %v2035_v38 = vmul.f32 %v2009_v49, %v7594_v30  ;;  %v2033_v1 = vsel %vm2030_vm6, %v2032_v0, %v2028_v61  ;;  %v11393_v30 = vld [vmem:[#allocation35_spill] sm:$0xff]  ;;  %v11415_v37 = vld [vmem:[#allocation72_spill] sm:$0xff]  ;;  %v11417_v49 = vld [vmem:[#allocation58_spill] sm:$0xff] }
 0x6ab   :  { %v11414_v56 = vld [vmem:[#allocation55_spill] sm:$0xff]  ;;  %v11420_v42 = vld [vmem:[#allocation73_spill] sm:$0xff]  ;;  %v11423_v0 = vld [vmem:[#allocation76_spill] sm:$0xff] }
 0x6ac   :  { %v8466_v14 = vadd.f32 %v2036_v29, %v2035_v38  ;;  %v11395_v29 = vld [vmem:[#allocation50_spill] sm:$0xff]  ;;  %v11422_v61 = vld [vmem:[#allocation63_spill] sm:$0xff] }
 0x6ad   :  { %v11419_v38 = vld [vmem:[#allocation74_spill] sm:$0xff] }
 0x6ae   :  { %3605 = vtanh.f32 %v8466_v14 }
 0x6b4   :  { %v3606_v51 = vpop.eup %3605 }
 0x6b5   :  { %v8469_v5 = vmul.f32 %v3606_v51, %v2033_v1  ;;  %v11424_v51 = vld [vmem:[#allocation75_spill] sm:$0xff]  ;;  %v11425_v1 = vld [vmem:[#allocation66_spill] sm:$0xff] }
 0x6b7   :  { %2056 = vmatmul.f32.vlgmr.msra.gmra.mxu0 %v8469_v5  ;;  %2076 = vmatmul.f32.vlgmr.msra.gmra.mxu1 %v8469_v5 }
 0x6b8   :  { %2096 = vmatmul.f32.vlgmr.msra.gmra.mxu2 %v8469_v5  ;;  %2116 = vmatmul.f32.vlgmr.msra.gmra.mxu3 %v8469_v5 }
 0x6b9   :  { %2269 = vmatpush.msra.mxu0 %v7606_v39  ;;  %2289 = vmatpush.msra.mxu1 %v7612_v8  ;;  %v11396_v39 = vld [vmem:[#allocation49_spill] sm:$0xff]  ;;  %v11397_v8 = vld [vmem:[#allocation39_spill] sm:$0xff] }
 0x6ba   :  { %2309 = vmatpush.msra.mxu2 %v7618_v7  ;;  %2329 = vmatpush.msra.mxu3 %v7624_v2  ;;  %v11398_v7 = vld [vmem:[#allocation40_spill] sm:$0xff] }
 0x6bb   :  { %2270 = vmatpush.msra.mxu0 %v7630_v35  ;;  %2290 = vmatpush.msra.mxu1 %v7636_v27  ;;  %v11399_v2 = vld [vmem:[#allocation56_spill] sm:$0xff]  ;;  %v11400_v35 = vld [vmem:[#allocation53_spill] sm:$0xff]  ;;  %v11401_v27 = vld [vmem:[#allocation43_spill] sm:$0xff] }
 0x6bc   :  { %2310 = vmatpush.msra.mxu2 %v7642_v50  ;;  %2330 = vmatpush.msra.mxu3 %v7648_v46  ;;  %v11402_v50 = vld [vmem:[#allocation44_spill] sm:$0xff] }
 0x6bd   :  { %2271 = vmatpush.msra.mxu0 %v11393_v30  ;;  %2291 = vmatpush.msra.mxu1 %v11394_v43  ;;  %v11403_v46 = vld [vmem:[#allocation60_spill] sm:$0xff]  ;;  %v11426_v30 = vld [vmem:[#allocation67_spill] sm:$0xff]  ;;  %v11427_v43 = vld [vmem:[#allocation78_spill] sm:$0xff] }
 0x6be   :  { %2311 = vmatpush.msra.mxu2 %v11395_v29  ;;  %2331 = vmatpush.msra.mxu3 %v11396_v39  ;;  %v11428_v29 = vld [vmem:[#allocation77_spill] sm:$0xff]  ;;  %v11429_v39 = vld [vmem:[#allocation70_spill] sm:$0xff] }
 0x6bf   :  { %2272 = vmatpush.msra.mxu0 %v11397_v8  ;;  %2292 = vmatpush.msra.mxu1 %v11398_v7  ;;  %v11430_v8 = vld [vmem:[#allocation71_spill] sm:$0xff]  ;;  %v11431_v7 = vld [vmem:[#allocation93_spill] sm:$0xff] }
 0x6c0   :  { %2312 = vmatpush.msra.mxu2 %v11399_v2  ;;  %2332 = vmatpush.msra.mxu3 %v11400_v35  ;;  %v11432_v2 = vld [vmem:[#allocation84_spill] sm:$0xff]  ;;  %v11433_v35 = vld [vmem:[#allocation85_spill] sm:$0xff] }
 0x6c1   :  { %2273 = vmatpush.msra.mxu0 %v11401_v27  ;;  %2293 = vmatpush.msra.mxu1 %v11402_v50  ;;  %v11434_v27 = vld [vmem:[#allocation82_spill] sm:$0xff]  ;;  %v11435_v50 = vld [vmem:[#allocation79_spill] sm:$0xff] }
 0x6c2   :  { %2313 = vmatpush.msra.mxu2 %v11403_v46  ;;  %2333 = vmatpush.msra.mxu3 %v11404_v41  ;;  %v11436_v46 = vld [vmem:[#allocation80_spill] sm:$0xff]  ;;  %v11437_v41 = vld [vmem:[#allocation81_spill] sm:$0xff] }
 0x6c3   :  { %2274 = vmatpush.msra.mxu0 %v11405_v25  ;;  %2294 = vmatpush.msra.mxu1 %v11406_v60  ;;  %v11438_v25 = vld [vmem:[#allocation83_spill] sm:$0xff]  ;;  %v11439_v60 = vld [vmem:[#allocation86_spill] sm:$0xff] }
 0x6c4   :  { %2314 = vmatpush.msra.mxu2 %v11407_v9  ;;  %2334 = vmatpush.msra.mxu3 %v11408_v15  ;;  %v11440_v9 = vld [vmem:[#allocation87_spill] sm:$0xff]  ;;  %v11441_v15 = vld [vmem:[#allocation88_spill] sm:$0xff] }
 0x6c5   :  { %2275 = vmatpush.msra.mxu0 %v11409_v34  ;;  %2295 = vmatpush.msra.mxu1 %v11410_v11  ;;  %v11442_v34 = vld [vmem:[#allocation89_spill] sm:$0xff]  ;;  %v11443_v11 = vld [vmem:[#allocation90_spill] sm:$0xff] }
 0x6c6   :  { %2315 = vmatpush.msra.mxu2 %v11411_v48  ;;  %2335 = vmatpush.msra.mxu3 %v11412_v4  ;;  %v11444_v48 = vld [vmem:[#allocation91_spill] sm:$0xff]  ;;  %v11445_v4 = vld [vmem:[#allocation92_spill] sm:$0xff] }
 0x6c7   :  { %2276 = vmatpush.msra.mxu0 %v11413_v47  ;;  %2296 = vmatpush.msra.mxu1 %v11414_v56  ;;  %v11446_v47 = vld [vmem:[#allocation94_spill] sm:$0xff]  ;;  %v11447_v56 = vld [vmem:[#allocation95_spill] sm:$0xff] }
 0x6c8   :  { %2316 = vmatpush.msra.mxu2 %v11415_v37  ;;  %2336 = vmatpush.msra.mxu3 %v11416_v40  ;;  %v11448_v37 = vld [vmem:[#allocation96_spill] sm:$0xff] }
 0x6c9   :  { %2277 = vmatpush.msra.mxu0 %v11417_v49  ;;  %2297 = vmatpush.msra.mxu1 %v11418_v10 }
 0x6ca   :  { %2317 = vmatpush.msra.mxu2 %v11419_v38  ;;  %2337 = vmatpush.msra.mxu3 %v11420_v42  ;;  %v11449_v42 = vld [vmem:[#allocation8_spill] sm:$0xff] }
 0x6cb   :  { %2278 = vmatpush.msra.mxu0 %v11421_v26  ;;  %2298 = vmatpush.msra.mxu1 %v11422_v61  ;;  %v11450_v61 = vld [vmem:[#allocation7_spill] sm:$0xff] }
 0x6cc   :  { %2318 = vmatpush.msra.mxu2 %v11423_v0  ;;  %2338 = vmatpush.msra.mxu3 %v11424_v51 }
 0x6cd   :  { %2279 = vmatpush.msra.mxu0 %v11425_v1  ;;  %2299 = vmatpush.msra.mxu1 %v11426_v30 }
 0x6ce   :  { %2319 = vmatpush.msra.mxu2 %v11427_v43  ;;  %2339 = vmatpush.msra.mxu3 %v11428_v29  ;;  %v11451_v29 = vld [vmem:[#allocation3_spill] sm:$0xff] }
 0x6cf   :  { %2280 = vmatpush.msra.mxu0 %v11429_v39  ;;  %2300 = vmatpush.msra.mxu1 %v11430_v8 }
 0x6d0   :  { %2320 = vmatpush.msra.mxu2 %v11431_v7  ;;  %2340 = vmatpush.msra.mxu3 %v11432_v2 }
 0x6d1   :  { %2281 = vmatpush.msra.mxu0 %v11433_v35  ;;  %2301 = vmatpush.msra.mxu1 %v11434_v27 }
 0x6d2   :  { %2321 = vmatpush.msra.mxu2 %v11435_v50  ;;  %2341 = vmatpush.msra.mxu3 %v11436_v46 }
 0x6d3   :  { %2282 = vmatpush.msra.mxu0 %v11437_v41  ;;  %2302 = vmatpush.msra.mxu1 %v11438_v25  ;;  %v11452_v25 = vld [vmem:[#allocation4_spill] sm:$0xff] }
 0x6d4   :  { %2322 = vmatpush.msra.mxu2 %v11439_v60  ;;  %2342 = vmatpush.msra.mxu3 %v11440_v9 }
 0x6d5   :  { %2283 = vmatpush.msra.mxu0 %v11441_v15  ;;  %2303 = vmatpush.msra.mxu1 %v11442_v34 }
 0x6d6   :  { %2323 = vmatpush.msra.mxu2 %v11443_v11  ;;  %2343 = vmatpush.msra.mxu3 %v11444_v48 }
 0x6d7   :  { %2284 = vmatpush.msra.mxu0 %v11445_v4  ;;  %2304 = vmatpush.msra.mxu1 %v11446_v47 }
 0x6d8   :  { %2324 = vmatpush.msra.mxu2 %v11447_v56  ;;  %2344 = vmatpush.msra.mxu3 %v11448_v37 }
 0x734   :  { %v2057_v40 = vpop.f32.mrf.mxu0  ;;  %v2077_v49 = vpop.f32.mrf.mxu1 }
 0x735   :  { %v2058_v10 = vadd.f32 %v2057_v40, %v8453_v18  ;;  %v2078_v38 = vadd.f32 %v2077_v49, %v8451_v44 }
 0x737   :  { %v2120_v26 = vadd.f32 %v2058_v10, %v11449_v42  ;;  %v2121_v0 = vadd.f32 %v2078_v38, %v11450_v61 }
 0x739   :  { %v3437_v51 = vmul.f32 -1.442695, %v2120_v26  ;;  %v3438_v1 = vmul.f32 -1.442695, %v2121_v0 }
 0x73b   :  { %3607 = vpow2.f32 %v3437_v51  ;;  %v2117_v30 = vpop.f32.mrf.mxu3  ;;  %v2097_v44 = vpop.f32.mrf.mxu2 }
 0x73c   :  { %3609 = vpow2.f32 %v3438_v1  ;;  %v2118_v43 = vadd.f32 %v2117_v30, %v8457_v13  ;;  %v2098_v27 = vadd.f32 %v2097_v44, %v8455_v19 }
 0x73e   :  { %v2123_v39 = vadd.f32 %v2118_v43, %v11451_v29  ;;  %v2122_v60 = vadd.f32 %v2098_v27, %v11452_v25 }
 0x740   :  { %v3439_v8 = vmul.f32 -1.442695, %v2123_v39 }
 0x741   :  { %v3608_v7 = vpop.eup %3607 }
 0x742   :  { %v3610_v2 = vpop.eup %3609  ;;  %v2127_v35 = vadd.f32 1.0, %v3608_v7  ;;  %3611 = vpow2.f32 %v3439_v8 }
 0x743   :  { %v2146_v18 = vadd.f32 1.0, %v3610_v2 }
 0x744   :  { %3613 = vrcp.f32 %v2127_v35  ;;  %v2139_v48 = vand.u32 2147483648, %v2127_v35  ;;  %v2137_v56 = vand.u32 2147483647, %v2127_v35  ;;  %vm2133_vm9 = vweird.f32 %v2127_v35 }
 0x745   :  { %3615 = vrcp.f32 %v2146_v18  ;;  %v2158_v4 = vand.u32 2147483648, %v2146_v18  ;;  %v2156_v19 = vand.u32 2147483647, %v2146_v18  ;;  %vm2152_vm10 = vweird.f32 %v2146_v18 }
 0x746   :  { %v2140_v10 = vor.u32 1.1754944e-38, %v2139_v48  ;;  %vm2138_vm13 = vcmp.eq.f32.partialorder %v2137_v56, 8.507059e+37  ;;  %v11480_v48 = vld [vmem:[#allocation124_spill] sm:$0xff]  ;;  %v11483_v56 = vld [vmem:[#allocation127_spill] sm:$0xff] }
 0x747   :  { %v2159_v0 = vor.u32 1.1754944e-38, %v2158_v4  ;;  %vm2157_vm14 = vcmp.eq.f32.partialorder %v2156_v19, 8.507059e+37  ;;  %v11481_v4 = vld [vmem:[#allocation125_spill] sm:$0xff] }
 0x748   :  { %v3612_v50 = vpop.eup %3611  ;;  %v11485_v19 = vld [vmem:[#allocation129_spill] sm:$0xff] }
 0x749   :  { %v2166_v46 = vadd.f32 1.0, %v3612_v50 }
 0x74a   :  { %v3614_v41 = vpop.eup %3613 }
 0x74b   :  { %v3616_v9 = vpop.eup %3615  ;;  %v2129_v13 = vmul.f32 %v3614_v41, %v2127_v35  ;;  %3617 = vrcp.f32 %v2166_v46  ;;  %vm2134_vm7 = vweird.f32 %v3614_v41  ;;  %v2178_v27 = vand.u32 2147483648, %v2166_v46 }
 0x74c   :  { %v2148_v15 = vmul.f32 %v3616_v9, %v2146_v18  ;;  %3619 = vtanh.f32 %v2122_v60  ;;  %vm2153_vm8 = vweird.f32 %v3616_v9  ;;  %vm2135_vm11 = vmor %vm2133_vm9, %vm2134_vm7  ;;  %vm2172_vm3 = vweird.f32 %v2166_v46 }
 0x74d   :  { %v2130_v34 = vsub.f32 1.0, %v2129_v13  ;;  %vm2154_vm12 = vmor %vm2152_vm10, %vm2153_vm8  ;;  %v2176_v50 = vand.u32 2147483647, %v2166_v46  ;;  %v2179_v60 = vor.u32 1.1754944e-38, %v2178_v27  ;;  %v8688_v27 = vld [vmem:[%s10121_s3 + $0x1b8] sm:$0xff] }
 0x74e   :  { %v2149_v11 = vsub.f32 1.0, %v2148_v15 }
 0x74f   :  { %v2131_v47 = vmul.f32 %v3614_v41, %v2130_v34  ;;  %vm2177_vm5 = vcmp.eq.f32.partialorder %v2176_v50, 8.507059e+37  ;;  %v11478_v34 = vld [vmem:[#allocation122_spill] sm:$0xff] }
 0x750   :  { %v2150_v37 = vmul.f32 %v3616_v9, %v2149_v11  ;;  %v11479_v11 = vld [vmem:[#allocation123_spill] sm:$0xff] }
 0x751   :  { %v3618_v40 = vpop.eup %3617  ;;  %v2132_v49 = vadd.f32 %v3614_v41, %v2131_v47  ;;  %v11482_v47 = vld [vmem:[#allocation126_spill] sm:$0xff] }
 0x752   :  { %v2151_v38 = vadd.f32 %v3616_v9, %v2150_v37  ;;  %v2168_v26 = vmul.f32 %v3618_v40, %v2166_v46  ;;  %v3620_v1 = vpop.eup %3619  ;;  %vm2173_vm15 = vweird.f32 %v3618_v40  ;;  %v11477_v46 = vld [vmem:[#allocation121_spill] sm:$0xff]  ;;  %v11484_v37 = vld [vmem:[#allocation128_spill] sm:$0xff]  ;;  %v8694_v50 = vld [vmem:[%s10121_s3 + $0x180] sm:$0xff] }
 0x753   :  { %v2136_v51 = vsel %vm2135_vm11, %v3614_v41, %v2132_v49  ;;  %vm2174_vm4 = vmor %vm2172_vm3, %vm2173_vm15  ;;  %v11487_v49 = vld [vmem:[#allocation131_spill] sm:$0xff] }
 0x754   :  { %v2141_v30 = vsel %vm2138_vm13, %v2140_v10, %v2136_v51  ;;  %v2155_v43 = vsel %vm2154_vm12, %v3616_v9, %v2151_v38  ;;  %v2169_v39 = vsub.f32 1.0, %v2168_v26  ;;  %v11488_v10 = vld [vmem:[#allocation132_spill] sm:$0xff]  ;;  %v11489_v38 = vld [vmem:[#allocation133_spill] sm:$0xff]  ;;  %v11490_v26 = vld [vmem:[#allocation134_spill] sm:$0xff] }
 0x755   :  { %v2160_v8 = vsel %vm2157_vm14, %v2159_v0, %v2155_v43  ;;  %v2183_v7 = vmul.f32 %v3620_v1, %v2141_v30  ;;  %v11491_v0 = vld [vmem:[#allocation135_spill] sm:$0xff]  ;;  %v11492_v51 = vld [vmem:[#allocation136_spill] sm:$0xff] }
 0x756   :  { %v2182_v2 = vmul.f32 %v2160_v8, %v7996_v52  ;;  %v2170_v44 = vmul.f32 %v3618_v40, %v2169_v39  ;;  %v11453_v52 = vld [vmem:[#allocation97_spill] sm:$0xff]  ;;  %v8622_v1 = vld [vmem:[%s10121_s3 + $0x1e0] sm:$0xff]  ;;  %v8628_v30 = vld [vmem:[%s10121_s3 + $0x1e8] sm:$0xff] }
 0x757   :  { %v8646_v43 = vld [vmem:[%s10121_s3 + $0x1c0] sm:$0xff]  ;;  %v8652_v39 = vld [vmem:[%s10121_s3 + $0x1c8] sm:$0xff]  ;;  %v8658_v8 = vld [vmem:[%s10121_s3 + $0x1d0] sm:$0xff] }
 0x758   :  { %v8548_v35 = vadd.f32 %v2183_v7, %v2182_v2  ;;  %v2171_v18 = vadd.f32 %v3618_v40, %v2170_v44  ;;  %v8664_v7 = vld [vmem:[%s10121_s3 + $0x1d8] sm:$0xff]  ;;  %v8670_v2 = vld [vmem:[%s10121_s3 + $0x1a0] sm:$0xff]  ;;  %v8676_v44 = vld [vmem:[%s10121_s3 + $0x1a8] sm:$0xff] }
 0x75a   :  { %3621 = vtanh.f32 %v8548_v35  ;;  %v2175_v41 = vsel %vm2174_vm4, %v3618_v40, %v2171_v18  ;;  %v11486_v40 = vld [vmem:[#allocation130_spill] sm:$0xff]  ;;  %v8682_v18 = vld [vmem:[%s10121_s3 + $0x1b0] sm:$0xff] }
 0x75b   :  { %v2180_v13 = vsel %vm2177_vm5, %v2179_v60, %v2175_v41  ;;  %v8700_v41 = vld [vmem:[%s10121_s3 + $0x188] sm:$0xff]  ;;  %v8706_v60 = vld [vmem:[%s10121_s3 + $0x190] sm:$0xff] }
 0x760   :  { %v3622_v9 = vpop.eup %3621 }
 0x761   :  { %v2186_v15 = vmul.f32 %v3622_v9, %v2180_v13  ;;  %v8712_v9 = vld [vmem:[%s10121_s3 + $0x198] sm:$0xff]  ;;  %v8718_v13 = vld [vmem:[%s10121_s3 + $0x160] sm:$0xff] }
 0x763   :  { %2203 = vmatmul.f32.vlgmr.msrb.gmra.mxu0 %v2186_v15  ;;  %2223 = vmatmul.f32.vlgmr.msrb.gmra.mxu1 %v2186_v15 }
 0x764   :  { %2243 = vmatmul.f32.vlgmr.msrb.gmra.mxu2 %v2186_v15  ;;  %2263 = vmatmul.f32.vlgmr.msrb.gmra.mxu3 %v2186_v15  ;;  %v8724_v15 = vld [vmem:[%s10121_s3 + $0x168] sm:$0xff] }
 0x765   :  { %2431 = vmatpush.msrb.mxu0 %v8002_v20  ;;  %2451 = vmatpush.msrb.mxu1 %v8008_v32  ;;  %v11454_v20 = vld [vmem:[#allocation98_spill] sm:$0xff]  ;;  %v11455_v32 = vld [vmem:[#allocation99_spill] sm:$0xff] }
 0x766   :  { %2471 = vmatpush.msrb.mxu2 %v8014_v3  ;;  %2491 = vmatpush.msrb.mxu3 %v8020_v55  ;;  %v11456_v3 = vld [vmem:[#allocation100_spill] sm:$0xff]  ;;  %v11457_v55 = vld [vmem:[#allocation101_spill] sm:$0xff] }
 0x767   :  { %2432 = vmatpush.msrb.mxu0 %v8026_v22  ;;  %2452 = vmatpush.msrb.mxu1 %v8032_v28  ;;  %v11458_v22 = vld [vmem:[#allocation102_spill] sm:$0xff]  ;;  %v11459_v28 = vld [vmem:[#allocation103_spill] sm:$0xff] }
 0x768   :  { %2472 = vmatpush.msrb.mxu2 %v8038_v17  ;;  %2492 = vmatpush.msrb.mxu3 %v8044_v31  ;;  %v11460_v17 = vld [vmem:[#allocation104_spill] sm:$0xff]  ;;  %v11461_v31 = vld [vmem:[#allocation105_spill] sm:$0xff] }
 0x769   :  { %2433 = vmatpush.msrb.mxu0 %v8050_v33  ;;  %2453 = vmatpush.msrb.mxu1 %v8056_v21  ;;  %v11462_v33 = vld [vmem:[#allocation106_spill] sm:$0xff]  ;;  %v11463_v21 = vld [vmem:[#allocation107_spill] sm:$0xff] }
 0x76a   :  { %2473 = vmatpush.msrb.mxu2 %v8062_v58  ;;  %2493 = vmatpush.msrb.mxu3 %v8068_v23  ;;  %v11464_v58 = vld [vmem:[#allocation108_spill] sm:$0xff]  ;;  %v11465_v23 = vld [vmem:[#allocation109_spill] sm:$0xff] }
 0x76b   :  { %2285 = vmatmul.f32.vlgmr.msra.gmra.mxu0 %v8469_v5  ;;  %2305 = vmatmul.f32.vlgmr.msra.gmra.mxu1 %v8469_v5 }
 0x76c   :  { %2325 = vmatmul.f32.vlgmr.msra.gmra.mxu2 %v8469_v5  ;;  %2345 = vmatmul.f32.vlgmr.msra.gmra.mxu3 %v8469_v5  ;;  %v11476_v5 = vld [vmem:[#allocation120_spill] sm:$0xff] }
 0x76d   :  { %2434 = vmatpush.msrb.mxu0 %v8078_v54  ;;  %2454 = vmatpush.msrb.mxu1 %v8084_v36  ;;  %v11466_v54 = vld [vmem:[#allocation110_spill] sm:$0xff]  ;;  %v11467_v36 = vld [vmem:[#allocation111_spill] sm:$0xff] }
 0x76e   :  { %2474 = vmatpush.msrb.mxu2 %v8090_v53  ;;  %2494 = vmatpush.msrb.mxu3 %v8096_v16  ;;  %v11468_v53 = vld [vmem:[#allocation112_spill] sm:$0xff]  ;;  %v11469_v16 = vld [vmem:[#allocation113_spill] sm:$0xff] }
 0x76f   :  { %2435 = vmatpush.msrb.mxu0 %v8102_v59  ;;  %2455 = vmatpush.msrb.mxu1 %v8108_v12  ;;  %v11470_v59 = vld [vmem:[#allocation114_spill] sm:$0xff]  ;;  %v11471_v12 = vld [vmem:[#allocation115_spill] sm:$0xff] }
 0x770   :  { %2475 = vmatpush.msrb.mxu2 %v8114_v63  ;;  %2495 = vmatpush.msrb.mxu3 %v8120_v57  ;;  %v11472_v63 = vld [vmem:[#allocation116_spill] sm:$0xff]  ;;  %v11473_v57 = vld [vmem:[#allocation117_spill] sm:$0xff] }
 0x771   :  { %2436 = vmatpush.msrb.mxu0 %v8126_v6  ;;  %2456 = vmatpush.msrb.mxu1 %v8132_v62  ;;  %v11474_v6 = vld [vmem:[#allocation118_spill] sm:$0xff]  ;;  %v11475_v62 = vld [vmem:[#allocation119_spill] sm:$0xff] }
 0x772   :  { %2476 = vmatpush.msrb.mxu2 %v11453_v52  ;;  %2496 = vmatpush.msrb.mxu3 %v11454_v20  ;;  %v8730_v52 = vld [vmem:[%s10121_s3 + $0x170] sm:$0xff]  ;;  %v8736_v20 = vld [vmem:[%s10121_s3 + $0x178] sm:$0xff] }
 0x773   :  { %2437 = vmatpush.msrb.mxu0 %v11455_v32  ;;  %2457 = vmatpush.msrb.mxu1 %v11456_v3  ;;  %v8742_v32 = vld [vmem:[%s10121_s3 + $0x140] sm:$0xff]  ;;  %v8748_v3 = vld [vmem:[%s10121_s3 + $0x148] sm:$0xff] }
 0x774   :  { %2477 = vmatpush.msrb.mxu2 %v11457_v55  ;;  %2497 = vmatpush.msrb.mxu3 %v11458_v22  ;;  %v8754_v55 = vld [vmem:[%s10121_s3 + $0x150] sm:$0xff]  ;;  %v8760_v22 = vld [vmem:[%s10121_s3 + $0x158] sm:$0xff] }
 0x775   :  { %2438 = vmatpush.msrb.mxu0 %v11459_v28  ;;  %2458 = vmatpush.msrb.mxu1 %v11460_v17  ;;  %v8766_v28 = vld [vmem:[%s10121_s3 + $0x120] sm:$0xff]  ;;  %v8772_v17 = vld [vmem:[%s10121_s3 + $0x128] sm:$0xff] }
 0x776   :  { %2478 = vmatpush.msrb.mxu2 %v11461_v31  ;;  %2498 = vmatpush.msrb.mxu3 %v11462_v33  ;;  %v8778_v31 = vld [vmem:[%s10121_s3 + $0x130] sm:$0xff]  ;;  %v8784_v33 = vld [vmem:[%s10121_s3 + $0x138] sm:$0xff] }
 0x777   :  { %2439 = vmatpush.msrb.mxu0 %v11463_v21  ;;  %2459 = vmatpush.msrb.mxu1 %v11464_v58  ;;  %v8790_v21 = vld [vmem:[%s10121_s3 + $0x100] sm:$0xff]  ;;  %v8796_v58 = vld [vmem:[%s10121_s3 + $0x108] sm:$0xff] }
 0x778   :  { %2479 = vmatpush.msrb.mxu2 %v11465_v23  ;;  %2499 = vmatpush.msrb.mxu3 %v11466_v54  ;;  %11493 = vst [vmem:[#allocation137_spill] sm:$0xff] %v8790_v21  ;;  %v8802_v23 = vld [vmem:[%s10121_s3 + $0x110] sm:$0xff]  ;;  %v8808_v54 = vld [vmem:[%s10121_s3 + $0x118] sm:$0xff] }
 0x779   :  { %2440 = vmatpush.msrb.mxu0 %v11467_v36  ;;  %2460 = vmatpush.msrb.mxu1 %v11468_v53  ;;  %11494 = vst [vmem:[#allocation138_spill] sm:$0xff] %v8796_v58  ;;  %v8814_v36 = vld [vmem:[%s10121_s3 + $0xe0] sm:$0xff]  ;;  %v8820_v53 = vld [vmem:[%s10121_s3 + $0xe8] sm:$0xff] }
 0x77a   :  { %2480 = vmatpush.msrb.mxu2 %v11469_v16  ;;  %2500 = vmatpush.msrb.mxu3 %v11470_v59  ;;  %11495 = vst [vmem:[#allocation139_spill] sm:$0xff] %v8802_v23  ;;  %v8826_v16 = vld [vmem:[%s10121_s3 + $0xf0] sm:$0xff]  ;;  %v8832_v59 = vld [vmem:[%s10121_s3 + $0xf8] sm:$0xff] }
 0x77b   :  { %2441 = vmatpush.msrb.mxu0 %v11471_v12  ;;  %2461 = vmatpush.msrb.mxu1 %v11472_v63  ;;  %11496 = vst [vmem:[#allocation140_spill] sm:$0xff] %v8808_v54  ;;  %v8838_v12 = vld [vmem:[%s10121_s3 + $0xc0] sm:$0xff]  ;;  %v8844_v63 = vld [vmem:[%s10121_s3 + $0xc8] sm:$0xff] }
 0x77c   :  { %2481 = vmatpush.msrb.mxu2 %v11473_v57  ;;  %2501 = vmatpush.msrb.mxu3 %v11474_v6  ;;  %11497 = vst [vmem:[#allocation14_spill] sm:$0xff] %v8814_v36  ;;  %v8850_v57 = vld [vmem:[%s10121_s3 + $0xd0] sm:$0xff]  ;;  %v8856_v6 = vld [vmem:[%s10121_s3 + $0xd8] sm:$0xff] }
 0x77d   :  { %2442 = vmatpush.msrb.mxu0 %v11475_v62  ;;  %2462 = vmatpush.msrb.mxu1 %v11476_v5  ;;  %11498 = vst [vmem:[#allocation13_spill] sm:$0xff] %v8820_v53  ;;  %v8862_v62 = vld [vmem:[%s10121_s3 + $0xa0] sm:$0xff]  ;;  %v8868_v5 = vld [vmem:[%s10121_s3 + $0xa8] sm:$0xff] }
 0x77e   :  { %2482 = vmatpush.msrb.mxu2 %v11477_v46  ;;  %2502 = vmatpush.msrb.mxu3 %v11478_v34  ;;  %11499 = vst [vmem:[#allocation5_spill] sm:$0xff] %v8826_v16  ;;  %v8874_v46 = vld [vmem:[%s10121_s3 + $0xb0] sm:$0xff]  ;;  %v8880_v34 = vld [vmem:[%s10121_s3 + $0xb8] sm:$0xff] }
 0x77f   :  { %2443 = vmatpush.msrb.mxu0 %v11479_v11  ;;  %2463 = vmatpush.msrb.mxu1 %v11480_v48  ;;  %11500 = vst [vmem:[#allocation6_spill] sm:$0xff] %v8832_v59  ;;  %v8886_v11 = vld [vmem:[%s10121_s3 + $0x80] sm:$0xff]  ;;  %v8892_v48 = vld [vmem:[%s10121_s3 + $0x88] sm:$0xff] }
 0x780   :  { %2483 = vmatpush.msrb.mxu2 %v11481_v4  ;;  %2503 = vmatpush.msrb.mxu3 %v11482_v47  ;;  %11501 = vst [vmem:[#allocation18_spill] sm:$0xff] %v8838_v12  ;;  %v8898_v4 = vld [vmem:[%s10121_s3 + $0x90] sm:$0xff]  ;;  %v8904_v47 = vld [vmem:[%s10121_s3 + $0x98] sm:$0xff] }
 0x781   :  { %2444 = vmatpush.msrb.mxu0 %v11483_v56  ;;  %2464 = vmatpush.msrb.mxu1 %v11484_v37  ;;  %11502 = vst [vmem:[#allocation17_spill] sm:$0xff] %v8844_v63  ;;  %v8910_v56 = vld [vmem:[%s10121_s3 + $0x60] sm:$0xff]  ;;  %v8916_v37 = vld [vmem:[%s10121_s3 + $0x68] sm:$0xff] }
 0x782   :  { %2484 = vmatpush.msrb.mxu2 %v11485_v19  ;;  %2504 = vmatpush.msrb.mxu3 %v11486_v40  ;;  %11503 = vst [vmem:[#allocation9_spill] sm:$0xff] %v8850_v57  ;;  %v8922_v19 = vld [vmem:[%s10121_s3 + $0x70] sm:$0xff]  ;;  %v8928_v40 = vld [vmem:[%s10121_s3 + $0x78] sm:$0xff] }
 0x783   :  { %2445 = vmatpush.msrb.mxu0 %v11487_v49  ;;  %2465 = vmatpush.msrb.mxu1 %v11488_v10  ;;  %11504 = vst [vmem:[#allocation10_spill] sm:$0xff] %v8856_v6  ;;  %v8934_v49 = vld [vmem:[%s10121_s3 + $0x40] sm:$0xff]  ;;  %v8940_v10 = vld [vmem:[%s10121_s3 + $0x48] sm:$0xff] }
 0x784   :  { %2485 = vmatpush.msrb.mxu2 %v11489_v38  ;;  %2505 = vmatpush.msrb.mxu3 %v11490_v26  ;;  %11505 = vst [vmem:[#allocation22_spill] sm:$0xff] %v8862_v62  ;;  %v8946_v38 = vld [vmem:[%s10121_s3 + $0x50] sm:$0xff]  ;;  %v8952_v26 = vld [vmem:[%s10121_s3 + $0x58] sm:$0xff] }
 0x785   :  { %2446 = vmatpush.msrb.mxu0 %v8366_v24  ;;  %2466 = vmatpush.msrb.mxu1 %v8372_v45  ;;  %v8634_v24 = vld [vmem:[%s10121_s3 + $0x1f0] sm:$0xff]  ;;  %v8640_v45 = vld [vmem:[%s10121_s3 + $0x1f8] sm:$0xff]  ;;  %11506 = vst [vmem:[#allocation21_spill] sm:$0xff] %v8868_v5 }
 0x786   :  { %2486 = vmatpush.msrb.mxu2 %v11491_v0  ;;  %2506 = vmatpush.msrb.mxu3 %v11492_v51  ;;  %11507 = vst [vmem:[#allocation11_spill] sm:$0xff] %v8874_v46  ;;  %v8958_v0 = vld [vmem:[%s10121_s3 + $0x20] sm:$0xff]  ;;  %v8964_v51 = vld [vmem:[%s10121_s3 + $0x28] sm:$0xff] }
 0x787   :  { %2578 = vmatpush.msra.mxu0 %v8622_v1  ;;  %2598 = vmatpush.msra.mxu1 %v8628_v30  ;;  %11508 = vst [vmem:[#allocation12_spill] sm:$0xff] %v8880_v34 }
 0x788   :  { %2618 = vmatpush.msra.mxu2 %v8634_v24  ;;  %2638 = vmatpush.msra.mxu3 %v8640_v45  ;;  %11509 = vst [vmem:[#allocation26_spill] sm:$0xff] %v8886_v11 }
 0x789   :  { %2579 = vmatpush.msra.mxu0 %v8646_v43  ;;  %2599 = vmatpush.msra.mxu1 %v8652_v39  ;;  %11510 = vst [vmem:[#allocation25_spill] sm:$0xff] %v8892_v48 }
 0x78a   :  { %2619 = vmatpush.msra.mxu2 %v8658_v8  ;;  %2639 = vmatpush.msra.mxu3 %v8664_v7  ;;  %11511 = vst [vmem:[#allocation15_spill] sm:$0xff] %v8898_v4 }
 0x78b   :  { %2580 = vmatpush.msra.mxu0 %v8670_v2  ;;  %2600 = vmatpush.msra.mxu1 %v8676_v44  ;;  %11512 = vst [vmem:[#allocation16_spill] sm:$0xff] %v8904_v47 }
 0x78c   :  { %2620 = vmatpush.msra.mxu2 %v8682_v18  ;;  %2640 = vmatpush.msra.mxu3 %v8688_v27  ;;  %11513 = vst [vmem:[#allocation30_spill] sm:$0xff] %v8910_v56 }
 0x78d   :  { %2581 = vmatpush.msra.mxu0 %v8694_v50  ;;  %2601 = vmatpush.msra.mxu1 %v8700_v41  ;;  %11514 = vst [vmem:[#allocation29_spill] sm:$0xff] %v8916_v37 }
 0x78e   :  { %2621 = vmatpush.msra.mxu2 %v8706_v60  ;;  %2641 = vmatpush.msra.mxu3 %v8712_v9  ;;  %11515 = vst [vmem:[#allocation19_spill] sm:$0xff] %v8922_v19 }
 0x78f   :  { %2582 = vmatpush.msra.mxu0 %v8718_v13  ;;  %2602 = vmatpush.msra.mxu1 %v8724_v15  ;;  %11516 = vst [vmem:[#allocation20_spill] sm:$0xff] %v8928_v40 }
 0x790   :  { %2622 = vmatpush.msra.mxu2 %v8730_v52  ;;  %2642 = vmatpush.msra.mxu3 %v8736_v20  ;;  %11517 = vst [vmem:[#allocation34_spill] sm:$0xff] %v8934_v49 }
 0x791   :  { %2583 = vmatpush.msra.mxu0 %v8742_v32  ;;  %2603 = vmatpush.msra.mxu1 %v8748_v3  ;;  %11518 = vst [vmem:[#allocation33_spill] sm:$0xff] %v8940_v10 }
 0x792   :  { %2623 = vmatpush.msra.mxu2 %v8754_v55  ;;  %2643 = vmatpush.msra.mxu3 %v8760_v22  ;;  %11519 = vst [vmem:[#allocation23_spill] sm:$0xff] %v8946_v38 }
 0x793   :  { %2584 = vmatpush.msra.mxu0 %v8766_v28  ;;  %2604 = vmatpush.msra.mxu1 %v8772_v17  ;;  %11520 = vst [vmem:[#allocation24_spill] sm:$0xff] %v8952_v26 }
 0x794   :  { %2624 = vmatpush.msra.mxu2 %v8778_v31  ;;  %2644 = vmatpush.msra.mxu3 %v8784_v33  ;;  %11521 = vst [vmem:[#allocation38_spill] sm:$0xff] %v8958_v0 }
 0x795   :  { %2585 = vmatpush.msra.mxu0 %v8790_v21  ;;  %2605 = vmatpush.msra.mxu1 %v8796_v58  ;;  %11522 = vst [vmem:[#allocation37_spill] sm:$0xff] %v8964_v51 }
 0x796   :  { %2625 = vmatpush.msra.mxu2 %v8802_v23  ;;  %2645 = vmatpush.msra.mxu3 %v8808_v54 }
 0x797   :  { %2586 = vmatpush.msra.mxu0 %v8814_v36  ;;  %2606 = vmatpush.msra.mxu1 %v8820_v53 }
 0x798   :  { %2626 = vmatpush.msra.mxu2 %v8826_v16  ;;  %2646 = vmatpush.msra.mxu3 %v8832_v59 }
 0x799   :  { %2587 = vmatpush.msra.mxu0 %v8838_v12  ;;  %2607 = vmatpush.msra.mxu1 %v8844_v63 }
 0x79a   :  { %2627 = vmatpush.msra.mxu2 %v8850_v57  ;;  %2647 = vmatpush.msra.mxu3 %v8856_v6 }
 0x79b   :  { %2588 = vmatpush.msra.mxu0 %v8862_v62  ;;  %2608 = vmatpush.msra.mxu1 %v8868_v5 }
 0x79c   :  { %2628 = vmatpush.msra.mxu2 %v8874_v46  ;;  %2648 = vmatpush.msra.mxu3 %v8880_v34 }
 0x79d   :  { %2589 = vmatpush.msra.mxu0 %v8886_v11  ;;  %2609 = vmatpush.msra.mxu1 %v8892_v48  ;;  %v3440_v48 = vld [vmem:[%s10124_s0 + $0x28] sm:$0xff] }
 0x79e   :  { %2629 = vmatpush.msra.mxu2 %v8898_v4  ;;  %2649 = vmatpush.msra.mxu3 %v8904_v47 }
 0x79f   :  { %2590 = vmatpush.msra.mxu0 %v8910_v56  ;;  %2610 = vmatpush.msra.mxu1 %v8916_v37 }
 0x7a0   :  { %2630 = vmatpush.msra.mxu2 %v8922_v19  ;;  %2650 = vmatpush.msra.mxu3 %v8928_v40 }
 0x7a1   :  { %2591 = vmatpush.msra.mxu0 %v8934_v49  ;;  %2611 = vmatpush.msra.mxu1 %v8940_v10 }
 0x7a2   :  { %2631 = vmatpush.msra.mxu2 %v8946_v38  ;;  %2651 = vmatpush.msra.mxu3 %v8952_v26  ;;  %v8970_v38 = vld [vmem:[%s10121_s3 + $0x30] sm:$0xff]  ;;  %v8976_v26 = vld [vmem:[%s10121_s3 + $0x38] sm:$0xff] }
 0x7a3   :  { %2592 = vmatpush.msra.mxu0 %v8958_v0  ;;  %2612 = vmatpush.msra.mxu1 %v8964_v51  ;;  %11523 = vst [vmem:[#allocation27_spill] sm:$0xff] %v8970_v38  ;;  %v8982_v0 = vld [vmem:[%s10121_s3] sm:$0xff]  ;;  %v8988_v51 = vld [vmem:[%s10121_s3 + $0x8] sm:$0xff] }
 0x7a4   :  { %2632 = vmatpush.msra.mxu2 %v8970_v38  ;;  %11524 = vst [vmem:[#allocation28_spill] sm:$0xff] %v8976_v26  ;;  %2652 = vmatpush.msra.mxu3 %v8976_v26  ;;  %v8994_v38 = vld [vmem:[%s10121_s3 + $0x10] sm:$0xff]  ;;  %v9000_v26 = vld [vmem:[%s10121_s3 + $0x18] sm:$0xff] }
 0x7a5   :  { %11525 = vst [vmem:[#allocation42_spill] sm:$0xff] %v8982_v0  ;;  %2593 = vmatpush.msra.mxu0 %v8982_v0  ;;  %2613 = vmatpush.msra.mxu1 %v8988_v51 }
 0x7a6   :  { %11526 = vst [vmem:[#allocation41_spill] sm:$0xff] %v8988_v51  ;;  %2633 = vmatpush.msra.mxu2 %v8994_v38  ;;  %2653 = vmatpush.msra.mxu3 %v9000_v26 }
 0x7a7   :  { %11527 = vst [vmem:[#allocation31_spill] sm:$0xff] %v8994_v38 }
 0x7a8   :  { %11528 = vst [vmem:[#allocation32_spill] sm:$0xff] %v9000_v26 }
 0x7e0   :  { %v9003_v0 = vpop.f32.mrf.mxu1  ;;  %v9005_v10 = vpop.f32.mrf.mxu0 }
 0x7e7   :  { %v9007_v49 = vpop.f32.mrf.mxu2  ;;  %v9009_v51 = vpop.f32.mrf.mxu3 }
 0x7e8   :  { %v2306_v40 = vpop.f32.mrf.mxu1  ;;  %v2286_v4 = vpop.f32.mrf.mxu0 }
 0x7e9   :  { %v2353_v19 = vrot.slane %v2306_v40, 6 }
 0x7eb   :  { %v2356_v26 = vsel %vm398_vm1, %v2286_v4, %v2353_v19 }
 0x7ef   :  { %v2326_v37 = vpop.f32.mrf.mxu2  ;;  %v2346_v56 = vpop.f32.mrf.mxu3 }
 0x7f0   :  { %v2354_v38 = vrot.slane %v2326_v37, 4  ;;  %v2355_v47 = vrot.slane %v2346_v56, 2 }
 0x7f2   :  { %v2357_v11 = vsel %vm400_vm0, %v2354_v38, %v2355_v47 }
 0x7f3   :  { %v2358_v34 = vsel %vm402_vm2, %v2356_v26, %v2357_v11 }
 0x7f4   :  { %v2360_v46 = vadd.f32 %v3440_v48, %v2358_v34 }
 0x7f6   :  { %v3441_v5 = vmul.f32 -1.442695, %v2360_v46  ;;  %v2381_v62 = vrot.slane %v2360_v46, 2  ;;  %v2405_v6 = vrot.slane %v2360_v46, 6  ;;  %v2402_v19 = vrot.slane %v2360_v46, 4 }
 0x7f8   :  { %3623 = vpow2.f32 %v3441_v5  ;;  %v3442_v40 = vmul.f32 -1.442695, %v2381_v62  ;;  %v3443_v57 = vmul.f32 -1.442695, %v2405_v6 }
 0x7fa   :  { %3625 = vpow2.f32 %v3442_v40 }
 0x7fb   :  { %3627 = vpow2.f32 %v3443_v57 }
 0x7fe   :  { %v3624_v56 = vpop.eup %3623 }
 0x7ff   :  { %v2364_v37 = vadd.f32 1.0, %v3624_v56 }
 0x800   :  { %v3626_v63 = vpop.eup %3625 }
 0x801   :  { %v3628_v12 = vpop.eup %3627  ;;  %3629 = vrcp.f32 %v2364_v37  ;;  %v2386_v59 = vadd.f32 1.0, %v3626_v63  ;;  %v2376_v6 = vand.u32 2147483648, %v2364_v37  ;;  %v2374_v26 = vand.u32 2147483647, %v2364_v37 }
 0x802   :  { %v2410_v4 = vadd.f32 1.0, %v3628_v12  ;;  %vm2370_vm7 = vweird.f32 %v2364_v37 }
 0x803   :  { %3631 = vrcp.f32 %v2386_v59  ;;  %v2398_v16 = vand.u32 2147483648, %v2386_v59  ;;  %v2396_v63 = vand.u32 2147483647, %v2386_v59  ;;  %v2377_v36 = vor.u32 1.1754944e-38, %v2376_v6  ;;  %v9066_v6 = vld [vmem:[%s10122_s1 + $0x1d0] sm:$0xff] }
 0x804   :  { %3633 = vrcp.f32 %v2410_v4  ;;  %vm2375_vm10 = vcmp.eq.f32.partialorder %v2374_v26, 8.507059e+37  ;;  %vm2392_vm11 = vweird.f32 %v2386_v59  ;;  %vm2416_vm15 = vweird.f32 %v2410_v4  ;;  %v9078_v26 = vld [vmem:[%s10122_s1 + $0x1a0] sm:$0xff] }
 0x805   :  { %3635 = vtanh.f32 %v2402_v19  ;;  %v2399_v54 = vor.u32 1.1754944e-38, %v2398_v16  ;;  %vm2397_vm13 = vcmp.eq.f32.partialorder %v2396_v63, 8.507059e+37  ;;  %11529 = vst [vmem:[#allocation46_spill] sm:$0xff] %v9078_v26  ;;  %v9096_v63 = vld [vmem:[%s10122_s1 + $0x1b8] sm:$0xff] }
 0x806   :  { %11532 = vst [vmem:[#allocation36_spill] sm:$0xff] %v9096_v63 }
 0x807   :  { %v3630_v47 = vpop.eup %3629 }
 0x808   :  { %v2366_v11 = vmul.f32 %v3630_v47, %v2364_v37  ;;  %vm2371_vm6 = vweird.f32 %v3630_v47 }
 0x809   :  { %v3632_v34 = vpop.eup %3631  ;;  %vm2372_vm8 = vmor %vm2370_vm7, %vm2371_vm6 }
 0x80a   :  { %v2367_v48 = vsub.f32 1.0, %v2366_v11  ;;  %v3634_v38 = vpop.eup %3633  ;;  %v2388_v5 = vmul.f32 %v3632_v34, %v2386_v59  ;;  %vm2393_vm9 = vweird.f32 %v3632_v34  ;;  %v2420_v59 = vand.u32 2147483647, %v2410_v4 }
 0x80b   :  { %v2412_v57 = vmul.f32 %v3634_v38, %v2410_v4  ;;  %vm2394_vm12 = vmor %vm2392_vm11, %vm2393_vm9  ;;  %vm2417_vm14 = vweird.f32 %v3634_v38 }
 0x80c   :  { %v2368_v62 = vmul.f32 %v3630_v47, %v2367_v48  ;;  %v2389_v40 = vsub.f32 1.0, %v2388_v5  ;;  %v3636_v5 = vpop.eup %3635  ;;  %vm2418_vm3 = vmor %vm2416_vm15, %vm2417_vm14  ;;  %vm2421_vm4 = vcmp.eq.f32.partialorder %v2420_v59, 8.507059e+37  ;;  %v9150_v59 = vld [vmem:[%s10122_s1 + $0x140] sm:$0xff] }
 0x80d   :  { %v2413_v11 = vsub.f32 1.0, %v2412_v57  ;;  %v9072_v57 = vld [vmem:[%s10122_s1 + $0x1d8] sm:$0xff]  ;;  %11541 = vst [vmem:[#allocation60_spill] sm:$0xff] %v9150_v59 }
 0x80e   :  { %v2369_v56 = vadd.f32 %v3630_v47, %v2368_v62  ;;  %v2390_v12 = vmul.f32 %v3632_v34, %v2389_v40 }
 0x80f   :  { %v2414_v37 = vmul.f32 %v3634_v38, %v2413_v11  ;;  %v9102_v11 = vld [vmem:[%s10122_s1 + $0x180] sm:$0xff] }
 0x810   :  { %v2373_v53 = vsel %vm2372_vm8, %v3630_v47, %v2369_v56  ;;  %v2391_v46 = vadd.f32 %v3632_v34, %v2390_v12  ;;  %v2422_v47 = vand.u32 2147483648, %v2410_v4  ;;  %v9054_v4 = vld [vmem:[%s10122_s1 + $0x1c0] sm:$0xff]  ;;  %v9084_v56 = vld [vmem:[%s10122_s1 + $0x1a8] sm:$0xff]  ;;  %v9090_v12 = vld [vmem:[%s10122_s1 + $0x1b0] sm:$0xff]  ;;  %11533 = vst [vmem:[#allocation50_spill] sm:$0xff] %v9102_v11 }
 0x811   :  { %v2378_v48 = vsel %vm2375_vm10, %v2377_v36, %v2373_v53  ;;  %v2415_v21 = vadd.f32 %v3634_v38, %v2414_v37  ;;  %11530 = vst [vmem:[#allocation45_spill] sm:$0xff] %v9084_v56  ;;  %v9132_v37 = vld [vmem:[%s10122_s1 + $0x168] sm:$0xff] }
 0x812   :  { %v2395_v23 = vsel %vm2394_vm12, %v3632_v34, %v2391_v46  ;;  %v2427_v58 = vmul.f32 %v3636_v5, %v2378_v48  ;;  %v2423_v53 = vor.u32 1.1754944e-38, %v2422_v47  ;;  %11531 = vst [vmem:[#allocation35_spill] sm:$0xff] %v9090_v12  ;;  %v9108_v46 = vld [vmem:[%s10122_s1 + $0x188] sm:$0xff]  ;;  %v9114_v48 = vld [vmem:[%s10122_s1 + $0x190] sm:$0xff]  ;;  %v9120_v5 = vld [vmem:[%s10122_s1 + $0x198] sm:$0xff] }
 0x813   :  { %v2400_v62 = vsel %vm2397_vm13, %v2399_v54, %v2395_v23  ;;  %v2419_v36 = vsel %vm2418_vm3, %v3634_v38, %v2415_v21  ;;  %v9036_v21 = vld [vmem:[%s10122_s1 + $0x1e8] sm:$0xff]  ;;  %v9048_v54 = vld [vmem:[%s10122_s1 + $0x1f8] sm:$0xff]  ;;  %11534 = vst [vmem:[#allocation49_spill] sm:$0xff] %v9108_v46 }
 0x814   :  { %v2426_v19 = vmul.f32 %v2400_v62, %v8466_v14  ;;  %v2424_v34 = vsel %vm2421_vm4, %v2423_v53, %v2419_v36  ;;  %v9030_v14 = vld [vmem:[%s10122_s1 + $0x1e0] sm:$0xff]  ;;  %v9060_v38 = vld [vmem:[%s10122_s1 + $0x1c8] sm:$0xff]  ;;  %11535 = vst [vmem:[#allocation39_spill] sm:$0xff] %v9114_v48  ;;  %v9144_v47 = vld [vmem:[%s10122_s1 + $0x178] sm:$0xff] }
 0x815   :  { %11536 = vst [vmem:[#allocation40_spill] sm:$0xff] %v9120_v5  ;;  %v9126_v62 = vld [vmem:[%s10122_s1 + $0x160] sm:$0xff]  ;;  %v9156_v36 = vld [vmem:[%s10122_s1 + $0x148] sm:$0xff]  ;;  %v9162_v53 = vld [vmem:[%s10122_s1 + $0x150] sm:$0xff] }
 0x816   :  { %v9018_v40 = vadd.f32 %v2427_v58, %v2426_v19  ;;  %v9042_v58 = vld [vmem:[%s10122_s1 + $0x1f0] sm:$0xff]  ;;  %11537 = vst [vmem:[#allocation56_spill] sm:$0xff] %v9126_v62 }
 0x817   :  { %11538 = vst [vmem:[#allocation53_spill] sm:$0xff] %v9132_v37  ;;  %v9138_v19 = vld [vmem:[%s10122_s1 + $0x170] sm:$0xff] }
 0x818   :  { %3637 = vtanh.f32 %v9018_v40  ;;  %11539 = vst [vmem:[#allocation43_spill] sm:$0xff] %v9138_v19 }
 0x819   :  { %11540 = vst [vmem:[#allocation44_spill] sm:$0xff] %v9144_v47 }
 0x81a   :  { %11542 = vst [vmem:[#allocation57_spill] sm:$0xff] %v9156_v36 }
 0x81b   :  { %11543 = vst [vmem:[#allocation47_spill] sm:$0xff] %v9162_v53 }
 0x81e   :  { %v3638_v16 = vpop.eup %3637 }
 0x81f   :  { %v9021_v23 = vmul.f32 %v3638_v16, %v2424_v34  ;;  %v9168_v16 = vld [vmem:[%s10122_s1 + $0x158] sm:$0xff]  ;;  %v9174_v34 = vld [vmem:[%s10122_s1 + $0x120] sm:$0xff] }
 0x820   :  { %11544 = vst [vmem:[#allocation48_spill] sm:$0xff] %v9168_v16 }
 0x821   :  { %2447 = vmatmul.f32.vlgmr.msrb.gmra.mxu0 %v9021_v23  ;;  %2467 = vmatmul.f32.vlgmr.msrb.gmra.mxu1 %v9021_v23  ;;  %11545 = vst [vmem:[#allocation64_spill] sm:$0xff] %v9174_v34 }
 0x822   :  { %2487 = vmatmul.f32.vlgmr.msrb.gmra.mxu2 %v9021_v23  ;;  %2507 = vmatmul.f32.vlgmr.msrb.gmra.mxu3 %v9021_v23 }
 0x823   :  { %2660 = vmatpush.msrb.mxu0 %v9030_v14  ;;  %2680 = vmatpush.msrb.mxu1 %v9036_v21 }
 0x824   :  { %2700 = vmatpush.msrb.mxu2 %v9042_v58  ;;  %2720 = vmatpush.msrb.mxu3 %v9048_v54 }
 0x825   :  { %2661 = vmatpush.msrb.mxu0 %v9054_v4  ;;  %2681 = vmatpush.msrb.mxu1 %v9060_v38 }
 0x826   :  { %2701 = vmatpush.msrb.mxu2 %v9066_v6  ;;  %2721 = vmatpush.msrb.mxu3 %v9072_v57 }
 0x827   :  { %2662 = vmatpush.msrb.mxu0 %v9078_v26  ;;  %2682 = vmatpush.msrb.mxu1 %v9084_v56 }
 0x828   :  { %2702 = vmatpush.msrb.mxu2 %v9090_v12  ;;  %2722 = vmatpush.msrb.mxu3 %v9096_v63 }
 0x829   :  { %2663 = vmatpush.msrb.mxu0 %v9102_v11  ;;  %2683 = vmatpush.msrb.mxu1 %v9108_v46 }
 0x82a   :  { %2703 = vmatpush.msrb.mxu2 %v9114_v48  ;;  %2723 = vmatpush.msrb.mxu3 %v9120_v5 }
 0x82b   :  { %2664 = vmatpush.msrb.mxu0 %v9126_v62  ;;  %2684 = vmatpush.msrb.mxu1 %v9132_v37 }
 0x82c   :  { %2704 = vmatpush.msrb.mxu2 %v9138_v19  ;;  %2724 = vmatpush.msrb.mxu3 %v9144_v47 }
 0x82d   :  { %2665 = vmatpush.msrb.mxu0 %v9150_v59  ;;  %2685 = vmatpush.msrb.mxu1 %v9156_v36  ;;  %v9180_v36 = vld [vmem:[%s10122_s1 + $0x128] sm:$0xff] }
 0x82e   :  { %2705 = vmatpush.msrb.mxu2 %v9162_v53  ;;  %2725 = vmatpush.msrb.mxu3 %v9168_v16  ;;  %11546 = vst [vmem:[#allocation61_spill] sm:$0xff] %v9180_v36  ;;  %v9186_v53 = vld [vmem:[%s10122_s1 + $0x130] sm:$0xff]  ;;  %v9192_v16 = vld [vmem:[%s10122_s1 + $0x138] sm:$0xff] }
 0x82f   :  { %2666 = vmatpush.msrb.mxu0 %v9174_v34  ;;  %2686 = vmatpush.msrb.mxu1 %v9180_v36  ;;  %11547 = vst [vmem:[#allocation51_spill] sm:$0xff] %v9186_v53  ;;  %v9198_v34 = vld [vmem:[%s10122_s1 + $0x100] sm:$0xff]  ;;  %v9204_v36 = vld [vmem:[%s10122_s1 + $0x108] sm:$0xff] }
 0x830   :  { %2706 = vmatpush.msrb.mxu2 %v9186_v53  ;;  %11548 = vst [vmem:[#allocation52_spill] sm:$0xff] %v9192_v16  ;;  %2726 = vmatpush.msrb.mxu3 %v9192_v16  ;;  %v9210_v53 = vld [vmem:[%s10122_s1 + $0x110] sm:$0xff]  ;;  %v9216_v16 = vld [vmem:[%s10122_s1 + $0x118] sm:$0xff] }
 0x831   :  { %11549 = vst [vmem:[#allocation68_spill] sm:$0xff] %v9198_v34  ;;  %2667 = vmatpush.msrb.mxu0 %v9198_v34  ;;  %2687 = vmatpush.msrb.mxu1 %v9204_v36  ;;  %v9222_v34 = vld [vmem:[%s10122_s1 + $0xe0] sm:$0xff] }
 0x832   :  { %11550 = vst [vmem:[#allocation65_spill] sm:$0xff] %v9204_v36  ;;  %2707 = vmatpush.msrb.mxu2 %v9210_v53  ;;  %2727 = vmatpush.msrb.mxu3 %v9216_v16  ;;  %v9228_v36 = vld [vmem:[%s10122_s1 + $0xe8] sm:$0xff] }
 0x833   :  { %11551 = vst [vmem:[#allocation54_spill] sm:$0xff] %v9210_v53  ;;  %2668 = vmatpush.msrb.mxu0 %v9222_v34  ;;  %2688 = vmatpush.msrb.mxu1 %v9228_v36  ;;  %v9234_v53 = vld [vmem:[%s10122_s1 + $0xf0] sm:$0xff] }
 0x834   :  { %11552 = vst [vmem:[#allocation55_spill] sm:$0xff] %v9216_v16  ;;  %2708 = vmatpush.msrb.mxu2 %v9234_v53  ;;  %v9240_v16 = vld [vmem:[%s10122_s1 + $0xf8] sm:$0xff] }
 0x835   :  { %11553 = vst [vmem:[#allocation72_spill] sm:$0xff] %v9222_v34  ;;  %2728 = vmatpush.msrb.mxu3 %v9240_v16  ;;  %v9246_v34 = vld [vmem:[%s10122_s1 + $0xc0] sm:$0xff] }
 0x836   :  { %11554 = vst [vmem:[#allocation69_spill] sm:$0xff] %v9228_v36  ;;  %2669 = vmatpush.msrb.mxu0 %v9246_v34  ;;  %v9252_v36 = vld [vmem:[%s10122_s1 + $0xc8] sm:$0xff] }
 0x837   :  { %11555 = vst [vmem:[#allocation58_spill] sm:$0xff] %v9234_v53  ;;  %2689 = vmatpush.msrb.mxu1 %v9252_v36  ;;  %v9258_v53 = vld [vmem:[%s10122_s1 + $0xd0] sm:$0xff] }
 0x838   :  { %11556 = vst [vmem:[#allocation59_spill] sm:$0xff] %v9240_v16  ;;  %2709 = vmatpush.msrb.mxu2 %v9258_v53  ;;  %v9264_v16 = vld [vmem:[%s10122_s1 + $0xd8] sm:$0xff] }
 0x839   :  { %11557 = vst [vmem:[#allocation74_spill] sm:$0xff] %v9246_v34  ;;  %2729 = vmatpush.msrb.mxu3 %v9264_v16  ;;  %v9270_v34 = vld [vmem:[%s10122_s1 + $0xa0] sm:$0xff] }
 0x83a   :  { %11558 = vst [vmem:[#allocation73_spill] sm:$0xff] %v9252_v36  ;;  %2670 = vmatpush.msrb.mxu0 %v9270_v34  ;;  %v9276_v36 = vld [vmem:[%s10122_s1 + $0xa8] sm:$0xff] }
 0x83b   :  { %11559 = vst [vmem:[#allocation62_spill] sm:$0xff] %v9258_v53  ;;  %2690 = vmatpush.msrb.mxu1 %v9276_v36  ;;  %v9282_v53 = vld [vmem:[%s10122_s1 + $0xb0] sm:$0xff] }
 0x83c   :  { %11560 = vst [vmem:[#allocation63_spill] sm:$0xff] %v9264_v16  ;;  %2710 = vmatpush.msrb.mxu2 %v9282_v53  ;;  %v9288_v16 = vld [vmem:[%s10122_s1 + $0xb8] sm:$0xff] }
 0x83d   :  { %11561 = vst [vmem:[#allocation76_spill] sm:$0xff] %v9270_v34  ;;  %2730 = vmatpush.msrb.mxu3 %v9288_v16  ;;  %v9294_v34 = vld [vmem:[%s10122_s1 + $0x80] sm:$0xff] }
 0x83e   :  { %11562 = vst [vmem:[#allocation75_spill] sm:$0xff] %v9276_v36  ;;  %2671 = vmatpush.msrb.mxu0 %v9294_v34  ;;  %v9300_v36 = vld [vmem:[%s10122_s1 + $0x88] sm:$0xff] }
 0x83f   :  { %11563 = vst [vmem:[#allocation66_spill] sm:$0xff] %v9282_v53  ;;  %2691 = vmatpush.msrb.mxu1 %v9300_v36  ;;  %v9306_v53 = vld [vmem:[%s10122_s1 + $0x90] sm:$0xff] }
 0x840   :  { %11564 = vst [vmem:[#allocation67_spill] sm:$0xff] %v9288_v16  ;;  %2711 = vmatpush.msrb.mxu2 %v9306_v53  ;;  %v9312_v16 = vld [vmem:[%s10122_s1 + $0x98] sm:$0xff] }
 0x841   :  { %11565 = vst [vmem:[#allocation78_spill] sm:$0xff] %v9294_v34  ;;  %2731 = vmatpush.msrb.mxu3 %v9312_v16  ;;  %v9318_v34 = vld [vmem:[%s10122_s1 + $0x60] sm:$0xff] }
 0x842   :  { %11566 = vst [vmem:[#allocation77_spill] sm:$0xff] %v9300_v36  ;;  %2672 = vmatpush.msrb.mxu0 %v9318_v34  ;;  %v9324_v36 = vld [vmem:[%s10122_s1 + $0x68] sm:$0xff] }
 0x843   :  { %11567 = vst [vmem:[#allocation70_spill] sm:$0xff] %v9306_v53  ;;  %2692 = vmatpush.msrb.mxu1 %v9324_v36  ;;  %v9330_v53 = vld [vmem:[%s10122_s1 + $0x70] sm:$0xff] }
 0x844   :  { %11568 = vst [vmem:[#allocation71_spill] sm:$0xff] %v9312_v16  ;;  %2712 = vmatpush.msrb.mxu2 %v9330_v53  ;;  %v9336_v16 = vld [vmem:[%s10122_s1 + $0x78] sm:$0xff] }
 0x845   :  { %11569 = vst [vmem:[#allocation93_spill] sm:$0xff] %v9318_v34  ;;  %2732 = vmatpush.msrb.mxu3 %v9336_v16  ;;  %v9342_v34 = vld [vmem:[%s10122_s1 + $0x40] sm:$0xff] }
 0x846   :  { %11570 = vst [vmem:[#allocation84_spill] sm:$0xff] %v9324_v36  ;;  %2673 = vmatpush.msrb.mxu0 %v9342_v34  ;;  %v9348_v36 = vld [vmem:[%s10122_s1 + $0x48] sm:$0xff] }
 0x847   :  { %11571 = vst [vmem:[#allocation85_spill] sm:$0xff] %v9330_v53  ;;  %2693 = vmatpush.msrb.mxu1 %v9348_v36  ;;  %v9354_v53 = vld [vmem:[%s10122_s1 + $0x50] sm:$0xff] }
 0x848   :  { %11572 = vst [vmem:[#allocation82_spill] sm:$0xff] %v9336_v16  ;;  %2713 = vmatpush.msrb.mxu2 %v9354_v53  ;;  %v9360_v16 = vld [vmem:[%s10122_s1 + $0x58] sm:$0xff] }
 0x849   :  { %11573 = vst [vmem:[#allocation79_spill] sm:$0xff] %v9342_v34  ;;  %2733 = vmatpush.msrb.mxu3 %v9360_v16  ;;  %v9366_v34 = vld [vmem:[%s10122_s1 + $0x20] sm:$0xff] }
 0x84a   :  { %11574 = vst [vmem:[#allocation80_spill] sm:$0xff] %v9348_v36  ;;  %2674 = vmatpush.msrb.mxu0 %v9366_v34  ;;  %v9372_v36 = vld [vmem:[%s10122_s1 + $0x28] sm:$0xff] }
 0x84b   :  { %11575 = vst [vmem:[#allocation81_spill] sm:$0xff] %v9354_v53  ;;  %2694 = vmatpush.msrb.mxu1 %v9372_v36  ;;  %v9378_v53 = vld [vmem:[%s10122_s1 + $0x30] sm:$0xff] }
 0x84c   :  { %11576 = vst [vmem:[#allocation83_spill] sm:$0xff] %v9360_v16  ;;  %2714 = vmatpush.msrb.mxu2 %v9378_v53  ;;  %v9384_v16 = vld [vmem:[%s10122_s1 + $0x38] sm:$0xff] }
 0x84d   :  { %11577 = vst [vmem:[#allocation86_spill] sm:$0xff] %v9366_v34  ;;  %2734 = vmatpush.msrb.mxu3 %v9384_v16  ;;  %v9390_v34 = vld [vmem:[%s10122_s1] sm:$0xff] }
 0x84e   :  { %11578 = vst [vmem:[#allocation87_spill] sm:$0xff] %v9372_v36  ;;  %2675 = vmatpush.msrb.mxu0 %v9390_v34  ;;  %v9396_v36 = vld [vmem:[%s10122_s1 + $0x8] sm:$0xff] }
 0x84f   :  { %11579 = vst [vmem:[#allocation88_spill] sm:$0xff] %v9378_v53  ;;  %2695 = vmatpush.msrb.mxu1 %v9396_v36  ;;  %v9402_v53 = vld [vmem:[%s10122_s1 + $0x10] sm:$0xff] }
 0x850   :  { %11580 = vst [vmem:[#allocation89_spill] sm:$0xff] %v9384_v16  ;;  %2715 = vmatpush.msrb.mxu2 %v9402_v53  ;;  %v9408_v16 = vld [vmem:[%s10122_s1 + $0x18] sm:$0xff] }
 0x851   :  { %11581 = vst [vmem:[#allocation90_spill] sm:$0xff] %v9390_v34  ;;  %2735 = vmatpush.msrb.mxu3 %v9408_v16 }
 0x852   :  { %11582 = vst [vmem:[#allocation91_spill] sm:$0xff] %v9396_v36 }
 0x853   :  { %11583 = vst [vmem:[#allocation92_spill] sm:$0xff] %v9402_v53 }
 0x854   :  { %11584 = vst [vmem:[#allocation94_spill] sm:$0xff] %v9408_v16 }
 0x89e   :  { %v2448_v34 = vpop.f32.mrf.mxu0  ;;  %v2468_v59 = vpop.f32.mrf.mxu1 }
 0x89f   :  { %v2449_v47 = vadd.f32 %v2448_v34, %v9005_v10  ;;  %v2469_v36 = vadd.f32 %v2468_v59, %v9003_v0 }
 0x8a1   :  { %v2511_v19 = vadd.f32 %v2449_v47, %v11449_v42  ;;  %v2512_v37 = vadd.f32 %v2469_v36, %v11450_v61 }
 0x8a3   :  { %v3444_v62 = vmul.f32 -1.442695, %v2511_v19  ;;  %v3445_v5 = vmul.f32 -1.442695, %v2512_v37 }
 0x8a5   :  { %3639 = vpow2.f32 %v3444_v62  ;;  %v2508_v53 = vpop.f32.mrf.mxu3  ;;  %v2488_v0 = vpop.f32.mrf.mxu2 }
 0x8a6   :  { %3641 = vpow2.f32 %v3445_v5  ;;  %v2509_v48 = vadd.f32 %v2508_v53, %v9009_v51  ;;  %v2489_v47 = vadd.f32 %v2488_v0, %v9007_v49 }
 0x8a8   :  { %v2514_v46 = vadd.f32 %v2509_v48, %v11451_v29  ;;  %v2513_v5 = vadd.f32 %v2489_v47, %v11452_v25 }
 0x8aa   :  { %v3446_v16 = vmul.f32 -1.442695, %v2514_v46 }
 0x8ab   :  { %v3640_v11 = vpop.eup %3639 }
 0x8ac   :  { %v3642_v63 = vpop.eup %3641  ;;  %v2518_v12 = vadd.f32 1.0, %v3640_v11  ;;  %3643 = vpow2.f32 %v3446_v16 }
 0x8ad   :  { %v2537_v10 = vadd.f32 1.0, %v3642_v63 }
 0x8ae   :  { %3645 = vrcp.f32 %v2518_v12  ;;  %v2530_v53 = vand.u32 2147483648, %v2518_v12  ;;  %v2528_v16 = vand.u32 2147483647, %v2518_v12  ;;  %vm2524_vm7 = vweird.f32 %v2518_v12 }
 0x8af   :  { %3647 = vrcp.f32 %v2537_v10  ;;  %v2549_v11 = vand.u32 2147483648, %v2537_v10  ;;  %v2547_v49 = vand.u32 2147483647, %v2537_v10  ;;  %vm2543_vm8 = vweird.f32 %v2537_v10 }
 0x8b0   :  { %v2531_v47 = vor.u32 1.1754944e-38, %v2530_v53  ;;  %vm2529_vm11 = vcmp.eq.f32.partialorder %v2528_v16, 8.507059e+37 }
 0x8b1   :  { %vm2548_vm12 = vcmp.eq.f32.partialorder %v2547_v49, 8.507059e+37  ;;  %v9468_v49 = vld [vmem:[%s10123_s2 + $0x1d8] sm:$0xff] }
 0x8b2   :  { %v3644_v19 = vpop.eup %3643 }
 0x8b3   :  { %v2557_v37 = vadd.f32 1.0, %v3644_v19 }
 0x8b4   :  { %v3646_v62 = vpop.eup %3645 }
 0x8b5   :  { %v3648_v59 = vpop.eup %3647  ;;  %v2520_v51 = vmul.f32 %v3646_v62, %v2518_v12  ;;  %3649 = vrcp.f32 %v2557_v37  ;;  %vm2525_vm5 = vweird.f32 %v3646_v62  ;;  %v2569_v53 = vand.u32 2147483648, %v2557_v37 }
 0x8b6   :  { %v2539_v48 = vmul.f32 %v3648_v59, %v2537_v10  ;;  %3651 = vtanh.f32 %v2513_v5  ;;  %vm2544_vm6 = vweird.f32 %v3648_v59  ;;  %vm2526_vm9 = vmor %vm2524_vm7, %vm2525_vm5  ;;  %vm2563_vm14 = vweird.f32 %v2557_v37 }
 0x8b7   :  { %v2521_v46 = vsub.f32 1.0, %v2520_v51  ;;  %vm2545_vm10 = vmor %vm2543_vm8, %vm2544_vm6  ;;  %v2550_v51 = vor.u32 1.1754944e-38, %v2549_v11  ;;  %v2570_v16 = vor.u32 1.1754944e-38, %v2569_v53  ;;  %v9544_v53 = vld [vmem:[%s10123_s2 + $0x178] sm:$0xff] }
 0x8b8   :  { %v2540_v36 = vsub.f32 1.0, %v2539_v48 }
 0x8b9   :  { %v2522_v63 = vmul.f32 %v3646_v62, %v2521_v46 }
 0x8ba   :  { %v2541_v34 = vmul.f32 %v3648_v59, %v2540_v36 }
 0x8bb   :  { %v3650_v0 = vpop.eup %3649  ;;  %v2523_v19 = vadd.f32 %v3646_v62, %v2522_v63 }
 0x8bc   :  { %v2542_v25 = vadd.f32 %v3648_v59, %v2541_v34  ;;  %v2559_v29 = vmul.f32 %v3650_v0, %v2557_v37  ;;  %v3652_v5 = vpop.eup %3651  ;;  %vm2564_vm13 = vweird.f32 %v3650_v0  ;;  %v9462_v34 = vld [vmem:[%s10123_s2 + $0x1d0] sm:$0xff] }
 0x8bd   :  { %v2527_v48 = vsel %vm2526_vm9, %v3646_v62, %v2523_v19  ;;  %v2567_v62 = vand.u32 2147483647, %v2557_v37  ;;  %vm2565_vm15 = vmor %vm2563_vm14, %vm2564_vm13  ;;  %v9456_v37 = vld [vmem:[%s10123_s2 + $0x1c8] sm:$0xff] }
 0x8be   :  { %v2532_v61 = vsel %vm2529_vm11, %v2531_v47, %v2527_v48  ;;  %v2546_v46 = vsel %vm2545_vm10, %v3648_v59, %v2542_v25  ;;  %v2560_v42 = vsub.f32 1.0, %v2559_v29  ;;  %v9480_v19 = vld [vmem:[%s10123_s2 + $0x1a8] sm:$0xff]  ;;  %v9486_v47 = vld [vmem:[%s10123_s2 + $0x1b0] sm:$0xff]  ;;  %v9502_v48 = vld [vmem:[%s10123_s2 + $0x180] sm:$0xff] }
 0x8bf   :  { %v2551_v36 = vsel %vm2548_vm12, %v2550_v51, %v2546_v46  ;;  %v2574_v56 = vmul.f32 %v3652_v5, %v2532_v61  ;;  %vm2568_vm3 = vcmp.eq.f32.partialorder %v2567_v62, 8.507059e+37  ;;  %v9432_v61 = vld [vmem:[%s10123_s2 + $0x1e8] sm:$0xff]  ;;  %v9492_v51 = vld [vmem:[%s10123_s2 + $0x1b8] sm:$0xff]  ;;  %v9514_v46 = vld [vmem:[%s10123_s2 + $0x190] sm:$0xff] }
 0x8c0   :  { %v2573_v26 = vmul.f32 %v2551_v36, %v8548_v35  ;;  %v2561_v63 = vmul.f32 %v3650_v0, %v2560_v42  ;;  %v9426_v42 = vld [vmem:[%s10123_s2 + $0x1e0] sm:$0xff]  ;;  %v9438_v35 = vld [vmem:[%s10123_s2 + $0x1f0] sm:$0xff]  ;;  %v9508_v5 = vld [vmem:[%s10123_s2 + $0x188] sm:$0xff] }
 0x8c1   :  { %v9526_v36 = vld [vmem:[%s10123_s2 + $0x160] sm:$0xff] }
 0x8c2   :  { %v9420_v12 = vadd.f32 %v2574_v56, %v2573_v26  ;;  %v2562_v10 = vadd.f32 %v3650_v0, %v2561_v63  ;;  %v9444_v26 = vld [vmem:[%s10123_s2 + $0x1f8] sm:$0xff]  ;;  %v9450_v56 = vld [vmem:[%s10123_s2 + $0x1c0] sm:$0xff]  ;;  %v9532_v63 = vld [vmem:[%s10123_s2 + $0x168] sm:$0xff] }
 0x8c3   :  { %v9550_v62 = vld [vmem:[%s10123_s2 + $0x140] sm:$0xff] }
 0x8c4   :  { %3653 = vtanh.f32 %v9420_v12  ;;  %v2566_v11 = vsel %vm2565_vm15, %v3650_v0, %v2562_v10  ;;  %v9474_v0 = vld [vmem:[%s10123_s2 + $0x1a0] sm:$0xff]  ;;  %v9538_v10 = vld [vmem:[%s10123_s2 + $0x170] sm:$0xff] }
 0x8c5   :  { %v2571_v29 = vsel %vm2568_vm3, %v2570_v16, %v2566_v11  ;;  %v9556_v11 = vld [vmem:[%s10123_s2 + $0x148] sm:$0xff]  ;;  %v9562_v16 = vld [vmem:[%s10123_s2 + $0x150] sm:$0xff] }
 0x8c6   :  { %11585 = vst [vmem:[#allocation95_spill] sm:$0xff] %v9562_v16 }
 0x8ca   :  { %v3654_v25 = vpop.eup %3653 }
 0x8cb   :  { %v2577_v59 = vmul.f32 %v3654_v25, %v2571_v29  ;;  %v9568_v25 = vld [vmem:[%s10123_s2 + $0x158] sm:$0xff]  ;;  %v9574_v29 = vld [vmem:[%s10123_s2 + $0x120] sm:$0xff] }
 0x8cc   :  { %11586 = vst [vmem:[#allocation96_spill] sm:$0xff] %v9568_v25 }
 0x8cd   :  { %2594 = vmatmul.f32.vlgmr.msra.gmra.mxu0 %v2577_v59  ;;  %2614 = vmatmul.f32.vlgmr.msra.gmra.mxu1 %v2577_v59  ;;  %11587 = vst [vmem:[#allocation97_spill] sm:$0xff] %v9574_v29 }
 0x8ce   :  { %2634 = vmatmul.f32.vlgmr.msra.gmra.mxu2 %v2577_v59  ;;  %2654 = vmatmul.f32.vlgmr.msra.gmra.mxu3 %v2577_v59  ;;  %v9580_v59 = vld [vmem:[%s10123_s2 + $0x128] sm:$0xff] }
 0x8cf   :  { %2822 = vmatpush.msra.mxu0 %v9426_v42  ;;  %2842 = vmatpush.msra.mxu1 %v9432_v61  ;;  %11588 = vst [vmem:[#allocation98_spill] sm:$0xff] %v9580_v59 }
 0x8d0   :  { %2862 = vmatpush.msra.mxu2 %v9438_v35  ;;  %2882 = vmatpush.msra.mxu3 %v9444_v26 }
 0x8d1   :  { %2823 = vmatpush.msra.mxu0 %v9450_v56  ;;  %2843 = vmatpush.msra.mxu1 %v9456_v37 }
 0x8d2   :  { %2863 = vmatpush.msra.mxu2 %v9462_v34  ;;  %2883 = vmatpush.msra.mxu3 %v9468_v49 }
 0x8d3   :  { %2824 = vmatpush.msra.mxu0 %v9474_v0  ;;  %2844 = vmatpush.msra.mxu1 %v9480_v19 }
 0x8d4   :  { %2864 = vmatpush.msra.mxu2 %v9486_v47  ;;  %2884 = vmatpush.msra.mxu3 %v9492_v51 }
 0x8d5   :  { %2676 = vmatmul.f32.vlgmr.msrb.gmra.mxu0 %v9021_v23  ;;  %2696 = vmatmul.f32.vlgmr.msrb.gmra.mxu1 %v9021_v23 }
 0x8d6   :  { %2716 = vmatmul.f32.vlgmr.msrb.gmra.mxu2 %v9021_v23  ;;  %2736 = vmatmul.f32.vlgmr.msrb.gmra.mxu3 %v9021_v23  ;;  %v9520_v23 = vld [vmem:[%s10123_s2 + $0x198] sm:$0xff] }
 0x8d7   :  { %2825 = vmatpush.msra.mxu0 %v9502_v48  ;;  %2845 = vmatpush.msra.mxu1 %v9508_v5 }
 0x8d8   :  { %2865 = vmatpush.msra.mxu2 %v9514_v46  ;;  %2885 = vmatpush.msra.mxu3 %v9520_v23 }
 0x8d9   :  { %2826 = vmatpush.msra.mxu0 %v9526_v36  ;;  %2846 = vmatpush.msra.mxu1 %v9532_v63 }
 0x8da   :  { %2866 = vmatpush.msra.mxu2 %v9538_v10  ;;  %2886 = vmatpush.msra.mxu3 %v9544_v53 }
 0x8db   :  { %2827 = vmatpush.msra.mxu0 %v9550_v62  ;;  %2847 = vmatpush.msra.mxu1 %v9556_v11 }
 0x8dc   :  { %2867 = vmatpush.msra.mxu2 %v9562_v16  ;;  %2887 = vmatpush.msra.mxu3 %v9568_v25  ;;  %v9586_v16 = vld [vmem:[%s10123_s2 + $0x130] sm:$0xff]  ;;  %v9592_v25 = vld [vmem:[%s10123_s2 + $0x138] sm:$0xff] }
 0x8dd   :  { %2828 = vmatpush.msra.mxu0 %v9574_v29  ;;  %2848 = vmatpush.msra.mxu1 %v9580_v59  ;;  %11589 = vst [vmem:[#allocation99_spill] sm:$0xff] %v9586_v16  ;;  %v9598_v29 = vld [vmem:[%s10123_s2 + $0x100] sm:$0xff]  ;;  %v9604_v59 = vld [vmem:[%s10123_s2 + $0x108] sm:$0xff] }
 0x8de   :  { %2868 = vmatpush.msra.mxu2 %v9586_v16  ;;  %11590 = vst [vmem:[#allocation100_spill] sm:$0xff] %v9592_v25  ;;  %2888 = vmatpush.msra.mxu3 %v9592_v25  ;;  %v9610_v16 = vld [vmem:[%s10123_s2 + $0x110] sm:$0xff]  ;;  %v9616_v25 = vld [vmem:[%s10123_s2 + $0x118] sm:$0xff] }
 0x8df   :  { %11591 = vst [vmem:[#allocation101_spill] sm:$0xff] %v9598_v29  ;;  %2829 = vmatpush.msra.mxu0 %v9598_v29  ;;  %2849 = vmatpush.msra.mxu1 %v9604_v59  ;;  %v9622_v29 = vld [vmem:[%s10123_s2 + $0xe0] sm:$0xff] }
 0x8e0   :  { %11592 = vst [vmem:[#allocation102_spill] sm:$0xff] %v9604_v59  ;;  %2869 = vmatpush.msra.mxu2 %v9610_v16  ;;  %2889 = vmatpush.msra.mxu3 %v9616_v25  ;;  %v9628_v59 = vld [vmem:[%s10123_s2 + $0xe8] sm:$0xff] }
 0x8e1   :  { %11593 = vst [vmem:[#allocation103_spill] sm:$0xff] %v9610_v16  ;;  %2830 = vmatpush.msra.mxu0 %v9622_v29  ;;  %2850 = vmatpush.msra.mxu1 %v9628_v59  ;;  %v9634_v16 = vld [vmem:[%s10123_s2 + $0xf0] sm:$0xff] }
 0x8e2   :  { %11594 = vst [vmem:[#allocation104_spill] sm:$0xff] %v9616_v25  ;;  %2870 = vmatpush.msra.mxu2 %v9634_v16  ;;  %v9640_v25 = vld [vmem:[%s10123_s2 + $0xf8] sm:$0xff] }
 0x8e3   :  { %11595 = vst [vmem:[#allocation105_spill] sm:$0xff] %v9622_v29  ;;  %2890 = vmatpush.msra.mxu3 %v9640_v25  ;;  %v9646_v29 = vld [vmem:[%s10123_s2 + $0xc0] sm:$0xff] }
 0x8e4   :  { %11596 = vst [vmem:[#allocation106_spill] sm:$0xff] %v9628_v59  ;;  %2831 = vmatpush.msra.mxu0 %v9646_v29  ;;  %v9652_v59 = vld [vmem:[%s10123_s2 + $0xc8] sm:$0xff] }
 0x8e5   :  { %11597 = vst [vmem:[#allocation107_spill] sm:$0xff] %v9634_v16  ;;  %2851 = vmatpush.msra.mxu1 %v9652_v59  ;;  %v9658_v16 = vld [vmem:[%s10123_s2 + $0xd0] sm:$0xff] }
 0x8e6   :  { %11598 = vst [vmem:[#allocation108_spill] sm:$0xff] %v9640_v25  ;;  %2871 = vmatpush.msra.mxu2 %v9658_v16  ;;  %v9664_v25 = vld [vmem:[%s10123_s2 + $0xd8] sm:$0xff] }
 0x8e7   :  { %11599 = vst [vmem:[#allocation109_spill] sm:$0xff] %v9646_v29  ;;  %2891 = vmatpush.msra.mxu3 %v9664_v25  ;;  %v9670_v29 = vld [vmem:[%s10123_s2 + $0xa0] sm:$0xff] }
 0x8e8   :  { %11600 = vst [vmem:[#allocation110_spill] sm:$0xff] %v9652_v59  ;;  %2832 = vmatpush.msra.mxu0 %v9670_v29  ;;  %v9676_v59 = vld [vmem:[%s10123_s2 + $0xa8] sm:$0xff] }
 0x8e9   :  { %11601 = vst [vmem:[#allocation111_spill] sm:$0xff] %v9658_v16  ;;  %2852 = vmatpush.msra.mxu1 %v9676_v59  ;;  %v9682_v16 = vld [vmem:[%s10123_s2 + $0xb0] sm:$0xff] }
 0x8ea   :  { %11602 = vst [vmem:[#allocation112_spill] sm:$0xff] %v9664_v25  ;;  %2872 = vmatpush.msra.mxu2 %v9682_v16  ;;  %v9688_v25 = vld [vmem:[%s10123_s2 + $0xb8] sm:$0xff] }
 0x8eb   :  { %11603 = vst [vmem:[#allocation113_spill] sm:$0xff] %v9670_v29  ;;  %2892 = vmatpush.msra.mxu3 %v9688_v25  ;;  %v9694_v29 = vld [vmem:[%s10123_s2 + $0x80] sm:$0xff] }
 0x8ec   :  { %11604 = vst [vmem:[#allocation114_spill] sm:$0xff] %v9676_v59  ;;  %2833 = vmatpush.msra.mxu0 %v9694_v29  ;;  %v9700_v59 = vld [vmem:[%s10123_s2 + $0x88] sm:$0xff] }
 0x8ed   :  { %11605 = vst [vmem:[#allocation115_spill] sm:$0xff] %v9682_v16  ;;  %2853 = vmatpush.msra.mxu1 %v9700_v59  ;;  %v9706_v16 = vld [vmem:[%s10123_s2 + $0x90] sm:$0xff] }
 0x8ee   :  { %11606 = vst [vmem:[#allocation116_spill] sm:$0xff] %v9688_v25  ;;  %2873 = vmatpush.msra.mxu2 %v9706_v16  ;;  %v9712_v25 = vld [vmem:[%s10123_s2 + $0x98] sm:$0xff] }
 0x8ef   :  { %11607 = vst [vmem:[#allocation117_spill] sm:$0xff] %v9694_v29  ;;  %2893 = vmatpush.msra.mxu3 %v9712_v25  ;;  %v9718_v29 = vld [vmem:[%s10123_s2 + $0x60] sm:$0xff] }
 0x8f0   :  { %11608 = vst [vmem:[#allocation118_spill] sm:$0xff] %v9700_v59  ;;  %2834 = vmatpush.msra.mxu0 %v9718_v29  ;;  %v9724_v59 = vld [vmem:[%s10123_s2 + $0x68] sm:$0xff] }
 0x8f1   :  { %11609 = vst [vmem:[#allocation119_spill] sm:$0xff] %v9706_v16  ;;  %2854 = vmatpush.msra.mxu1 %v9724_v59  ;;  %v9730_v16 = vld [vmem:[%s10123_s2 + $0x70] sm:$0xff] }
 0x8f2   :  { %11610 = vst [vmem:[#allocation120_spill] sm:$0xff] %v9712_v25  ;;  %2874 = vmatpush.msra.mxu2 %v9730_v16  ;;  %v9736_v25 = vld [vmem:[%s10123_s2 + $0x78] sm:$0xff] }
 0x8f3   :  { %11611 = vst [vmem:[#allocation121_spill] sm:$0xff] %v9718_v29  ;;  %2894 = vmatpush.msra.mxu3 %v9736_v25  ;;  %v9742_v29 = vld [vmem:[%s10123_s2 + $0x40] sm:$0xff] }
 0x8f4   :  { %11612 = vst [vmem:[#allocation122_spill] sm:$0xff] %v9724_v59  ;;  %2835 = vmatpush.msra.mxu0 %v9742_v29  ;;  %v9748_v59 = vld [vmem:[%s10123_s2 + $0x48] sm:$0xff] }
 0x8f5   :  { %11613 = vst [vmem:[#allocation123_spill] sm:$0xff] %v9730_v16  ;;  %2855 = vmatpush.msra.mxu1 %v9748_v59  ;;  %v9754_v16 = vld [vmem:[%s10123_s2 + $0x50] sm:$0xff] }
 0x8f6   :  { %11614 = vst [vmem:[#allocation124_spill] sm:$0xff] %v9736_v25  ;;  %2875 = vmatpush.msra.mxu2 %v9754_v16  ;;  %v9760_v25 = vld [vmem:[%s10123_s2 + $0x58] sm:$0xff] }
 0x8f7   :  { %11615 = vst [vmem:[#allocation125_spill] sm:$0xff] %v9742_v29  ;;  %2895 = vmatpush.msra.mxu3 %v9760_v25  ;;  %v9766_v29 = vld [vmem:[%s10123_s2 + $0x20] sm:$0xff] }
 0x8f8   :  { %11616 = vst [vmem:[#allocation126_spill] sm:$0xff] %v9748_v59  ;;  %2836 = vmatpush.msra.mxu0 %v9766_v29  ;;  %v9772_v59 = vld [vmem:[%s10123_s2 + $0x28] sm:$0xff] }
 0x8f9   :  { %11617 = vst [vmem:[#allocation127_spill] sm:$0xff] %v9754_v16  ;;  %2856 = vmatpush.msra.mxu1 %v9772_v59  ;;  %v9778_v16 = vld [vmem:[%s10123_s2 + $0x30] sm:$0xff] }
 0x8fa   :  { %11618 = vst [vmem:[#allocation128_spill] sm:$0xff] %v9760_v25  ;;  %2876 = vmatpush.msra.mxu2 %v9778_v16  ;;  %v9784_v25 = vld [vmem:[%s10123_s2 + $0x38] sm:$0xff] }
 0x8fb   :  { %11619 = vst [vmem:[#allocation129_spill] sm:$0xff] %v9766_v29  ;;  %2896 = vmatpush.msra.mxu3 %v9784_v25  ;;  %v9790_v29 = vld [vmem:[%s10123_s2] sm:$0xff] }
 0x8fc   :  { %11620 = vst [vmem:[#allocation130_spill] sm:$0xff] %v9772_v59  ;;  %2837 = vmatpush.msra.mxu0 %v9790_v29  ;;  %v9796_v59 = vld [vmem:[%s10123_s2 + $0x8] sm:$0xff] }
 0x8fd   :  { %11621 = vst [vmem:[#allocation131_spill] sm:$0xff] %v9778_v16  ;;  %2857 = vmatpush.msra.mxu1 %v9796_v59  ;;  %v9802_v16 = vld [vmem:[%s10123_s2 + $0x10] sm:$0xff] }
 0x8fe   :  { %11622 = vst [vmem:[#allocation132_spill] sm:$0xff] %v9784_v25  ;;  %2877 = vmatpush.msra.mxu2 %v9802_v16  ;;  %v9808_v25 = vld [vmem:[%s10123_s2 + $0x18] sm:$0xff]  ;;  %2969 = vmatpush.msrb.mxu0 %v8622_v1 }
 0x8ff   :  { %11623 = vst [vmem:[#allocation133_spill] sm:$0xff] %v9802_v16  ;;  %2897 = vmatpush.msra.mxu3 %v9808_v25  ;;  %2989 = vmatpush.msrb.mxu1 %v8628_v30  ;;  %v11625_v1 = vld [vmem:[#allocation137_spill] sm:$0xff]  ;;  %v11626_v30 = vld [vmem:[#allocation138_spill] sm:$0xff] }
 0x900   :  { %11624 = vst [vmem:[#allocation134_spill] sm:$0xff] %v9808_v25  ;;  %3009 = vmatpush.msrb.mxu2 %v8634_v24  ;;  %2970 = vmatpush.msrb.mxu0 %v8646_v43  ;;  %v11627_v24 = vld [vmem:[#allocation139_spill] sm:$0xff]  ;;  %v11629_v43 = vld [vmem:[#allocation14_spill] sm:$0xff] }
 0x901   :  { %3029 = vmatpush.msrb.mxu3 %v8640_v45  ;;  %2990 = vmatpush.msrb.mxu1 %v8652_v39  ;;  %v11628_v45 = vld [vmem:[#allocation140_spill] sm:$0xff]  ;;  %v11630_v39 = vld [vmem:[#allocation13_spill] sm:$0xff] }
 0x902   :  { %3010 = vmatpush.msrb.mxu2 %v8658_v8  ;;  %2971 = vmatpush.msrb.mxu0 %v8670_v2  ;;  %v11631_v8 = vld [vmem:[#allocation5_spill] sm:$0xff]  ;;  %v11633_v2 = vld [vmem:[#allocation18_spill] sm:$0xff] }
 0x903   :  { %3030 = vmatpush.msrb.mxu3 %v8664_v7  ;;  %2991 = vmatpush.msrb.mxu1 %v8676_v44  ;;  %v11632_v7 = vld [vmem:[#allocation6_spill] sm:$0xff]  ;;  %v11634_v44 = vld [vmem:[#allocation17_spill] sm:$0xff] }
 0x904   :  { %3011 = vmatpush.msrb.mxu2 %v8682_v18  ;;  %2972 = vmatpush.msrb.mxu0 %v8694_v50  ;;  %v11635_v18 = vld [vmem:[#allocation9_spill] sm:$0xff]  ;;  %v11637_v50 = vld [vmem:[#allocation22_spill] sm:$0xff] }
 0x905   :  { %3031 = vmatpush.msrb.mxu3 %v8688_v27  ;;  %2992 = vmatpush.msrb.mxu1 %v8700_v41  ;;  %v11636_v27 = vld [vmem:[#allocation10_spill] sm:$0xff]  ;;  %v11638_v41 = vld [vmem:[#allocation21_spill] sm:$0xff] }
 0x906   :  { %3012 = vmatpush.msrb.mxu2 %v8706_v60  ;;  %2973 = vmatpush.msrb.mxu0 %v8718_v13  ;;  %v11639_v60 = vld [vmem:[#allocation11_spill] sm:$0xff]  ;;  %v11641_v13 = vld [vmem:[#allocation26_spill] sm:$0xff] }
 0x907   :  { %3032 = vmatpush.msrb.mxu3 %v8712_v9  ;;  %2993 = vmatpush.msrb.mxu1 %v8724_v15  ;;  %v11640_v9 = vld [vmem:[#allocation12_spill] sm:$0xff]  ;;  %v11642_v15 = vld [vmem:[#allocation25_spill] sm:$0xff] }
 0x908   :  { %3013 = vmatpush.msrb.mxu2 %v8730_v52  ;;  %2974 = vmatpush.msrb.mxu0 %v8742_v32  ;;  %v11643_v52 = vld [vmem:[#allocation15_spill] sm:$0xff]  ;;  %v11645_v32 = vld [vmem:[#allocation30_spill] sm:$0xff] }
 0x909   :  { %3033 = vmatpush.msrb.mxu3 %v8736_v20  ;;  %2994 = vmatpush.msrb.mxu1 %v8748_v3  ;;  %v11644_v20 = vld [vmem:[#allocation16_spill] sm:$0xff]  ;;  %v11646_v3 = vld [vmem:[#allocation29_spill] sm:$0xff] }
 0x90a   :  { %3014 = vmatpush.msrb.mxu2 %v8754_v55  ;;  %2975 = vmatpush.msrb.mxu0 %v8766_v28  ;;  %v11647_v55 = vld [vmem:[#allocation19_spill] sm:$0xff]  ;;  %v11649_v28 = vld [vmem:[#allocation34_spill] sm:$0xff] }
 0x90b   :  { %3034 = vmatpush.msrb.mxu3 %v8760_v22  ;;  %2995 = vmatpush.msrb.mxu1 %v8772_v17  ;;  %v11648_v22 = vld [vmem:[#allocation20_spill] sm:$0xff]  ;;  %v11650_v17 = vld [vmem:[#allocation33_spill] sm:$0xff] }
 0x90c   :  { %3015 = vmatpush.msrb.mxu2 %v8778_v31  ;;  %2976 = vmatpush.msrb.mxu0 %v11625_v1  ;;  %v11651_v31 = vld [vmem:[#allocation23_spill] sm:$0xff]  ;;  %v11653_v1 = vld [vmem:[#allocation38_spill] sm:$0xff] }
 0x90d   :  { %3035 = vmatpush.msrb.mxu3 %v8784_v33  ;;  %2996 = vmatpush.msrb.mxu1 %v11626_v30  ;;  %v11652_v33 = vld [vmem:[#allocation24_spill] sm:$0xff]  ;;  %v11654_v30 = vld [vmem:[#allocation37_spill] sm:$0xff] }
 0x90e   :  { %3016 = vmatpush.msrb.mxu2 %v11627_v24  ;;  %2977 = vmatpush.msrb.mxu0 %v11629_v43  ;;  %v11655_v24 = vld [vmem:[#allocation27_spill] sm:$0xff]  ;;  %v11657_v43 = vld [vmem:[#allocation42_spill] sm:$0xff] }
 0x90f   :  { %3036 = vmatpush.msrb.mxu3 %v11628_v45  ;;  %2997 = vmatpush.msrb.mxu1 %v11630_v39  ;;  %v11656_v45 = vld [vmem:[#allocation28_spill] sm:$0xff]  ;;  %v11658_v39 = vld [vmem:[#allocation41_spill] sm:$0xff] }
 0x910   :  { %3017 = vmatpush.msrb.mxu2 %v11631_v8  ;;  %2978 = vmatpush.msrb.mxu0 %v11633_v2  ;;  %v11659_v8 = vld [vmem:[#allocation31_spill] sm:$0xff] }
 0x911   :  { %3037 = vmatpush.msrb.mxu3 %v11632_v7  ;;  %2998 = vmatpush.msrb.mxu1 %v11634_v44  ;;  %v11660_v7 = vld [vmem:[#allocation32_spill] sm:$0xff] }
 0x912   :  { %3018 = vmatpush.msrb.mxu2 %v11635_v18  ;;  %2979 = vmatpush.msrb.mxu0 %v11637_v50 }
 0x913   :  { %3038 = vmatpush.msrb.mxu3 %v11636_v27  ;;  %2999 = vmatpush.msrb.mxu1 %v11638_v41 }
 0x914   :  { %3019 = vmatpush.msrb.mxu2 %v11639_v60  ;;  %2980 = vmatpush.msrb.mxu0 %v11641_v13 }
 0x915   :  { %3039 = vmatpush.msrb.mxu3 %v11640_v9  ;;  %3000 = vmatpush.msrb.mxu1 %v11642_v15 }
 0x916   :  { %3020 = vmatpush.msrb.mxu2 %v11643_v52  ;;  %2981 = vmatpush.msrb.mxu0 %v11645_v32 }
 0x917   :  { %3040 = vmatpush.msrb.mxu3 %v11644_v20  ;;  %3001 = vmatpush.msrb.mxu1 %v11646_v3  ;;  %v3447_v20 = vld [vmem:[%s10124_s0 + $0x30] sm:$0xff] }
 0x918   :  { %3021 = vmatpush.msrb.mxu2 %v11647_v55  ;;  %2982 = vmatpush.msrb.mxu0 %v11649_v28 }
 0x919   :  { %3041 = vmatpush.msrb.mxu3 %v11648_v22  ;;  %3002 = vmatpush.msrb.mxu1 %v11650_v17 }
 0x91a   :  { %3022 = vmatpush.msrb.mxu2 %v11651_v31  ;;  %2983 = vmatpush.msrb.mxu0 %v11653_v1 }
 0x91b   :  { %3042 = vmatpush.msrb.mxu3 %v11652_v33  ;;  %3003 = vmatpush.msrb.mxu1 %v11654_v30 }
 0x91c   :  { %3023 = vmatpush.msrb.mxu2 %v11655_v24  ;;  %2984 = vmatpush.msrb.mxu0 %v11657_v43 }
 0x91d   :  { %3043 = vmatpush.msrb.mxu3 %v11656_v45  ;;  %3004 = vmatpush.msrb.mxu1 %v11658_v39 }
 0x91e   :  { %3024 = vmatpush.msrb.mxu2 %v11659_v8 }
 0x91f   :  { %3044 = vmatpush.msrb.mxu3 %v11660_v7 }
 0x94a   :  { %v9875_v2 = vpop.f32.mrf.mxu1  ;;  %v9877_v44 = vpop.f32.mrf.mxu0 }
 0x951   :  { %v9879_v18 = vpop.f32.mrf.mxu2  ;;  %v9881_v27 = vpop.f32.mrf.mxu3 }
 0x952   :  { %v2697_v50 = vpop.f32.mrf.mxu1  ;;  %v2677_v52 = vpop.f32.mrf.mxu0 }
 0x953   :  { %v2744_v41 = vrot.slane %v2697_v50, 6 }
 0x955   :  { %v2747_v32 = vsel %vm398_vm1, %v2677_v52, %v2744_v41 }
 0x959   :  { %v2717_v60 = vpop.f32.mrf.mxu2  ;;  %v2737_v9 = vpop.f32.mrf.mxu3 }
 0x95a   :  { %v2745_v13 = vrot.slane %v2717_v60, 4  ;;  %v2746_v15 = vrot.slane %v2737_v9, 2 }
 0x95c   :  { %v2748_v3 = vsel %vm400_vm0, %v2745_v13, %v2746_v15 }
 0x95d   :  { %v2749_v55 = vsel %vm402_vm2, %v2747_v32, %v2748_v3 }
 0x95e   :  { %v2751_v22 = vadd.f32 %v3447_v20, %v2749_v55 }
 0x960   :  { %v3448_v28 = vmul.f32 -1.442695, %v2751_v22  ;;  %v2772_v17 = vrot.slane %v2751_v22, 2  ;;  %v2796_v31 = vrot.slane %v2751_v22, 6  ;;  %v2793_v9 = vrot.slane %v2751_v22, 4 }
 0x962   :  { %3655 = vpow2.f32 %v3448_v28  ;;  %v3449_v33 = vmul.f32 -1.442695, %v2772_v17  ;;  %v3450_v1 = vmul.f32 -1.442695, %v2796_v31 }
 0x964   :  { %3657 = vpow2.f32 %v3449_v33 }
 0x965   :  { %3659 = vpow2.f32 %v3450_v1 }
 0x968   :  { %v3656_v30 = vpop.eup %3655 }
 0x969   :  { %v2755_v24 = vadd.f32 1.0, %v3656_v30 }
 0x96a   :  { %v3658_v45 = vpop.eup %3657 }
 0x96b   :  { %v3660_v43 = vpop.eup %3659  ;;  %3661 = vrcp.f32 %v2755_v24  ;;  %v2777_v39 = vadd.f32 1.0, %v3658_v45  ;;  %v2767_v20 = vand.u32 2147483648, %v2755_v24  ;;  %v2765_v3 = vand.u32 2147483647, %v2755_v24 }
 0x96c   :  { %v2801_v8 = vadd.f32 1.0, %v3660_v43  ;;  %vm2761_vm5 = vweird.f32 %v2755_v24 }
 0x96d   :  { %3663 = vrcp.f32 %v2777_v39  ;;  %v2789_v17 = vand.u32 2147483648, %v2777_v39  ;;  %v2787_v33 = vand.u32 2147483647, %v2777_v39  ;;  %v2768_v30 = vor.u32 1.1754944e-38, %v2767_v20 }
 0x96e   :  { %3665 = vrcp.f32 %v2801_v8  ;;  %vm2766_vm8 = vcmp.eq.f32.partialorder %v2765_v3, 8.507059e+37  ;;  %vm2783_vm9 = vweird.f32 %v2777_v39  ;;  %vm2807_vm13 = vweird.f32 %v2801_v8 }
 0x96f   :  { %3667 = vtanh.f32 %v2793_v9  ;;  %vm2788_vm11 = vcmp.eq.f32.partialorder %v2787_v33, 8.507059e+37  ;;  %v11676_v33 = vld [vmem:[#allocation48_spill] sm:$0xff] }
 0x971   :  { %v3662_v7 = vpop.eup %3661 }
 0x972   :  { %v2757_v50 = vmul.f32 %v3662_v7, %v2755_v24  ;;  %vm2762_vm4 = vweird.f32 %v3662_v7 }
 0x973   :  { %v3664_v41 = vpop.eup %3663  ;;  %vm2763_vm6 = vmor %vm2761_vm5, %vm2762_vm4 }
 0x974   :  { %v2758_v60 = vsub.f32 1.0, %v2757_v50  ;;  %v3666_v13 = vpop.eup %3665  ;;  %v2779_v15 = vmul.f32 %v3664_v41, %v2777_v39  ;;  %vm2784_vm7 = vweird.f32 %v3664_v41  ;;  %v2790_v50 = vor.u32 1.1754944e-38, %v2789_v17  ;;  %v11674_v17 = vld [vmem:[#allocation57_spill] sm:$0xff] }
 0x975   :  { %v2803_v32 = vmul.f32 %v3666_v13, %v2801_v8  ;;  %vm2785_vm10 = vmor %vm2783_vm9, %vm2784_vm7  ;;  %vm2808_vm12 = vweird.f32 %v3666_v13  ;;  %v2811_v39 = vand.u32 2147483647, %v2801_v8 }
 0x976   :  { %v2759_v52 = vmul.f32 %v3662_v7, %v2758_v60  ;;  %v2780_v55 = vsub.f32 1.0, %v2779_v15  ;;  %v3668_v15 = vpop.eup %3667  ;;  %vm2809_vm14 = vmor %vm2807_vm13, %vm2808_vm12 }
 0x977   :  { %v2804_v45 = vsub.f32 1.0, %v2803_v32  ;;  %vm2812_vm15 = vcmp.eq.f32.partialorder %v2811_v39, 8.507059e+37  ;;  %v11689_v39 = vld [vmem:[#allocation74_spill] sm:$0xff] }
 0x978   :  { %v2760_v28 = vadd.f32 %v3662_v7, %v2759_v52  ;;  %v2781_v31 = vmul.f32 %v3664_v41, %v2780_v55 }
 0x979   :  { %v2805_v24 = vmul.f32 %v3666_v13, %v2804_v45  ;;  %v11679_v45 = vld [vmem:[#allocation51_spill] sm:$0xff] }
 0x97a   :  { %v2764_v1 = vsel %vm2763_vm6, %v3662_v7, %v2760_v28  ;;  %v2782_v22 = vadd.f32 %v3664_v41, %v2781_v31  ;;  %v2813_v7 = vand.u32 2147483648, %v2801_v8  ;;  %v11672_v8 = vld [vmem:[#allocation44_spill] sm:$0xff]  ;;  %v11675_v31 = vld [vmem:[#allocation47_spill] sm:$0xff] }
 0x97b   :  { %v2769_v43 = vsel %vm2766_vm8, %v2768_v30, %v2764_v1  ;;  %v2806_v16 = vadd.f32 %v3666_v13, %v2805_v24  ;;  %v11677_v1 = vld [vmem:[#allocation64_spill] sm:$0xff]  ;;  %v11678_v30 = vld [vmem:[#allocation61_spill] sm:$0xff] }
 0x97c   :  { %v2786_v60 = vsel %vm2785_vm10, %v3664_v41, %v2782_v22  ;;  %v2818_v25 = vmul.f32 %v3668_v15, %v2769_v43  ;;  %v2814_v32 = vor.u32 1.1754944e-38, %v2813_v7  ;;  %v11680_v22 = vld [vmem:[#allocation52_spill] sm:$0xff]  ;;  %v11684_v15 = vld [vmem:[#allocation55_spill] sm:$0xff]  ;;  %v11686_v24 = vld [vmem:[#allocation69_spill] sm:$0xff] }
 0x97d   :  { %v2791_v52 = vsel %vm2788_vm11, %v2790_v50, %v2786_v60  ;;  %v2810_v20 = vsel %vm2809_vm14, %v3666_v13, %v2806_v16  ;;  %v11662_v16 = vld [vmem:[#allocation45_spill] sm:$0xff]  ;;  %v11673_v13 = vld [vmem:[#allocation60_spill] sm:$0xff]  ;;  %v11683_v60 = vld [vmem:[#allocation54_spill] sm:$0xff] }
 0x97e   :  { %v2817_v9 = vmul.f32 %v2791_v52, %v9018_v40  ;;  %v2815_v3 = vsel %vm2812_vm15, %v2814_v32, %v2810_v20  ;;  %v11661_v40 = vld [vmem:[#allocation46_spill] sm:$0xff]  ;;  %v11681_v43 = vld [vmem:[#allocation68_spill] sm:$0xff]  ;;  %v11682_v50 = vld [vmem:[#allocation65_spill] sm:$0xff] }
 0x97f   :  { %v11685_v52 = vld [vmem:[#allocation72_spill] sm:$0xff]  ;;  %v11688_v7 = vld [vmem:[#allocation59_spill] sm:$0xff]  ;;  %v11690_v20 = vld [vmem:[#allocation73_spill] sm:$0xff] }
 0x980   :  { %v9890_v55 = vadd.f32 %v2818_v25, %v2817_v9  ;;  %v11663_v25 = vld [vmem:[#allocation35_spill] sm:$0xff]  ;;  %v11687_v9 = vld [vmem:[#allocation58_spill] sm:$0xff] }
 0x981   :  { %v11691_v32 = vld [vmem:[#allocation62_spill] sm:$0xff] }
 0x982   :  { %3669 = vtanh.f32 %v9890_v55 }
 0x988   :  { %v3670_v41 = vpop.eup %3669 }
 0x989   :  { %v9893_v28 = vmul.f32 %v3670_v41, %v2815_v3  ;;  %v11692_v41 = vld [vmem:[#allocation63_spill] sm:$0xff]  ;;  %v11693_v3 = vld [vmem:[#allocation76_spill] sm:$0xff] }
 0x98b   :  { %2838 = vmatmul.f32.vlgmr.msra.gmra.mxu0 %v9893_v28  ;;  %2858 = vmatmul.f32.vlgmr.msra.gmra.mxu1 %v9893_v28 }
 0x98c   :  { %2878 = vmatmul.f32.vlgmr.msra.gmra.mxu2 %v9893_v28  ;;  %2898 = vmatmul.f32.vlgmr.msra.gmra.mxu3 %v9893_v28 }
 0x98d   :  { %3051 = vmatpush.msra.mxu0 %v9030_v14  ;;  %3071 = vmatpush.msra.mxu1 %v9036_v21  ;;  %v11664_v14 = vld [vmem:[#allocation36_spill] sm:$0xff]  ;;  %v11665_v21 = vld [vmem:[#allocation50_spill] sm:$0xff] }
 0x98e   :  { %3091 = vmatpush.msra.mxu2 %v9042_v58  ;;  %3111 = vmatpush.msra.mxu3 %v9048_v54  ;;  %v11666_v58 = vld [vmem:[#allocation49_spill] sm:$0xff]  ;;  %v11667_v54 = vld [vmem:[#allocation39_spill] sm:$0xff] }
 0x98f   :  { %3052 = vmatpush.msra.mxu0 %v9054_v4  ;;  %3072 = vmatpush.msra.mxu1 %v9060_v38  ;;  %v11668_v4 = vld [vmem:[#allocation40_spill] sm:$0xff] }
 0x990   :  { %3092 = vmatpush.msra.mxu2 %v9066_v6  ;;  %3112 = vmatpush.msra.mxu3 %v9072_v57  ;;  %v11669_v38 = vld [vmem:[#allocation56_spill] sm:$0xff]  ;;  %v11670_v6 = vld [vmem:[#allocation53_spill] sm:$0xff]  ;;  %v11671_v57 = vld [vmem:[#allocation43_spill] sm:$0xff] }
 0x991   :  { %3053 = vmatpush.msra.mxu0 %v11661_v40  ;;  %3073 = vmatpush.msra.mxu1 %v11662_v16  ;;  %v11694_v40 = vld [vmem:[#allocation75_spill] sm:$0xff]  ;;  %v11695_v16 = vld [vmem:[#allocation66_spill] sm:$0xff] }
 0x992   :  { %3093 = vmatpush.msra.mxu2 %v11663_v25  ;;  %3113 = vmatpush.msra.mxu3 %v11664_v14  ;;  %v11696_v25 = vld [vmem:[#allocation67_spill] sm:$0xff]  ;;  %v11697_v14 = vld [vmem:[#allocation78_spill] sm:$0xff] }
 0x993   :  { %3054 = vmatpush.msra.mxu0 %v11665_v21  ;;  %3074 = vmatpush.msra.mxu1 %v11666_v58  ;;  %v11698_v21 = vld [vmem:[#allocation77_spill] sm:$0xff]  ;;  %v11699_v58 = vld [vmem:[#allocation70_spill] sm:$0xff] }
 0x994   :  { %3094 = vmatpush.msra.mxu2 %v11667_v54  ;;  %3114 = vmatpush.msra.mxu3 %v11668_v4  ;;  %v11700_v54 = vld [vmem:[#allocation71_spill] sm:$0xff]  ;;  %v11701_v4 = vld [vmem:[#allocation93_spill] sm:$0xff] }
 0x995   :  { %3055 = vmatpush.msra.mxu0 %v11669_v38  ;;  %3075 = vmatpush.msra.mxu1 %v11670_v6  ;;  %v11702_v38 = vld [vmem:[#allocation84_spill] sm:$0xff]  ;;  %v11703_v6 = vld [vmem:[#allocation85_spill] sm:$0xff] }
 0x996   :  { %3095 = vmatpush.msra.mxu2 %v11671_v57  ;;  %3115 = vmatpush.msra.mxu3 %v11672_v8  ;;  %v11704_v57 = vld [vmem:[#allocation82_spill] sm:$0xff]  ;;  %v11705_v8 = vld [vmem:[#allocation79_spill] sm:$0xff] }
 0x997   :  { %3056 = vmatpush.msra.mxu0 %v11673_v13  ;;  %3076 = vmatpush.msra.mxu1 %v11674_v17  ;;  %v11706_v13 = vld [vmem:[#allocation80_spill] sm:$0xff]  ;;  %v11707_v17 = vld [vmem:[#allocation81_spill] sm:$0xff] }
 0x998   :  { %3096 = vmatpush.msra.mxu2 %v11675_v31  ;;  %3116 = vmatpush.msra.mxu3 %v11676_v33  ;;  %v11708_v31 = vld [vmem:[#allocation83_spill] sm:$0xff]  ;;  %v11709_v33 = vld [vmem:[#allocation86_spill] sm:$0xff] }
 0x999   :  { %3057 = vmatpush.msra.mxu0 %v11677_v1  ;;  %3077 = vmatpush.msra.mxu1 %v11678_v30  ;;  %v11710_v1 = vld [vmem:[#allocation87_spill] sm:$0xff]  ;;  %v11711_v30 = vld [vmem:[#allocation88_spill] sm:$0xff] }
 0x99a   :  { %3097 = vmatpush.msra.mxu2 %v11679_v45  ;;  %3117 = vmatpush.msra.mxu3 %v11680_v22  ;;  %v11712_v45 = vld [vmem:[#allocation89_spill] sm:$0xff]  ;;  %v11713_v22 = vld [vmem:[#allocation90_spill] sm:$0xff] }
 0x99b   :  { %3058 = vmatpush.msra.mxu0 %v11681_v43  ;;  %3078 = vmatpush.msra.mxu1 %v11682_v50  ;;  %v11714_v43 = vld [vmem:[#allocation91_spill] sm:$0xff]  ;;  %v11715_v50 = vld [vmem:[#allocation92_spill] sm:$0xff] }
 0x99c   :  { %3098 = vmatpush.msra.mxu2 %v11683_v60  ;;  %3118 = vmatpush.msra.mxu3 %v11684_v15  ;;  %v11716_v60 = vld [vmem:[#allocation94_spill] sm:$0xff] }
 0x99d   :  { %3059 = vmatpush.msra.mxu0 %v11685_v52  ;;  %3079 = vmatpush.msra.mxu1 %v11686_v24 }
 0x99e   :  { %3099 = vmatpush.msra.mxu2 %v11687_v9  ;;  %3119 = vmatpush.msra.mxu3 %v11688_v7  ;;  %v11717_v7 = vld [vmem:[#allocation8_spill] sm:$0xff] }
 0x99f   :  { %3060 = vmatpush.msra.mxu0 %v11689_v39  ;;  %3080 = vmatpush.msra.mxu1 %v11690_v20  ;;  %v11718_v20 = vld [vmem:[#allocation7_spill] sm:$0xff] }
 0x9a0   :  { %3100 = vmatpush.msra.mxu2 %v11691_v32  ;;  %3120 = vmatpush.msra.mxu3 %v11692_v41 }
 0x9a1   :  { %3061 = vmatpush.msra.mxu0 %v11693_v3  ;;  %3081 = vmatpush.msra.mxu1 %v11694_v40 }
 0x9a2   :  { %3101 = vmatpush.msra.mxu2 %v11695_v16  ;;  %3121 = vmatpush.msra.mxu3 %v11696_v25  ;;  %v11719_v25 = vld [vmem:[#allocation3_spill] sm:$0xff] }
 0x9a3   :  { %3062 = vmatpush.msra.mxu0 %v11697_v14  ;;  %3082 = vmatpush.msra.mxu1 %v11698_v21 }
 0x9a4   :  { %3102 = vmatpush.msra.mxu2 %v11699_v58  ;;  %3122 = vmatpush.msra.mxu3 %v11700_v54 }
 0x9a5   :  { %3063 = vmatpush.msra.mxu0 %v11701_v4  ;;  %3083 = vmatpush.msra.mxu1 %v11702_v38 }
 0x9a6   :  { %3103 = vmatpush.msra.mxu2 %v11703_v6  ;;  %3123 = vmatpush.msra.mxu3 %v11704_v57 }
 0x9a7   :  { %3064 = vmatpush.msra.mxu0 %v11705_v8  ;;  %3084 = vmatpush.msra.mxu1 %v11706_v13  ;;  %v11720_v13 = vld [vmem:[#allocation4_spill] sm:$0xff] }
 0x9a8   :  { %3104 = vmatpush.msra.mxu2 %v11707_v17  ;;  %3124 = vmatpush.msra.mxu3 %v11708_v31 }
 0x9a9   :  { %3065 = vmatpush.msra.mxu0 %v11709_v33  ;;  %3085 = vmatpush.msra.mxu1 %v11710_v1 }
 0x9aa   :  { %3105 = vmatpush.msra.mxu2 %v11711_v30  ;;  %3125 = vmatpush.msra.mxu3 %v11712_v45 }
 0x9ab   :  { %3066 = vmatpush.msra.mxu0 %v11713_v22  ;;  %3086 = vmatpush.msra.mxu1 %v11714_v43 }
 0x9ac   :  { %3106 = vmatpush.msra.mxu2 %v11715_v50  ;;  %3126 = vmatpush.msra.mxu3 %v11716_v60 }
 0xa08   :  { %v2839_v15 = vpop.f32.mrf.mxu0  ;;  %v2859_v52 = vpop.f32.mrf.mxu1 }
 0xa09   :  { %v2840_v24 = vadd.f32 %v2839_v15, %v9877_v44  ;;  %v2860_v9 = vadd.f32 %v2859_v52, %v9875_v2 }
 0xa0b   :  { %v2902_v39 = vadd.f32 %v2840_v24, %v11717_v7  ;;  %v2903_v32 = vadd.f32 %v2860_v9, %v11718_v20 }
 0xa0d   :  { %v3451_v41 = vmul.f32 -1.442695, %v2902_v39  ;;  %v3452_v3 = vmul.f32 -1.442695, %v2903_v32 }
 0xa0f   :  { %3671 = vpow2.f32 %v3451_v41  ;;  %v2899_v40 = vpop.f32.mrf.mxu3  ;;  %v2879_v2 = vpop.f32.mrf.mxu2 }
 0xa10   :  { %3673 = vpow2.f32 %v3452_v3  ;;  %v2900_v16 = vadd.f32 %v2899_v40, %v9881_v27  ;;  %v2880_v38 = vadd.f32 %v2879_v2, %v9879_v18 }
 0xa12   :  { %v2905_v14 = vadd.f32 %v2900_v16, %v11719_v25  ;;  %v2904_v17 = vadd.f32 %v2880_v38, %v11720_v13 }
 0xa14   :  { %v3453_v21 = vmul.f32 -1.442695, %v2905_v14 }
 0xa15   :  { %v3672_v58 = vpop.eup %3671 }
 0xa16   :  { %v3674_v54 = vpop.eup %3673  ;;  %v2909_v4 = vadd.f32 1.0, %v3672_v58  ;;  %3675 = vpow2.f32 %v3453_v21 }
 0xa17   :  { %v2928_v44 = vadd.f32 1.0, %v3674_v54 }
 0xa18   :  { %3677 = vrcp.f32 %v2909_v4  ;;  %v2921_v45 = vand.u32 2147483648, %v2909_v4  ;;  %v2919_v50 = vand.u32 2147483647, %v2909_v4  ;;  %vm2915_vm5 = vweird.f32 %v2909_v4 }
 0xa19   :  { %3679 = vrcp.f32 %v2928_v44  ;;  %v2940_v22 = vand.u32 2147483648, %v2928_v44  ;;  %v2938_v18 = vand.u32 2147483647, %v2928_v44  ;;  %vm2934_vm6 = vweird.f32 %v2928_v44 }
 0xa1a   :  { %v2922_v24 = vor.u32 1.1754944e-38, %v2921_v45  ;;  %vm2920_vm9 = vcmp.eq.f32.partialorder %v2919_v50, 8.507059e+37  ;;  %v11748_v45 = vld [vmem:[#allocation122_spill] sm:$0xff]  ;;  %v11751_v50 = vld [vmem:[#allocation125_spill] sm:$0xff] }
 0xa1b   :  { %v2941_v32 = vor.u32 1.1754944e-38, %v2940_v22  ;;  %vm2939_vm10 = vcmp.eq.f32.partialorder %v2938_v18, 8.507059e+37  ;;  %v11749_v22 = vld [vmem:[#allocation123_spill] sm:$0xff] }
 0xa1c   :  { %v3676_v6 = vpop.eup %3675  ;;  %v11753_v18 = vld [vmem:[#allocation127_spill] sm:$0xff] }
 0xa1d   :  { %v2948_v57 = vadd.f32 1.0, %v3676_v6 }
 0xa1e   :  { %v3678_v8 = vpop.eup %3677 }
 0xa1f   :  { %v3680_v31 = vpop.eup %3679  ;;  %v2911_v27 = vmul.f32 %v3678_v8, %v2909_v4  ;;  %3681 = vrcp.f32 %v2948_v57  ;;  %vm2916_vm3 = vweird.f32 %v3678_v8  ;;  %v2960_v38 = vand.u32 2147483648, %v2948_v57 }
 0xa20   :  { %v2930_v33 = vmul.f32 %v3680_v31, %v2928_v44  ;;  %3683 = vtanh.f32 %v2904_v17  ;;  %vm2935_vm4 = vweird.f32 %v3680_v31  ;;  %vm2917_vm7 = vmor %vm2915_vm5, %vm2916_vm3  ;;  %vm2954_vm12 = vweird.f32 %v2948_v57 }
 0xa21   :  { %v2912_v1 = vsub.f32 1.0, %v2911_v27  ;;  %vm2936_vm8 = vmor %vm2934_vm6, %vm2935_vm4  ;;  %v2958_v6 = vand.u32 2147483647, %v2948_v57  ;;  %v2961_v17 = vor.u32 1.1754944e-38, %v2960_v38 }
 0xa22   :  { %v2931_v30 = vsub.f32 1.0, %v2930_v33 }
 0xa23   :  { %v2913_v43 = vmul.f32 %v3678_v8, %v2912_v1  ;;  %vm2959_vm14 = vcmp.eq.f32.partialorder %v2958_v6, 8.507059e+37  ;;  %v11746_v1 = vld [vmem:[#allocation120_spill] sm:$0xff] }
 0xa24   :  { %v2932_v60 = vmul.f32 %v3680_v31, %v2931_v30  ;;  %v11747_v30 = vld [vmem:[#allocation121_spill] sm:$0xff] }
 0xa25   :  { %v3682_v15 = vpop.eup %3681  ;;  %v2914_v52 = vadd.f32 %v3678_v8, %v2913_v43  ;;  %v11750_v43 = vld [vmem:[#allocation124_spill] sm:$0xff] }
 0xa26   :  { %v2933_v9 = vadd.f32 %v3680_v31, %v2932_v60  ;;  %v2950_v39 = vmul.f32 %v3682_v15, %v2948_v57  ;;  %v3684_v3 = vpop.eup %3683  ;;  %vm2955_vm11 = vweird.f32 %v3682_v15  ;;  %v11745_v57 = vld [vmem:[#allocation119_spill] sm:$0xff]  ;;  %v11752_v60 = vld [vmem:[#allocation126_spill] sm:$0xff] }
 0xa27   :  { %v2918_v41 = vsel %vm2917_vm7, %v3678_v8, %v2914_v52  ;;  %vm2956_vm13 = vmor %vm2954_vm12, %vm2955_vm11  ;;  %v11755_v52 = vld [vmem:[#allocation129_spill] sm:$0xff] }
 0xa28   :  { %v2923_v40 = vsel %vm2920_vm9, %v2922_v24, %v2918_v41  ;;  %v2937_v16 = vsel %vm2936_vm8, %v3680_v31, %v2933_v9  ;;  %v2951_v14 = vsub.f32 1.0, %v2950_v39  ;;  %v11756_v24 = vld [vmem:[#allocation130_spill] sm:$0xff]  ;;  %v11757_v9 = vld [vmem:[#allocation131_spill] sm:$0xff]  ;;  %v11758_v39 = vld [vmem:[#allocation132_spill] sm:$0xff] }
 0xa29   :  { %v2942_v21 = vsel %vm2939_vm10, %v2941_v32, %v2937_v16  ;;  %v2965_v58 = vmul.f32 %v3684_v3, %v2923_v40  ;;  %v11759_v32 = vld [vmem:[#allocation133_spill] sm:$0xff]  ;;  %v11760_v41 = vld [vmem:[#allocation134_spill] sm:$0xff] }
 0xa2a   :  { %v2964_v54 = vmul.f32 %v2942_v21, %v9420_v12  ;;  %v2952_v2 = vmul.f32 %v3682_v15, %v2951_v14  ;;  %v11721_v12 = vld [vmem:[#allocation95_spill] sm:$0xff] }
 0xa2c   :  { %v9972_v4 = vadd.f32 %v2965_v58, %v2964_v54  ;;  %v2953_v44 = vadd.f32 %v3682_v15, %v2952_v2 }
 0xa2e   :  { %3685 = vtanh.f32 %v9972_v4  ;;  %v2957_v8 = vsel %vm2956_vm13, %v3682_v15, %v2953_v44  ;;  %v11754_v15 = vld [vmem:[#allocation128_spill] sm:$0xff] }
 0xa2f   :  { %v2962_v27 = vsel %vm2959_vm14, %v2961_v17, %v2957_v8 }
 0xa34   :  { %v3686_v31 = vpop.eup %3685 }
 0xa35   :  { %v2968_v33 = vmul.f32 %v3686_v31, %v2962_v27 }
 0xa37   :  { %2985 = vmatmul.f32.vlgmr.msrb.gmra.mxu0 %v2968_v33  ;;  %3005 = vmatmul.f32.vlgmr.msrb.gmra.mxu1 %v2968_v33 }
 0xa38   :  { %3025 = vmatmul.f32.vlgmr.msrb.gmra.mxu2 %v2968_v33  ;;  %3045 = vmatmul.f32.vlgmr.msrb.gmra.mxu3 %v2968_v33 }
 0xa39   :  { %3213 = vmatpush.msrb.mxu0 %v9426_v42  ;;  %3233 = vmatpush.msrb.mxu1 %v9432_v61  ;;  %v11722_v42 = vld [vmem:[#allocation96_spill] sm:$0xff]  ;;  %v11723_v61 = vld [vmem:[#allocation97_spill] sm:$0xff] }
 0xa3a   :  { %3253 = vmatpush.msrb.mxu2 %v9438_v35  ;;  %3273 = vmatpush.msrb.mxu3 %v9444_v26  ;;  %v11724_v35 = vld [vmem:[#allocation98_spill] sm:$0xff]  ;;  %v11725_v26 = vld [vmem:[#allocation99_spill] sm:$0xff] }
 0xa3b   :  { %3214 = vmatpush.msrb.mxu0 %v9450_v56  ;;  %3234 = vmatpush.msrb.mxu1 %v9456_v37  ;;  %v11726_v56 = vld [vmem:[#allocation100_spill] sm:$0xff]  ;;  %v11727_v37 = vld [vmem:[#allocation101_spill] sm:$0xff] }
 0xa3c   :  { %3254 = vmatpush.msrb.mxu2 %v9462_v34  ;;  %3274 = vmatpush.msrb.mxu3 %v9468_v49  ;;  %v11728_v34 = vld [vmem:[#allocation102_spill] sm:$0xff]  ;;  %v11729_v49 = vld [vmem:[#allocation103_spill] sm:$0xff] }
 0xa3d   :  { %3215 = vmatpush.msrb.mxu0 %v9474_v0  ;;  %3235 = vmatpush.msrb.mxu1 %v9480_v19  ;;  %v11730_v0 = vld [vmem:[#allocation104_spill] sm:$0xff]  ;;  %v11731_v19 = vld [vmem:[#allocation105_spill] sm:$0xff] }
 0xa3e   :  { %3255 = vmatpush.msrb.mxu2 %v9486_v47  ;;  %3275 = vmatpush.msrb.mxu3 %v9492_v51  ;;  %v11732_v47 = vld [vmem:[#allocation106_spill] sm:$0xff]  ;;  %v11733_v51 = vld [vmem:[#allocation107_spill] sm:$0xff] }
 0xa3f   :  { %3067 = vmatmul.f32.vlgmr.msra.gmra.mxu0 %v9893_v28  ;;  %3087 = vmatmul.f32.vlgmr.msra.gmra.mxu1 %v9893_v28 }
 0xa40   :  { %3107 = vmatmul.f32.vlgmr.msra.gmra.mxu2 %v9893_v28  ;;  %3127 = vmatmul.f32.vlgmr.msra.gmra.mxu3 %v9893_v28  ;;  %v11744_v28 = vld [vmem:[#allocation118_spill] sm:$0xff] }
 0xa41   :  { %3216 = vmatpush.msrb.mxu0 %v9502_v48  ;;  %3236 = vmatpush.msrb.mxu1 %v9508_v5  ;;  %v11734_v48 = vld [vmem:[#allocation108_spill] sm:$0xff]  ;;  %v11735_v5 = vld [vmem:[#allocation109_spill] sm:$0xff] }
 0xa42   :  { %3256 = vmatpush.msrb.mxu2 %v9514_v46  ;;  %3276 = vmatpush.msrb.mxu3 %v9520_v23  ;;  %v11736_v46 = vld [vmem:[#allocation110_spill] sm:$0xff]  ;;  %v11737_v23 = vld [vmem:[#allocation111_spill] sm:$0xff] }
 0xa43   :  { %3217 = vmatpush.msrb.mxu0 %v9526_v36  ;;  %3237 = vmatpush.msrb.mxu1 %v9532_v63  ;;  %v11738_v36 = vld [vmem:[#allocation112_spill] sm:$0xff]  ;;  %v11739_v63 = vld [vmem:[#allocation113_spill] sm:$0xff] }
 0xa44   :  { %3257 = vmatpush.msrb.mxu2 %v9538_v10  ;;  %3277 = vmatpush.msrb.mxu3 %v9544_v53  ;;  %v11740_v10 = vld [vmem:[#allocation114_spill] sm:$0xff]  ;;  %v11741_v53 = vld [vmem:[#allocation115_spill] sm:$0xff] }
 0xa45   :  { %3218 = vmatpush.msrb.mxu0 %v9550_v62  ;;  %3238 = vmatpush.msrb.mxu1 %v9556_v11  ;;  %v11742_v62 = vld [vmem:[#allocation116_spill] sm:$0xff]  ;;  %v11743_v11 = vld [vmem:[#allocation117_spill] sm:$0xff] }
 0xa46   :  { %3258 = vmatpush.msrb.mxu2 %v11721_v12  ;;  %3278 = vmatpush.msrb.mxu3 %v11722_v42 }
 0xa47   :  { %3219 = vmatpush.msrb.mxu0 %v11723_v61  ;;  %3239 = vmatpush.msrb.mxu1 %v11724_v35 }
 0xa48   :  { %3259 = vmatpush.msrb.mxu2 %v11725_v26  ;;  %3279 = vmatpush.msrb.mxu3 %v11726_v56 }
 0xa49   :  { %3220 = vmatpush.msrb.mxu0 %v11727_v37  ;;  %3240 = vmatpush.msrb.mxu1 %v11728_v34 }
 0xa4a   :  { %3260 = vmatpush.msrb.mxu2 %v11729_v49  ;;  %3280 = vmatpush.msrb.mxu3 %v11730_v0 }
 0xa4b   :  { %3221 = vmatpush.msrb.mxu0 %v11731_v19  ;;  %3241 = vmatpush.msrb.mxu1 %v11732_v47 }
 0xa4c   :  { %3261 = vmatpush.msrb.mxu2 %v11733_v51  ;;  %3281 = vmatpush.msrb.mxu3 %v11734_v48 }
 0xa4d   :  { %3222 = vmatpush.msrb.mxu0 %v11735_v5  ;;  %3242 = vmatpush.msrb.mxu1 %v11736_v46 }
 0xa4e   :  { %3262 = vmatpush.msrb.mxu2 %v11737_v23  ;;  %3282 = vmatpush.msrb.mxu3 %v11738_v36 }
 0xa4f   :  { %3223 = vmatpush.msrb.mxu0 %v11739_v63  ;;  %3243 = vmatpush.msrb.mxu1 %v11740_v10 }
 0xa50   :  { %3263 = vmatpush.msrb.mxu2 %v11741_v53  ;;  %3283 = vmatpush.msrb.mxu3 %v11742_v62 }
 0xa51   :  { %3224 = vmatpush.msrb.mxu0 %v11743_v11  ;;  %3244 = vmatpush.msrb.mxu1 %v11744_v28 }
 0xa52   :  { %3264 = vmatpush.msrb.mxu2 %v11745_v57  ;;  %3284 = vmatpush.msrb.mxu3 %v11746_v1 }
 0xa53   :  { %3225 = vmatpush.msrb.mxu0 %v11747_v30  ;;  %3245 = vmatpush.msrb.mxu1 %v11748_v45 }
 0xa54   :  { %3265 = vmatpush.msrb.mxu2 %v11749_v22  ;;  %3285 = vmatpush.msrb.mxu3 %v11750_v43 }
 0xa55   :  { %3226 = vmatpush.msrb.mxu0 %v11751_v50  ;;  %3246 = vmatpush.msrb.mxu1 %v11752_v60 }
 0xa56   :  { %3266 = vmatpush.msrb.mxu2 %v11753_v18  ;;  %3286 = vmatpush.msrb.mxu3 %v11754_v15 }
 0xa57   :  { %3227 = vmatpush.msrb.mxu0 %v11755_v52  ;;  %3247 = vmatpush.msrb.mxu1 %v11756_v24 }
 0xa58   :  { %3267 = vmatpush.msrb.mxu2 %v11757_v9  ;;  %3287 = vmatpush.msrb.mxu3 %v11758_v39 }
 0xa59   :  { %3228 = vmatpush.msrb.mxu0 %v9790_v29  ;;  %3248 = vmatpush.msrb.mxu1 %v9796_v59  ;;  %v3454_v59 = vld [vmem:[%s10124_s0 + $0x38] sm:$0xff] }
 0xa5a   :  { %3268 = vmatpush.msrb.mxu2 %v11759_v32  ;;  %3288 = vmatpush.msrb.mxu3 %v11760_v41 }
 0xab4   :  { %v10043_v3 = vpop.f32.mrf.mxu1  ;;  %v10045_v40 = vpop.f32.mrf.mxu0 }
 0xabb   :  { %v10047_v16 = vpop.f32.mrf.mxu2  ;;  %v10049_v14 = vpop.f32.mrf.mxu3 }
 0xabc   :  { %v3088_v21 = vpop.f32.mrf.mxu1  ;;  %v3068_v38 = vpop.f32.mrf.mxu0 }
 0xabd   :  { %v3135_v58 = vrot.slane %v3088_v21, 6 }
 0xabf   :  { %v3138_v6 = vsel %vm398_vm1, %v3068_v38, %v3135_v58  ;;  %v3374_v38 = vld [vmem:[%s10126_s5 + $0x70] sm:$0xff] }
 0xac3   :  { %v3108_v54 = vpop.f32.mrf.mxu2  ;;  %v3128_v2 = vpop.f32.mrf.mxu3 }
 0xac4   :  { %v3136_v44 = vrot.slane %v3108_v54, 4  ;;  %v3137_v29 = vrot.slane %v3128_v2, 2 }
 0xac6   :  { %v3139_v8 = vsel %vm400_vm0, %v3136_v44, %v3137_v29 }
 0xac7   :  { %v3140_v17 = vsel %vm402_vm2, %v3138_v6, %v3139_v8  ;;  %v3372_v6 = vld [vmem:[%s10126_s5 + $0x60] sm:$0xff]  ;;  %v3371_v8 = vld [vmem:[%s10126_s5 + $0x58] sm:$0xff] }
 0xac8   :  { %v3142_v31 = vadd.f32 %v3454_v59, %v3140_v17  ;;  %v3373_v59 = vld [vmem:[%s10126_s5 + $0x68] sm:$0xff]  ;;  %v3370_v17 = vld [vmem:[%s10126_s5 + $0x50] sm:$0xff] }
 0xaca   :  { %v3455_v27 = vmul.f32 -1.442695, %v3142_v31  ;;  %v3163_v33 = vrot.slane %v3142_v31, 2  ;;  %v3187_v12 = vrot.slane %v3142_v31, 6  ;;  %v3184_v51 = vrot.slane %v3142_v31, 4  ;;  %v3369_v31 = vld [vmem:[%s10126_s5 + $0x48] sm:$0xff] }
 0xacc   :  { %3687 = vpow2.f32 %v3455_v27  ;;  %v3456_v42 = vmul.f32 -1.442695, %v3163_v33  ;;  %v3457_v61 = vmul.f32 -1.442695, %v3187_v12  ;;  %v3368_v27 = vld [vmem:[%s10126_s5 + $0x40] sm:$0xff] }
 0xace   :  { %3689 = vpow2.f32 %v3456_v42  ;;  %v3367_v42 = vld [vmem:[%s10126_s5 + $0x38] sm:$0xff] }
 0xacf   :  { %3691 = vpow2.f32 %v3457_v61 }
 0xad2   :  { %v3688_v35 = vpop.eup %3687 }
 0xad3   :  { %v3146_v26 = vadd.f32 1.0, %v3688_v35 }
 0xad4   :  { %v3690_v56 = vpop.eup %3689 }
 0xad5   :  { %v3692_v37 = vpop.eup %3691  ;;  %3693 = vrcp.f32 %v3146_v26  ;;  %v3168_v34 = vadd.f32 1.0, %v3690_v56  ;;  %v3158_v23 = vand.u32 2147483648, %v3146_v26  ;;  %v3156_v10 = vand.u32 2147483647, %v3146_v26 }
 0xad6   :  { %v3192_v49 = vadd.f32 1.0, %v3692_v37  ;;  %vm3152_vm1 = vweird.f32 %v3146_v26 }
 0xad7   :  { %3695 = vrcp.f32 %v3168_v34  ;;  %v3180_v62 = vand.u32 2147483648, %v3168_v34  ;;  %v3178_v57 = vand.u32 2147483647, %v3168_v34  ;;  %v3159_v1 = vor.u32 1.1754944e-38, %v3158_v23 }
 0xad8   :  { %3697 = vrcp.f32 %v3192_v49  ;;  %vm3157_vm3 = vcmp.eq.f32.partialorder %v3156_v10, 8.507059e+37  ;;  %vm3174_vm4 = vweird.f32 %v3168_v34  ;;  %v3204_v41 = vand.u32 2147483648, %v3192_v49 }
 0xad9   :  { %3699 = vtanh.f32 %v3184_v51  ;;  %v3181_v50 = vor.u32 1.1754944e-38, %v3180_v62  ;;  %vm3179_vm6 = vcmp.eq.f32.partialorder %v3178_v57, 8.507059e+37  ;;  %vm3198_vm8 = vweird.f32 %v3192_v49  ;;  %v3361_v51 = vld [vmem:[%s10126_s5 + $0x8] sm:$0xff] }
 0xada   :  { %v3202_v21 = vand.u32 2147483647, %v3192_v49  ;;  %v3205_v54 = vor.u32 1.1754944e-38, %v3204_v41 }
 0xadb   :  { %v3694_v0 = vpop.eup %3693 }
 0xadc   :  { %v3148_v19 = vmul.f32 %v3694_v0, %v3146_v26  ;;  %vm3153_vm0 = vweird.f32 %v3694_v0  ;;  %vm3203_vm10 = vcmp.eq.f32.partialorder %v3202_v21, 8.507059e+37  ;;  %v3366_v26 = vld [vmem:[%s10126_s5 + $0x30] sm:$0xff] }
 0xadd   :  { %v3696_v47 = vpop.eup %3695  ;;  %vm3154_vm15 = vmor %vm3152_vm1, %vm3153_vm0 }
 0xade   :  { %v3698_v48 = vpop.eup %3697  ;;  %v3149_v5 = vsub.f32 1.0, %v3148_v19  ;;  %v3170_v46 = vmul.f32 %v3696_v47, %v3168_v34  ;;  %vm3175_vm2 = vweird.f32 %v3696_v47  ;;  %v3365_v34 = vld [vmem:[%s10126_s5 + $0x28] sm:$0xff]  ;;  %v3362_v19 = vld [vmem:[%s10126_s5 + $0x10] sm:$0xff] }
 0xadf   :  { %v3194_v36 = vmul.f32 %v3698_v48, %v3192_v49  ;;  %vm3176_vm5 = vmor %vm3174_vm4, %vm3175_vm2  ;;  %v3700_v18 = vpop.eup %3699  ;;  %vm3199_vm7 = vweird.f32 %v3698_v48 }
 0xae0   :  { %v3150_v63 = vmul.f32 %v3694_v0, %v3149_v5  ;;  %v3171_v53 = vsub.f32 1.0, %v3170_v46  ;;  %vm3200_vm9 = vmor %vm3198_vm8, %vm3199_vm7  ;;  %v3360_v5 = vld [vmem:[%s10126_s5] sm:$0xff]  ;;  %vm3400_vm7 = vcmask 1024  }
 0xae1   :  { %v3195_v30 = vsub.f32 1.0, %v3194_v36 }
 0xae2   :  { %v3151_v11 = vadd.f32 %v3694_v0, %v3150_v63  ;;  %v3172_v28 = vmul.f32 %v3696_v47, %v3171_v53 }
 0xae3   :  { %v3196_v52 = vmul.f32 %v3698_v48, %v3195_v30 }
 0xae4   :  { %v3155_v45 = vsel %vm3154_vm15, %v3694_v0, %v3151_v11  ;;  %v3173_v22 = vadd.f32 %v3696_v47, %v3172_v28 }
 0xae5   :  { %v3160_v43 = vsel %vm3157_vm3, %v3159_v1, %v3155_v45  ;;  %v3197_v32 = vadd.f32 %v3698_v48, %v3196_v52 }
 0xae6   :  { %v3177_v60 = vsel %vm3176_vm5, %v3696_v47, %v3173_v22  ;;  %v3209_v9 = vmul.f32 %v3700_v18, %v3160_v43 }
 0xae7   :  { %v3182_v15 = vsel %vm3179_vm6, %v3181_v50, %v3177_v60  ;;  %v3201_v58 = vsel %vm3200_vm9, %v3698_v48, %v3197_v32 }
 0xae8   :  { %v3208_v24 = vmul.f32 %v3182_v15, %v9890_v55  ;;  %v3206_v44 = vsel %vm3203_vm10, %v3205_v54, %v3201_v58  ;;  %v3375_v55 = vld [vmem:[%s10126_s5 + $0x78] sm:$0xff] }
 0xae9   :  { %3380 = vmatpush.msra.mxu0 %v3375_v55 }
 0xaea   :  { %v3210_v39 = vadd.f32 %v3209_v9, %v3208_v24 }
 0xaeb   :  { %3381 = vmatpush.msra.mxu0 %v3374_v38 }
 0xaec   :  { %3701 = vtanh.f32 %v3210_v39 }
 0xaed   :  { %3382 = vmatpush.msra.mxu0 %v3373_v59 }
 0xaef   :  { %3383 = vmatpush.msra.mxu0 %v3372_v6 }
 0xaf1   :  { %3384 = vmatpush.msra.mxu0 %v3371_v8 }
 0xaf2   :  { %v3702_v2 = vpop.eup %3701 }
 0xaf3   :  { %v3212_v29 = vmul.f32 %v3702_v2, %v3206_v44  ;;  %3385 = vmatpush.msra.mxu0 %v3370_v17 }
 0xaf5   :  { %3229 = vmatmul.f32.vlgmr.msrb.gmra.mxu0 %v3212_v29  ;;  %3249 = vmatmul.f32.vlgmr.msrb.gmra.mxu1 %v3212_v29 }
 0xaf6   :  { %3269 = vmatmul.f32.vlgmr.msrb.gmra.mxu2 %v3212_v29  ;;  %3289 = vmatmul.f32.vlgmr.msrb.gmra.mxu3 %v3212_v29 }
 0xaf7   :  { %3386 = vmatpush.msra.mxu0 %v3369_v31 }
 0xaf9   :  { %3387 = vmatpush.msra.mxu0 %v3368_v27 }
 0xafb   :  { %3388 = vmatpush.msra.mxu0 %v3367_v42 }
 0xafd   :  { %3389 = vmatpush.msra.mxu0 %v3366_v26 }
 0xaff   :  { %3390 = vmatpush.msra.mxu0 %v3365_v34 }
 0xb72   :  { %v3230_v33 = vpop.f32.mrf.mxu0  ;;  %v3250_v12 = vpop.f32.mrf.mxu1 }
 0xb73   :  { %v3231_v61 = vadd.f32 %v3230_v33, %v10045_v40  ;;  %v3251_v35 = vadd.f32 %v3250_v12, %v10043_v3  ;;  %v3364_v3 = vld [vmem:[%s10126_s5 + $0x20] sm:$0xff]  ;;  %v3363_v40 = vld [vmem:[%s10126_s5 + $0x18] sm:$0xff] }
 0xb74   :  { %3391 = vmatpush.msra.mxu0 %v3364_v3 }
 0xb75   :  { %v3293_v56 = vadd.f32 %v3231_v61, %v11717_v7  ;;  %v3294_v37 = vadd.f32 %v3251_v35, %v11718_v20 }
 0xb76   :  { %3392 = vmatpush.msra.mxu0 %v3363_v40 }
 0xb77   :  { %v3458_v49 = vmul.f32 -1.442695, %v3293_v56  ;;  %v3459_v0 = vmul.f32 -1.442695, %v3294_v37 }
 0xb78   :  { %3393 = vmatpush.msra.mxu0 %v3362_v19 }
 0xb79   :  { %3703 = vpow2.f32 %v3458_v49  ;;  %v3290_v7 = vpop.f32.mrf.mxu3  ;;  %v3270_v63 = vpop.f32.mrf.mxu2 }
 0xb7a   :  { %3705 = vpow2.f32 %v3459_v0  ;;  %v3291_v20 = vadd.f32 %v3290_v7, %v10049_v14  ;;  %3394 = vmatpush.msra.mxu0 %v3361_v51  ;;  %v3271_v10 = vadd.f32 %v3270_v63, %v10047_v16 }
 0xb7c   :  { %v3296_v47 = vadd.f32 %v3291_v20, %v11719_v25  ;;  %3395 = vmatpush.msra.mxu0 %v3360_v5  ;;  %v12_v25 = vstv %s10127_s6  ;;  %v3295_v28 = vadd.f32 %v3271_v10, %v11720_v13 }
 0xb7d   :  { %13 = vst [vmem:[#allocation2] sm:$0x1] %v12_v25 }
 0xb7e   :  { %v3460_v48 = vmul.f32 -1.442695, %v3296_v47 }
 0xb7f   :  { %v3704_v46 = vpop.eup %3703 }
 0xb80   :  { %v3706_v14 = vpop.eup %3705  ;;  %v3300_v23 = vadd.f32 1.0, %v3704_v46  ;;  %3707 = vpow2.f32 %v3460_v48 }
 0xb81   :  { %v3319_v36 = vadd.f32 1.0, %v3706_v14 }
 0xb82   :  { %3709 = vrcp.f32 %v3300_v23  ;;  %v3312_v43 = vand.u32 2147483648, %v3300_v23  ;;  %v3310_v18 = vand.u32 2147483647, %v3300_v23  ;;  %vm3306_vm13 = vweird.f32 %v3300_v23 }
 0xb83   :  { %3711 = vrcp.f32 %v3319_v36  ;;  %v3331_v50 = vand.u32 2147483648, %v3319_v36  ;;  %v3329_v16 = vand.u32 2147483647, %v3319_v36  ;;  %vm3325_vm14 = vweird.f32 %v3319_v36 }
 0xb84   :  { %v3313_v13 = vor.u32 1.1754944e-38, %v3312_v43  ;;  %vm3311_vm2 = vcmp.eq.f32.partialorder %v3310_v18, 8.507059e+37  ;;  %v3462_v61 = vld [vmem:[#allocation2] ss:$0 sm:$0xff] }
 0xb85   :  { %v3332_v32 = vor.u32 1.1754944e-38, %v3331_v50  ;;  %vm3330_vm15 = vcmp.eq.f32.partialorder %v3329_v16, 8.507059e+37 }
 0xb86   :  { %v3708_v53 = vpop.eup %3707 }
 0xb87   :  { %v3339_v62 = vadd.f32 1.0, %v3708_v53 }
 0xb88   :  { %v3710_v11 = vpop.eup %3709 }
 0xb89   :  { %v3712_v57 = vpop.eup %3711  ;;  %v3302_v1 = vmul.f32 %v3710_v11, %v3300_v23  ;;  %3713 = vrcp.f32 %v3339_v62  ;;  %vm3307_vm11 = vweird.f32 %v3710_v11  ;;  %v3351_v8 = vand.u32 2147483648, %v3339_v62 }
 0xb8a   :  { %v3321_v30 = vmul.f32 %v3712_v57, %v3319_v36  ;;  %3715 = vtanh.f32 %v3295_v28  ;;  %vm3326_vm12 = vweird.f32 %v3712_v57  ;;  %vm3308_vm0 = vmor %vm3306_vm13, %vm3307_vm11  ;;  %vm3345_vm4 = vweird.f32 %v3339_v62 }
 0xb8b   :  { %v3303_v45 = vsub.f32 1.0, %v3302_v1  ;;  %vm3327_vm1 = vmor %vm3325_vm14, %vm3326_vm12  ;;  %v3349_v17 = vand.u32 2147483647, %v3339_v62  ;;  %v3352_v27 = vor.u32 1.1754944e-38, %v3351_v8 }
 0xb8c   :  { %v3322_v22 = vsub.f32 1.0, %v3321_v30 }
 0xb8d   :  { %v3304_v60 = vmul.f32 %v3710_v11, %v3303_v45  ;;  %vm3350_vm6 = vcmp.eq.f32.partialorder %v3349_v17, 8.507059e+37 }
 0xb8e   :  { %v3323_v15 = vmul.f32 %v3712_v57, %v3322_v22 }
 0xb8f   :  { %v3714_v52 = vpop.eup %3713  ;;  %v3305_v24 = vadd.f32 %v3710_v11, %v3304_v60 }
 0xb90   :  { %v3324_v9 = vadd.f32 %v3712_v57, %v3323_v15  ;;  %v3341_v39 = vmul.f32 %v3714_v52, %v3339_v62  ;;  %v3716_v21 = vpop.eup %3715  ;;  %vm3346_vm3 = vweird.f32 %v3714_v52 }
 0xb91   :  { %v3309_v41 = vsel %vm3308_vm0, %v3710_v11, %v3305_v24  ;;  %vm3347_vm5 = vmor %vm3345_vm4, %vm3346_vm3 }
 0xb92   :  { %v3314_v58 = vsel %vm3311_vm2, %v3313_v13, %v3309_v41  ;;  %v3328_v54 = vsel %vm3327_vm1, %v3712_v57, %v3324_v9  ;;  %v3342_v2 = vsub.f32 1.0, %v3341_v39 }
 0xb93   :  { %v3333_v44 = vsel %vm3330_vm15, %v3332_v32, %v3328_v54  ;;  %v3356_v29 = vmul.f32 %v3716_v21, %v3314_v58 }
 0xb94   :  { %v3355_v55 = vmul.f32 %v3333_v44, %v9972_v4  ;;  %v3343_v38 = vmul.f32 %v3714_v52, %v3342_v2 }
 0xb96   :  { %v3357_v59 = vadd.f32 %v3356_v29, %v3355_v55  ;;  %v3344_v6 = vadd.f32 %v3714_v52, %v3343_v38 }
 0xb98   :  { %3717 = vtanh.f32 %v3357_v59  ;;  %v3348_v31 = vsel %vm3347_vm5, %v3714_v52, %v3344_v6 }
 0xb99   :  { %v3353_v12 = vsel %vm3350_vm6, %v3352_v27, %v3348_v31 }
 0xb9e   :  { %v3718_v33 = vpop.eup %3717 }
 0xb9f   :  { %v3359_v42 = vmul.f32 %v3718_v33, %v3353_v12 }
 0xba1   :  { %3396 = vmatmul.f32.vlgmr.msra.gmra.mxu0 %v3359_v42 }
 0xc1e   :  { %v3397_v35 = vpop.f32.mrf.mxu0 }
 0xc1f   :  { %v3398_v4 = vadd.f32 %v3462_v61, %v3397_v35 }
 0xc21   :  { %3401 = vst.msk [vmem:[%s10128_s7] sm:$0x3] %vm3400_vm7, %v3398_v4 }

</bundles_post_ra>
